<compile_context>
chip_gen: v7x
topology: tpu7x:2x2x1
jax: 0.10.0
libtpu: 0.0.40
codegen_flags: <defaults>
</compile_context>

<pallas_src>
import numpy as np
import jax
import jax.numpy as jnp
from jax.experimental import pallas as pl
from jax.experimental.pallas import tpu as pltpu

EMBED_DIM = 256     # hardcoded in Head.__init__
DECODER_DIM = 128
NUM_CLASSES = 2
LEAKY_SLOPE = 0.2


# ----------------------------------------------------------------------------
# Bilinear upsample as a right matmul: X_hi = X_lo @ R,  R = kron(A_h, A_w)^T
# ----------------------------------------------------------------------------
def _bilinear_matrix_1d(n_in, n_out):
    """Half-pixel (align_corners=False) 1-D bilinear weights, shape (out, in)."""
    a = np.zeros((n_out, n_in), dtype=np.float32)
    if n_in == 1:
        a[:, 0] = 1.0
        return a
    scale = n_in / n_out
    for i in range(n_out):
        src = (i + 0.5) * scale - 0.5
        src = min(max(src, 0.0), n_in - 1.0)
        i0 = int(np.floor(src))
        i1 = min(i0 + 1, n_in - 1)
        f = src - i0
        a[i, i0] += 1.0 - f
        a[i, i1] += f
    return a


def _resize_matrix(h_in, w_in, h_out, w_out):
    """(hw_in, hw_out) matrix such that flat_hi = flat_lo @ R (row-major HW)."""
    a = _bilinear_matrix_1d(h_in, h_out)            # (h_out, h_in)
    b = _bilinear_matrix_1d(w_in, w_out)            # (w_out, w_in)
    r = np.kron(a, b)                                # (hw_out, hw_in)
    # weights are power-of-two fractions for integer scale factors -> exact bf16
    return jnp.asarray(r.T, dtype=jnp.bfloat16)      # (hw_in, hw_out)


# ----------------------------------------------------------------------------
# The mega-kernel: whole Head forward for one batch item.
# ----------------------------------------------------------------------------
def _leaky(y, slope=LEAKY_SLOPE):
    return jnp.maximum(y, slope * y)


def _head_kernel(
    # per-batch activations, channel-major (C, HW), bf16
    c1_ref, c2_ref, c3_ref, c4_ref, fi_ref, fs_ref,
    # MLP projections (nn.Linear): w (256, Cin) bf16, b (256, 1) f32
    wl1_ref, bl1_ref, wl2_ref, bl2_ref, wl3_ref, bl3_ref, wl4_ref, bl4_ref,
    # Edge module convs 1..3 (1x1 conv + folded BN + LeakyReLU)
    we1_ref, se1_ref, te1_ref,
    we2_ref, se2_ref, te2_ref,
    we3_ref, se3_ref, te3_ref,
    # Edge fuse conv + bilinear interp matrices for the c2/c3 branches
    wef_ref, sef_ref, tef_ref, r2_ref, r3_ref,
    # Seg modules: per-branch feat halves of the fuse conv, stacked c4 half,
    # bilinear interp matrix for c4
    wif_ref, si_ref, ti_ref, wsf_ref, ss_ref, ts_ref, wc4_ref, r4_ref,
    # conv_fuse + all four packed prediction heads (block-diagonal)
    wcf_ref, scf_ref, tcf_ref, wpred_ref, bpred_ref,
    # output: (8, HW) = [seg_final | seg_img_coarse | seg_sn_coarse | edge]
    out_ref,
    # VMEM scratch slabs for K-packed concat convs
    ecat_ref, fcat_ref,
):
    f32 = jnp.float32
    bf16 = jnp.bfloat16

    def proj(w_ref, b_ref, x_ref):
        y = jnp.dot(w_ref[...], x_ref[0], preferred_element_type=f32)
        return (y + b_ref[...]).astype(bf16)

    def convbn(w_ref, s_ref, t_ref, x):
        y = jnp.dot(w_ref[...], x, preferred_element_type=f32)
        return _leaky(y * s_ref[...] + t_ref[...])

    # ---- MLP projections (nn.Linear over channels, channel-major) ----------
    c1e = proj(wl1_ref, bl1_ref, c1_ref)                    # (256, HW1)
    c2e = proj(wl2_ref, bl2_ref, c2_ref)                    # (256, HW2)
    c3e = proj(wl3_ref, bl3_ref, c3_ref)                    # (256, HW3)
    c4e = proj(wl4_ref, bl4_ref, c4_ref)                    # (256, HW4)

    # ---- Edge module: conv at native res, upsample via matmul, fused fuse --
    f1 = convbn(we1_ref, se1_ref, te1_ref, c1e).astype(bf16)          # (128, HW1)
    f2 = convbn(we2_ref, se2_ref, te2_ref, c2e).astype(bf16)          # (128, HW2)
    f3 = convbn(we3_ref, se3_ref, te3_ref, c3e).astype(bf16)          # (128, HW3)
    f2u = jnp.dot(f2, r2_ref[...], preferred_element_type=f32).astype(bf16)
    f3u = jnp.dot(f3, r3_ref[...], preferred_element_type=f32).astype(bf16)

    ecat_ref[0:DECODER_DIM, :] = f1
    ecat_ref[DECODER_DIM:2 * DECODER_DIM, :] = f2u
    ecat_ref[2 * DECODER_DIM:3 * DECODER_DIM, :] = f3u
    edge_feat = convbn(wef_ref, sef_ref, tef_ref, ecat_ref[...]).astype(bf16)

    # ---- Seg modules (img / sn) share the upsampled c4 ---------------------
    c4u = jnp.dot(c4e, r4_ref[...], preferred_element_type=f32).astype(bf16)
    # single stacked contraction of c4_up for both branches
    c4c = jnp.dot(wc4_ref[...], c4u, preferred_element_type=f32)      # (256, HW1)
    yi = jnp.dot(wif_ref[...], fi_ref[0], preferred_element_type=f32) \
        + c4c[0:DECODER_DIM, :]
    ys = jnp.dot(wsf_ref[...], fs_ref[0], preferred_element_type=f32) \
        + c4c[DECODER_DIM:, :]
    seg_img_feat = _leaky(yi * si_ref[...] + ti_ref[...]).astype(bf16)
    seg_sn_feat = _leaky(ys * ss_ref[...] + ts_ref[...]).astype(bf16)

    # ---- conv_fuse over concat([seg_img_feat, seg_sn_feat, edge_feat]) -----
    fcat_ref[DECODER_DIM:2 * DECODER_DIM, :] = seg_img_feat
    fcat_ref[2 * DECODER_DIM:3 * DECODER_DIM, :] = seg_sn_feat
    fcat_ref[3 * DECODER_DIM:4 * DECODER_DIM, :] = edge_feat
    fuse_feat = convbn(wcf_ref, scf_ref, tcf_ref,
                       fcat_ref[DECODER_DIM:, :]).astype(bf16)
    fcat_ref[0:DECODER_DIM, :] = fuse_feat

    # ---- all four 2-class heads as one block-diagonal matmul ---------------
    preds = jnp.dot(wpred_ref[...], fcat_ref[...],
                    preferred_element_type=f32) + bpred_ref[...]
    out_ref[0] = preds.astype(out_ref.dtype)                          # (8, HW1)


# ----------------------------------------------------------------------------
# Forward pass wrapper
# ----------------------------------------------------------------------------
def head_forward(params, inputs, feat_img, feat_sn):
    c1, c2, c3, c4 = inputs
    n, _, h1, w1 = c1.shape
    hw1 = h1 * w1

    def cm(x):  # NCHW -> (N, C, HW) channel-major, cast to bf16 at the boundary
        b, c, h, w = x.shape
        return x.reshape(b, c, h * w).astype(jnp.bfloat16)

    acts = [cm(c1), cm(c2), cm(c3), cm(c4), cm(feat_img), cm(feat_sn)]

    # bilinear upsamples folded into the kernel as right matmuls
    r2 = _resize_matrix(c2.shape[2], c2.shape[3], h1, w1)
    r3 = _resize_matrix(c3.shape[2], c3.shape[3], h1, w1)
    r4 = _resize_matrix(c4.shape[2], c4.shape[3], h1, w1)

    (wl1, bl1), (wl2, bl2), (wl3, bl3), (wl4, bl4) = params["linear"]
    (we1, se1, te1), (we2, se2, te2), (we3, se3, te3) = params["edge_conv"]
    wef, sef, tef = params["edge_fuse"]
    (wif, si, ti), (wsf, ss, ts) = params["seg_feat"]
    wc4 = params["seg_c4"]
    wcf, scf, tcf = params["conv_fuse"]
    wpred, bpred = params["pred"]

    consts = [wl1, bl1, wl2, bl2, wl3, bl3, wl4, bl4,
              we1, se1, te1, we2, se2, te2, we3, se3, te3,
              wef, sef, tef, r2, r3,
              wif, si, ti, wsf, ss, ts, wc4, r4,
              wcf, scf, tcf, wpred, bpred]

    act_specs = [pl.BlockSpec((1,) + tuple(a.shape[1:]), lambda i: (i, 0, 0))
                 for a in acts]
    const_specs = [pl.BlockSpec(tuple(c.shape), lambda i: (0, 0)) for c in consts]

    out = pl.pallas_call(
        _head_kernel,
        out_shape=jax.ShapeDtypeStruct((n, 4 * NUM_CLASSES, hw1), jnp.float32),
        grid=(n,),
        in_specs=act_specs + const_specs,
        out_specs=pl.BlockSpec((1, 4 * NUM_CLASSES, hw1), lambda i: (i, 0, 0)),
        scratch_shapes=[pltpu.VMEM((3 * DECODER_DIM, hw1), jnp.bfloat16),
                        pltpu.VMEM((4 * DECODER_DIM, hw1), jnp.bfloat16)],
        compiler_params=pltpu.CompilerParams(
            dimension_semantics=("parallel",)),
    )(*acts, *consts)

    seg_final = out[:, 0:2].reshape(n, NUM_CLASSES, h1, w1)
    seg_img_coarse = out[:, 2:4].reshape(n, NUM_CLASSES, h1, w1)
    seg_sn_coarse = out[:, 4:6].reshape(n, NUM_CLASSES, h1, w1)
    edge = out[:, 6:8].reshape(n, NUM_CLASSES, h1, w1)
    return seg_final, seg_img_coarse, seg_sn_coarse, edge


# ----------------------------------------------------------------------------
# Parameter construction (deterministic, synthetic); weights (Cout, Cin) bf16,
# folded-BN affine / bias as (Cout, 1) f32, pre-packed into kernel-ready form.
# ----------------------------------------------------------------------------
def _bn_fold(gamma, beta, mean, var, eps=1e-5):
    s = gamma / jnp.sqrt(var + eps)
    t = beta - mean * s
    return s.reshape(-1, 1).astype(jnp.float32), t.reshape(-1, 1).astype(jnp.float32)


def init_conv_bn(key, cin, cout):
    kw, kg, kb, km, kv = jax.random.split(key, 5)
    w = jax.random.normal(kw, (cout, cin), jnp.float32) / jnp.sqrt(float(cin))
    gamma = 1.0 + 0.1 * jax.random.normal(kg, (cout,), jnp.float32)
    beta = 0.1 * jax.random.normal(kb, (cout,), jnp.float32)
    mean = 0.1 * jax.random.normal(km, (cout,), jnp.float32)
    var = jnp.abs(1.0 + 0.1 * jax.random.normal(kv, (cout,), jnp.float32))
    s, t = _bn_fold(gamma, beta, mean, var)
    return {"w": w.astype(jnp.bfloat16), "scale": s, "shift": t}


def init_conv_bias(key, cin, cout):
    kw, kb = jax.random.split(key)
    w = jax.random.normal(kw, (cout, cin), jnp.float32) / jnp.sqrt(float(cin))
    b = 0.1 * jax.random.normal(kb, (cout,), jnp.float32)
    return {"w": w.astype(jnp.bfloat16), "bias": b.reshape(-1, 1).astype(jnp.float32)}


def init_head_params(key, in_channels):
    keys = iter(jax.random.split(key, 20))

    lin = [init_conv_bias(next(keys), cin, EMBED_DIM) for cin in in_channels]
    edge_convs = [init_conv_bn(next(keys), EMBED_DIM, DECODER_DIM) for _ in range(3)]
    edge_fuse = init_conv_bn(next(keys), 3 * DECODER_DIM, DECODER_DIM)
    edge_pred = init_conv_bias(next(keys), DECODER_DIM, NUM_CLASSES)

    seg = []
    for _ in range(2):                       # seg_img, seg_sn
        fuse = init_conv_bn(next(keys), 2 * EMBED_DIM, DECODER_DIM)
        pred = init_conv_bias(next(keys), DECODER_DIM, NUM_CLASSES)
        seg.append((fuse, pred))

    conv_fuse = init_conv_bn(next(keys), 3 * DECODER_DIM, DECODER_DIM)
    seg_pred = init_conv_bias(next(keys), DECODER_DIM, NUM_CLASSES)

    # --- pack into kernel-ready constants -----------------------------------
    # Seg fuse weight splits K over concat([feat, c4_up]); the two c4 halves
    # are stacked so the shared c4 contraction runs once on the MXU.
    seg_feat, seg_c4_parts = [], []
    for fuse, _ in seg:
        w = fuse["w"]
        seg_feat.append((w[:, :EMBED_DIM], fuse["scale"], fuse["shift"]))
        seg_c4_parts.append(w[:, EMBED_DIM:])
    seg_c4 = jnp.concatenate(seg_c4_parts, axis=0)            # (256, 256)

    # All four 2-class prediction heads packed into one block-diagonal matmul
    # over cat([fuse_feat, seg_img_feat, seg_sn_feat, edge_feat]).
    pred_ws = [seg_pred["w"], seg[0][1]["w"], seg[1][1]["w"], edge_pred["w"]]
    pred_bs = [seg_pred["bias"], seg[0][1]["bias"], seg[1][1]["bias"],
               edge_pred["bias"]]
    wpred = jnp.zeros((4 * NUM_CLASSES, 4 * DECODER_DIM), jnp.bfloat16)
    for i, w in enumerate(pred_ws):
        wpred = wpred.at[i * NUM_CLASSES:(i + 1) * NUM_CLASSES,
                         i * DECODER_DIM:(i + 1) * DECODER_DIM].set(w)
    bpred = jnp.concatenate(pred_bs, axis=0)                   # (8, 1)

    return {
        "linear": [(l["w"], l["bias"]) for l in lin],
        "edge_conv": [(c["w"], c["scale"], c["shift"]) for c in edge_convs],
        "edge_fuse": (edge_fuse["w"], edge_fuse["scale"], edge_fuse["shift"]),
        "seg_feat": seg_feat,
        "seg_c4": seg_c4,
        "conv_fuse": (conv_fuse["w"], conv_fuse["scale"], conv_fuse["shift"]),
        "pred": (wpred, bpred),
    }


# ----------------------------------------------------------------------------
if __name__ == "__main__":
    key = jax.random.PRNGKey(0)
    k_in, k_fi, k_fs, k_par = jax.random.split(key, 4)

    batch = 2
    in_channels = [16, 32, 48, 64]                 # small synthetic c1..c4 channels
    spatial = [(16, 16), (8, 8), (4, 4), (2, 2)]   # strides 4/8/16/32, img 64x64

    ks = jax.random.split(k_in, 4)
    inputs = tuple(
        jax.random.normal(ks[i], (batch, in_channels[i], *spatial[i]), jnp.float32)
        for i in range(4))
    h1, w1 = spatial[0]
    feat_img = jax.random.normal(k_fi, (batch, EMBED_DIM, h1, w1), jnp.float32)
    feat_sn = jax.random.normal(k_fs, (batch, EMBED_DIM, h1, w1), jnp.float32)

    params = init_head_params(k_par, in_channels)

    fwd = jax.jit(head_forward)
    seg_final, seg_img_coarse, seg_sn_coarse, edge = fwd(
        params, inputs, feat_img, feat_sn)
    jax.block_until_ready((seg_final, seg_img_coarse, seg_sn_coarse, edge))

    assert seg_final.shape == (batch, NUM_CLASSES, h1, w1), seg_final.shape
    assert seg_img_coarse.shape == (batch, NUM_CLASSES, h1, w1)
    assert seg_sn_coarse.shape == (batch, NUM_CLASSES, h1, w1)
    assert edge.shape == (batch, NUM_CLASSES, h1, w1)
    assert bool(jnp.isfinite(seg_final).all())
    assert bool(jnp.isfinite(edge).all())
    print("KERNEL_OK")
</pallas_src>

<mosaic_0001>
module attributes {stable_mosaic.version = 11 : i64} {
  func.func @_head_kernel(%arg0: i32, %arg1: memref<1x16x256xbf16, #tpu.memory_space<vmem>>, %arg2: memref<1x32x64xbf16, #tpu.memory_space<vmem>>, %arg3: memref<1x48x16xbf16, #tpu.memory_space<vmem>>, %arg4: memref<1x64x4xbf16, #tpu.memory_space<vmem>>, %arg5: memref<1x256x256xbf16, #tpu.memory_space<vmem>>, %arg6: memref<1x256x256xbf16, #tpu.memory_space<vmem>>, %arg7: memref<256x16xbf16, #tpu.memory_space<vmem>>, %arg8: memref<256x1xf32, #tpu.memory_space<vmem>>, %arg9: memref<256x32xbf16, #tpu.memory_space<vmem>>, %arg10: memref<256x1xf32, #tpu.memory_space<vmem>>, %arg11: memref<256x48xbf16, #tpu.memory_space<vmem>>, %arg12: memref<256x1xf32, #tpu.memory_space<vmem>>, %arg13: memref<256x64xbf16, #tpu.memory_space<vmem>>, %arg14: memref<256x1xf32, #tpu.memory_space<vmem>>, %arg15: memref<128x256xbf16, #tpu.memory_space<vmem>>, %arg16: memref<128x1xf32, #tpu.memory_space<vmem>>, %arg17: memref<128x1xf32, #tpu.memory_space<vmem>>, %arg18: memref<128x256xbf16, #tpu.memory_space<vmem>>, %arg19: memref<128x1xf32, #tpu.memory_space<vmem>>, %arg20: memref<128x1xf32, #tpu.memory_space<vmem>>, %arg21: memref<128x256xbf16, #tpu.memory_space<vmem>>, %arg22: memref<128x1xf32, #tpu.memory_space<vmem>>, %arg23: memref<128x1xf32, #tpu.memory_space<vmem>>, %arg24: memref<128x384xbf16, #tpu.memory_space<vmem>>, %arg25: memref<128x1xf32, #tpu.memory_space<vmem>>, %arg26: memref<128x1xf32, #tpu.memory_space<vmem>>, %arg27: memref<64x256xbf16, #tpu.memory_space<vmem>>, %arg28: memref<16x256xbf16, #tpu.memory_space<vmem>>, %arg29: memref<128x256xbf16, #tpu.memory_space<vmem>>, %arg30: memref<128x1xf32, #tpu.memory_space<vmem>>, %arg31: memref<128x1xf32, #tpu.memory_space<vmem>>, %arg32: memref<128x256xbf16, #tpu.memory_space<vmem>>, %arg33: memref<128x1xf32, #tpu.memory_space<vmem>>, %arg34: memref<128x1xf32, #tpu.memory_space<vmem>>, %arg35: memref<256x256xbf16, #tpu.memory_space<vmem>>, %arg36: memref<4x256xbf16, #tpu.memory_space<vmem>>, %arg37: memref<128x384xbf16, #tpu.memory_space<vmem>>, %arg38: memref<128x1xf32, #tpu.memory_space<vmem>>, %arg39: memref<128x1xf32, #tpu.memory_space<vmem>>, %arg40: memref<8x512xbf16, #tpu.memory_space<vmem>>, %arg41: memref<8x1xf32, #tpu.memory_space<vmem>>, %arg42: memref<1x8x256xf32, #tpu.memory_space<vmem>>, %arg43: memref<384x256xbf16, #tpu.memory_space<vmem>>, %arg44: memref<512x256xbf16, #tpu.memory_space<vmem>>) attributes {dimension_semantics = [#tpu.dimension_semantics<parallel>], iteration_bounds = array<i64: 2>, scalar_prefetch = 0 : i64, scratch_operands = 2 : i64, tpu.core_type = #tpu.core_type<tc>, window_params = [{transform_indices = @transform_0, window_bounds = array<i64: 1, 16, 256>}, {transform_indices = @transform_1, window_bounds = array<i64: 1, 32, 64>}, {transform_indices = @transform_2, window_bounds = array<i64: 1, 48, 16>}, {transform_indices = @transform_3, window_bounds = array<i64: 1, 64, 4>}, {transform_indices = @transform_4, window_bounds = array<i64: 1, 256, 256>}, {transform_indices = @transform_5, window_bounds = array<i64: 1, 256, 256>}, {pipeline_mode = #tpu.pipeline_mode<synchronous>, transform_indices = @transform_6, window_bounds = array<i64: 256, 16>}, {pipeline_mode = #tpu.pipeline_mode<synchronous>, transform_indices = @transform_7, window_bounds = array<i64: 256, 1>}, {pipeline_mode = #tpu.pipeline_mode<synchronous>, transform_indices = @transform_8, window_bounds = array<i64: 256, 32>}, {pipeline_mode = #tpu.pipeline_mode<synchronous>, transform_indices = @transform_9, window_bounds = array<i64: 256, 1>}, {pipeline_mode = #tpu.pipeline_mode<synchronous>, transform_indices = @transform_10, window_bounds = array<i64: 256, 48>}, {pipeline_mode = #tpu.pipeline_mode<synchronous>, transform_indices = @transform_11, window_bounds = array<i64: 256, 1>}, {pipeline_mode = #tpu.pipeline_mode<synchronous>, transform_indices = @transform_12, window_bounds = array<i64: 256, 64>}, {pipeline_mode = #tpu.pipeline_mode<synchronous>, transform_indices = @transform_13, window_bounds = array<i64: 256, 1>}, {pipeline_mode = #tpu.pipeline_mode<synchronous>, transform_indices = @transform_14, window_bounds = array<i64: 128, 256>}, {pipeline_mode = #tpu.pipeline_mode<synchronous>, transform_indices = @transform_15, window_bounds = array<i64: 128, 1>}, {pipeline_mode = #tpu.pipeline_mode<synchronous>, transform_indices = @transform_16, window_bounds = array<i64: 128, 1>}, {pipeline_mode = #tpu.pipeline_mode<synchronous>, transform_indices = @transform_17, window_bounds = array<i64: 128, 256>}, {pipeline_mode = #tpu.pipeline_mode<synchronous>, transform_indices = @transform_18, window_bounds = array<i64: 128, 1>}, {pipeline_mode = #tpu.pipeline_mode<synchronous>, transform_indices = @transform_19, window_bounds = array<i64: 128, 1>}, {pipeline_mode = #tpu.pipeline_mode<synchronous>, transform_indices = @transform_20, window_bounds = array<i64: 128, 256>}, {pipeline_mode = #tpu.pipeline_mode<synchronous>, transform_indices = @transform_21, window_bounds = array<i64: 128, 1>}, {pipeline_mode = #tpu.pipeline_mode<synchronous>, transform_indices = @transform_22, window_bounds = array<i64: 128, 1>}, {pipeline_mode = #tpu.pipeline_mode<synchronous>, transform_indices = @transform_23, window_bounds = array<i64: 128, 384>}, {pipeline_mode = #tpu.pipeline_mode<synchronous>, transform_indices = @transform_24, window_bounds = array<i64: 128, 1>}, {pipeline_mode = #tpu.pipeline_mode<synchronous>, transform_indices = @transform_25, window_bounds = array<i64: 128, 1>}, {pipeline_mode = #tpu.pipeline_mode<synchronous>, transform_indices = @transform_26, window_bounds = array<i64: 64, 256>}, {pipeline_mode = #tpu.pipeline_mode<synchronous>, transform_indices = @transform_27, window_bounds = array<i64: 16, 256>}, {pipeline_mode = #tpu.pipeline_mode<synchronous>, transform_indices = @transform_28, window_bounds = array<i64: 128, 256>}, {pipeline_mode = #tpu.pipeline_mode<synchronous>, transform_indices = @transform_29, window_bounds = array<i64: 128, 1>}, {pipeline_mode = #tpu.pipeline_mode<synchronous>, transform_indices = @transform_30, window_bounds = array<i64: 128, 1>}, {pipeline_mode = #tpu.pipeline_mode<synchronous>, transform_indices = @transform_31, window_bounds = array<i64: 128, 256>}, {pipeline_mode = #tpu.pipeline_mode<synchronous>, transform_indices = @transform_32, window_bounds = array<i64: 128, 1>}, {pipeline_mode = #tpu.pipeline_mode<synchronous>, transform_indices = @transform_33, window_bounds = array<i64: 128, 1>}, {pipeline_mode = #tpu.pipeline_mode<synchronous>, transform_indices = @transform_34, window_bounds = array<i64: 256, 256>}, {pipeline_mode = #tpu.pipeline_mode<synchronous>, transform_indices = @transform_35, window_bounds = array<i64: 4, 256>}, {pipeline_mode = #tpu.pipeline_mode<synchronous>, transform_indices = @transform_36, window_bounds = array<i64: 128, 384>}, {pipeline_mode = #tpu.pipeline_mode<synchronous>, transform_indices = @transform_37, window_bounds = array<i64: 128, 1>}, {pipeline_mode = #tpu.pipeline_mode<synchronous>, transform_indices = @transform_38, window_bounds = array<i64: 128, 1>}, {pipeline_mode = #tpu.pipeline_mode<synchronous>, transform_indices = @transform_39, window_bounds = array<i64: 8, 512>}, {pipeline_mode = #tpu.pipeline_mode<synchronous>, transform_indices = @transform_40, window_bounds = array<i64: 8, 1>}, {transform_indices = @transform_41, window_bounds = array<i64: 1, 8, 256>}]} {
    %c0 = arith.constant 0 : index
    %c0_0 = arith.constant 0 : index
    %0 = vector.load %arg7[%c0, %c0_0] : memref<256x16xbf16, #tpu.memory_space<vmem>>, vector<256x16xbf16>
    %c0_1 = arith.constant 0 : index
    %c0_2 = arith.constant 0 : index
    %c0_3 = arith.constant 0 : index
    %1 = vector.load %arg1[%c0_1, %c0_2, %c0_3] : memref<1x16x256xbf16, #tpu.memory_space<vmem>>, vector<1x16x256xbf16>
    %2 = vector.shape_cast %1 : vector<1x16x256xbf16> to vector<16x256xbf16>
    %cst = arith.constant dense<0.000000e+00> : vector<256x256xf32>
    %3 = tpu.matmul %0, %2, %cst {dimension_numbers = #tpu.dot_dimension_numbers<[1], [0], [0], [1], [0, 0, 1, 1], [], []>} : vector<256x16xbf16>, vector<16x256xbf16>, vector<256x256xf32> -> vector<256x256xf32>
    %c0_4 = arith.constant 0 : index
    %c0_5 = arith.constant 0 : index
    %4 = vector.load %arg8[%c0_4, %c0_5] : memref<256x1xf32, #tpu.memory_space<vmem>>, vector<256x1xf32>
    %5 = vector.broadcast %4 : vector<256x1xf32> to vector<256x256xf32>
    %6 = arith.addf %3, %5 : vector<256x256xf32>
    %7 = arith.truncf %6 : vector<256x256xf32> to vector<256x256xbf16>
    %c0_6 = arith.constant 0 : index
    %c0_7 = arith.constant 0 : index
    %8 = vector.load %arg9[%c0_6, %c0_7] : memref<256x32xbf16, #tpu.memory_space<vmem>>, vector<256x32xbf16>
    %c0_8 = arith.constant 0 : index
    %c0_9 = arith.constant 0 : index
    %c0_10 = arith.constant 0 : index
    %9 = vector.load %arg2[%c0_8, %c0_9, %c0_10] : memref<1x32x64xbf16, #tpu.memory_space<vmem>>, vector<1x32x64xbf16>
    %10 = vector.shape_cast %9 : vector<1x32x64xbf16> to vector<32x64xbf16>
    %cst_11 = arith.constant dense<0.000000e+00> : vector<256x64xf32>
    %11 = tpu.matmul %8, %10, %cst_11 {dimension_numbers = #tpu.dot_dimension_numbers<[1], [0], [0], [1], [0, 0, 1, 1], [], []>} : vector<256x32xbf16>, vector<32x64xbf16>, vector<256x64xf32> -> vector<256x64xf32>
    %c0_12 = arith.constant 0 : index
    %c0_13 = arith.constant 0 : index
    %12 = vector.load %arg10[%c0_12, %c0_13] : memref<256x1xf32, #tpu.memory_space<vmem>>, vector<256x1xf32>
    %13 = vector.broadcast %12 : vector<256x1xf32> to vector<256x64xf32>
    %14 = arith.addf %11, %13 : vector<256x64xf32>
    %15 = arith.truncf %14 : vector<256x64xf32> to vector<256x64xbf16>
    %c0_14 = arith.constant 0 : index
    %c0_15 = arith.constant 0 : index
    %16 = vector.load %arg11[%c0_14, %c0_15] : memref<256x48xbf16, #tpu.memory_space<vmem>>, vector<256x48xbf16>
    %c0_16 = arith.constant 0 : index
    %c0_17 = arith.constant 0 : index
    %c0_18 = arith.constant 0 : index
    %17 = vector.load %arg3[%c0_16, %c0_17, %c0_18] : memref<1x48x16xbf16, #tpu.memory_space<vmem>>, vector<1x48x16xbf16>
    %18 = vector.shape_cast %17 : vector<1x48x16xbf16> to vector<48x16xbf16>
    %cst_19 = arith.constant dense<0.000000e+00> : vector<256x16xf32>
    %19 = tpu.matmul %16, %18, %cst_19 {dimension_numbers = #tpu.dot_dimension_numbers<[1], [0], [0], [1], [0, 0, 1, 1], [], []>} : vector<256x48xbf16>, vector<48x16xbf16>, vector<256x16xf32> -> vector<256x16xf32>
    %c0_20 = arith.constant 0 : index
    %c0_21 = arith.constant 0 : index
    %20 = vector.load %arg12[%c0_20, %c0_21] : memref<256x1xf32, #tpu.memory_space<vmem>>, vector<256x1xf32>
    %21 = vector.broadcast %20 : vector<256x1xf32> to vector<256x16xf32>
    %22 = arith.addf %19, %21 : vector<256x16xf32>
    %23 = arith.truncf %22 : vector<256x16xf32> to vector<256x16xbf16>
    %c0_22 = arith.constant 0 : index
    %c0_23 = arith.constant 0 : index
    %24 = vector.load %arg13[%c0_22, %c0_23] : memref<256x64xbf16, #tpu.memory_space<vmem>>, vector<256x64xbf16>
    %c0_24 = arith.constant 0 : index
    %c0_25 = arith.constant 0 : index
    %c0_26 = arith.constant 0 : index
    %25 = vector.load %arg4[%c0_24, %c0_25, %c0_26] : memref<1x64x4xbf16, #tpu.memory_space<vmem>>, vector<1x64x4xbf16>
    %26 = vector.shape_cast %25 : vector<1x64x4xbf16> to vector<64x4xbf16>
    %cst_27 = arith.constant dense<0.000000e+00> : vector<256x4xf32>
    %27 = tpu.matmul %24, %26, %cst_27 {dimension_numbers = #tpu.dot_dimension_numbers<[1], [0], [0], [1], [0, 0, 1, 1], [], []>} : vector<256x64xbf16>, vector<64x4xbf16>, vector<256x4xf32> -> vector<256x4xf32>
    %c0_28 = arith.constant 0 : index
    %c0_29 = arith.constant 0 : index
    %28 = vector.load %arg14[%c0_28, %c0_29] : memref<256x1xf32, #tpu.memory_space<vmem>>, vector<256x1xf32>
    %29 = vector.broadcast %28 : vector<256x1xf32> to vector<256x4xf32>
    %30 = arith.addf %27, %29 : vector<256x4xf32>
    %31 = arith.truncf %30 : vector<256x4xf32> to vector<256x4xbf16>
    %c0_30 = arith.constant 0 : index
    %c0_31 = arith.constant 0 : index
    %32 = vector.load %arg15[%c0_30, %c0_31] : memref<128x256xbf16, #tpu.memory_space<vmem>>, vector<128x256xbf16>
    %cst_32 = arith.constant dense<0.000000e+00> : vector<128x256xf32>
    %33 = tpu.matmul %32, %7, %cst_32 {dimension_numbers = #tpu.dot_dimension_numbers<[1], [0], [0], [1], [0, 0, 1, 1], [], []>} : vector<128x256xbf16>, vector<256x256xbf16>, vector<128x256xf32> -> vector<128x256xf32>
    %c0_33 = arith.constant 0 : index
    %c0_34 = arith.constant 0 : index
    %34 = vector.load %arg16[%c0_33, %c0_34] : memref<128x1xf32, #tpu.memory_space<vmem>>, vector<128x1xf32>
    %35 = vector.broadcast %34 : vector<128x1xf32> to vector<128x256xf32>
    %36 = arith.mulf %33, %35 : vector<128x256xf32>
    %c0_35 = arith.constant 0 : index
    %c0_36 = arith.constant 0 : index
    %37 = vector.load %arg17[%c0_35, %c0_36] : memref<128x1xf32, #tpu.memory_space<vmem>>, vector<128x1xf32>
    %38 = vector.broadcast %37 : vector<128x1xf32> to vector<128x256xf32>
    %39 = arith.addf %36, %38 : vector<128x256xf32>
    %cst_37 = arith.constant 2.000000e-01 : f32
    %40 = vector.broadcast %cst_37 : f32 to vector<128x256xf32>
    %41 = arith.mulf %40, %39 : vector<128x256xf32>
    %42 = arith.maximumf %39, %41 : vector<128x256xf32>
    %43 = arith.truncf %42 : vector<128x256xf32> to vector<128x256xbf16>
    %c0_38 = arith.constant 0 : index
    %c0_39 = arith.constant 0 : index
    %44 = vector.load %arg18[%c0_38, %c0_39] : memref<128x256xbf16, #tpu.memory_space<vmem>>, vector<128x256xbf16>
    %cst_40 = arith.constant dense<0.000000e+00> : vector<128x64xf32>
    %45 = tpu.matmul %44, %15, %cst_40 {dimension_numbers = #tpu.dot_dimension_numbers<[1], [0], [0], [1], [0, 0, 1, 1], [], []>} : vector<128x256xbf16>, vector<256x64xbf16>, vector<128x64xf32> -> vector<128x64xf32>
    %c0_41 = arith.constant 0 : index
    %c0_42 = arith.constant 0 : index
    %46 = vector.load %arg19[%c0_41, %c0_42] : memref<128x1xf32, #tpu.memory_space<vmem>>, vector<128x1xf32>
    %47 = vector.broadcast %46 : vector<128x1xf32> to vector<128x64xf32>
    %48 = arith.mulf %45, %47 : vector<128x64xf32>
    %c0_43 = arith.constant 0 : index
    %c0_44 = arith.constant 0 : index
    %49 = vector.load %arg20[%c0_43, %c0_44] : memref<128x1xf32, #tpu.memory_space<vmem>>, vector<128x1xf32>
    %50 = vector.broadcast %49 : vector<128x1xf32> to vector<128x64xf32>
    %51 = arith.addf %48, %50 : vector<128x64xf32>
    %cst_45 = arith.constant 2.000000e-01 : f32
    %52 = vector.broadcast %cst_45 : f32 to vector<128x64xf32>
    %53 = arith.mulf %52, %51 : vector<128x64xf32>
    %54 = arith.maximumf %51, %53 : vector<128x64xf32>
    %55 = arith.truncf %54 : vector<128x64xf32> to vector<128x64xbf16>
    %c0_46 = arith.constant 0 : index
    %c0_47 = arith.constant 0 : index
    %56 = vector.load %arg21[%c0_46, %c0_47] : memref<128x256xbf16, #tpu.memory_space<vmem>>, vector<128x256xbf16>
    %cst_48 = arith.constant dense<0.000000e+00> : vector<128x16xf32>
    %57 = tpu.matmul %56, %23, %cst_48 {dimension_numbers = #tpu.dot_dimension_numbers<[1], [0], [0], [1], [0, 0, 1, 1], [], []>} : vector<128x256xbf16>, vector<256x16xbf16>, vector<128x16xf32> -> vector<128x16xf32>
    %c0_49 = arith.constant 0 : index
    %c0_50 = arith.constant 0 : index
    %58 = vector.load %arg22[%c0_49, %c0_50] : memref<128x1xf32, #tpu.memory_space<vmem>>, vector<128x1xf32>
    %59 = vector.broadcast %58 : vector<128x1xf32> to vector<128x16xf32>
    %60 = arith.mulf %57, %59 : vector<128x16xf32>
    %c0_51 = arith.constant 0 : index
    %c0_52 = arith.constant 0 : index
    %61 = vector.load %arg23[%c0_51, %c0_52] : memref<128x1xf32, #tpu.memory_space<vmem>>, vector<128x1xf32>
    %62 = vector.broadcast %61 : vector<128x1xf32> to vector<128x16xf32>
    %63 = arith.addf %60, %62 : vector<128x16xf32>
    %cst_53 = arith.constant 2.000000e-01 : f32
    %64 = vector.broadcast %cst_53 : f32 to vector<128x16xf32>
    %65 = arith.mulf %64, %63 : vector<128x16xf32>
    %66 = arith.maximumf %63, %65 : vector<128x16xf32>
    %67 = arith.truncf %66 : vector<128x16xf32> to vector<128x16xbf16>
    %c0_54 = arith.constant 0 : index
    %c0_55 = arith.constant 0 : index
    %68 = vector.load %arg27[%c0_54, %c0_55] : memref<64x256xbf16, #tpu.memory_space<vmem>>, vector<64x256xbf16>
    %cst_56 = arith.constant dense<0.000000e+00> : vector<128x256xf32>
    %69 = tpu.matmul %55, %68, %cst_56 {dimension_numbers = #tpu.dot_dimension_numbers<[1], [0], [0], [1], [0, 0, 1, 1], [], []>} : vector<128x64xbf16>, vector<64x256xbf16>, vector<128x256xf32> -> vector<128x256xf32>
    %70 = arith.truncf %69 : vector<128x256xf32> to vector<128x256xbf16>
    %c0_57 = arith.constant 0 : index
    %c0_58 = arith.constant 0 : index
    %71 = vector.load %arg28[%c0_57, %c0_58] : memref<16x256xbf16, #tpu.memory_space<vmem>>, vector<16x256xbf16>
    %cst_59 = arith.constant dense<0.000000e+00> : vector<128x256xf32>
    %72 = tpu.matmul %67, %71, %cst_59 {dimension_numbers = #tpu.dot_dimension_numbers<[1], [0], [0], [1], [0, 0, 1, 1], [], []>} : vector<128x16xbf16>, vector<16x256xbf16>, vector<128x256xf32> -> vector<128x256xf32>
    %73 = arith.truncf %72 : vector<128x256xf32> to vector<128x256xbf16>
    %c0_60 = arith.constant 0 : index
    %c0_61 = arith.constant 0 : index
    %74 = vector.load %arg43[%c0_60, %c0_61] : memref<384x256xbf16, #tpu.memory_space<vmem>>, vector<128x256xbf16>
    tpu.vector_store %arg43[%c0_60, %c0_61], %43 {strides = array<i32>} : memref<384x256xbf16, #tpu.memory_space<vmem>>, vector<128x256xbf16>,
    %c128 = arith.constant 128 : index
    %c0_62 = arith.constant 0 : index
    %75 = vector.load %arg43[%c128, %c0_62] : memref<384x256xbf16, #tpu.memory_space<vmem>>, vector<128x256xbf16>
    tpu.vector_store %arg43[%c128, %c0_62], %70 {strides = array<i32>} : memref<384x256xbf16, #tpu.memory_space<vmem>>, vector<128x256xbf16>,
    %c256 = arith.constant 256 : index
    %c0_63 = arith.constant 0 : index
    %76 = vector.load %arg43[%c256, %c0_63] : memref<384x256xbf16, #tpu.memory_space<vmem>>, vector<128x256xbf16>
    tpu.vector_store %arg43[%c256, %c0_63], %73 {strides = array<i32>} : memref<384x256xbf16, #tpu.memory_space<vmem>>, vector<128x256xbf16>,
    %c0_64 = arith.constant 0 : index
    %c0_65 = arith.constant 0 : index
    %77 = vector.load %arg43[%c0_64, %c0_65] : memref<384x256xbf16, #tpu.memory_space<vmem>>, vector<384x256xbf16>
    %c0_66 = arith.constant 0 : index
    %c0_67 = arith.constant 0 : index
    %78 = vector.load %arg24[%c0_66, %c0_67] : memref<128x384xbf16, #tpu.memory_space<vmem>>, vector<128x384xbf16>
    %cst_68 = arith.constant dense<0.000000e+00> : vector<128x256xf32>
    %79 = tpu.matmul %78, %77, %cst_68 {dimension_numbers = #tpu.dot_dimension_numbers<[1], [0], [0], [1], [0, 0, 1, 1], [], []>} : vector<128x384xbf16>, vector<384x256xbf16>, vector<128x256xf32> -> vector<128x256xf32>
    %c0_69 = arith.constant 0 : index
    %c0_70 = arith.constant 0 : index
    %80 = vector.load %arg25[%c0_69, %c0_70] : memref<128x1xf32, #tpu.memory_space<vmem>>, vector<128x1xf32>
    %81 = vector.broadcast %80 : vector<128x1xf32> to vector<128x256xf32>
    %82 = arith.mulf %79, %81 : vector<128x256xf32>
    %c0_71 = arith.constant 0 : index
    %c0_72 = arith.constant 0 : index
    %83 = vector.load %arg26[%c0_71, %c0_72] : memref<128x1xf32, #tpu.memory_space<vmem>>, vector<128x1xf32>
    %84 = vector.broadcast %83 : vector<128x1xf32> to vector<128x256xf32>
    %85 = arith.addf %82, %84 : vector<128x256xf32>
    %cst_73 = arith.constant 2.000000e-01 : f32
    %86 = vector.broadcast %cst_73 : f32 to vector<128x256xf32>
    %87 = arith.mulf %86, %85 : vector<128x256xf32>
    %88 = arith.maximumf %85, %87 : vector<128x256xf32>
    %89 = arith.truncf %88 : vector<128x256xf32> to vector<128x256xbf16>
    %c0_74 = arith.constant 0 : index
    %c0_75 = arith.constant 0 : index
    %90 = vector.load %arg36[%c0_74, %c0_75] : memref<4x256xbf16, #tpu.memory_space<vmem>>, vector<4x256xbf16>
    %cst_76 = arith.constant dense<0.000000e+00> : vector<256x256xf32>
    %91 = tpu.matmul %31, %90, %cst_76 {dimension_numbers = #tpu.dot_dimension_numbers<[1], [0], [0], [1], [0, 0, 1, 1], [], []>} : vector<256x4xbf16>, vector<4x256xbf16>, vector<256x256xf32> -> vector<256x256xf32>
    %92 = arith.truncf %91 : vector<256x256xf32> to vector<256x256xbf16>
    %c0_77 = arith.constant 0 : index
    %c0_78 = arith.constant 0 : index
    %93 = vector.load %arg35[%c0_77, %c0_78] : memref<256x256xbf16, #tpu.memory_space<vmem>>, vector<256x256xbf16>
    %cst_79 = arith.constant dense<0.000000e+00> : vector<256x256xf32>
    %94 = tpu.matmul %93, %92, %cst_79 {dimension_numbers = #tpu.dot_dimension_numbers<[1], [0], [0], [1], [0, 0, 1, 1], [], []>} : vector<256x256xbf16>, vector<256x256xbf16>, vector<256x256xf32> -> vector<256x256xf32>
    %c0_80 = arith.constant 0 : index
    %c0_81 = arith.constant 0 : index
    %95 = vector.load %arg29[%c0_80, %c0_81] : memref<128x256xbf16, #tpu.memory_space<vmem>>, vector<128x256xbf16>
    %c0_82 = arith.constant 0 : index
    %c0_83 = arith.constant 0 : index
    %c0_84 = arith.constant 0 : index
    %96 = vector.load %arg5[%c0_82, %c0_83, %c0_84] : memref<1x256x256xbf16, #tpu.memory_space<vmem>>, vector<1x256x256xbf16>
    %97 = vector.shape_cast %96 : vector<1x256x256xbf16> to vector<256x256xbf16>
    %cst_85 = arith.constant dense<0.000000e+00> : vector<128x256xf32>
    %98 = tpu.matmul %95, %97, %cst_85 {dimension_numbers = #tpu.dot_dimension_numbers<[1], [0], [0], [1], [0, 0, 1, 1], [], []>} : vector<128x256xbf16>, vector<256x256xbf16>, vector<128x256xf32> -> vector<128x256xf32>
    %99 = vector.extract_strided_slice %94 {offsets = [0, 0], sizes = [128, 256], strides = [1, 1]} : vector<256x256xf32> to vector<128x256xf32>
    %100 = arith.addf %98, %99 : vector<128x256xf32>
    %c0_86 = arith.constant 0 : index
    %c0_87 = arith.constant 0 : index
    %101 = vector.load %arg32[%c0_86, %c0_87] : memref<128x256xbf16, #tpu.memory_space<vmem>>, vector<128x256xbf16>
    %c0_88 = arith.constant 0 : index
    %c0_89 = arith.constant 0 : index
    %c0_90 = arith.constant 0 : index
    %102 = vector.load %arg6[%c0_88, %c0_89, %c0_90] : memref<1x256x256xbf16, #tpu.memory_space<vmem>>, vector<1x256x256xbf16>
    %103 = vector.shape_cast %102 : vector<1x256x256xbf16> to vector<256x256xbf16>
    %cst_91 = arith.constant dense<0.000000e+00> : vector<128x256xf32>
    %104 = tpu.matmul %101, %103, %cst_91 {dimension_numbers = #tpu.dot_dimension_numbers<[1], [0], [0], [1], [0, 0, 1, 1], [], []>} : vector<128x256xbf16>, vector<256x256xbf16>, vector<128x256xf32> -> vector<128x256xf32>
    %105 = vector.extract_strided_slice %94 {offsets = [128, 0], sizes = [128, 256], strides = [1, 1]} : vector<256x256xf32> to vector<128x256xf32>
    %106 = arith.addf %104, %105 : vector<128x256xf32>
    %c0_92 = arith.constant 0 : index
    %c0_93 = arith.constant 0 : index
    %107 = vector.load %arg30[%c0_92, %c0_93] : memref<128x1xf32, #tpu.memory_space<vmem>>, vector<128x1xf32>
    %108 = vector.broadcast %107 : vector<128x1xf32> to vector<128x256xf32>
    %109 = arith.mulf %100, %108 : vector<128x256xf32>
    %c0_94 = arith.constant 0 : index
    %c0_95 = arith.constant 0 : index
    %110 = vector.load %arg31[%c0_94, %c0_95] : memref<128x1xf32, #tpu.memory_space<vmem>>, vector<128x1xf32>
    %111 = vector.broadcast %110 : vector<128x1xf32> to vector<128x256xf32>
    %112 = arith.addf %109, %111 : vector<128x256xf32>
    %cst_96 = arith.constant 2.000000e-01 : f32
    %113 = vector.broadcast %cst_96 : f32 to vector<128x256xf32>
    %114 = arith.mulf %113, %112 : vector<128x256xf32>
    %115 = arith.maximumf %112, %114 : vector<128x256xf32>
    %116 = arith.truncf %115 : vector<128x256xf32> to vector<128x256xbf16>
    %c0_97 = arith.constant 0 : index
    %c0_98 = arith.constant 0 : index
    %117 = vector.load %arg33[%c0_97, %c0_98] : memref<128x1xf32, #tpu.memory_space<vmem>>, vector<128x1xf32>
    %118 = vector.broadcast %117 : vector<128x1xf32> to vector<128x256xf32>
    %119 = arith.mulf %106, %118 : vector<128x256xf32>
    %c0_99 = arith.constant 0 : index
    %c0_100 = arith.constant 0 : index
    %120 = vector.load %arg34[%c0_99, %c0_100] : memref<128x1xf32, #tpu.memory_space<vmem>>, vector<128x1xf32>
    %121 = vector.broadcast %120 : vector<128x1xf32> to vector<128x256xf32>
    %122 = arith.addf %119, %121 : vector<128x256xf32>
    %cst_101 = arith.constant 2.000000e-01 : f32
    %123 = vector.broadcast %cst_101 : f32 to vector<128x256xf32>
    %124 = arith.mulf %123, %122 : vector<128x256xf32>
    %125 = arith.maximumf %122, %124 : vector<128x256xf32>
    %126 = arith.truncf %125 : vector<128x256xf32> to vector<128x256xbf16>
    %c128_102 = arith.constant 128 : index
    %c0_103 = arith.constant 0 : index
    %127 = vector.load %arg44[%c128_102, %c0_103] : memref<512x256xbf16, #tpu.memory_space<vmem>>, vector<128x256xbf16>
    tpu.vector_store %arg44[%c128_102, %c0_103], %116 {strides = array<i32>} : memref<512x256xbf16, #tpu.memory_space<vmem>>, vector<128x256xbf16>,
    %c256_104 = arith.constant 256 : index
    %c0_105 = arith.constant 0 : index
    %128 = vector.load %arg44[%c256_104, %c0_105] : memref<512x256xbf16, #tpu.memory_space<vmem>>, vector<128x256xbf16>
    tpu.vector_store %arg44[%c256_104, %c0_105], %126 {strides = array<i32>} : memref<512x256xbf16, #tpu.memory_space<vmem>>, vector<128x256xbf16>,
    %c384 = arith.constant 384 : index
    %c0_106 = arith.constant 0 : index
    %129 = vector.load %arg44[%c384, %c0_106] : memref<512x256xbf16, #tpu.memory_space<vmem>>, vector<128x256xbf16>
    tpu.vector_store %arg44[%c384, %c0_106], %89 {strides = array<i32>} : memref<512x256xbf16, #tpu.memory_space<vmem>>, vector<128x256xbf16>,
    %c128_107 = arith.constant 128 : index
    %c0_108 = arith.constant 0 : index
    %130 = vector.load %arg44[%c128_107, %c0_108] : memref<512x256xbf16, #tpu.memory_space<vmem>>, vector<384x256xbf16>
    %c0_109 = arith.constant 0 : index
    %c0_110 = arith.constant 0 : index
    %131 = vector.load %arg37[%c0_109, %c0_110] : memref<128x384xbf16, #tpu.memory_space<vmem>>, vector<128x384xbf16>
    %cst_111 = arith.constant dense<0.000000e+00> : vector<128x256xf32>
    %132 = tpu.matmul %131, %130, %cst_111 {dimension_numbers = #tpu.dot_dimension_numbers<[1], [0], [0], [1], [0, 0, 1, 1], [], []>} : vector<128x384xbf16>, vector<384x256xbf16>, vector<128x256xf32> -> vector<128x256xf32>
    %c0_112 = arith.constant 0 : index
    %c0_113 = arith.constant 0 : index
    %133 = vector.load %arg38[%c0_112, %c0_113] : memref<128x1xf32, #tpu.memory_space<vmem>>, vector<128x1xf32>
    %134 = vector.broadcast %133 : vector<128x1xf32> to vector<128x256xf32>
    %135 = arith.mulf %132, %134 : vector<128x256xf32>
    %c0_114 = arith.constant 0 : index
    %c0_115 = arith.constant 0 : index
    %136 = vector.load %arg39[%c0_114, %c0_115] : memref<128x1xf32, #tpu.memory_space<vmem>>, vector<128x1xf32>
    %137 = vector.broadcast %136 : vector<128x1xf32> to vector<128x256xf32>
    %138 = arith.addf %135, %137 : vector<128x256xf32>
    %cst_116 = arith.constant 2.000000e-01 : f32
    %139 = vector.broadcast %cst_116 : f32 to vector<128x256xf32>
    %140 = arith.mulf %139, %138 : vector<128x256xf32>
    %141 = arith.maximumf %138, %140 : vector<128x256xf32>
    %142 = arith.truncf %141 : vector<128x256xf32> to vector<128x256xbf16>
    %c0_117 = arith.constant 0 : index
    %c0_118 = arith.constant 0 : index
    %143 = vector.load %arg44[%c0_117, %c0_118] : memref<512x256xbf16, #tpu.memory_space<vmem>>, vector<128x256xbf16>
    tpu.vector_store %arg44[%c0_117, %c0_118], %142 {strides = array<i32>} : memref<512x256xbf16, #tpu.memory_space<vmem>>, vector<128x256xbf16>,
    %c0_119 = arith.constant 0 : index
    %c0_120 = arith.constant 0 : index
    %144 = vector.load %arg40[%c0_119, %c0_120] : memref<8x512xbf16, #tpu.memory_space<vmem>>, vector<8x512xbf16>
    %c0_121 = arith.constant 0 : index
    %c0_122 = arith.constant 0 : index
    %145 = vector.load %arg44[%c0_121, %c0_122] : memref<512x256xbf16, #tpu.memory_space<vmem>>, vector<512x256xbf16>
    %cst_123 = arith.constant dense<0.000000e+00> : vector<8x256xf32>
    %146 = tpu.matmul %144, %145, %cst_123 {dimension_numbers = #tpu.dot_dimension_numbers<[1], [0], [0], [1], [0, 0, 1, 1], [], []>} : vector<8x512xbf16>, vector<512x256xbf16>, vector<8x256xf32> -> vector<8x256xf32>
    %c0_124 = arith.constant 0 : index
    %c0_125 = arith.constant 0 : index
    %147 = vector.load %arg41[%c0_124, %c0_125] : memref<8x1xf32, #tpu.memory_space<vmem>>, vector<8x1xf32>
    %148 = vector.broadcast %147 : vector<8x1xf32> to vector<8x256xf32>
    %149 = arith.addf %146, %148 : vector<8x256xf32>
    %c0_126 = arith.constant 0 : index
    %c0_127 = arith.constant 0 : index
    %c0_128 = arith.constant 0 : index
    %150 = vector.load %arg42[%c0_126, %c0_127, %c0_128] : memref<1x8x256xf32, #tpu.memory_space<vmem>>, vector<1x8x256xf32>
    %151 = vector.shape_cast %150 : vector<1x8x256xf32> to vector<8x256xf32>
    %152 = vector.shape_cast %149 : vector<8x256xf32> to vector<1x8x256xf32>
    tpu.vector_store %arg42[%c0_126, %c0_127, %c0_128], %152 {strides = array<i32>} : memref<1x8x256xf32, #tpu.memory_space<vmem>>, vector<1x8x256xf32>,
    return
  }
  func.func @transform_0(%arg0: i32) -> (i32, i32, i32) {
    %c0_i32 = arith.constant 0 : i32
    %c0_i32_0 = arith.constant 0 : i32
    %c0_i32_1 = arith.constant 0 : i32
    return %arg0, %c0_i32, %c0_i32_0 : i32, i32, i32
  }
  func.func @transform_1(%arg0: i32) -> (i32, i32, i32) {
    %c0_i32 = arith.constant 0 : i32
    %c0_i32_0 = arith.constant 0 : i32
    %c0_i32_1 = arith.constant 0 : i32
    return %arg0, %c0_i32, %c0_i32_0 : i32, i32, i32
  }
  func.func @transform_2(%arg0: i32) -> (i32, i32, i32) {
    %c0_i32 = arith.constant 0 : i32
    %c0_i32_0 = arith.constant 0 : i32
    %c0_i32_1 = arith.constant 0 : i32
    return %arg0, %c0_i32, %c0_i32_0 : i32, i32, i32
  }
  func.func @transform_3(%arg0: i32) -> (i32, i32, i32) {
    %c0_i32 = arith.constant 0 : i32
    %c0_i32_0 = arith.constant 0 : i32
    %c0_i32_1 = arith.constant 0 : i32
    return %arg0, %c0_i32, %c0_i32_0 : i32, i32, i32
  }
  func.func @transform_4(%arg0: i32) -> (i32, i32, i32) {
    %c0_i32 = arith.constant 0 : i32
    %c0_i32_0 = arith.constant 0 : i32
    %c0_i32_1 = arith.constant 0 : i32
    return %arg0, %c0_i32, %c0_i32_0 : i32, i32, i32
  }
  func.func @transform_5(%arg0: i32) -> (i32, i32, i32) {
    %c0_i32 = arith.constant 0 : i32
    %c0_i32_0 = arith.constant 0 : i32
    %c0_i32_1 = arith.constant 0 : i32
    return %arg0, %c0_i32, %c0_i32_0 : i32, i32, i32
  }
  func.func @transform_6(%arg0: i32) -> (i32, i32) {
    %c0_i32 = arith.constant 0 : i32
    %c0_i32_0 = arith.constant 0 : i32
    %c0_i32_1 = arith.constant 0 : i32
    return %c0_i32, %c0_i32_0 : i32, i32
  }
  func.func @transform_7(%arg0: i32) -> (i32, i32) {
    %c0_i32 = arith.constant 0 : i32
    %c0_i32_0 = arith.constant 0 : i32
    %c0_i32_1 = arith.constant 0 : i32
    return %c0_i32, %c0_i32_0 : i32, i32
  }
  func.func @transform_8(%arg0: i32) -> (i32, i32) {
    %c0_i32 = arith.constant 0 : i32
    %c0_i32_0 = arith.constant 0 : i32
    %c0_i32_1 = arith.constant 0 : i32
    return %c0_i32, %c0_i32_0 : i32, i32
  }
  func.func @transform_9(%arg0: i32) -> (i32, i32) {
    %c0_i32 = arith.constant 0 : i32
    %c0_i32_0 = arith.constant 0 : i32
    %c0_i32_1 = arith.constant 0 : i32
    return %c0_i32, %c0_i32_0 : i32, i32
  }
  func.func @transform_10(%arg0: i32) -> (i32, i32) {
    %c0_i32 = arith.constant 0 : i32
    %c0_i32_0 = arith.constant 0 : i32
    %c0_i32_1 = arith.constant 0 : i32
    return %c0_i32, %c0_i32_0 : i32, i32
  }
  func.func @transform_11(%arg0: i32) -> (i32, i32) {
    %c0_i32 = arith.constant 0 : i32
    %c0_i32_0 = arith.constant 0 : i32
    %c0_i32_1 = arith.constant 0 : i32
    return %c0_i32, %c0_i32_0 : i32, i32
  }
  func.func @transform_12(%arg0: i32) -> (i32, i32) {
    %c0_i32 = arith.constant 0 : i32
    %c0_i32_0 = arith.constant 0 : i32
    %c0_i32_1 = arith.constant 0 : i32
    return %c0_i32, %c0_i32_0 : i32, i32
  }
  func.func @transform_13(%arg0: i32) -> (i32, i32) {
    %c0_i32 = arith.constant 0 : i32
    %c0_i32_0 = arith.constant 0 : i32
    %c0_i32_1 = arith.constant 0 : i32
    return %c0_i32, %c0_i32_0 : i32, i32
  }
  func.func @transform_14(%arg0: i32) -> (i32, i32) {
    %c0_i32 = arith.constant 0 : i32
    %c0_i32_0 = arith.constant 0 : i32
    %c0_i32_1 = arith.constant 0 : i32
    return %c0_i32, %c0_i32_0 : i32, i32
  }
  func.func @transform_15(%arg0: i32) -> (i32, i32) {
    %c0_i32 = arith.constant 0 : i32
    %c0_i32_0 = arith.constant 0 : i32
    %c0_i32_1 = arith.constant 0 : i32
    return %c0_i32, %c0_i32_0 : i32, i32
  }
  func.func @transform_16(%arg0: i32) -> (i32, i32) {
    %c0_i32 = arith.constant 0 : i32
    %c0_i32_0 = arith.constant 0 : i32
    %c0_i32_1 = arith.constant 0 : i32
    return %c0_i32, %c0_i32_0 : i32, i32
  }
  func.func @transform_17(%arg0: i32) -> (i32, i32) {
    %c0_i32 = arith.constant 0 : i32
    %c0_i32_0 = arith.constant 0 : i32
    %c0_i32_1 = arith.constant 0 : i32
    return %c0_i32, %c0_i32_0 : i32, i32
  }
  func.func @transform_18(%arg0: i32) -> (i32, i32) {
    %c0_i32 = arith.constant 0 : i32
    %c0_i32_0 = arith.constant 0 : i32
    %c0_i32_1 = arith.constant 0 : i32
    return %c0_i32, %c0_i32_0 : i32, i32
  }
  func.func @transform_19(%arg0: i32) -> (i32, i32) {
    %c0_i32 = arith.constant 0 : i32
    %c0_i32_0 = arith.constant 0 : i32
    %c0_i32_1 = arith.constant 0 : i32
    return %c0_i32, %c0_i32_0 : i32, i32
  }
  func.func @transform_20(%arg0: i32) -> (i32, i32) {
    %c0_i32 = arith.constant 0 : i32
    %c0_i32_0 = arith.constant 0 : i32
    %c0_i32_1 = arith.constant 0 : i32
    return %c0_i32, %c0_i32_0 : i32, i32
  }
  func.func @transform_21(%arg0: i32) -> (i32, i32) {
    %c0_i32 = arith.constant 0 : i32
    %c0_i32_0 = arith.constant 0 : i32
    %c0_i32_1 = arith.constant 0 : i32
    return %c0_i32, %c0_i32_0 : i32, i32
  }
  func.func @transform_22(%arg0: i32) -> (i32, i32) {
    %c0_i32 = arith.constant 0 : i32
    %c0_i32_0 = arith.constant 0 : i32
    %c0_i32_1 = arith.constant 0 : i32
    return %c0_i32, %c0_i32_0 : i32, i32
  }
  func.func @transform_23(%arg0: i32) -> (i32, i32) {
    %c0_i32 = arith.constant 0 : i32
    %c0_i32_0 = arith.constant 0 : i32
    %c0_i32_1 = arith.constant 0 : i32
    return %c0_i32, %c0_i32_0 : i32, i32
  }
  func.func @transform_24(%arg0: i32) -> (i32, i32) {
    %c0_i32 = arith.constant 0 : i32
    %c0_i32_0 = arith.constant 0 : i32
    %c0_i32_1 = arith.constant 0 : i32
    return %c0_i32, %c0_i32_0 : i32, i32
  }
  func.func @transform_25(%arg0: i32) -> (i32, i32) {
    %c0_i32 = arith.constant 0 : i32
    %c0_i32_0 = arith.constant 0 : i32
    %c0_i32_1 = arith.constant 0 : i32
    return %c0_i32, %c0_i32_0 : i32, i32
  }
  func.func @transform_26(%arg0: i32) -> (i32, i32) {
    %c0_i32 = arith.constant 0 : i32
    %c0_i32_0 = arith.constant 0 : i32
    %c0_i32_1 = arith.constant 0 : i32
    return %c0_i32, %c0_i32_0 : i32, i32
  }
  func.func @transform_27(%arg0: i32) -> (i32, i32) {
    %c0_i32 = arith.constant 0 : i32
    %c0_i32_0 = arith.constant 0 : i32
    %c0_i32_1 = arith.constant 0 : i32
    return %c0_i32, %c0_i32_0 : i32, i32
  }
  func.func @transform_28(%arg0: i32) -> (i32, i32) {
    %c0_i32 = arith.constant 0 : i32
    %c0_i32_0 = arith.constant 0 : i32
    %c0_i32_1 = arith.constant 0 : i32
    return %c0_i32, %c0_i32_0 : i32, i32
  }
  func.func @transform_29(%arg0: i32) -> (i32, i32) {
    %c0_i32 = arith.constant 0 : i32
    %c0_i32_0 = arith.constant 0 : i32
    %c0_i32_1 = arith.constant 0 : i32
    return %c0_i32, %c0_i32_0 : i32, i32
  }
  func.func @transform_30(%arg0: i32) -> (i32, i32) {
    %c0_i32 = arith.constant 0 : i32
    %c0_i32_0 = arith.constant 0 : i32
    %c0_i32_1 = arith.constant 0 : i32
    return %c0_i32, %c0_i32_0 : i32, i32
  }
  func.func @transform_31(%arg0: i32) -> (i32, i32) {
    %c0_i32 = arith.constant 0 : i32
    %c0_i32_0 = arith.constant 0 : i32
    %c0_i32_1 = arith.constant 0 : i32
    return %c0_i32, %c0_i32_0 : i32, i32
  }
  func.func @transform_32(%arg0: i32) -> (i32, i32) {
    %c0_i32 = arith.constant 0 : i32
    %c0_i32_0 = arith.constant 0 : i32
    %c0_i32_1 = arith.constant 0 : i32
    return %c0_i32, %c0_i32_0 : i32, i32
  }
  func.func @transform_33(%arg0: i32) -> (i32, i32) {
    %c0_i32 = arith.constant 0 : i32
    %c0_i32_0 = arith.constant 0 : i32
    %c0_i32_1 = arith.constant 0 : i32
    return %c0_i32, %c0_i32_0 : i32, i32
  }
  func.func @transform_34(%arg0: i32) -> (i32, i32) {
    %c0_i32 = arith.constant 0 : i32
    %c0_i32_0 = arith.constant 0 : i32
    %c0_i32_1 = arith.constant 0 : i32
    return %c0_i32, %c0_i32_0 : i32, i32
  }
  func.func @transform_35(%arg0: i32) -> (i32, i32) {
    %c0_i32 = arith.constant 0 : i32
    %c0_i32_0 = arith.constant 0 : i32
    %c0_i32_1 = arith.constant 0 : i32
    return %c0_i32, %c0_i32_0 : i32, i32
  }
  func.func @transform_36(%arg0: i32) -> (i32, i32) {
    %c0_i32 = arith.constant 0 : i32
    %c0_i32_0 = arith.constant 0 : i32
    %c0_i32_1 = arith.constant 0 : i32
    return %c0_i32, %c0_i32_0 : i32, i32
  }
  func.func @transform_37(%arg0: i32) -> (i32, i32) {
    %c0_i32 = arith.constant 0 : i32
    %c0_i32_0 = arith.constant 0 : i32
    %c0_i32_1 = arith.constant 0 : i32
    return %c0_i32, %c0_i32_0 : i32, i32
  }
  func.func @transform_38(%arg0: i32) -> (i32, i32) {
    %c0_i32 = arith.constant 0 : i32
    %c0_i32_0 = arith.constant 0 : i32
    %c0_i32_1 = arith.constant 0 : i32
    return %c0_i32, %c0_i32_0 : i32, i32
  }
  func.func @transform_39(%arg0: i32) -> (i32, i32) {
    %c0_i32 = arith.constant 0 : i32
    %c0_i32_0 = arith.constant 0 : i32
    %c0_i32_1 = arith.constant 0 : i32
    return %c0_i32, %c0_i32_0 : i32, i32
  }
  func.func @transform_40(%arg0: i32) -> (i32, i32) {
    %c0_i32 = arith.constant 0 : i32
    %c0_i32_0 = arith.constant 0 : i32
    %c0_i32_1 = arith.constant 0 : i32
    return %c0_i32, %c0_i32_0 : i32, i32
  }
  func.func @transform_41(%arg0: i32) -> (i32, i32, i32) {
    %c0_i32 = arith.constant 0 : i32
    %c0_i32_0 = arith.constant 0 : i32
    %c0_i32_1 = arith.constant 0 : i32
    return %arg0, %c0_i32, %c0_i32_0 : i32, i32, i32
  }
}

</mosaic_0001>

<bundles_post_ra>
// kernel: head_forward.1
= control target key start
LH: loop header
LB: loop body
LE: loop exit
PB: predicated region body
PF: predicated region fallthrough
CT: control target
= control target key end

     0   :  { %s10901_s6 = smov 1   ;;  %s10902_s10 = smov 2   ;;  %s13588_s0 = inlined_call_operand.smem [shape: u32[42], index: -1, kind: input, shape index: {}] }
   0x1   :  { %s10951_s5 = sld [smem:[%s13588_s0]]   ;;  %s10903_s14 = smov 3  }
   0x2   :  { %s10956_s9 = sld [smem:[%s13588_s0 + %s10901_s6]]   ;;  %s10904_s18 = smov 4  }
   0x3   :  { %s10961_s13 = sld [smem:[%s13588_s0 + %s10902_s10]]   ;;  %s10905_s22 = smov 5  }
   0x4   :  { %s10966_s17 = sld [smem:[%s13588_s0 + %s10903_s14]]   ;;  %s10906_s26 = smov 6  }
   0x5   :  { %s10971_s21 = sld [smem:[%s13588_s0 + %s10904_s18]]   ;;  %s10907_s30 = smov 7  }
   0x6   :  { %s10976_s25 = sld [smem:[%s13588_s0 + %s10905_s22]]   ;;  %s10908_s4 = smov 8  }
   0x7   :  { %13713 = sst [smem:[#allocation4_spill]] %s10951_s5  ;;  %s10909_s10 = smov 9  }
   0x8   :  { %s10981_s29 = sld [smem:[%s13588_s0 + %s10906_s26]]   ;;  %s10910_s15 = smov 10  }
   0x9   :  { %s10986_s3 = sld [smem:[%s13588_s0 + %s10907_s30]]   ;;  %s10911_s20 = smov 11  }
   0xa   :  { %s10991_s8 = sld [smem:[%s13588_s0 + %s10908_s4]]   ;;  %s10912_s26 = smov 12  }
   0xb   :  { %s10996_s14 = sld [smem:[%s13588_s0 + %s10909_s10]]   ;;  %s10913_s1 = smov 13  }
   0xc   :  { %s11001_s19 = sld [smem:[%s13588_s0 + %s10910_s15]]   ;;  %s10914_s7 = smov 14  }
   0xd   :  { %s11006_s24 = sld [smem:[%s13588_s0 + %s10911_s20]]   ;;  %s10915_s15 = smov 15  }
   0xe   :  { %s11011_s30 = sld [smem:[%s13588_s0 + %s10912_s26]]   ;;  %s10916_s22 = smov 16  }
   0xf   :  { %13714 = sst [smem:[#allocation5_spill]] %s10986_s3  ;;  %s10917_s28 = smov 17  }
  0x10   :  { %s11016_s6 = sld [smem:[%s13588_s0 + %s10913_s1]]  }
  0x11   :  { %s11021_s12 = sld [smem:[%s13588_s0 + %s10914_s7]]   ;;  %s10918_s7 = smov 18  }
  0x12   :  { %s11026_s20 = sld [smem:[%s13588_s0 + %s10915_s15]]   ;;  %s10919_s15 = smov 19  }
  0x13   :  { %s11031_s27 = sld [smem:[%s13588_s0 + %s10916_s22]]   ;;  %s10920_s22 = smov 20  }
  0x14   :  { %s11036_s4 = sld [smem:[%s13588_s0 + %s10917_s28]]   ;;  %s10921_s28 = smov 21  }
  0x16   :  { %13715 = sst [smem:[#allocation6_spill]] %s11016_s6 }
  0x17   :  { %13716 = sst [smem:[#allocation7_spill]] %s11021_s12 }
  0x18   :  { %13717 = sst [smem:[#allocation8_spill]] %s11026_s20 }
  0x19   :  { %13718 = sst [smem:[#allocation9_spill]] %s11031_s27 }
  0x1a   :  { %13719 = sst [smem:[#allocation10_spill]] %s11036_s4 }
  0x1b   :  { %s11041_s6 = sld [smem:[%s13588_s0 + %s10918_s7]]   ;;  %s10922_s7 = smov 22  }
  0x1c   :  { %s11046_s20 = sld [smem:[%s13588_s0 + %s10919_s15]]   ;;  %s10923_s15 = smov 23  }
  0x1d   :  { %s11051_s27 = sld [smem:[%s13588_s0 + %s10920_s22]]   ;;  %s10924_s22 = smov 24  }
  0x1e   :  { %s11056_s12 = sld [smem:[%s13588_s0 + %s10921_s28]]   ;;  %s10925_s28 = smov 25  }
  0x1f   :  { %s11061_s4 = sld [smem:[%s13588_s0 + %s10922_s7]]   ;;  %s10926_s7 = smov 26  }
  0x21   :  { %13720 = sst [smem:[#allocation11_spill]] %s11041_s6 }
  0x22   :  { %13721 = sst [smem:[#allocation12_spill]] %s11046_s20 }
  0x23   :  { %13722 = sst [smem:[#allocation13_spill]] %s11051_s27 }
  0x24   :  { %13723 = sst [smem:[#allocation14_spill]] %s11056_s12 }
  0x25   :  { %13724 = sst [smem:[#allocation15_spill]] %s11061_s4 }
  0x26   :  { %s11066_s20 = sld [smem:[%s13588_s0 + %s10923_s15]]   ;;  %s10927_s15 = smov 27  }
  0x27   :  { %s11071_s27 = sld [smem:[%s13588_s0 + %s10924_s22]]   ;;  %s10928_s22 = smov 28  }
  0x28   :  { %s11076_s12 = sld [smem:[%s13588_s0 + %s10925_s28]]   ;;  %s10929_s28 = smov 29  }
  0x29   :  { %s11081_s4 = sld [smem:[%s13588_s0 + %s10926_s7]]   ;;  %s10930_s7 = smov 30  }
  0x2c   :  { %13725 = sst [smem:[#allocation16_spill]] %s11066_s20 }
  0x2d   :  { %13726 = sst [smem:[#allocation17_spill]] %s11071_s27 }
  0x2e   :  { %13727 = sst [smem:[#allocation18_spill]] %s11076_s12 }
  0x2f   :  { %13728 = sst [smem:[#allocation19_spill]] %s11081_s4 }
  0x30   :  { %s11086_s20 = sld [smem:[%s13588_s0 + %s10927_s15]]   ;;  %s10931_s15 = smov 31  }
  0x31   :  { %s11091_s27 = sld [smem:[%s13588_s0 + %s10928_s22]]   ;;  %s10932_s22 = smov 32  }
  0x32   :  { %s11096_s12 = sld [smem:[%s13588_s0 + %s10929_s28]]   ;;  %s10933_s28 = smov 33  }
  0x33   :  { %s11101_s4 = sld [smem:[%s13588_s0 + %s10930_s7]]   ;;  %s10934_s7 = smov 34  }
  0x36   :  { %13729 = sst [smem:[#allocation20_spill]] %s11086_s20 }
  0x37   :  { %13730 = sst [smem:[#allocation21_spill]] %s11091_s27 }
  0x38   :  { %13731 = sst [smem:[#allocation22_spill]] %s11096_s12 }
  0x39   :  { %13732 = sst [smem:[#allocation23_spill]] %s11101_s4 }
  0x3a   :  { %s11106_s20 = sld [smem:[%s13588_s0 + %s10931_s15]]   ;;  %s10935_s15 = smov 35  }
  0x3b   :  { %s11111_s27 = sld [smem:[%s13588_s0 + %s10932_s22]]   ;;  %s10936_s22 = smov 36  }
  0x3c   :  { %s11116_s12 = sld [smem:[%s13588_s0 + %s10933_s28]]   ;;  %s10937_s28 = smov 37  }
  0x3d   :  { %s11121_s4 = sld [smem:[%s13588_s0 + %s10934_s7]]   ;;  %s10938_s7 = smov 38  }
  0x40   :  { %13733 = sst [smem:[#allocation24_spill]] %s11106_s20 }
  0x41   :  { %13734 = sst [smem:[#allocation25_spill]] %s11111_s27 }
  0x42   :  { %13735 = sst [smem:[#allocation26_spill]] %s11116_s12 }
  0x43   :  { %13736 = sst [smem:[#allocation27_spill]] %s11121_s4 }
  0x44   :  { %s11126_s20 = sld [smem:[%s13588_s0 + %s10935_s15]]   ;;  %s10939_s15 = smov 39  }
  0x45   :  { %s11131_s27 = sld [smem:[%s13588_s0 + %s10936_s22]]   ;;  %s10940_s22 = smov 40  }
  0x46   :  { %s11136_s12 = sld [smem:[%s13588_s0 + %s10937_s28]]   ;;  %s10941_s28 = smov 41  }
  0x47   :  { %s11141_s4 = sld [smem:[%s13588_s0 + %s10938_s7]]   ;;  %s11158_s7 = smov 0  }
  0x4a   :  { %13737 = sst [smem:[#allocation28_spill]] %s11126_s20 }
  0x4b   :  { %13738 = sst [smem:[#allocation29_spill]] %s11131_s27 }
  0x4c   :  { %13739 = sst [smem:[#allocation30_spill]] %s11136_s12 }
  0x4d   :  { %s11146_s20 = sld [smem:[%s13588_s0 + %s10939_s15]]  }
  0x4e   :  { %s11151_s27 = sld [smem:[%s13588_s0 + %s10940_s22]]  }
  0x4f   :  { %s11156_s12 = sld [smem:[%s13588_s0 + %s10941_s28]]  }
  0x50 LB: > { %s13740_s6 = sld [smem:[#allocation11_spill]]  ;;  %s13741_s3 = sld [smem:[#allocation5_spill]]  ;;  %s10899_s7 = sphi %s11158_s7, %s93_s7  }
  0x51   : > { %s9545_s10 = sadd.s32 4294967295, %s10899_s7   ;;  %p9549_p0 = scmp.ge.s32.totalorder %s10899_s7, 1 }
  0x52   : > { %p1179_p1 = scmp.lt.s32.totalorder %s10899_s7, 3 }
  0x54   : > { %p1180_p2 = pnand %p9549_p0, %p1179_p1 }
  0x56   : > { %1183 = sbr.rel (%p1180_p2) target bundleno = 2272 (0x8e0), region = 184 }
  0x5d   : > { %s13742_s5 = sld [smem:[#allocation4_spill]]  ;;  %v1376_v0 = vld [vmem:[%s13741_s3 + $0x10] sm:$0xff]  ;;  %v1374_v1 = vld [vmem:[%s13741_s3] sm:$0xff]  ;;  %p1304_p3 = scmp.lt.s32.totalorder %s9545_s10, 1  ;;  %v13612_v2 = vmov 0   ;;  %v1377_v3 = vld [vmem:[%s13741_s3 + $0x18] sm:$0xff] }
  0x5e   : > { %10469 = vset.pattern.permute.xlu1 %v13612_v2  ;;  %10468 = vset.pattern.permute.xlu0 %v13612_v2  ;;  %v1375_v4 = vld [vmem:[%s13741_s3 + $0x8] sm:$0xff]  ;;  %v1378_v7 = vld [vmem:[%s13741_s3 + $0x20] sm:$0xff]  ;;  %vm1656_vm0 = vcmask 130048   ;;  %v1381_v11 = vld [vmem:[%s13741_s3 + $0x38] sm:$0xff]  ;;  %vm2250_vm1 = vcmask 261120   ;;  %vm2804_vm2 = vcmask 392192  }
  0x5f   : > { %1418 = vperm.xlu1 %10469, %v1376_v0   ;;  %1408 = vperm.xlu0 %10468, %v1374_v1   ;;  %s14109_s10 = smov (!%p1304_p3, %s9545_s10), 1  ;;  %v1379_v5 = vld [vmem:[%s13741_s3 + $0x28] sm:$0xff]  ;;  %v10473_v9 = vld [vmem:[%s10981_s29] sm:$0xff]   ;;  %v1380_v12 = vld [vmem:[%s13741_s3 + $0x30] sm:$0xff]  ;;  %vm3366_vm3 = vcmask 523264   ;;  %s13744_s2 = sld [smem:[#allocation10_spill]] }
  0x60   : > { %1737 = vmatprep.mubr.bf16.mxu0 %v13612_v2  ;;  %1867 = vmatprep.mubr.bf16.mxu1 %v13612_v2  ;;  %s11177_s0 = sshll.u32 %s14109_s10, 4  ;;  %v10474_v10 = vld [vmem:[%s10981_s29 + $0x68] sm:$0xff]   ;;  %v1382_v15 = vld [vmem:[%s13741_s3 + $0x40] sm:$0xff]  ;;  %v10476_v18 = vld [vmem:[%s10981_s29 + $0x70] sm:$0xff]   ;;  %s10417_s16 = smul.u32 24, %s14109_s10  ;;  %vm6294_vm4 = vcmask 1041408  }
  0x61   : > { %s1313_s15 = scalar_lea.vmem %s10956_s9, %s11177_s0  ;;  %v1383_v14 = vld [vmem:[%s13741_s3 + $0x48] sm:$0xff]  ;;  %v1385_v19 = vld [vmem:[%s13741_s3 + $0x58] sm:$0xff]  ;;  %v1384_v20 = vld [vmem:[%s13741_s3 + $0x50] sm:$0xff]  ;;  %s9978_s22 = sshll.u32 %s14109_s10, 5  ;;  %vm6245_vm5 = vcmask 31744  }
  0x62   : > { %v10479_v13 = vld [vmem:[%s1313_s15] sm:$0xff]   ;;  %v10480_v16 = vld [vmem:[%s1313_s15 + $0x8] sm:$0xff]   ;;  %v10477_v23 = vld [vmem:[%s10981_s29 + $0x10] sm:$0xff]   ;;  %s11221_s18 = scalar_lea.vmem %s10961_s13, %s10417_s16  ;;  %s11304_s23 = scalar_lea.vmem %s10966_s17, %s9978_s22 }
  0x63   : > { %s1308_s11 = scalar_lea.vmem %s13742_s5, %s11177_s0  ;;  %1423 = vperm.xlu1 %10469, %v1377_v3   ;;  %1413 = vperm.xlu0 %10468, %v1375_v4   ;;  %v10475_v17 = vld [vmem:[%s10981_s29 + $0x8] sm:$0xff]   ;;  %v1386_v22 = vld [vmem:[%s13741_s3 + $0x60] sm:$0xff]  ;;  %v10478_v24 = vld [vmem:[%s10981_s29 + $0x78] sm:$0xff]   ;;  %s9979_s26 = sshll.u32 %s14109_s10, 8 }
  0x64   : > { %v10470_v6 = vld [vmem:[%s1308_s11 + $0x4] ss:$8 sps:$4 sm:$0xff]   ;;  %v10472_v8 = vld [vmem:[%s1308_s11] ss:$8 sps:$4 sm:$0xff]   ;;  %v1389_v26 = vld [vmem:[%s13741_s3 + $0x78] sm:$0xff]  ;;  %s11430_s28 = scalar_lea.vmem %s10971_s21, %s9979_s26  ;;  %s11483_s1 = scalar_lea.vmem %s10976_s25, %s9979_s26 }
  0x65   : > { %1705 = vmatprep.subr.bf16.mxu0 %v10470_v6  ;;  %10281 = vmatprep.subr.bf16.mxu1 %v10470_v6  ;;  %v1387_v21 = vld [vmem:[%s13741_s3 + $0x68] sm:$0xff]  ;;  %v10481_v25 = vld [vmem:[%s10991_s8] sm:$0xff]   ;;  %v1388_v27 = vld [vmem:[%s13741_s3 + $0x70] sm:$0xff]  ;;  %s13745_s10 = sld [smem:[#allocation14_spill]]  ;;  %s13746_s11 = sld [smem:[#allocation12_spill]] }
  0x66   : > { %1706 = vmatpush1.bf16.msra.mxu0 %v10472_v8  ;;  %10282 = vmatpush1.bf16.msra.mxu1 %v10472_v8  ;;  %v1391_v28 = vld [vmem:[%s13741_s3 + $0x88] sm:$0xff]  ;;  %v1390_v29 = vld [vmem:[%s13741_s3 + $0x80] sm:$0xff]  ;;  %v10482_v30 = vld [vmem:[%s10981_s29 + $0x18] sm:$0xff]   ;;  %s13747_s15 = sld [smem:[#allocation15_spill]]  ;;  %s13842_s22 = sld [smem:[#allocation8_spill]] }
  0x67   : > { %1433 = vperm.xlu1 %10469, %v1379_v5   ;;  %1428 = vperm.xlu0 %10468, %v1378_v7   ;;  %v10483_v31 = vld [vmem:[%s10991_s8 + $0x8] sm:$0xff]   ;;  %v10484_v32 = vld [vmem:[%s10991_s8 + $0x10] sm:$0xff]   ;;  %v1393_v33 = vld [vmem:[%s13741_s3 + $0x98] sm:$0xff]  ;;  %s13750_s16 = sld [smem:[#allocation7_spill]]  ;;  %s13851_s26 = sld [smem:[#allocation13_spill]] }
  0x68   : > { %10167 = vmatprep.subr.bf16.mxu1 %v10479_v13  ;;  %v1392_v34 = vld [vmem:[%s13741_s3 + $0x90] sm:$0xff]  ;;  %v10496_v35 = vld [vmem:[%s11221_s18] sm:$0xff]   ;;  %v1395_v36 = vld [vmem:[%s13741_s3 + $0xa8] sm:$0xff]  ;;  %s13882_s5 = sld [smem:[#allocation20_spill]] }
  0x69   : > { %9581 = vmatmul.mubr.msk.bf16.vlgmr.msra.gmra.mrb[0].mxu0 %vm1656_vm0, %v10473_v9  ;;  %9594 = vmatmul.mubr.msk.bf16.vlgmr.msra.gmra.mrb[0].mxu1 %vm1656_vm0, %v10474_v10  ;;  %v1394_v37 = vld [vmem:[%s13741_s3 + $0xa0] sm:$0xff]  ;;  %v10486_v39 = vld [vmem:[%s10991_s8 + $0x18] sm:$0xff]   ;;  %v1396_v42 = vld [vmem:[%s13741_s3 + $0xb0] sm:$0xff] }
  0x6a   : > { %1747 = vmatprep.mubr.bf16.mxu0 %v13612_v2  ;;  %1877 = vmatprep.mubr.bf16.mxu1 %v13612_v2  ;;  %v10485_v38 = vld [vmem:[%s10981_s29 + $0x20] sm:$0xff]   ;;  %v1397_v41 = vld [vmem:[%s13741_s3 + $0xb8] sm:$0xff]  ;;  %v1399_v43 = vld [vmem:[%s13741_s3 + $0xc8] sm:$0xff] }
  0x6b   : > { %1443 = vperm.xlu1 %10469, %v1381_v11   ;;  %1438 = vperm.xlu0 %10468, %v1380_v12   ;;  %v10487_v40 = vld [vmem:[%s10991_s8 + $0x20] sm:$0xff]   ;;  %v10488_v45 = vld [vmem:[%s10981_s29 + $0x28] sm:$0xff]   ;;  %v10490_v48 = vld [vmem:[%s10991_s8 + $0x30] sm:$0xff]  }
  0x6c   : > { %10168 = vmatpush3.bf16.msra.mxu1 %v10479_v13  ;;  %v1398_v44 = vld [vmem:[%s13741_s3 + $0xc0] sm:$0xff]  ;;  %v10503_v46 = vld [vmem:[%s11221_s18 + $0x8] sm:$0xff]   ;;  %v1401_v49 = vld [vmem:[%s13741_s3 + $0xd8] sm:$0xff] }
  0x6d   : > { %10169 = vmatprep.subr.bf16.mxu1 %v10480_v16  ;;  %v10489_v47 = vld [vmem:[%s10991_s8 + $0x28] sm:$0xff]   ;;  %v1400_v50 = vld [vmem:[%s13741_s3 + $0xd0] sm:$0xff]  ;;  %v1402_v53 = vld [vmem:[%s13741_s3 + $0xe0] sm:$0xff] }
  0x6e   : > { %v10507_v51 = vld [vmem:[%s11221_s18 + $0x10] sm:$0xff]   ;;  %v1403_v52 = vld [vmem:[%s13741_s3 + $0xe8] sm:$0xff]  ;;  %v10492_v55 = vld [vmem:[%s10991_s8 + $0x38] sm:$0xff]   ;;  %s13784_s18 = sld [smem:[#allocation6_spill]] }
  0x6f   : > { %1453 = vperm.xlu1 %10469, %v1383_v14   ;;  %1448 = vperm.xlu0 %10468, %v1382_v15   ;;  %v10491_v54 = vld [vmem:[%s10981_s29 + $0x30] sm:$0xff]   ;;  %v10493_v56 = vld [vmem:[%s10991_s8 + $0x40] sm:$0xff]   ;;  %v1405_v57 = vld [vmem:[%s13741_s3 + $0xf8] sm:$0xff] }
  0x70   : > { %10170 = vmatpush3.bf16.msra.mxu1 %v10480_v16  ;;  %v1404_v58 = vld [vmem:[%s13741_s3 + $0xf0] sm:$0xff]  ;;  %v1983_v59 = vld [vmem:[%s10996_s14 + $0x88] sm:$0xff]  ;;  %v1982_v60 = vld [vmem:[%s10996_s14 + $0x80] sm:$0xff]  ;;  %s13879_s3 = sld [smem:[#allocation23_spill]] }
  0x71   : > { %9582 = vmatmul.mubr.msk.bf16.gmra.mrb[4].mxu0 %vm1656_vm0, %v10475_v17  ;;  %9595 = vmatmul.mubr.msk.bf16.gmra.mrb[4].mxu1 %vm1656_vm0, %v10476_v18  ;;  %v10494_v61 = vld [vmem:[%s10981_s29 + $0x38] sm:$0xff]   ;;  %v10495_v62 = vld [vmem:[%s10991_s8 + $0x48] sm:$0xff]   ;;  %v10497_v63 = vld [vmem:[%s10991_s8 + $0x50] sm:$0xff]  }
  0x72   : > { %1757 = vmatprep.mubr.bf16.mxu0 %v13612_v2  ;;  %1887 = vmatprep.mubr.bf16.mxu1 %v13612_v2  ;;  %v2531_v0 = vld [vmem:[%s11006_s24 + $0x88] sm:$0xff]  ;;  %v2530_v1 = vld [vmem:[%s11006_s24 + $0x80] sm:$0xff]  ;;  %v10499_v6 = vld [vmem:[%s10991_s8 + $0x58] sm:$0xff]  }
  0x73   : > { %1463 = vperm.xlu1 %10469, %v1385_v19   ;;  %1458 = vperm.xlu0 %10468, %v1384_v20   ;;  %v1967_v3 = vld [vmem:[%s10996_s14 + $0x8] sm:$0xff]  ;;  %v1966_v4 = vld [vmem:[%s10996_s14] sm:$0xff]  ;;  %v1985_v10 = vld [vmem:[%s10996_s14 + $0x98] sm:$0xff] }
  0x74   : > { %10203 = vmatprep.subr.bf16.mxu1 %v10496_v35  ;;  %v10498_v5 = vld [vmem:[%s10981_s29 + $0x40] sm:$0xff]   ;;  %v2515_v8 = vld [vmem:[%s11006_s24 + $0x8] sm:$0xff]  ;;  %v1984_v11 = vld [vmem:[%s10996_s14 + $0x90] sm:$0xff] }
  0x75   : > { %v10500_v7 = vld [vmem:[%s10991_s8 + $0x60] sm:$0xff]   ;;  %v10501_v12 = vld [vmem:[%s10981_s29 + $0x48] sm:$0xff]   ;;  %v10504_v14 = vld [vmem:[%s10991_s8 + $0x70] sm:$0xff]  }
  0x76   : > { %v2514_v9 = vld [vmem:[%s11006_s24] sm:$0xff]  ;;  %v10502_v13 = vld [vmem:[%s10991_s8 + $0x68] sm:$0xff]   ;;  %v2533_v15 = vld [vmem:[%s11006_s24 + $0x98] sm:$0xff] }
  0x77   : > { %1473 = vperm.xlu1 %10469, %v1387_v21   ;;  %1468 = vperm.xlu0 %10468, %v1386_v22   ;;  %v2532_v16 = vld [vmem:[%s11006_s24 + $0x90] sm:$0xff]  ;;  %v1969_v17 = vld [vmem:[%s10996_s14 + $0x18] sm:$0xff]  ;;  %v10508_v21 = vld [vmem:[%s11001_s19] sm:$0xff]  }
  0x78   : > { %v1968_v18 = vld [vmem:[%s10996_s14 + $0x10] sm:$0xff]  ;;  %v10506_v20 = vld [vmem:[%s10991_s8 + $0x78] sm:$0xff]  }
  0x79   : > { %9583 = vmatmul.mubr.msk.bf16.gmra.mrb[8].mxu0 %vm1656_vm0, %v10477_v23  ;;  %9596 = vmatmul.mubr.msk.bf16.gmra.mrb[8].mxu1 %vm1656_vm0, %v10478_v24  ;;  %v10505_v19 = vld [vmem:[%s10981_s29 + $0x50] sm:$0xff]   ;;  %v2517_v22 = vld [vmem:[%s11006_s24 + $0x18] sm:$0xff]  ;;  %v10526_v24 = vld [vmem:[%s11304_s23] sm:$0xff]  }
  0x7a   : > { %1767 = vmatprep.mubr.bf16.mxu0 %v13612_v2  ;;  %10171 = vmatprep.mubr.msk.bf16.mxu1 %vm2250_vm1, %v10481_v25  ;;  %v2516_v23 = vld [vmem:[%s11006_s24 + $0x10] sm:$0xff]  ;;  %v1987_v25 = vld [vmem:[%s10996_s14 + $0xa8] sm:$0xff] }
  0x7b   : > { %1483 = vperm.xlu1 %10469, %v1389_v26   ;;  %1478 = vperm.xlu0 %10468, %v1388_v27   ;;  %v1986_v26 = vld [vmem:[%s10996_s14 + $0xa0] sm:$0xff]  ;;  %v10527_v27 = vld [vmem:[%s11304_s23 + $0x8] sm:$0xff]  }
  0x7c   : > { %10241 = vmatprep.subr.bf16.mxu0 %v10526_v24 }
  0x7d   : > { %10242 = vmatpush3.bf16.msra.mxu0 %v10526_v24 }
  0x7e   : > { %10243 = vmatprep.subr.bf16.mxu0 %v10527_v27 }
  0x7f   : > { %1493 = vperm.xlu1 %10469, %v1391_v28   ;;  %1488 = vperm.xlu0 %10468, %v1390_v29   ;;  %v10509_v28 = vld [vmem:[%s10981_s29 + $0x58] sm:$0xff]   ;;  %v10510_v29 = vld [vmem:[%s11001_s19 + $0x8] sm:$0xff]  }
  0x81   : > { %9584 = vmatmul.mubr.msk.bf16.gmra.mrb[12].mxu0 %vm1656_vm0, %v10482_v30  ;;  %10172 = vmatmul.mubr.msk.bf16.vlgmr.msra.gmra.mrb[12].mxu1 %vm2250_vm1, %v10483_v31  ;;  %v2535_v30 = vld [vmem:[%s11006_s24 + $0xa8] sm:$0xff]  ;;  %v2534_v31 = vld [vmem:[%s11006_s24 + $0xa0] sm:$0xff] }
  0x82   : > { %1777 = vmatprep.mubr.bf16.mxu0 %v13612_v2  ;;  %10175 = vmatprep.mubr.msk.bf16.mxu1 %vm2250_vm1, %v10484_v32  ;;  %v10511_v32 = vld [vmem:[%s11001_s19 + $0x10] sm:$0xff]  }
  0x83   : > { %1503 = vperm.xlu1 %10469, %v1393_v33   ;;  %1498 = vperm.xlu0 %10468, %v1392_v34   ;;  %v10528_v33 = vld [vmem:[%s11304_s23 + $0x10] sm:$0xff]   ;;  %v1971_v34 = vld [vmem:[%s10996_s14 + $0x28] sm:$0xff] }
  0x84   : > { %10204 = vmatpush3.bf16.msra.mxu1 %v10496_v35  ;;  %v1970_v35 = vld [vmem:[%s10996_s14 + $0x20] sm:$0xff]  ;;  %10244 = vmatpush3.bf16.msra.mxu0 %v10527_v27  ;;  %v10540_v27 = vld [vmem:[%s11011_s30 + $0x50] sm:$0xff]  }
  0x85   : > { %10205 = vmatprep.subr.bf16.mxu1 %v10503_v46  ;;  %10245 = vmatprep.subr.bf16.mxu0 %v10528_v33 }
  0x87   : > { %1513 = vperm.xlu1 %10469, %v1395_v36   ;;  %1508 = vperm.xlu0 %10468, %v1394_v37   ;;  %v10512_v36 = vld [vmem:[%s10981_s29 + $0x60] sm:$0xff]   ;;  %v10513_v37 = vld [vmem:[%s11001_s19 + $0x18] sm:$0xff]  }
  0x88   : > { %10206 = vmatpush3.bf16.msra.mxu1 %v10503_v46  ;;  %10246 = vmatpush3.bf16.msra.mxu0 %v10528_v33  ;;  %v10531_v46 = vld [vmem:[%s11011_s30 + $0x8] sm:$0xff]   ;;  %v1976_v33 = vld [vmem:[%s10996_s14 + $0x50] sm:$0xff] }
  0x89   : > { %9585 = vmatmul.mubr.msk.bf16.gmra.mrb[16].mxu0 %vm1656_vm0, %v10485_v38  ;;  %10176 = vmatmul.mubr.msk.bf16.gmra.mrb[16].mxu1 %vm2250_vm1, %v10486_v39  ;;  %v2519_v38 = vld [vmem:[%s11006_s24 + $0x28] sm:$0xff]  ;;  %v10514_v39 = vld [vmem:[%s11001_s19 + $0x20] sm:$0xff]  }
  0x8a   : > { %1787 = vmatprep.mubr.bf16.mxu0 %v13612_v2  ;;  %10179 = vmatprep.mubr.msk.bf16.mxu1 %vm2250_vm1, %v10487_v40  ;;  %v10529_v40 = vld [vmem:[%s11304_s23 + $0x18] sm:$0xff]   ;;  %s13847_s23 = sld [smem:[#allocation9_spill]] }
  0x8b   : > { %1523 = vperm.xlu1 %10469, %v1397_v41   ;;  %1518 = vperm.xlu0 %10468, %v1396_v42   ;;  %v2518_v41 = vld [vmem:[%s11006_s24 + $0x20] sm:$0xff] }
  0x8c   : > { %10207 = vmatprep.subr.bf16.mxu1 %v10507_v51  ;;  %v10530_v42 = vld [vmem:[%s11011_s30] sm:$0xff]   ;;  %10247 = vmatprep.subr.bf16.mxu0 %v10529_v40 }
  0x8d   : > { %10208 = vmatpush3.bf16.msra.mxu1 %v10507_v51  ;;  %10248 = vmatpush3.bf16.msra.mxu0 %v10529_v40  ;;  %v1973_v51 = vld [vmem:[%s10996_s14 + $0x38] sm:$0xff]  ;;  %v2524_v40 = vld [vmem:[%s11006_s24 + $0x50] sm:$0xff] }
  0x8f   : > { %1533 = vperm.xlu1 %10469, %v1399_v43   ;;  %1528 = vperm.xlu0 %10468, %v1398_v44   ;;  %v1989_v43 = vld [vmem:[%s10996_s14 + $0xb8] sm:$0xff]  ;;  %v1988_v44 = vld [vmem:[%s10996_s14 + $0xb0] sm:$0xff] }
  0x91   : > { %9586 = vmatmul.mubr.msk.bf16.gmra.mrb[20].mxu0 %vm1656_vm0, %v10488_v45  ;;  %10180 = vmatmul.mubr.msk.bf16.gmra.mrb[20].mxu1 %vm2250_vm1, %v10489_v47  ;;  %v10515_v45 = vld [vmem:[%s11001_s19 + $0x28] sm:$0xff]   ;;  %v10516_v47 = vld [vmem:[%s11001_s19 + $0x30] sm:$0xff]  }
  0x92   : > { %1797 = vmatprep.mubr.bf16.mxu0 %v13612_v2  ;;  %10183 = vmatprep.mubr.msk.bf16.mxu1 %vm2250_vm1, %v10490_v48  ;;  %v10532_v48 = vld [vmem:[%s11011_s30 + $0x10] sm:$0xff]  }
  0x93   : > { %1543 = vperm.xlu1 %10469, %v1401_v49   ;;  %1538 = vperm.xlu0 %10468, %v1400_v50   ;;  %v2537_v49 = vld [vmem:[%s11006_s24 + $0xb8] sm:$0xff]  ;;  %v2536_v50 = vld [vmem:[%s11006_s24 + $0xb0] sm:$0xff] }
  0x97   : > { %1553 = vperm.xlu1 %10469, %v1403_v52   ;;  %1548 = vperm.xlu0 %10468, %v1402_v53   ;;  %v1972_v52 = vld [vmem:[%s10996_s14 + $0x30] sm:$0xff]  ;;  %v10517_v53 = vld [vmem:[%s11001_s19 + $0x38] sm:$0xff]  }
  0x99   : > { %9587 = vmatmul.mubr.msk.bf16.gmra.mrb[24].mxu0 %vm1656_vm0, %v10491_v54  ;;  %10184 = vmatmul.mubr.msk.bf16.gmra.mrb[24].mxu1 %vm2250_vm1, %v10492_v55  ;;  %v10533_v54 = vld [vmem:[%s11011_s30 + $0x18] sm:$0xff]   ;;  %v10518_v55 = vld [vmem:[%s11001_s19 + $0x40] sm:$0xff]  }
  0x9a   : > { %1807 = vmatprep.mubr.bf16.mxu0 %v13612_v2  ;;  %10187 = vmatprep.mubr.msk.bf16.mxu1 %vm2250_vm1, %v10493_v56  ;;  %v10534_v56 = vld [vmem:[%s11011_s30 + $0x20] sm:$0xff]  }
  0x9b   : > { %1563 = vperm.xlu1 %10469, %v1405_v57   ;;  %1558 = vperm.xlu0 %10468, %v1404_v58   ;;  %v2521_v57 = vld [vmem:[%s11006_s24 + $0x38] sm:$0xff]  ;;  %v2520_v58 = vld [vmem:[%s11006_s24 + $0x30] sm:$0xff] }
  0x9f   : > { %2085 = vperm.xlu1 %10469, %v1983_v59   ;;  %2080 = vperm.xlu0 %10468, %v1982_v60   ;;  %v1991_v59 = vld [vmem:[%s10996_s14 + $0xc8] sm:$0xff]  ;;  %v1990_v60 = vld [vmem:[%s10996_s14 + $0xc0] sm:$0xff] }
  0xa1   : > { %9588 = vmatmul.mubr.msk.bf16.gmra.mrb[28].mxu0 %vm1656_vm0, %v10494_v61  ;;  %10188 = vmatmul.mubr.msk.bf16.gmra.mrb[28].mxu1 %vm2250_vm1, %v10495_v62  ;;  %v10519_v61 = vld [vmem:[%s11001_s19 + $0x48] sm:$0xff]  }
  0xa2   : > { %1817 = vmatprep.mubr.bf16.mxu0 %v13612_v2  ;;  %10191 = vmatprep.mubr.msk.bf16.mxu1 %vm2250_vm1, %v10497_v63  ;;  %v10535_v62 = vld [vmem:[%s11011_s30 + $0x28] sm:$0xff]  }
  0xa3   : > { %2633 = vperm.xlu1 %10469, %v2531_v0   ;;  %2628 = vperm.xlu0 %10468, %v2530_v1   ;;  %v10520_v1 = vld [vmem:[%s11001_s19 + $0x50] sm:$0xff]  }
  0xa7   : > { %2005 = vperm.xlu1 %10469, %v1967_v3   ;;  %2000 = vperm.xlu0 %10468, %v1966_v4   ;;  %v10536_v3 = vld [vmem:[%s11011_s30 + $0x30] sm:$0xff]   ;;  %v2539_v4 = vld [vmem:[%s11006_s24 + $0xc8] sm:$0xff] }
  0xa9   : > { %9589 = vmatmul.mubr.msk.bf16.gmra.mrb[32].mxu0 %vm1656_vm0, %v10498_v5  ;;  %10192 = vmatmul.mubr.msk.bf16.gmra.mrb[32].mxu1 %vm2250_vm1, %v10499_v6  ;;  %v2538_v5 = vld [vmem:[%s11006_s24 + $0xc0] sm:$0xff] }
  0xaa   : > { %1827 = vmatprep.mubr.bf16.mxu0 %v13612_v2  ;;  %10195 = vmatprep.mubr.msk.bf16.mxu1 %vm2250_vm1, %v10500_v7 }
  0xab   : > { %2553 = vperm.xlu1 %10469, %v2515_v8   ;;  %2548 = vperm.xlu0 %10468, %v2514_v9   ;;  %v1975_v8 = vld [vmem:[%s10996_s14 + $0x48] sm:$0xff]  ;;  %v1974_v9 = vld [vmem:[%s10996_s14 + $0x40] sm:$0xff] }
  0xaf   : > { %2095 = vperm.xlu1 %10469, %v1985_v10   ;;  %2090 = vperm.xlu0 %10468, %v1984_v11   ;;  %v10521_v10 = vld [vmem:[%s11001_s19 + $0x58] sm:$0xff]  }
  0xb0   : > { %v10537_v11 = vld [vmem:[%s11011_s30 + $0x38] sm:$0xff]  }
  0xb1   : > { %9590 = vmatmul.mubr.msk.bf16.gmra.mrb[36].mxu0 %vm1656_vm0, %v10501_v12  ;;  %10196 = vmatmul.mubr.msk.bf16.gmra.mrb[36].mxu1 %vm2250_vm1, %v10502_v13  ;;  %v10522_v12 = vld [vmem:[%s11001_s19 + $0x60] sm:$0xff]  }
  0xb2   : > { %1837 = vmatprep.mubr.bf16.mxu0 %v13612_v2  ;;  %10199 = vmatprep.mubr.msk.bf16.mxu1 %vm2250_vm1, %v10504_v14 }
  0xb3   : > { %2643 = vperm.xlu1 %10469, %v2533_v15   ;;  %2638 = vperm.xlu0 %10468, %v2532_v16   ;;  %v10538_v15 = vld [vmem:[%s11011_s30 + $0x40] sm:$0xff]   ;;  %v2523_v16 = vld [vmem:[%s11006_s24 + $0x48] sm:$0xff] }
  0xb7   : > { %2015 = vperm.xlu1 %10469, %v1969_v17   ;;  %2010 = vperm.xlu0 %10468, %v1968_v18   ;;  %v2522_v17 = vld [vmem:[%s11006_s24 + $0x40] sm:$0xff] }
  0xb9   : > { %9591 = vmatmul.mubr.msk.bf16.gmra.mrb[40].mxu0 %vm1656_vm0, %v10505_v19  ;;  %10200 = vmatmul.mubr.msk.bf16.gmra.mrb[40].mxu1 %vm2250_vm1, %v10506_v20  ;;  %v1993_v20 = vld [vmem:[%s10996_s14 + $0xd8] sm:$0xff] }
  0xba   : > { %1847 = vmatprep.mubr.bf16.mxu0 %v13612_v2  ;;  %10209 = vmatprep.mubr.msk.bf16.mxu1 %vm2804_vm2, %v10508_v21  ;;  %v1992_v21 = vld [vmem:[%s10996_s14 + $0xd0] sm:$0xff] }
  0xbb   : > { %2563 = vperm.xlu1 %10469, %v2517_v22   ;;  %2558 = vperm.xlu0 %10468, %v2516_v23   ;;  %v10523_v22 = vld [vmem:[%s11001_s19 + $0x68] sm:$0xff]  }
  0xbc   : > { %v10539_v23 = vld [vmem:[%s11011_s30 + $0x48] sm:$0xff]  }
  0xbf   : > { %2105 = vperm.xlu1 %10469, %v1987_v25   ;;  %2100 = vperm.xlu0 %10468, %v1986_v26   ;;  %v10524_v26 = vld [vmem:[%s11001_s19 + $0x70] sm:$0xff]  }
  0xc1   : > { %9592 = vmatmul.mubr.msk.bf16.gmra.mrb[44].mxu0 %vm1656_vm0, %v10509_v28  ;;  %10210 = vmatmul.mubr.msk.bf16.vlgmr.msra.gmra.mrb[44].mxu1 %vm2804_vm2, %v10510_v29  ;;  %v2541_v28 = vld [vmem:[%s11006_s24 + $0xd8] sm:$0xff]  ;;  %v2540_v29 = vld [vmem:[%s11006_s24 + $0xd0] sm:$0xff] }
  0xc2   : > { %1857 = vmatprep.mubr.bf16.mxu0 %v13612_v2  ;;  %10213 = vmatprep.mubr.msk.bf16.mxu1 %vm2804_vm2, %v10511_v32  ;;  %v1977_v32 = vld [vmem:[%s10996_s14 + $0x58] sm:$0xff] }
  0xc3   : > { %2653 = vperm.xlu1 %10469, %v2535_v30   ;;  %2648 = vperm.xlu0 %10468, %v2534_v31  }
  0xc7   : > { %2025 = vperm.xlu1 %10469, %v1971_v34   ;;  %2020 = vperm.xlu0 %10468, %v1970_v35   ;;  %v10525_v34 = vld [vmem:[%s11001_s19 + $0x78] sm:$0xff]  }
  0xc8   : > { %v10541_v35 = vld [vmem:[%s11011_s30 + $0x58] sm:$0xff]  }
  0xc9   : > { %9593 = vmatmul.mubr.msk.bf16.gmra.mrb[48].mxu0 %vm1656_vm0, %v10512_v36  ;;  %10214 = vmatmul.mubr.msk.bf16.gmra.mrb[48].mxu1 %vm2804_vm2, %v10513_v37 }
  0xca   : > { %10217 = vmatprep.mubr.msk.bf16.mxu1 %vm2804_vm2, %v10514_v39  ;;  %10249 = vmatprep.mubr.msk.bf16.mxu0 %vm3366_vm3, %v10530_v42  ;;  %v2525_v39 = vld [vmem:[%s11006_s24 + $0x58] sm:$0xff] }
  0xcb   : > { %2573 = vperm.xlu1 %10469, %v2519_v38   ;;  %2568 = vperm.xlu0 %10468, %v2518_v41   ;;  %v10542_v38 = vld [vmem:[%s11011_s30 + $0x60] sm:$0xff]  }
  0xcf   : > { %2115 = vperm.xlu1 %10469, %v1989_v43   ;;  %2110 = vperm.xlu0 %10468, %v1988_v44   ;;  %v1995_v43 = vld [vmem:[%s10996_s14 + $0xe8] sm:$0xff]  ;;  %v1994_v44 = vld [vmem:[%s10996_s14 + $0xe0] sm:$0xff] }
  0xd1   : > { %10218 = vmatmul.mubr.msk.bf16.gmra.mrb[52].mxu1 %vm2804_vm2, %v10515_v45  ;;  %10250 = vmatmul.mubr.msk.bf16.vlgmr.msra.gmra.mrb[52].mxu0 %vm3366_vm3, %v10531_v46  ;;  %v10543_v45 = vld [vmem:[%s11011_s30 + $0x68] sm:$0xff]  }
  0xd2   : > { %10221 = vmatprep.mubr.msk.bf16.mxu1 %vm2804_vm2, %v10516_v47  ;;  %10253 = vmatprep.mubr.msk.bf16.mxu0 %vm3366_vm3, %v10532_v48  ;;  %v10544_v48 = vld [vmem:[%s11011_s30 + $0x70] sm:$0xff]  }
  0xd3   : > { %2663 = vperm.xlu1 %10469, %v2537_v49   ;;  %2658 = vperm.xlu0 %10468, %v2536_v50   ;;  %v2543_v49 = vld [vmem:[%s11006_s24 + $0xe8] sm:$0xff]  ;;  %v2542_v50 = vld [vmem:[%s11006_s24 + $0xe0] sm:$0xff] }
  0xd7   : > { %2035 = vperm.xlu1 %10469, %v1973_v51   ;;  %2030 = vperm.xlu0 %10468, %v1972_v52  }
  0xd9   : > { %10222 = vmatmul.mubr.msk.bf16.gmra.mrb[56].mxu1 %vm2804_vm2, %v10517_v53  ;;  %10254 = vmatmul.mubr.msk.bf16.gmra.mrb[56].mxu0 %vm3366_vm3, %v10533_v54  ;;  %v1979_v53 = vld [vmem:[%s10996_s14 + $0x68] sm:$0xff]  ;;  %v1978_v54 = vld [vmem:[%s10996_s14 + $0x60] sm:$0xff] }
  0xda   : > { %10225 = vmatprep.mubr.msk.bf16.mxu1 %vm2804_vm2, %v10518_v55  ;;  %10257 = vmatprep.mubr.msk.bf16.mxu0 %vm3366_vm3, %v10534_v56  ;;  %v10545_v55 = vld [vmem:[%s11011_s30 + $0x78] sm:$0xff]  }
  0xdb   : > { %2583 = vperm.xlu1 %10469, %v2521_v57   ;;  %2578 = vperm.xlu0 %10468, %v2520_v58   ;;  %v2527_v58 = vld [vmem:[%s11006_s24 + $0x68] sm:$0xff] }
  0xde   : > { %v11368_v63 = vpop.permute.xlu1 %1418  ;;  %v11370_v0 = vpop.permute.xlu0 %1408 }
  0xdf   : > { %2125 = vperm.xlu1 %10469, %v1991_v59   ;;  %2120 = vperm.xlu0 %10468, %v1990_v60   ;;  %v2526_v59 = vld [vmem:[%s11006_s24 + $0x60] sm:$0xff] }
  0xe1   : > { %10226 = vmatmul.mubr.msk.bf16.gmra.mrb[60].mxu1 %vm2804_vm2, %v10519_v61  ;;  %10258 = vmatmul.mubr.msk.bf16.gmra.mrb[60].mxu0 %vm3366_vm3, %v10535_v62  ;;  %v1997_v62 = vld [vmem:[%s10996_s14 + $0xf8] sm:$0xff] }
  0xe2   : > { %v11378_v6 = vpop.permute.xlu1 %1423  ;;  %v11380_v7 = vpop.permute.xlu0 %1413  ;;  %10229 = vmatprep.mubr.msk.bf16.mxu1 %vm2804_vm2, %v10520_v1  ;;  %10261 = vmatprep.mubr.msk.bf16.mxu0 %vm3366_vm3, %v10536_v3  ;;  %v1996_v1 = vld [vmem:[%s10996_s14 + $0xf0] sm:$0xff] }
  0xe3   : > { %2673 = vperm.xlu1 %10469, %v2539_v4   ;;  %2668 = vperm.xlu0 %10468, %v2538_v5   ;;  %v2545_v5 = vld [vmem:[%s11006_s24 + $0xf8] sm:$0xff] }
  0xe6   : > { %v11389_v13 = vpop.permute.xlu1 %1433  ;;  %v11391_v14 = vpop.permute.xlu0 %1428 }
  0xe7   : > { %2045 = vperm.xlu1 %10469, %v1975_v8   ;;  %2040 = vperm.xlu0 %10468, %v1974_v9   ;;  %v2544_v8 = vld [vmem:[%s11006_s24 + $0xf0] sm:$0xff] }
  0xe9   : > { %10230 = vmatmul.mubr.msk.bf16.gmra.mrb[64].mxu1 %vm2804_vm2, %v10521_v10  ;;  %10262 = vmatmul.mubr.msk.bf16.gmra.mrb[64].mxu0 %vm3366_vm3, %v10537_v11  ;;  %v1981_v11 = vld [vmem:[%s10996_s14 + $0x78] sm:$0xff] }
  0xea   : > { %v11398_v18 = vpop.permute.xlu1 %1443  ;;  %v11400_v19 = vpop.permute.xlu0 %1438  ;;  %10233 = vmatprep.mubr.msk.bf16.mxu1 %vm2804_vm2, %v10522_v12  ;;  %10265 = vmatprep.mubr.msk.bf16.mxu0 %vm3366_vm3, %v10538_v15  ;;  %v1980_v12 = vld [vmem:[%s10996_s14 + $0x70] sm:$0xff] }
  0xeb   : > { %2593 = vperm.xlu1 %10469, %v2523_v16   ;;  %2588 = vperm.xlu0 %10468, %v2522_v17   ;;  %v2529_v17 = vld [vmem:[%s11006_s24 + $0x78] sm:$0xff] }
  0xee   : > { %v11408_v24 = vpop.permute.xlu1 %1453  ;;  %v11410_v25 = vpop.permute.xlu0 %1448 }
  0xef   : > { %2135 = vperm.xlu1 %10469, %v1993_v20   ;;  %2130 = vperm.xlu0 %10468, %v1992_v21   ;;  %v2528_v20 = vld [vmem:[%s11006_s24 + $0x70] sm:$0xff] }
  0xf1   : > { %10234 = vmatmul.mubr.msk.bf16.gmra.mrb[68].mxu1 %vm2804_vm2, %v10523_v22  ;;  %10266 = vmatmul.mubr.msk.bf16.gmra.mrb[68].mxu0 %vm3366_vm3, %v10539_v23  ;;  %v4331_v23 = vld [vmem:[%s13740_s6 + $0x8] sm:$0xff] }
  0xf2   : > { %v11419_v30 = vpop.permute.xlu1 %1463  ;;  %v11421_v31 = vpop.permute.xlu0 %1458  ;;  %10237 = vmatprep.mubr.msk.bf16.mxu1 %vm2804_vm2, %v10524_v26  ;;  %10269 = vmatprep.mubr.msk.bf16.mxu0 %vm3366_vm3, %v10540_v27  ;;  %v4330_v26 = vld [vmem:[%s13740_s6] sm:$0xff] }
  0xf3   : > { %2683 = vperm.xlu1 %10469, %v2541_v28   ;;  %2678 = vperm.xlu0 %10468, %v2540_v29   ;;  %v10548_v27 = vld [vmem:[%s13744_s2 + $0x4] ss:$8 sps:$4 sm:$0xff]  }
  0xf6   : > { %v11434_v36 = vpop.permute.xlu1 %1473  ;;  %v11436_v37 = vpop.permute.xlu0 %1468 }
  0xf7   : > { %2055 = vperm.xlu1 %10469, %v1977_v32   ;;  %2050 = vperm.xlu0 %10468, %v1976_v33   ;;  %v4788_v32 = vld [vmem:[%s13745_s10 + $0x8] sm:$0xff]  ;;  %v4787_v33 = vld [vmem:[%s13745_s10] sm:$0xff] }
  0xf9   : > { %10238 = vmatmul.mubr.msk.bf16.gmra.mrb[72].mxu1 %vm2804_vm2, %v10525_v34  ;;  %10270 = vmatmul.mubr.msk.bf16.gmra.mrb[72].mxu0 %vm3366_vm3, %v10541_v35 }
  0xfa   : > { %v11443_v41 = vpop.permute.xlu1 %1483  ;;  %v11445_v42 = vpop.permute.xlu0 %1478  ;;  %10273 = vmatprep.mubr.msk.bf16.mxu0 %vm3366_vm3, %v10542_v38  ;;  %v4443_v38 = vld [vmem:[%s13746_s11 + $0x8] sm:$0xff] }
  0xfb   : > { %2603 = vperm.xlu1 %10469, %v2525_v39   ;;  %2598 = vperm.xlu0 %10468, %v2524_v40   ;;  %v4442_v39 = vld [vmem:[%s13746_s11] sm:$0xff] }
  0xfe   : > { %v11451_v46 = vpop.permute.xlu1 %1493  ;;  %v11453_v47 = vpop.permute.xlu0 %1488 }
  0xff   : > { %2145 = vperm.xlu1 %10469, %v1995_v43   ;;  %2140 = vperm.xlu0 %10468, %v1994_v44   ;;  %v4900_v44 = vld [vmem:[%s13747_s15 + $0x8] sm:$0xff] }
 0x101   : > { %10274 = vmatmul.mubr.msk.bf16.gmra.mrb[76].mxu0 %vm3366_vm3, %v10543_v45  ;;  %v4899_v45 = vld [vmem:[%s13747_s15] sm:$0xff] }
 0x102   : > { %v11459_v51 = vpop.permute.xlu1 %1503  ;;  %v11461_v52 = vpop.permute.xlu0 %1498  ;;  %10277 = vmatprep.mubr.msk.bf16.mxu0 %vm3366_vm3, %v10544_v48 }
 0x103   : > { %2693 = vperm.xlu1 %10469, %v2543_v49   ;;  %2688 = vperm.xlu0 %10468, %v2542_v50   ;;  %v4333_v50 = vld [vmem:[%s13740_s6 + $0x18] sm:$0xff] }
 0x106   : > { %v11467_v56 = vpop.permute.xlu1 %1513  ;;  %v11469_v57 = vpop.permute.xlu0 %1508 }
 0x107   : > { %2065 = vperm.xlu1 %10469, %v1979_v53   ;;  %2060 = vperm.xlu0 %10468, %v1978_v54   ;;  %v4332_v53 = vld [vmem:[%s13740_s6 + $0x10] sm:$0xff] }
 0x109   : > { %10278 = vmatmul.mubr.msk.bf16.gmra.mrb[80].mxu0 %vm3366_vm3, %v10545_v55 }
 0x10a   : > { %v11474_v60 = vpop.permute.xlu1 %1523  ;;  %v11476_v61 = vpop.permute.xlu0 %1518  ;;  %4265 = vmatprep.mubr.bf16.mxu0 %v10548_v27 }
 0x10b   : > { %2613 = vperm.xlu1 %10469, %v2527_v58   ;;  %2608 = vperm.xlu0 %10468, %v2526_v59   ;;  %v4790_v58 = vld [vmem:[%s13745_s10 + $0x18] sm:$0xff]  ;;  %v4789_v59 = vld [vmem:[%s13745_s10 + $0x10] sm:$0xff] }
 0x10e   : > { %v11485_v3 = vpop.permute.xlu1 %1533  ;;  %v11487_v4 = vpop.permute.xlu0 %1528 }
 0x10f   : > { %13743 = vst [vmem:[#allocation31_spill] sm:$0xff] %v11485_v3  ;;  %2155 = vperm.xlu1 %10469, %v1997_v62   ;;  %2150 = vperm.xlu0 %10468, %v1996_v1  }
 0x112   : > { %v11491_v9 = vpop.permute.xlu1 %1543  ;;  %v11493_v10 = vpop.permute.xlu0 %1538 }
 0x113   : > { %2703 = vperm.xlu1 %10469, %v2545_v5   ;;  %2698 = vperm.xlu0 %10468, %v2544_v8   ;;  %v4445_v5 = vld [vmem:[%s13746_s11 + $0x18] sm:$0xff]  ;;  %v10557_v8 = vld [vmem:[%s13750_s16 + $0x4] ss:$8 sps:$4 sm:$0xff]  }
 0x114   : > { %3720 = vmatprep.mubr.bf16.mxu1 %v10557_v8 }
 0x116   : > { %v11497_v15 = vpop.permute.xlu1 %1553  ;;  %v11499_v16 = vpop.permute.xlu0 %1548 }
 0x117   : > { %2075 = vperm.xlu1 %10469, %v1981_v11   ;;  %2070 = vperm.xlu0 %10468, %v1980_v12   ;;  %v4444_v11 = vld [vmem:[%s13746_s11 + $0x10] sm:$0xff] }
 0x11a   : > { %v11503_v21 = vpop.permute.xlu1 %1563  ;;  %v11505_v22 = vpop.permute.xlu0 %1558 }
 0x11b   : > { %2623 = vperm.xlu1 %10469, %v2529_v17   ;;  %2618 = vperm.xlu0 %10468, %v2528_v20   ;;  %v4902_v20 = vld [vmem:[%s13747_s15 + $0x18] sm:$0xff] }
 0x11e   : > { %v11510_v28 = vpop.permute.xlu1 %2085  ;;  %v11512_v29 = vpop.permute.xlu0 %2080 }
 0x11f   : > { %4353 = vperm.xlu1 %10469, %v4331_v23   ;;  %4348 = vperm.xlu0 %10468, %v4330_v26   ;;  %v4901_v23 = vld [vmem:[%s13747_s15 + $0x10] sm:$0xff] }
 0x122   : > { %v11516_v34 = vpop.permute.xlu1 %2633  ;;  %v11518_v35 = vpop.permute.xlu0 %2628 }
 0x123   : > { %13748 = vst [vmem:[#allocation32_spill] sm:$0xff] %v11516_v34  ;;  %13749 = vst [vmem:[#allocation33_spill] sm:$0xff] %v11518_v35  ;;  %4810 = vperm.xlu1 %10469, %v4788_v32   ;;  %4805 = vperm.xlu0 %10468, %v4787_v33   ;;  %v4792_v34 = vld [vmem:[%s13745_s10 + $0x28] sm:$0xff]  ;;  %v4791_v35 = vld [vmem:[%s13745_s10 + $0x20] sm:$0xff] }
 0x126   : > { %v11522_v40 = vpop.permute.xlu1 %2005  ;;  %v11524_v43 = vpop.permute.xlu0 %2000 }
 0x127   : > { %4465 = vperm.xlu1 %10469, %v4443_v38   ;;  %4460 = vperm.xlu0 %10468, %v4442_v39   ;;  %v4335_v38 = vld [vmem:[%s13740_s6 + $0x28] sm:$0xff]  ;;  %v4334_v39 = vld [vmem:[%s13740_s6 + $0x20] sm:$0xff] }
 0x12a   : > { %v11528_v48 = vpop.permute.xlu1 %2553  ;;  %v11530_v49 = vpop.permute.xlu0 %2548 }
 0x12b   : > { %4922 = vperm.xlu1 %10469, %v4900_v44   ;;  %4917 = vperm.xlu0 %10468, %v4899_v45  }
 0x12e   : > { %v11534_v54 = vpop.permute.xlu1 %2095  ;;  %v11536_v55 = vpop.permute.xlu0 %2090 }
 0x12f   : > { %4363 = vperm.xlu1 %10469, %v4333_v50   ;;  %4358 = vperm.xlu0 %10468, %v4332_v53  }
 0x132   : > { %v11540_v62 = vpop.permute.xlu1 %2643  ;;  %v11542_v1 = vpop.permute.xlu0 %2638 }
 0x133   : > { %13751 = vst [vmem:[#allocation34_spill] sm:$0xff] %v11540_v62  ;;  %13752 = vst [vmem:[#allocation35_spill] sm:$0xff] %v11542_v1  ;;  %4820 = vperm.xlu1 %10469, %v4790_v58   ;;  %4815 = vperm.xlu0 %10468, %v4789_v59  }
 0x136   : > { %v11547_v12 = vpop.permute.xlu1 %2015  ;;  %v11549_v17 = vpop.permute.xlu0 %2010 }
 0x137   : > { %4475 = vperm.xlu1 %10469, %v4445_v5   ;;  %4470 = vperm.xlu0 %10468, %v4444_v11  }
 0x13a   : > { %v11553_v26 = vpop.permute.xlu1 %2563  ;;  %v11555_v27 = vpop.permute.xlu0 %2558 }
 0x13b   : > { %4932 = vperm.xlu1 %10469, %v4902_v20   ;;  %4927 = vperm.xlu0 %10468, %v4901_v23  }
 0x13c   : > { %v1739_v32 = vpop.f32.mrb[0].mxu0  ;;  %v1869_v33 = vpop.f32.mrb[0].mxu1 }
 0x13d   : > { %v1741_v44 = vpop.f32.mrb[1].mxu0  ;;  %v1871_v45 = vpop.f32.mrb[1].mxu1  ;;  %v1740_v5 = vadd.f32 %v1739_v32, %v11370_v0  ;;  %v11565_v8 = vadd.f32 %v1869_v33, %v11493_v10 }
 0x13e   : > { %v11559_v50 = vpop.permute.xlu1 %2105  ;;  %v11561_v53 = vpop.permute.xlu0 %2100 }
 0x13f   : > { %4373 = vperm.xlu1 %10469, %v4335_v38   ;;  %4368 = vperm.xlu0 %10468, %v4334_v39   ;;  %v1743_v58 = vpop.f32.mrb[2].mxu0  ;;  %v1873_v59 = vpop.f32.mrb[2].mxu1  ;;  %13753 = vst [vmem:[#allocation36_spill] sm:$0xff] %v11565_v8  ;;  %v1742_v38 = vadd.f32 %v1741_v44, %v11370_v0  ;;  %v11575_v39 = vadd.f32 %v1871_v45, %v11493_v10  ;;  %v4446_v45 = vld [vmem:[%s13746_s11 + $0x20] sm:$0xff] }
 0x140   : > { %v1744_v11 = vadd.f32 %v1743_v58, %v11380_v7  ;;  %v11569_v20 = vadd.f32 %v1873_v59, %v11491_v9  ;;  %v1745_v23 = vpop.f32.mrb[3].mxu0  ;;  %v1875_v2 = vpop.f32.mrb[3].mxu1 }
 0x141   : > { %13755 = vst [vmem:[#allocation38_spill] sm:$0xff] %v11575_v39  ;;  %v1746_v32 = vadd.f32 %v1745_v23, %v11380_v7  ;;  %v11579_v33 = vadd.f32 %v1875_v2, %v11491_v9  ;;  %v4447_v7 = vld [vmem:[%s13746_s11 + $0x28] sm:$0xff]  ;;  %v4341_v39 = vld [vmem:[%s13740_s6 + $0x58] sm:$0xff] }
 0x142   : > { %13754 = vst [vmem:[#allocation37_spill] sm:$0xff] %v11569_v20  ;;  %v1898_v58 = vpack.c.bf16 %v1744_v11, %v1740_v5  ;;  %v11581_v62 = vpop.permute.xlu1 %2653  ;;  %v11583_v59 = vpop.permute.xlu0 %2648 }
 0x143   : > { %13756 = vst [vmem:[#allocation39_spill] sm:$0xff] %v11579_v33  ;;  %13757 = vst [vmem:[#allocation40_spill] sm:$0xff] %v11581_v62  ;;  %v1899_v3 = vpack.c.bf16 %v1746_v32, %v1742_v38  ;;  %4830 = vperm.xlu1 %10469, %v4792_v34   ;;  %4825 = vperm.xlu0 %10468, %v4791_v35   ;;  %v4904_v62 = vld [vmem:[%s13747_s15 + $0x28] sm:$0xff]  ;;  %v4453_v33 = vld [vmem:[%s13746_s11 + $0x58] sm:$0xff] }
 0x144   : > { %13758 = vst [vmem:[#allocation41_spill] sm:$0xff] %v11583_v59  ;;  %v1749_v10 = vpop.f32.mrb[4].mxu0  ;;  %v1879_v44 = vpop.f32.mrb[4].mxu1  ;;  %v4903_v59 = vld [vmem:[%s13747_s15 + $0x20] sm:$0xff] }
 0x145   : > { %3688 = vmatprep.subr.bf16.mxu1 %v1899_v3  ;;  %v1751_v2 = vpop.f32.mrb[5].mxu0  ;;  %v1881_v9 = vpop.f32.mrb[5].mxu1  ;;  %v1750_v23 = vadd.f32 %v1749_v10, %v11368_v63  ;;  %v11597_v38 = vadd.f32 %v1879_v44, %v11499_v16 }
 0x146   : > { %v11591_v5 = vpop.permute.xlu1 %2025  ;;  %v11593_v11 = vpop.permute.xlu0 %2020  ;;  %3689 = vmatpush1.bf16.msra.mxu1 %v1898_v58  ;;  %v1752_v58 = vadd.f32 %v1751_v2, %v11368_v63 }
 0x147   : > { %4485 = vperm.xlu1 %10469, %v4447_v7   ;;  %4480 = vperm.xlu0 %10468, %v4446_v45   ;;  %v1753_v34 = vpop.f32.mrb[6].mxu0  ;;  %v1883_v35 = vpop.f32.mrb[6].mxu1  ;;  %13759 = vst [vmem:[#allocation42_spill] sm:$0xff] %v11597_v38  ;;  %v11607_v7 = vadd.f32 %v1881_v9, %v11499_v16  ;;  %v4794_v38 = vld [vmem:[%s13745_s10 + $0x38] sm:$0xff] }
 0x148   : > { %v1754_v3 = vadd.f32 %v1753_v34, %v11378_v6  ;;  %v11601_v32 = vadd.f32 %v1883_v35, %v11497_v15  ;;  %v1755_v1 = vpop.f32.mrb[7].mxu0  ;;  %v1885_v0 = vpop.f32.mrb[7].mxu1 }
 0x149   : > { %13761 = vst [vmem:[#allocation44_spill] sm:$0xff] %v11607_v7  ;;  %v1756_v10 = vadd.f32 %v1755_v1, %v11378_v6  ;;  %v11611_v44 = vadd.f32 %v1885_v0, %v11497_v15  ;;  %v4337_v6 = vld [vmem:[%s13740_s6 + $0x38] sm:$0xff]  ;;  %v4336_v1 = vld [vmem:[%s13740_s6 + $0x30] sm:$0xff] }
 0x14a   : > { %13760 = vst [vmem:[#allocation43_spill] sm:$0xff] %v11601_v32  ;;  %v1900_v45 = vpack.c.bf16 %v1754_v3, %v1750_v23  ;;  %v11613_v34 = vpop.permute.xlu1 %2573  ;;  %v11615_v35 = vpop.permute.xlu0 %2568  ;;  %v4793_v32 = vld [vmem:[%s13745_s10 + $0x30] sm:$0xff] }
 0x14b   : > { %13762 = vst [vmem:[#allocation45_spill] sm:$0xff] %v11611_v44  ;;  %13763 = vst [vmem:[#allocation46_spill] sm:$0xff] %v11613_v34  ;;  %v1901_v20 = vpack.c.bf16 %v1756_v10, %v1752_v58  ;;  %4942 = vperm.xlu1 %10469, %v4904_v62   ;;  %4937 = vperm.xlu0 %10468, %v4903_v59   ;;  %v4452_v34 = vld [vmem:[%s13746_s11 + $0x50] sm:$0xff] }
 0x14c   : > { %13764 = vst [vmem:[#allocation47_spill] sm:$0xff] %v11615_v35  ;;  %v1759_v16 = vpop.f32.mrb[8].mxu0  ;;  %v1889_v2 = vpop.f32.mrb[8].mxu1 }
 0x14d   : > { %3690 = vmatprep.subr.bf16.mxu1 %v1901_v20  ;;  %v1761_v15 = vpop.f32.mrb[9].mxu0  ;;  %v1891_v0 = vpop.f32.mrb[9].mxu1  ;;  %v1760_v3 = vadd.f32 %v1759_v16, %v11391_v14  ;;  %v11629_v58 = vadd.f32 %v1889_v2, %v11505_v22 }
 0x14e   : > { %v11623_v9 = vpop.permute.xlu1 %2115  ;;  %v11625_v23 = vpop.permute.xlu0 %2110  ;;  %3691 = vmatpush1.bf16.msra.mxu1 %v1900_v45  ;;  %v1762_v45 = vadd.f32 %v1761_v15, %v11391_v14 }
 0x14f   : > { %4383 = vperm.xlu1 %10469, %v4337_v6   ;;  %4378 = vperm.xlu0 %10468, %v4336_v1   ;;  %v1763_v62 = vpop.f32.mrb[10].mxu0  ;;  %v1893_v59 = vpop.f32.mrb[10].mxu1  ;;  %13765 = vst [vmem:[#allocation48_spill] sm:$0xff] %v11629_v58  ;;  %v11639_v6 = vadd.f32 %v1891_v0, %v11505_v22  ;;  %v4796_v58 = vld [vmem:[%s13745_s10 + $0x48] sm:$0xff] }
 0x150   : > { %v1764_v20 = vadd.f32 %v1763_v62, %v11389_v13  ;;  %v11633_v10 = vadd.f32 %v1893_v59, %v11503_v21  ;;  %v1765_v8 = vpop.f32.mrb[11].mxu0  ;;  %v1895_v63 = vpop.f32.mrb[11].mxu1 }
 0x151   : > { %13767 = vst [vmem:[#allocation50_spill] sm:$0xff] %v11639_v6  ;;  %v1766_v16 = vadd.f32 %v1765_v8, %v11389_v13  ;;  %v11643_v2 = vadd.f32 %v1895_v63, %v11503_v21  ;;  %v4449_v13 = vld [vmem:[%s13746_s11 + $0x38] sm:$0xff]  ;;  %v4448_v8 = vld [vmem:[%s13746_s11 + $0x30] sm:$0xff] }
 0x152   : > { %13766 = vst [vmem:[#allocation49_spill] sm:$0xff] %v11633_v10  ;;  %v1902_v1 = vpack.c.bf16 %v1764_v20, %v1760_v3  ;;  %v11645_v62 = vpop.permute.xlu1 %2663  ;;  %v11647_v59 = vpop.permute.xlu0 %2658  ;;  %v4795_v10 = vld [vmem:[%s13745_s10 + $0x40] sm:$0xff] }
 0x153   : > { %13768 = vst [vmem:[#allocation51_spill] sm:$0xff] %v11643_v2  ;;  %13769 = vst [vmem:[#allocation52_spill] sm:$0xff] %v11645_v62  ;;  %v1903_v44 = vpack.c.bf16 %v1766_v16, %v1762_v45  ;;  %4840 = vperm.xlu1 %10469, %v4794_v38   ;;  %4835 = vperm.xlu0 %10468, %v4793_v32   ;;  %v4906_v62 = vld [vmem:[%s13747_s15 + $0x38] sm:$0xff] }
 0x154   : > { %13770 = vst [vmem:[#allocation53_spill] sm:$0xff] %v11647_v59  ;;  %v1769_v22 = vpop.f32.mrb[12].mxu0  ;;  %v10173_v15 = vpop.f32.mrb[12].mxu1  ;;  %v4905_v59 = vld [vmem:[%s13747_s15 + $0x30] sm:$0xff] }
 0x155   : > { %3692 = vmatprep.subr.bf16.mxu1 %v1903_v44  ;;  %v1771_v21 = vpop.f32.mrb[13].mxu0  ;;  %v2333_v63 = vpop.f32.mrb[13].mxu1  ;;  %v1770_v32 = vadd.f32 %v1769_v22, %v11400_v19  ;;  %v11657_v45 = vadd.f32 %v10173_v15, %v11549_v17 }
 0x156   : > { %v2036_v0 = vpop.permute.xlu1 %2035  ;;  %v2031_v3 = vpop.permute.xlu0 %2030  ;;  %3693 = vmatpush1.bf16.msra.mxu1 %v1902_v1  ;;  %v1772_v1 = vadd.f32 %v1771_v21, %v11400_v19 }
 0x157   : > { %4495 = vperm.xlu1 %10469, %v4449_v13   ;;  %4490 = vperm.xlu0 %10468, %v4448_v8   ;;  %v1773_v20 = vpop.f32.mrb[14].mxu0  ;;  %v10174_v38 = vpop.f32.mrb[14].mxu1  ;;  %v11667_v13 = vadd.f32 %v2333_v63, %v11524_v43 }
 0x158   : > { %v1774_v16 = vadd.f32 %v1773_v20, %v11398_v18  ;;  %v11661_v44 = vadd.f32 %v10174_v38, %v11547_v12  ;;  %v1775_v7 = vpop.f32.mrb[15].mxu0  ;;  %v2336_v14 = vpop.f32.mrb[15].mxu1 }
 0x159   : > { %v1776_v22 = vadd.f32 %v1775_v7, %v11398_v18  ;;  %v11671_v17 = vadd.f32 %v2336_v14, %v11522_v40  ;;  %v4339_v18 = vld [vmem:[%s13740_s6 + $0x48] sm:$0xff]  ;;  %v4338_v7 = vld [vmem:[%s13740_s6 + $0x40] sm:$0xff] }
 0x15a   : > { %v1904_v15 = vpack.c.bf16 %v1774_v16, %v1770_v32  ;;  %v11673_v8 = vpop.permute.xlu1 %2583  ;;  %v11675_v12 = vpop.permute.xlu0 %2578 }
 0x15b   : > { %13771 = vst [vmem:[#allocation54_spill] sm:$0xff] %v11673_v8  ;;  %13772 = vst [vmem:[#allocation55_spill] sm:$0xff] %v11675_v12  ;;  %v1905_v38 = vpack.c.bf16 %v1776_v22, %v1772_v1  ;;  %4952 = vperm.xlu1 %10469, %v4906_v62   ;;  %4947 = vperm.xlu0 %10468, %v4905_v59  }
 0x15c   : > { %v1779_v43 = vpop.f32.mrb[16].mxu0  ;;  %v10177_v21 = vpop.f32.mrb[16].mxu1 }
 0x15d   : > { %3694 = vmatprep.subr.bf16.mxu1 %v1905_v38  ;;  %v1781_v40 = vpop.f32.mrb[17].mxu0  ;;  %v2349_v14 = vpop.f32.mrb[17].mxu1  ;;  %v1780_v16 = vadd.f32 %v1779_v43, %v11410_v25  ;;  %v11688_v1 = vadd.f32 %v10177_v21, %v2031_v3 }
 0x15e   : > { %v11683_v63 = vpop.permute.xlu1 %2125  ;;  %v11685_v32 = vpop.permute.xlu0 %2120  ;;  %3695 = vmatpush1.bf16.msra.mxu1 %v1904_v15  ;;  %v1782_v15 = vadd.f32 %v1781_v40, %v11410_v25 }
 0x15f   : > { %4393 = vperm.xlu1 %10469, %v4339_v18   ;;  %4388 = vperm.xlu0 %10468, %v4338_v7   ;;  %v1783_v62 = vpop.f32.mrb[18].mxu0  ;;  %v10178_v59 = vpop.f32.mrb[18].mxu1  ;;  %v11697_v18 = vadd.f32 %v2349_v14, %v11593_v11 }
 0x160   : > { %v1784_v22 = vadd.f32 %v1783_v62, %v11408_v24  ;;  %v11691_v38 = vadd.f32 %v10178_v59, %v2036_v0  ;;  %v1785_v20 = vpop.f32.mrb[19].mxu0  ;;  %v2352_v19 = vpop.f32.mrb[19].mxu1 }
 0x161   : > { %v1786_v7 = vadd.f32 %v1785_v20, %v11408_v24  ;;  %v11701_v3 = vadd.f32 %v2352_v19, %v11591_v5  ;;  %v4451_v24 = vld [vmem:[%s13746_s11 + $0x48] sm:$0xff]  ;;  %v4450_v5 = vld [vmem:[%s13746_s11 + $0x40] sm:$0xff] }
 0x162   : > { %v1906_v43 = vpack.c.bf16 %v1784_v22, %v1780_v16  ;;  %v11705_v21 = vpop.permute.xlu1 %2673  ;;  %v11707_v62 = vpop.permute.xlu0 %2668 }
 0x163   : > { %13773 = vst [vmem:[#allocation56_spill] sm:$0xff] %v11705_v21  ;;  %13774 = vst [vmem:[#allocation57_spill] sm:$0xff] %v11707_v62  ;;  %v1907_v59 = vpack.c.bf16 %v1786_v7, %v1782_v15  ;;  %4850 = vperm.xlu1 %10469, %v4796_v58   ;;  %4845 = vperm.xlu0 %10468, %v4795_v10   ;;  %v4907_v21 = vld [vmem:[%s13747_s15 + $0x40] sm:$0xff] }
 0x164   : > { %v1789_v11 = vpop.f32.mrb[20].mxu0  ;;  %v11711_v40 = vpop.f32.mrb[20].mxu1 }
 0x165   : > { %3696 = vmatprep.subr.bf16.mxu1 %v1907_v59  ;;  %v1791_v20 = vpop.f32.mrb[21].mxu0  ;;  %v2365_v19 = vpop.f32.mrb[21].mxu1  ;;  %v1790_v10 = vadd.f32 %v1789_v11, %v11421_v31  ;;  %v4908_v59 = vld [vmem:[%s13747_s15 + $0x48] sm:$0xff] }
 0x166   : > { %v2046_v14 = vpop.permute.xlu1 %2045  ;;  %v2041_v16 = vpop.permute.xlu0 %2040  ;;  %3697 = vmatpush1.bf16.msra.mxu1 %v1906_v43  ;;  %v1792_v62 = vadd.f32 %v1791_v20, %v11421_v31  ;;  %v4340_v31 = vld [vmem:[%s13740_s6 + $0x50] sm:$0xff] }
 0x167   : > { %v11715_v22 = vadd.f32 %v2365_v19, %v2041_v16  ;;  %4505 = vperm.xlu1 %10469, %v4451_v24   ;;  %4500 = vperm.xlu0 %10468, %v4450_v5   ;;  %v1793_v15 = vpop.f32.mrb[22].mxu0  ;;  %v10182_v58 = vpop.f32.mrb[22].mxu1 }
 0x168   : > { %v1794_v7 = vadd.f32 %v1793_v15, %v11419_v30  ;;  %v1795_v0 = vpop.f32.mrb[23].mxu0  ;;  %v2368_v25 = vpop.f32.mrb[23].mxu1 }
 0x169   : > { %v1796_v43 = vadd.f32 %v1795_v0, %v11419_v30  ;;  %v11723_v19 = vadd.f32 %v2368_v25, %v2046_v14 }
 0x16a   : > { %v1908_v24 = vpack.c.bf16 %v1794_v7, %v1790_v10  ;;  %v11725_v5 = vpop.permute.xlu1 %2593  ;;  %v11727_v16 = vpop.permute.xlu0 %2588 }
 0x16b   : > { %13775 = vst [vmem:[#allocation58_spill] sm:$0xff] %v11725_v5  ;;  %13776 = vst [vmem:[#allocation59_spill] sm:$0xff] %v11727_v16  ;;  %v1909_v11 = vpack.c.bf16 %v1796_v43, %v1792_v62  ;;  %4962 = vperm.xlu1 %10469, %v4908_v59   ;;  %4957 = vperm.xlu0 %10468, %v4907_v21   ;;  %v4798_v43 = vld [vmem:[%s13745_s10 + $0x58] sm:$0xff] }
 0x16c   : > { %v1799_v6 = vpop.f32.mrb[24].mxu0  ;;  %v11731_v2 = vpop.f32.mrb[24].mxu1 }
 0x16d   : > { %3698 = vmatprep.subr.bf16.mxu1 %v1909_v11  ;;  %v1801_v30 = vpop.f32.mrb[25].mxu0  ;;  %v11735_v0 = vpop.f32.mrb[25].mxu1  ;;  %v1800_v14 = vadd.f32 %v1799_v6, %v11436_v37  ;;  %v4797_v11 = vld [vmem:[%s13745_s10 + $0x50] sm:$0xff] }
 0x16e   : > { %v11737_v25 = vpop.permute.xlu1 %2135  ;;  %v11739_v20 = vpop.permute.xlu0 %2130  ;;  %3699 = vmatpush1.bf16.msra.mxu1 %v1908_v24  ;;  %v1802_v15 = vadd.f32 %v1801_v30, %v11436_v37 }
 0x16f   : > { %4403 = vperm.xlu1 %10469, %v4341_v39   ;;  %4398 = vperm.xlu0 %10468, %v4340_v31   ;;  %v1803_v62 = vpop.f32.mrb[26].mxu0  ;;  %v11741_v21 = vpop.f32.mrb[26].mxu1 }
 0x170   : > { %v1804_v10 = vadd.f32 %v1803_v62, %v11434_v36  ;;  %v1805_v7 = vpop.f32.mrb[27].mxu0  ;;  %v11745_v59 = vpop.f32.mrb[27].mxu1 }
 0x171   : > { %v1806_v24 = vadd.f32 %v1805_v7, %v11434_v36 }
 0x172   : > { %v1910_v39 = vpack.c.bf16 %v1804_v10, %v1800_v14  ;;  %v11751_v31 = vpop.permute.xlu1 %2683  ;;  %v11753_v5 = vpop.permute.xlu0 %2678 }
 0x173   : > { %13777 = vst [vmem:[#allocation60_spill] sm:$0xff] %v11751_v31  ;;  %v1911_v16 = vpack.c.bf16 %v1806_v24, %v1802_v15  ;;  %4860 = vperm.xlu1 %10469, %v4798_v43   ;;  %4855 = vperm.xlu0 %10468, %v4797_v11   ;;  %v4343_v31 = vld [vmem:[%s13740_s6 + $0x68] sm:$0xff] }
 0x174   : > { %v1809_v6 = vpop.f32.mrb[28].mxu0  ;;  %v10189_v62 = vpop.f32.mrb[28].mxu1 }
 0x175   : > { %3700 = vmatprep.subr.bf16.mxu1 %v1911_v16  ;;  %v1811_v35 = vpop.f32.mrb[29].mxu0  ;;  %v2397_v8 = vpop.f32.mrb[29].mxu1  ;;  %v1810_v36 = vadd.f32 %v1809_v6, %v11445_v42  ;;  %v2406_v16 = vadd.f32 %v10189_v62, %v11536_v55  ;;  %v4910_v6 = vld [vmem:[%s13747_s15 + $0x58] sm:$0xff] }
 0x176   : > { %v2056_v12 = vpop.permute.xlu1 %2055  ;;  %v2051_v37 = vpop.permute.xlu0 %2050  ;;  %3701 = vmatpush1.bf16.msra.mxu1 %v1910_v39  ;;  %v1812_v7 = vadd.f32 %v1811_v35, %v11445_v42 }
 0x177   : > { %v11758_v30 = vadd.f32 %v10182_v58, %v2056_v12  ;;  %v11761_v15 = vadd.f32 %v11711_v40, %v2051_v37  ;;  %4515 = vperm.xlu1 %10469, %v4453_v33   ;;  %4510 = vperm.xlu0 %10468, %v4452_v34   ;;  %v1813_v14 = vpop.f32.mrb[30].mxu0  ;;  %v10190_v10 = vpop.f32.mrb[30].mxu1  ;;  %v4909_v12 = vld [vmem:[%s13747_s15 + $0x50] sm:$0xff]  ;;  %v2398_v34 = vadd.f32 %v2397_v8, %v11512_v29  ;;  %v4342_v33 = vld [vmem:[%s13740_s6 + $0x60] sm:$0xff] }
 0x178   : > { %v1814_v43 = vadd.f32 %v1813_v14, %v11443_v41  ;;  %v2409_v11 = vadd.f32 %v10190_v10, %v11534_v54  ;;  %v1815_v24 = vpop.f32.mrb[31].mxu0  ;;  %v2400_v39 = vpop.f32.mrb[31].mxu1 }
 0x179   : > { %v1816_v40 = vadd.f32 %v1815_v24, %v11443_v41  ;;  %v2401_v55 = vadd.f32 %v2400_v39, %v11510_v28 }
 0x17a   : > { %v1912_v42 = vpack.c.bf16 %v1814_v43, %v1810_v36  ;;  %v2469_v35 = vpack.c.bf16 %v2409_v11, %v2406_v16  ;;  %v11774_v58 = vpop.permute.xlu1 %2603  ;;  %v11776_v54 = vpop.permute.xlu0 %2598  ;;  %v13778_v16 = vpack.c.bf16 %v11671_v17, %v11667_v13 }
 0x17b   : > { %v1913_v62 = vpack.c.bf16 %v1816_v40, %v1812_v7  ;;  %v2468_v37 = vpack.c.bf16 %v2401_v55, %v2398_v34  ;;  %4972 = vperm.xlu1 %10469, %v4910_v6   ;;  %4967 = vperm.xlu0 %10468, %v4909_v12   ;;  %v4800_v34 = vld [vmem:[%s13745_s10 + $0x68] sm:$0xff]  ;;  %v4799_v40 = vld [vmem:[%s13745_s10 + $0x60] sm:$0xff] }
 0x17c   : > { %v1819_v14 = vpop.f32.mrb[32].mxu0  ;;  %v10193_v10 = vpop.f32.mrb[32].mxu1 }
 0x17d   : > { %3702 = vmatprep.subr.bf16.mxu1 %v1913_v62  ;;  %10039 = vmatprep.subr.bf16.mxu0 %v2468_v37  ;;  %v1821_v29 = vpop.f32.mrb[33].mxu0  ;;  %v2413_v41 = vpop.f32.mrb[33].mxu1  ;;  %v1820_v11 = vadd.f32 %v1819_v14, %v11453_v47  ;;  %v2422_v24 = vadd.f32 %v10193_v10, %v11625_v23  ;;  %v4455_v14 = vld [vmem:[%s13746_s11 + $0x68] sm:$0xff] }
 0x17e   : > { %v11780_v8 = vpop.permute.xlu1 %2145  ;;  %v11782_v28 = vpop.permute.xlu0 %2140  ;;  %v2414_v36 = vadd.f32 %v2413_v41, %v11561_v53  ;;  %3703 = vmatpush1.bf16.msra.mxu1 %v1912_v42  ;;  %10040 = vmatpush3.bf16.msra.mxu0 %v13778_v16  ;;  %v1822_v13 = vadd.f32 %v1821_v29, %v11453_v47  ;;  %v13780_v16 = vpack.c.bf16 %v11701_v3, %v11697_v18 }
 0x17f   : > { %4413 = vperm.xlu1 %10469, %v4343_v31   ;;  %4408 = vperm.xlu0 %10468, %v4342_v33   ;;  %v1823_v7 = vpop.f32.mrb[34].mxu0  ;;  %v10194_v43 = vpop.f32.mrb[34].mxu1 }
 0x180   : > { %v1824_v39 = vadd.f32 %v1823_v7, %v11451_v46  ;;  %v2425_v6 = vadd.f32 %v10194_v43, %v11623_v9  ;;  %10041 = vmatprep.subr.bf16.mxu0 %v2469_v35  ;;  %v1825_v12 = vpop.f32.mrb[35].mxu0  ;;  %v2416_v53 = vpop.f32.mrb[35].mxu1  ;;  %v13779_v9 = vpack.c.bf16 %v11661_v44, %v11657_v45 }
 0x181   : > { %v1826_v17 = vadd.f32 %v1825_v12, %v11451_v46  ;;  %v2417_v31 = vadd.f32 %v2416_v53, %v11559_v50  ;;  %v4454_v46 = vld [vmem:[%s13746_s11 + $0x60] sm:$0xff] }
 0x182   : > { %v1914_v33 = vpack.c.bf16 %v1824_v39, %v1820_v11  ;;  %v2471_v55 = vpack.c.bf16 %v2425_v6, %v2422_v24  ;;  %v11797_v23 = vpop.permute.xlu1 %2693  ;;  %v11799_v42 = vpop.permute.xlu0 %2688  ;;  %10042 = vmatpush3.bf16.msra.mxu0 %v13779_v9  ;;  %v4911_v12 = vld [vmem:[%s13747_s15 + $0x60] sm:$0xff]  ;;  %v4345_v9 = vld [vmem:[%s13740_s6 + $0x78] sm:$0xff] }
 0x183   : > { %v1915_v35 = vpack.c.bf16 %v1826_v17, %v1822_v13  ;;  %v2470_v62 = vpack.c.bf16 %v2417_v31, %v2414_v36  ;;  %4870 = vperm.xlu1 %10469, %v4800_v34   ;;  %4865 = vperm.xlu0 %10468, %v4799_v40   ;;  %v13781_v17 = vpack.c.bf16 %v11691_v38, %v11688_v1 }
 0x184   : > { %v1829_v37 = vpop.f32.mrb[36].mxu0  ;;  %v10197_v47 = vpop.f32.mrb[36].mxu1  ;;  %v13782_v1 = vpack.c.bf16 %v11723_v19, %v11715_v22 }
 0x185   : > { %3704 = vmatprep.subr.bf16.mxu1 %v1915_v35  ;;  %10043 = vmatprep.subr.bf16.mxu0 %v2470_v62  ;;  %v1831_v50 = vpop.f32.mrb[37].mxu0  ;;  %v2429_v10 = vpop.f32.mrb[37].mxu1  ;;  %v1830_v45 = vadd.f32 %v1829_v37, %v11461_v52  ;;  %v2438_v11 = vadd.f32 %v10197_v47, %v11739_v20 }
 0x186   : > { %v2066_v29 = vpop.permute.xlu1 %2065  ;;  %v2061_v41 = vpop.permute.xlu0 %2060  ;;  %3705 = vmatpush1.bf16.msra.mxu1 %v1914_v33  ;;  %10044 = vmatpush3.bf16.msra.mxu0 %v13780_v16  ;;  %v1832_v24 = vadd.f32 %v1831_v50, %v11461_v52  ;;  %v2430_v53 = vadd.f32 %v2429_v10, %v11685_v32  ;;  %v4802_v16 = vld [vmem:[%s13745_s10 + $0x78] sm:$0xff] }
 0x187   : > { %v11811_v44 = vadd.f32 %v11745_v59, %v2066_v29  ;;  %v11814_v36 = vadd.f32 %v11735_v0, %v2061_v41  ;;  %4525 = vperm.xlu1 %10469, %v4455_v14   ;;  %4520 = vperm.xlu0 %10468, %v4454_v46   ;;  %v1833_v7 = vpop.f32.mrb[38].mxu0  ;;  %v10198_v43 = vpop.f32.mrb[38].mxu1  ;;  %v4912_v59 = vld [vmem:[%s13747_s15 + $0x68] sm:$0xff] }
 0x188   : > { %v1834_v18 = vadd.f32 %v1833_v7, %v11459_v51  ;;  %v2441_v3 = vadd.f32 %v10198_v43, %v11737_v25  ;;  %10045 = vmatprep.subr.bf16.mxu0 %v2471_v55  ;;  %v1835_v39 = vpop.f32.mrb[39].mxu0  ;;  %v2432_v6 = vpop.f32.mrb[39].mxu1 }
 0x189   : > { %v2466_v0 = vpack.c.bf16 %v11811_v44, %v11814_v36  ;;  %v1836_v20 = vadd.f32 %v1835_v39, %v11459_v51  ;;  %v2433_v52 = vadd.f32 %v2432_v6, %v11683_v63  ;;  %v4344_v51 = vld [vmem:[%s13740_s6 + $0x70] sm:$0xff]  ;;  %v4457_v6 = vld [vmem:[%s13746_s11 + $0x78] sm:$0xff]  ;;  %s13896_s6 = sld [smem:[#allocation26_spill]] }
 0x18a   : > { %v1916_v34 = vpack.c.bf16 %v1834_v18, %v1830_v45  ;;  %v2473_v40 = vpack.c.bf16 %v2441_v3, %v2438_v11  ;;  %v11827_v13 = vpop.permute.xlu1 %2613  ;;  %v11829_v25 = vpop.permute.xlu0 %2608  ;;  %10046 = vmatpush3.bf16.msra.mxu0 %v13781_v17  ;;  %v4801_v45 = vld [vmem:[%s13745_s10 + $0x70] sm:$0xff]  ;;  %v13783_v18 = vpack.c.bf16 %v11758_v30, %v11761_v15 }
 0x18b   : > { %v1917_v31 = vpack.c.bf16 %v1836_v20, %v1832_v24  ;;  %v2472_v33 = vpack.c.bf16 %v2433_v52, %v2430_v53  ;;  %4982 = vperm.xlu1 %10469, %v4912_v59   ;;  %4977 = vperm.xlu0 %10468, %v4911_v12  }
 0x18c   : > { %v1839_v55 = vpop.f32.mrb[40].mxu0  ;;  %v10201_v32 = vpop.f32.mrb[40].mxu1 }
 0x18d   : > { %3706 = vmatprep.subr.bf16.mxu1 %v1917_v31  ;;  %10047 = vmatprep.subr.bf16.mxu0 %v2472_v33  ;;  %v1841_v63 = vpop.f32.mrb[41].mxu0  ;;  %v2445_v35 = vpop.f32.mrb[41].mxu1  ;;  %v1840_v46 = vadd.f32 %v1839_v55, %v11469_v57  ;;  %v4914_v55 = vld [vmem:[%s13747_s15 + $0x78] sm:$0xff] }
 0x18e   : > { %v2156_v62 = vpop.permute.xlu1 %2155  ;;  %v2151_v37 = vpop.permute.xlu0 %2150  ;;  %3707 = vmatpush1.bf16.msra.mxu1 %v1916_v34  ;;  %10048 = vmatpush3.bf16.msra.mxu0 %v13782_v1  ;;  %v1842_v44 = vadd.f32 %v1841_v63, %v11469_v57  ;;  %v2446_v22 = vadd.f32 %v2445_v35, %v11782_v28  ;;  %v3071_v1 = vld [vmem:[%s13784_s18 + $0x8] sm:$0xff] }
 0x18f   : > { %v2454_v38 = vadd.f32 %v10201_v32, %v2151_v37  ;;  %4423 = vperm.xlu1 %10469, %v4345_v9   ;;  %4418 = vperm.xlu0 %10468, %v4344_v51   ;;  %v1843_v47 = vpop.f32.mrb[42].mxu0  ;;  %v10202_v14 = vpop.f32.mrb[42].mxu1  ;;  %v10546_v37 = vld [vmem:[%s13744_s2] ss:$8 sps:$4 sm:$0xff]  }
 0x190   : > { %v1844_v50 = vadd.f32 %v1843_v47, %v11467_v56  ;;  %v2457_v10 = vadd.f32 %v10202_v14, %v2156_v62  ;;  %10049 = vmatprep.subr.bf16.mxu0 %v2473_v40  ;;  %v1845_v29 = vpop.f32.mrb[43].mxu0  ;;  %v2448_v41 = vpop.f32.mrb[43].mxu1 }
 0x191   : > { %v1846_v19 = vadd.f32 %v1845_v29, %v11467_v56  ;;  %v2449_v36 = vadd.f32 %v2448_v41, %v11780_v8  ;;  %v4456_v56 = vld [vmem:[%s13746_s11 + $0x70] sm:$0xff] }
 0x192   : > { %v1918_v7 = vpack.c.bf16 %v1844_v50, %v1840_v46  ;;  %v2475_v43 = vpack.c.bf16 %v2457_v10, %v2454_v38  ;;  %v11847_v11 = vpop.permute.xlu1 %2703  ;;  %v11849_v24 = vpop.permute.xlu0 %2698  ;;  %10050 = vmatpush3.bf16.msra.mxu0 %v13783_v18  ;;  %v10549_v38 = vld [vmem:[%s13744_s2 + $0x14] ss:$8 sps:$4 sm:$0xff]   ;;  %v3070_v46 = vld [vmem:[%s13784_s18] sm:$0xff] }
 0x193   : > { %v1919_v3 = vpack.c.bf16 %v1846_v19, %v1842_v44  ;;  %v2474_v39 = vpack.c.bf16 %v2449_v36, %v2446_v22  ;;  %4880 = vperm.xlu1 %10469, %v4802_v16   ;;  %4875 = vperm.xlu0 %10468, %v4801_v45   ;;  %v13785_v45 = vld [vmem:[#allocation55_spill] sm:$0xff]  ;;  %v13787_v36 = vld [vmem:[#allocation54_spill] sm:$0xff] }
 0x194   : > { %v1849_v57 = vpop.f32.mrb[44].mxu0  ;;  %v10211_v28 = vpop.f32.mrb[44].mxu1  ;;  %v13786_v22 = vld [vmem:[#allocation31_spill] sm:$0xff] }
 0x195   : > { %3708 = vmatprep.subr.bf16.mxu1 %v1919_v3  ;;  %10051 = vmatprep.subr.bf16.mxu0 %v2474_v39  ;;  %v1851_v8 = vpop.f32.mrb[45].mxu0  ;;  %v2887_v59 = vpop.f32.mrb[45].mxu1  ;;  %v1850_v30 = vadd.f32 %v1849_v57, %v11476_v61  ;;  %v11860_v40 = vadd.f32 %v10211_v28, %v11555_v27  ;;  %v3073_v3 = vld [vmem:[%s13784_s18 + $0x18] sm:$0xff]  ;;  %v13788_v57 = vld [vmem:[#allocation47_spill] sm:$0xff] }
 0x196   : > { %v2076_v12 = vpop.permute.xlu1 %2075  ;;  %v2071_v53 = vpop.permute.xlu0 %2070  ;;  %3709 = vmatpush1.bf16.msra.mxu1 %v1918_v7  ;;  %10052 = vmatpush3.bf16.msra.mxu0 %v2466_v0  ;;  %v1852_v17 = vadd.f32 %v1851_v8, %v11476_v61  ;;  %v11870_v9 = vadd.f32 %v2887_v59, %v11530_v49  ;;  %v3072_v59 = vld [vmem:[%s13784_s18 + $0x10] sm:$0xff] }
 0x197   : > { %v2393_v15 = vadd.f32 %v11741_v21, %v2076_v12  ;;  %v2390_v20 = vadd.f32 %v11731_v2, %v2071_v53  ;;  %4535 = vperm.xlu1 %10469, %v4457_v6   ;;  %4530 = vperm.xlu0 %10468, %v4456_v56   ;;  %v1853_v52 = vpop.f32.mrb[46].mxu0  ;;  %v10212_v34 = vpop.f32.mrb[46].mxu1  ;;  %v4913_v2 = vld [vmem:[%s13747_s15 + $0x70] sm:$0xff]  ;;  %v13789_v56 = vld [vmem:[#allocation46_spill] sm:$0xff] }
 0x198   : > { %v1854_v31 = vadd.f32 %v1853_v52, %v11474_v60  ;;  %v11865_v0 = vadd.f32 %v10212_v34, %v11553_v26  ;;  %10053 = vmatprep.subr.bf16.mxu0 %v2475_v43  ;;  %v1855_v33 = vpop.f32.mrb[47].mxu0  ;;  %v2890_v21 = vpop.f32.mrb[47].mxu1  ;;  %v10551_v52 = vld [vmem:[%s13744_s2 + $0x10] ss:$8 sps:$4 sm:$0xff]  }
 0x199   : > { %v2467_v32 = vpack.c.bf16 %v2393_v15, %v2390_v20  ;;  %v1856_v27 = vadd.f32 %v1855_v33, %v11474_v60  ;;  %v11874_v61 = vadd.f32 %v2890_v21, %v11528_v48  ;;  %v3074_v21 = vld [vmem:[%s13784_s18 + $0x20] sm:$0xff]  ;;  %v13818_v20 = vld [vmem:[#allocation33_spill] sm:$0xff] }
 0x19a   : > { %v1920_v51 = vpack.c.bf16 %v1854_v31, %v1850_v30  ;;  %v11878_v63 = vpop.permute.xlu1 %2623  ;;  %v11880_v35 = vpop.permute.xlu0 %2618  ;;  %v3084_v26 = vld [vmem:[%s13784_s18 + $0x70] sm:$0xff] }
 0x19b   : > { %v1921_v62 = vpack.c.bf16 %v1856_v27, %v1852_v17  ;;  %4992 = vperm.xlu1 %10469, %v4914_v55   ;;  %4987 = vperm.xlu0 %10468, %v4913_v2   ;;  %v3075_v17 = vld [vmem:[%s13784_s18 + $0x28] sm:$0xff]  ;;  %v10563_v49 = vld [vmem:[%s13750_s16 + $0x10] ss:$8 sps:$4 sm:$0xff]  }
 0x19c   : > { %10054 = vmatpush3.bf16.msra.mxu0 %v2467_v32  ;;  %v1859_v60 = vpop.f32.mrb[48].mxu0  ;;  %v10215_v48 = vpop.f32.mrb[48].mxu1  ;;  %v10552_v55 = vld [vmem:[%s13744_s2 + $0x24] ss:$8 sps:$4 sm:$0xff]  }
 0x19d   : > { %3710 = vmatprep.subr.bf16.mxu1 %v1921_v62  ;;  %v1861_v47 = vpop.f32.mrb[49].mxu0  ;;  %v2903_v14 = vpop.f32.mrb[49].mxu1  ;;  %v1860_v29 = vadd.f32 %v1859_v60, %v11487_v4  ;;  %v11894_v44 = vadd.f32 %v10215_v48, %v13785_v45  ;;  %v13792_v48 = vld [vmem:[#allocation39_spill] sm:$0xff]  ;;  %v3076_v45 = vld [vmem:[%s13784_s18 + $0x30] sm:$0xff] }
 0x19e   : > { %v11888_v50 = vpop.permute.xlu1 %4353  ;;  %v11890_v10 = vpop.permute.xlu0 %4348  ;;  %3711 = vmatpush1.bf16.msra.mxu1 %v1920_v51  ;;  %v1862_v39 = vadd.f32 %v1861_v47, %v11487_v4  ;;  %v11903_v28 = vadd.f32 %v2903_v14, %v13788_v57  ;;  %v3077_v14 = vld [vmem:[%s13784_s18 + $0x38] sm:$0xff]  ;;  %v13803_v57 = vld [vmem:[#allocation44_spill] sm:$0xff] }
 0x19f   : > { %4266 = vmatmul.mubr.bf16.vlgmr.msra.gmra.mrb[84].mxu0 %v10546_v37  ;;  %3109 = vperm.xlu1 %10469, %v3071_v1   ;;  %v1863_v41 = vpop.f32.mrb[50].mxu0  ;;  %v10216_v16 = vpop.f32.mrb[50].mxu1  ;;  %v13793_v1 = vld [vmem:[#allocation38_spill] sm:$0xff] }
 0x1a0   : > { %3104 = vperm.xlu0 %10468, %v3070_v46   ;;  %v1864_v19 = vadd.f32 %v1863_v41, %v13786_v22  ;;  %v11898_v7 = vadd.f32 %v10216_v16, %v13787_v36  ;;  %v1865_v43 = vpop.f32.mrb[51].mxu0  ;;  %v2906_v18 = vpop.f32.mrb[51].mxu1  ;;  %4273 = vmatprep.mubr.bf16.mxu0 %v10549_v38  ;;  %v13794_v38 = vpack.c.bf16 %v13792_v48, %v13793_v1  ;;  %v13796_v16 = vld [vmem:[#allocation58_spill] sm:$0xff]  ;;  %v13799_v36 = vld [vmem:[#allocation37_spill] sm:$0xff] }
 0x1a1   : > { %v1866_v6 = vadd.f32 %v1865_v43, %v13786_v22  ;;  %v11907_v8 = vadd.f32 %v2906_v18, %v13789_v56  ;;  %v13800_v43 = vld [vmem:[#allocation36_spill] sm:$0xff]  ;;  %v13806_v48 = vld [vmem:[#allocation42_spill] sm:$0xff] }
 0x1a2   : > { %v1922_v12 = vpack.c.bf16 %v1864_v19, %v1860_v29  ;;  %v11912_v30 = vpop.permute.xlu1 %4810  ;;  %v11914_v15 = vpop.permute.xlu0 %4805  ;;  %v13795_v29 = vld [vmem:[#allocation59_spill] sm:$0xff]  ;;  %v13801_v18 = vpack.c.bf16 %v13799_v36, %v13800_v43 }
 0x1a3   : > { %13790 = vst [vmem:[#allocation55_spill] sm:$0xff] %v11912_v30  ;;  %13791 = vst [vmem:[#allocation31_spill] sm:$0xff] %v11914_v15  ;;  %v1923_v4 = vpack.c.bf16 %v1866_v6, %v1862_v39  ;;  %3119 = vperm.xlu1 %10469, %v3073_v3   ;;  %v13802_v39 = vld [vmem:[#allocation45_spill] sm:$0xff]  ;;  %v10554_v56 = vld [vmem:[%s13744_s2 + $0x20] ss:$8 sps:$4 sm:$0xff]  }
 0x1a4   : > { %3114 = vperm.xlu0 %10468, %v3072_v59   ;;  %v10219_v34 = vpop.f32.mrb[52].mxu1  ;;  %v11920_v31 = vpop.f32.mrb[52].mxu0  ;;  %v13804_v6 = vpack.c.bf16 %v13802_v39, %v13803_v57  ;;  %v3085_v3 = vld [vmem:[%s13784_s18 + $0x78] sm:$0xff] }
 0x1a5   : > { %3712 = vmatprep.subr.bf16.mxu1 %v1923_v4  ;;  %v2919_v33 = vpop.f32.mrb[53].mxu1  ;;  %v11924_v2 = vpop.f32.mrb[53].mxu0  ;;  %v11933_v37 = vadd.f32 %v10219_v34, %v11776_v54  ;;  %v3078_v34 = vld [vmem:[%s13784_s18 + $0x40] sm:$0xff]  ;;  %v3089_v30 = vld [vmem:[%s13784_s18 + $0x98] sm:$0xff] }
 0x1a6   : > { %v11926_v32 = vpop.permute.xlu1 %4465  ;;  %v11928_v27 = vpop.permute.xlu0 %4460  ;;  %3713 = vmatpush1.bf16.msra.mxu1 %v1922_v12  ;;  %v11945_v41 = vadd.f32 %v2919_v33, %v13795_v29  ;;  %v3079_v12 = vld [vmem:[%s13784_s18 + $0x48] sm:$0xff]  ;;  %v10575_v15 = vld [vmem:[%s13750_s16 + $0x30] ss:$8 sps:$4 sm:$0xff]  }
 0x1a7   : > { %4274 = vmatmul.mubr.bf16.gmra.mrb[88].mxu0 %v10551_v52  ;;  %3129 = vperm.xlu1 %10469, %v3075_v17   ;;  %v10220_v51 = vpop.f32.mrb[54].mxu1  ;;  %v11930_v62 = vpop.f32.mrb[54].mxu0  ;;  %v10558_v17 = vld [vmem:[%s13744_s2 + $0x34] ss:$8 sps:$4 sm:$0xff]  }
 0x1a8   : > { %3124 = vperm.xlu0 %10468, %v3074_v21   ;;  %v11936_v60 = vadd.f32 %v10220_v51, %v11774_v58  ;;  %3714 = vmatprep.subr.bf16.mxu1 %v13794_v38  ;;  %v2922_v47 = vpop.f32.mrb[55].mxu1  ;;  %v11942_v46 = vpop.f32.mrb[55].mxu0  ;;  %v13805_v51 = vld [vmem:[#allocation43_spill] sm:$0xff] }
 0x1a9   : > { %v11948_v54 = vadd.f32 %v2922_v47, %v13796_v16  ;;  %4281 = vmatprep.mubr.bf16.mxu0 %v10552_v55  ;;  %v13807_v1 = vpack.c.bf16 %v13805_v51, %v13806_v48  ;;  %v13808_v16 = vld [vmem:[#allocation51_spill] sm:$0xff]  ;;  %v13814_v51 = vld [vmem:[#allocation48_spill] sm:$0xff] }
 0x1aa   : > { %v11953_v22 = vpop.permute.xlu1 %4922  ;;  %v11955_v19 = vpop.permute.xlu0 %4917  ;;  %3715 = vmatpush1.bf16.msra.mxu1 %v13801_v18  ;;  %v3081_v18 = vld [vmem:[%s13784_s18 + $0x58] sm:$0xff] }
 0x1ab   : > { %13797 = vst [vmem:[#allocation54_spill] sm:$0xff] %v11953_v22  ;;  %13798 = vst [vmem:[#allocation47_spill] sm:$0xff] %v11955_v19  ;;  %3139 = vperm.xlu1 %10469, %v3077_v14   ;;  %3716 = vmatprep.subr.bf16.mxu1 %v13804_v6  ;;  %v3080_v6 = vld [vmem:[%s13784_s18 + $0x50] sm:$0xff]  ;;  %v10569_v19 = vld [vmem:[%s13750_s16 + $0x20] ss:$8 sps:$4 sm:$0xff]  }
 0x1ac   : > { %3134 = vperm.xlu0 %10468, %v3076_v45   ;;  %v10223_v59 = vpop.f32.mrb[56].mxu1  ;;  %v11967_v4 = vpop.f32.mrb[56].mxu0  ;;  %v13809_v45 = vld [vmem:[#allocation50_spill] sm:$0xff] }
 0x1ad   : > { %v2935_v52 = vpop.f32.mrb[57].mxu1  ;;  %v11971_v33 = vpop.f32.mrb[57].mxu0  ;;  %v11983_v14 = vadd.f32 %v10223_v59, %v11880_v35  ;;  %v13810_v36 = vpack.c.bf16 %v13808_v16, %v13809_v45 }
 0x1ae   : > { %v11973_v21 = vpop.permute.xlu1 %4363  ;;  %v11975_v55 = vpop.permute.xlu0 %4358  ;;  %3717 = vmatpush1.bf16.msra.mxu1 %v13807_v1  ;;  %v11995_v57 = vadd.f32 %v2935_v52, %v11829_v25  ;;  %v10561_v25 = vld [vmem:[%s13750_s16 + $0x14] ss:$8 sps:$4 sm:$0xff]   ;;  %v10560_v52 = vld [vmem:[%s13744_s2 + $0x30] ss:$8 sps:$4 sm:$0xff]   ;;  %v3083_v1 = vld [vmem:[%s13784_s18 + $0x68] sm:$0xff] }
 0x1af   : > { %4282 = vmatmul.mubr.bf16.gmra.mrb[92].mxu0 %v10554_v56  ;;  %3149 = vperm.xlu1 %10469, %v3079_v12   ;;  %v10224_v38 = vpop.f32.mrb[58].mxu1  ;;  %v11980_v47 = vpop.f32.mrb[58].mxu0 }
 0x1b0   : > { %3144 = vperm.xlu0 %10468, %v3078_v34   ;;  %v11986_v29 = vadd.f32 %v10224_v38, %v11878_v63  ;;  %3718 = vmatprep.subr.bf16.mxu1 %v13810_v36  ;;  %v2938_v43 = vpop.f32.mrb[59].mxu1  ;;  %v11992_v39 = vpop.f32.mrb[59].mxu0  ;;  %v10555_v63 = vld [vmem:[%s13750_s16] ss:$8 sps:$4 sm:$0xff]   ;;  %v13813_v34 = vld [vmem:[#allocation49_spill] sm:$0xff] }
 0x1b1   : > { %v11998_v35 = vadd.f32 %v2938_v43, %v11827_v13  ;;  %4289 = vmatprep.mubr.bf16.mxu0 %v10558_v17  ;;  %v13815_v48 = vpack.c.bf16 %v13813_v34, %v13814_v51  ;;  %v10564_v38 = vld [vmem:[%s13744_s2 + $0x44] ss:$8 sps:$4 sm:$0xff]  }
 0x1b2   : > { %v12004_v59 = vpop.permute.xlu1 %4820  ;;  %v12006_v12 = vpop.permute.xlu0 %4815  ;;  %v3082_v36 = vld [vmem:[%s13784_s18 + $0x60] sm:$0xff] }
 0x1b3   : > { %13811 = vst [vmem:[#allocation46_spill] sm:$0xff] %v12004_v59  ;;  %13812 = vst [vmem:[#allocation39_spill] sm:$0xff] %v12006_v12  ;;  %3719 = vmatpush1.bf16.msra.mxu1 %v13815_v48  ;;  %3159 = vperm.xlu1 %10469, %v3081_v18   ;;  %v13816_v48 = vld [vmem:[#allocation35_spill] sm:$0xff]  ;;  %v3087_v12 = vld [vmem:[%s13784_s18 + $0x88] sm:$0xff] }
 0x1b4   : > { %3154 = vperm.xlu0 %10468, %v3080_v6   ;;  %v10227_v17 = vpop.f32.mrb[60].mxu1  ;;  %v12017_v16 = vpop.f32.mrb[60].mxu0 }
 0x1b5   : > { %v2951_v45 = vpop.f32.mrb[61].mxu1  ;;  %v12020_v43 = vpop.f32.mrb[61].mxu0  ;;  %v2960_v56 = vadd.f32 %v10227_v17, %v13816_v48 }
 0x1b6   : > { %3721 = vmatmul.mubr.bf16.vlgmr.msra.gmra.mrb[76].mxu1 %v10555_v63  ;;  %v12022_v34 = vpop.permute.xlu1 %4475  ;;  %v12024_v51 = vpop.permute.xlu0 %4470  ;;  %v13817_v63 = vld [vmem:[#allocation34_spill] sm:$0xff] }
 0x1b7   : > { %3730 = vmatprep.mubr.bf16.mxu1 %v10561_v25  ;;  %4290 = vmatmul.mubr.bf16.gmra.mrb[96].mxu0 %v10560_v52  ;;  %v10228_v18 = vpop.f32.mrb[62].mxu1  ;;  %v12026_v6 = vpop.f32.mrb[62].mxu0  ;;  %v2952_v25 = vadd.f32 %v2951_v45, %v13818_v20  ;;  %v13819_v52 = vld [vmem:[#allocation32_spill] sm:$0xff]  ;;  %v10570_v45 = vld [vmem:[%s13744_s2 + $0x54] ss:$8 sps:$4 sm:$0xff]  }
 0x1b8   : > { %3169 = vperm.xlu1 %10469, %v3083_v1   ;;  %3164 = vperm.xlu0 %10468, %v3082_v36   ;;  %v2963_v13 = vadd.f32 %v10228_v18, %v13817_v63  ;;  %v2954_v58 = vpop.f32.mrb[63].mxu1  ;;  %v12031_v53 = vpop.f32.mrb[63].mxu0  ;;  %v10567_v18 = vld [vmem:[%s13750_s16 + $0x24] ss:$8 sps:$4 sm:$0xff]   ;;  %v10566_v63 = vld [vmem:[%s13744_s2 + $0x40] ss:$8 sps:$4 sm:$0xff]  }
 0x1b9   : > { %4297 = vmatprep.mubr.bf16.mxu0 %v10564_v38  ;;  %v2955_v1 = vadd.f32 %v2954_v58, %v13819_v52  ;;  %v3086_v58 = vld [vmem:[%s13784_s18 + $0x80] sm:$0xff] }
 0x1ba   : > { %v3023_v59 = vpack.c.bf16 %v2963_v13, %v2960_v56  ;;  %v12037_v17 = vpop.permute.xlu1 %4932  ;;  %v12039_v36 = vpop.permute.xlu0 %4927 }
 0x1bb   : > { %13820 = vst [vmem:[#allocation38_spill] sm:$0xff] %v12037_v17  ;;  %13821 = vst [vmem:[#allocation59_spill] sm:$0xff] %v12039_v36  ;;  %v3022_v48 = vpack.c.bf16 %v2955_v1, %v2952_v25  ;;  %v13823_v25 = vld [vmem:[#allocation53_spill] sm:$0xff] }
 0x1bc   : > { %3179 = vperm.xlu1 %10469, %v3085_v3   ;;  %3174 = vperm.xlu0 %10468, %v3084_v26   ;;  %v10231_v38 = vpop.f32.mrb[64].mxu1  ;;  %v12044_v22 = vpop.f32.mrb[64].mxu0  ;;  %v13822_v3 = vpack.c.bf16 %v11874_v61, %v11870_v9  ;;  %v13825_v61 = vld [vmem:[#allocation41_spill] sm:$0xff] }
 0x1bd   : > { %10103 = vmatprep.subr.bf16.mxu1 %v3022_v48  ;;  %v2967_v20 = vpop.f32.mrb[65].mxu1  ;;  %v12048_v56 = vpop.f32.mrb[65].mxu0  ;;  %v2976_v1 = vadd.f32 %v10231_v38, %v13823_v25  ;;  %v13824_v48 = vld [vmem:[#allocation52_spill] sm:$0xff]  ;;  %v10573_v25 = vld [vmem:[%s13750_s16 + $0x34] ss:$8 sps:$4 sm:$0xff]  }
 0x1be   : > { %3731 = vmatmul.mubr.bf16.gmra.mrb[80].mxu1 %v10563_v49  ;;  %v12050_v13 = vpop.permute.xlu1 %4373  ;;  %v12052_v52 = vpop.permute.xlu0 %4368 }
 0x1bf   : > { %10104 = vmatpush3.bf16.msra.mxu1 %v13822_v3  ;;  %3740 = vmatprep.mubr.bf16.mxu1 %v10567_v18  ;;  %v10232_v26 = vpop.f32.mrb[66].mxu1  ;;  %v12057_v49 = vpop.f32.mrb[66].mxu0  ;;  %v2968_v18 = vadd.f32 %v2967_v20, %v13825_v61  ;;  %v3088_v3 = vld [vmem:[%s13784_s18 + $0x90] sm:$0xff]  ;;  %v3091_v61 = vld [vmem:[%s13784_s18 + $0xa8] sm:$0xff] }
 0x1c0   : > { %4298 = vmatmul.mubr.bf16.gmra.mrb[100].mxu0 %v10566_v63  ;;  %3189 = vperm.xlu1 %10469, %v3087_v12   ;;  %v2979_v17 = vadd.f32 %v10232_v26, %v13824_v48  ;;  %v2970_v36 = vpop.f32.mrb[67].mxu1  ;;  %v12062_v9 = vpop.f32.mrb[67].mxu0  ;;  %v13826_v63 = vld [vmem:[#allocation40_spill] sm:$0xff]  ;;  %v10572_v20 = vld [vmem:[%s13744_s2 + $0x50] ss:$8 sps:$4 sm:$0xff]  }
 0x1c1   : > { %3184 = vperm.xlu0 %10468, %v3086_v58   ;;  %10105 = vmatprep.subr.bf16.mxu1 %v3023_v59  ;;  %v2971_v12 = vadd.f32 %v2970_v36, %v13826_v63  ;;  %v13829_v59 = vpack.c.bf16 %v11865_v0, %v11860_v40  ;;  %v13830_v0 = vpack.c.bf16 %v11907_v8, %v11903_v28  ;;  %v13832_v8 = vld [vmem:[#allocation57_spill] sm:$0xff] }
 0x1c2   : > { %4305 = vmatprep.mubr.bf16.mxu0 %v10570_v45  ;;  %v3025_v38 = vpack.c.bf16 %v2979_v17, %v2976_v1  ;;  %v12068_v58 = vpop.permute.xlu1 %4830  ;;  %v12070_v26 = vpop.permute.xlu0 %4825  ;;  %v3090_v45 = vld [vmem:[%s13784_s18 + $0xa0] sm:$0xff] }
 0x1c3   : > { %13827 = vst [vmem:[#allocation58_spill] sm:$0xff] %v12068_v58  ;;  %13828 = vst [vmem:[#allocation37_spill] sm:$0xff] %v12070_v26  ;;  %10106 = vmatpush3.bf16.msra.mxu1 %v13829_v59  ;;  %v3024_v48 = vpack.c.bf16 %v2971_v12, %v2968_v18  ;;  %v10576_v1 = vld [vmem:[%s13744_s2 + $0x64] ss:$8 sps:$4 sm:$0xff]  }
 0x1c4   : > { %3199 = vperm.xlu1 %10469, %v3089_v30   ;;  %v10235_v36 = vpop.f32.mrb[68].mxu1  ;;  %v12078_v63 = vpop.f32.mrb[68].mxu0  ;;  %v13831_v12 = vld [vmem:[#allocation60_spill] sm:$0xff] }
 0x1c5   : > { %3194 = vperm.xlu0 %10468, %v3088_v3   ;;  %10107 = vmatprep.subr.bf16.mxu1 %v3024_v48  ;;  %v2983_v17 = vpop.f32.mrb[69].mxu1  ;;  %v12082_v58 = vpop.f32.mrb[69].mxu0  ;;  %v2992_v18 = vadd.f32 %v10235_v36, %v11753_v5  ;;  %v3093_v48 = vld [vmem:[%s13784_s18 + $0xb8] sm:$0xff] }
 0x1c6   : > { %3741 = vmatmul.mubr.bf16.gmra.mrb[84].mxu1 %v10569_v19  ;;  %v12084_v26 = vpop.permute.xlu1 %4485  ;;  %v12086_v40 = vpop.permute.xlu0 %4480 }
 0x1c7   : > { %10108 = vmatpush3.bf16.msra.mxu1 %v13830_v0  ;;  %3750 = vmatprep.mubr.bf16.mxu1 %v10573_v25  ;;  %v10236_v30 = vpop.f32.mrb[70].mxu1  ;;  %v12091_v19 = vpop.f32.mrb[70].mxu0  ;;  %v2984_v25 = vadd.f32 %v2983_v17, %v13832_v8  ;;  %v3092_v0 = vld [vmem:[%s13784_s18 + $0xb0] sm:$0xff]  ;;  %v10578_v17 = vld [vmem:[%s13744_s2 + $0x60] ss:$8 sps:$4 sm:$0xff]  }
 0x1c8   : > { %4306 = vmatmul.mubr.bf16.gmra.mrb[104].mxu0 %v10572_v20  ;;  %3209 = vperm.xlu1 %10469, %v3091_v61   ;;  %v2995_v3 = vadd.f32 %v10236_v30, %v13831_v12  ;;  %v2986_v59 = vpop.f32.mrb[71].mxu1  ;;  %v12096_v28 = vpop.f32.mrb[71].mxu0  ;;  %v13833_v20 = vld [vmem:[#allocation56_spill] sm:$0xff] }
 0x1c9   : > { %3204 = vperm.xlu0 %10468, %v3090_v45   ;;  %10109 = vmatprep.subr.bf16.mxu1 %v3025_v38  ;;  %v2987_v61 = vadd.f32 %v2986_v59, %v13833_v20  ;;  %v13836_v38 = vpack.c.bf16 %v11898_v7, %v11894_v44  ;;  %v10579_v30 = vld [vmem:[%s13750_s16 + $0x44] ss:$8 sps:$4 sm:$0xff]   ;;  %v13837_v7 = vpack.c.bf16 %v11948_v54, %v11945_v41 }
 0x1ca   : > { %4313 = vmatprep.mubr.bf16.mxu0 %v10576_v1  ;;  %v3027_v5 = vpack.c.bf16 %v2995_v3, %v2992_v18  ;;  %v12102_v36 = vpop.permute.xlu1 %4942  ;;  %v12104_v45 = vpop.permute.xlu0 %4937  ;;  %v3095_v8 = vld [vmem:[%s13784_s18 + $0xc8] sm:$0xff]  ;;  %v3094_v18 = vld [vmem:[%s13784_s18 + $0xc0] sm:$0xff]  ;;  %v10582_v3 = vld [vmem:[%s13744_s2 + $0x74] ss:$8 sps:$4 sm:$0xff]  }
 0x1cb   : > { %13834 = vst [vmem:[#allocation36_spill] sm:$0xff] %v12102_v36  ;;  %13835 = vst [vmem:[#allocation45_spill] sm:$0xff] %v12104_v45  ;;  %10110 = vmatpush3.bf16.msra.mxu1 %v13836_v38  ;;  %v3026_v12 = vpack.c.bf16 %v2987_v61, %v2984_v25  ;;  %v3097_v38 = vld [vmem:[%s13784_s18 + $0xd8] sm:$0xff] }
 0x1cc   : > { %3219 = vperm.xlu1 %10469, %v3093_v48   ;;  %v10239_v59 = vpop.f32.mrb[72].mxu1  ;;  %v12112_v20 = vpop.f32.mrb[72].mxu0 }
 0x1cd   : > { %3214 = vperm.xlu0 %10468, %v3092_v0   ;;  %10111 = vmatprep.subr.bf16.mxu1 %v3026_v12  ;;  %v2999_v1 = vpop.f32.mrb[73].mxu1  ;;  %v12116_v36 = vpop.f32.mrb[73].mxu0  ;;  %v3008_v25 = vadd.f32 %v10239_v59, %v11849_v24  ;;  %v3096_v12 = vld [vmem:[%s13784_s18 + $0xd0] sm:$0xff] }
 0x1ce   : > { %3751 = vmatmul.mubr.bf16.gmra.mrb[88].mxu1 %v10575_v15  ;;  %v12118_v45 = vpop.permute.xlu1 %4383  ;;  %v12120_v44 = vpop.permute.xlu0 %4378  ;;  %v3000_v54 = vadd.f32 %v2999_v1, %v11799_v42  ;;  %v3098_v1 = vld [vmem:[%s13784_s18 + $0xe0] sm:$0xff] }
 0x1cf   : > { %10112 = vmatpush3.bf16.msra.mxu1 %v13837_v7  ;;  %3760 = vmatprep.mubr.bf16.mxu1 %v10579_v30  ;;  %v10240_v15 = vpop.f32.mrb[74].mxu1  ;;  %v12125_v48 = vpop.f32.mrb[74].mxu0  ;;  %v10584_v7 = vld [vmem:[%s13744_s2 + $0x70] ss:$8 sps:$4 sm:$0xff]   ;;  %s13854_s2 = sld [smem:[#allocation19_spill]] }
 0x1d0   : > { %4314 = vmatmul.mubr.bf16.gmra.mrb[108].mxu0 %v10578_v17  ;;  %3229 = vperm.xlu1 %10469, %v3095_v8   ;;  %v3011_v61 = vadd.f32 %v10240_v15, %v11847_v11  ;;  %v3002_v0 = vpop.f32.mrb[75].mxu1  ;;  %v12130_v41 = vpop.f32.mrb[75].mxu0  ;;  %v10581_v17 = vld [vmem:[%s13750_s16 + $0x40] ss:$8 sps:$4 sm:$0xff]   ;;  %v13840_v11 = vpack.c.bf16 %v11936_v60, %v11933_v37  ;;  %v13841_v60 = vpack.c.bf16 %v11998_v35, %v11995_v57 }
 0x1d1   : > { %3224 = vperm.xlu0 %10468, %v3094_v18   ;;  %10113 = vmatprep.subr.bf16.mxu1 %v3027_v5  ;;  %v3003_v30 = vadd.f32 %v3002_v0, %v11797_v23  ;;  %v10585_v5 = vld [vmem:[%s13750_s16 + $0x54] ss:$8 sps:$4 sm:$0xff]   ;;  %v3099_v23 = vld [vmem:[%s13784_s18 + $0xe8] sm:$0xff]  ;;  %v13846_v35 = vpack.c.bf16 %v11986_v29, %v11983_v14 }
 0x1d2   : > { %4321 = vmatprep.mubr.bf16.mxu0 %v10582_v3  ;;  %v3029_v24 = vpack.c.bf16 %v3011_v61, %v3008_v25  ;;  %v12136_v59 = vpop.permute.xlu1 %4840  ;;  %v12138_v8 = vpop.permute.xlu0 %4835  ;;  %v3101_v61 = vld [vmem:[%s13784_s18 + $0xf8] sm:$0xff]  ;;  %v3930_v29 = vld [vmem:[%s13847_s23 + $0x8] sm:$0xff] }
 0x1d3   : > { %13838 = vst [vmem:[#allocation44_spill] sm:$0xff] %v12136_v59  ;;  %13839 = vst [vmem:[#allocation43_spill] sm:$0xff] %v12138_v8  ;;  %10114 = vmatpush3.bf16.msra.mxu1 %v13840_v11  ;;  %v3028_v18 = vpack.c.bf16 %v3003_v30, %v3000_v54  ;;  %v10587_v54 = vld [vmem:[%s13750_s16 + $0x50] ss:$8 sps:$4 sm:$0xff]   ;;  %v13843_v30 = vmov 0  }
 0x1d4   : > { %3239 = vperm.xlu1 %10469, %v3097_v38   ;;  %v12146_v42 = vpop.f32.mrb[76].mxu0  ;;  %v3100_v38 = vld [vmem:[%s13784_s18 + $0xf0] sm:$0xff]  ;;  %v3932_v59 = vld [vmem:[%s13847_s23 + $0x18] sm:$0xff]  ;;  %v10594_v8 = vld [vmem:[%s13851_s26] ss:$8 sps:$4 sm:$0xff]  }
 0x1d5   : > { %3234 = vperm.xlu0 %10468, %v3096_v12   ;;  %10115 = vmatprep.subr.bf16.mxu1 %v3028_v18  ;;  %v12149_v3 = vpop.f32.mrb[77].mxu0 }
 0x1d6   : > { %3761 = vmatmul.mubr.bf16.gmra.mrb[92].mxu1 %v10581_v17  ;;  %v12151_v15 = vpop.permute.xlu1 %4495  ;;  %v12153_v37 = vpop.permute.xlu0 %4490  ;;  %v10588_v17 = vld [vmem:[%s13750_s16 + $0x64] ss:$8 sps:$4 sm:$0xff]  }
 0x1d7   : > { %10116 = vmatpush3.bf16.msra.mxu1 %v13841_v60  ;;  %3770 = vmatprep.mubr.bf16.mxu1 %v10585_v5  ;;  %v12158_v25 = vpop.f32.mrb[78].mxu0  ;;  %v3801_v5 = vld [vmem:[%s13842_s22] sm:$0xff] }
 0x1d8   : > { %4322 = vmatmul.mubr.bf16.gmra.mrb[112].mxu0 %v10584_v7  ;;  %3249 = vperm.xlu1 %10469, %v3099_v23   ;;  %v12161_v0 = vpop.f32.mrb[79].mxu0  ;;  %v3929_v60 = vld [vmem:[%s13847_s23] sm:$0xff] }
 0x1d9   : > { %3244 = vperm.xlu0 %10468, %v3098_v1   ;;  %10117 = vmatprep.subr.bf16.mxu1 %v3029_v24  ;;  %v3802_v24 = vld [vmem:[%s13842_s22 + $0x8] sm:$0xff] }
 0x1da   : > { %5155 = vmatprep.mubr.bf16.mxu0 %v13843_v30  ;;  %v12166_v12 = vpop.permute.xlu1 %4952  ;;  %v12168_v57 = vpop.permute.xlu0 %4947 }
 0x1db   : > { %13844 = vst [vmem:[#allocation42_spill] sm:$0xff] %v12166_v12  ;;  %13845 = vst [vmem:[#allocation51_spill] sm:$0xff] %v12168_v57  ;;  %10118 = vmatpush3.bf16.msra.mxu1 %v13846_v35  ;;  %v10591_v35 = vld [vmem:[%s13750_s16 + $0x74] ss:$8 sps:$4 sm:$0xff]   ;;  %v3806_v57 = vld [vmem:[%s13842_s22 + $0x28] sm:$0xff] }
 0x1dc   : > { %3259 = vperm.xlu1 %10469, %v3101_v61   ;;  %v12175_v11 = vpop.f32.mrb[80].mxu0  ;;  %v10590_v61 = vld [vmem:[%s13750_s16 + $0x60] ss:$8 sps:$4 sm:$0xff]  }
 0x1dd   : > { %3254 = vperm.xlu0 %10468, %v3100_v38   ;;  %v12178_v18 = vpop.f32.mrb[81].mxu0 }
 0x1de   : > { %3771 = vmatmul.mubr.bf16.gmra.mrb[96].mxu1 %v10587_v54  ;;  %v12180_v7 = vpop.permute.xlu1 %4393  ;;  %v12182_v23 = vpop.permute.xlu0 %4388 }
 0x1df   : > { %13848 = vst [vmem:[#allocation50_spill] sm:$0xff] %v12180_v7  ;;  %3780 = vmatprep.mubr.bf16.mxu1 %v10588_v17  ;;  %v12184_v14 = vpop.f32.mrb[82].mxu0  ;;  %v3804_v17 = vld [vmem:[%s13842_s22 + $0x18] sm:$0xff]  ;;  %v10618_v7 = vld [vmem:[%s13854_s2] ss:$8 sps:$4 sm:$0xff]  }
 0x1e0   : > { %3824 = vperm.xlu1 %10469, %v3802_v24   ;;  %v12187_v1 = vpop.f32.mrb[83].mxu0  ;;  %v3803_v24 = vld [vmem:[%s13842_s22 + $0x10] sm:$0xff] }
 0x1e1   : > { %3819 = vperm.xlu0 %10468, %v3801_v5  }
 0x1e2   : > { %v12191_v38 = vpop.permute.xlu1 %4850  ;;  %v12193_v54 = vpop.permute.xlu0 %4845 }
 0x1e3   : > { %13849 = vst [vmem:[#allocation49_spill] sm:$0xff] %v12191_v38  ;;  %13850 = vst [vmem:[#allocation48_spill] sm:$0xff] %v12193_v54  ;;  %v3931_v38 = vld [vmem:[%s13847_s23 + $0x10] sm:$0xff] }
 0x1e4   : > { %3952 = vperm.xlu1 %10469, %v3930_v29   ;;  %v10593_v54 = vld [vmem:[%s13750_s16 + $0x70] ss:$8 sps:$4 sm:$0xff]  }
 0x1e5   : > { %3947 = vperm.xlu0 %10468, %v3929_v60  }
 0x1e6   : > { %3781 = vmatmul.mubr.bf16.gmra.mrb[100].mxu1 %v10590_v61  ;;  %v12198_v5 = vpop.permute.xlu1 %4505  ;;  %v12200_v12 = vpop.permute.xlu0 %4500  ;;  %v10596_v61 = vld [vmem:[%s13851_s26 + $0x4] ss:$8 sps:$4 sm:$0xff]  }
 0x1e7   : > { %13852 = vst [vmem:[#allocation35_spill] sm:$0xff] %v12198_v5  ;;  %3790 = vmatprep.mubr.bf16.mxu1 %v10591_v35  ;;  %v3805_v35 = vld [vmem:[%s13842_s22 + $0x20] sm:$0xff] }
 0x1e8   : > { %3834 = vperm.xlu1 %10469, %v3804_v17  }
 0x1e9   : > { %3829 = vperm.xlu0 %10468, %v3803_v24  }
 0x1ea   : > { %v12205_v29 = vpop.permute.xlu1 %4962  ;;  %v12207_v60 = vpop.permute.xlu0 %4957 }
 0x1eb   : > { %13853 = vst [vmem:[#allocation34_spill] sm:$0xff] %v12205_v29  ;;  %13855 = vst [vmem:[#allocation33_spill] sm:$0xff] %v12207_v60  ;;  %v3934_v29 = vld [vmem:[%s13847_s23 + $0x28] sm:$0xff]  ;;  %v3933_v60 = vld [vmem:[%s13847_s23 + $0x20] sm:$0xff] }
 0x1ec   : > { %3962 = vperm.xlu1 %10469, %v3932_v59   ;;  %v10620_v59 = vld [vmem:[%s13854_s2 + $0x4] ss:$8 sps:$4 sm:$0xff]  }
 0x1ed   : > { %3957 = vperm.xlu0 %10468, %v3931_v38   ;;  %5123 = vmatprep.subr.bf16.mxu0 %v10620_v59 }
 0x1ee   : > { %3791 = vmatmul.mubr.bf16.gmra.mrb[104].mxu1 %v10593_v54  ;;  %v12212_v17 = vpop.permute.xlu1 %4403  ;;  %v12214_v24 = vpop.permute.xlu0 %4398  ;;  %v10597_v54 = vld [vmem:[%s13851_s26 + $0x14] ss:$8 sps:$4 sm:$0xff]   ;;  %5124 = vmatpush1.bf16.msra.mxu0 %v10618_v7 }
 0x1ef   : > { %13856 = vst [vmem:[#allocation32_spill] sm:$0xff] %v12212_v17  ;;  %13857 = vst [vmem:[#allocation53_spill] sm:$0xff] %v12214_v24  ;;  %4722 = vmatprep.mubr.bf16.mxu1 %v10596_v61  ;;  %v3807_v61 = vld [vmem:[%s13842_s22 + $0x30] sm:$0xff] }
 0x1f0   : > { %3844 = vperm.xlu1 %10469, %v3806_v57   ;;  %v3808_v57 = vld [vmem:[%s13842_s22 + $0x38] sm:$0xff]  ;;  %v3935_v7 = vld [vmem:[%s13847_s23 + $0x30] sm:$0xff] }
 0x1f1   : > { %3839 = vperm.xlu0 %10468, %v3805_v35   ;;  %v10623_v35 = vld [vmem:[%s13854_s2 + $0x14] ss:$8 sps:$4 sm:$0xff]  }
 0x1f2   : > { %v12220_v38 = vpop.permute.xlu1 %4860  ;;  %v12222_v5 = vpop.permute.xlu0 %4855  ;;  %5125 = vmatprep.subr.bf16.mxu0 %v10623_v35 }
 0x1f3   : > { %13858 = vst [vmem:[#allocation52_spill] sm:$0xff] %v12220_v38  ;;  %13859 = vst [vmem:[#allocation41_spill] sm:$0xff] %v12222_v5  ;;  %v10621_v5 = vld [vmem:[%s13854_s2 + $0x10] ss:$8 sps:$4 sm:$0xff]  }
 0x1f4   : > { %3972 = vperm.xlu1 %10469, %v3934_v29   ;;  %v3936_v29 = vld [vmem:[%s13847_s23 + $0x38] sm:$0xff]  ;;  %5126 = vmatpush1.bf16.msra.mxu0 %v10621_v5  ;;  %v3809_v5 = vld [vmem:[%s13842_s22 + $0x40] sm:$0xff] }
 0x1f5   : > { %3967 = vperm.xlu0 %10468, %v3933_v60   ;;  %v10626_v60 = vld [vmem:[%s13854_s2 + $0x24] ss:$8 sps:$4 sm:$0xff]  }
 0x1f6   : > { %4723 = vmatmul.mubr.bf16.vlgmr.msra.gmra.mrb[108].mxu1 %v10594_v8  ;;  %v12229_v17 = vpop.permute.xlu1 %4515  ;;  %v12231_v38 = vpop.permute.xlu0 %4510  ;;  %v10599_v8 = vld [vmem:[%s13851_s26 + $0x10] ss:$8 sps:$4 sm:$0xff]   ;;  %5127 = vmatprep.subr.bf16.mxu0 %v10626_v60 }
 0x1f7   : > { %13860 = vst [vmem:[#allocation40_spill] sm:$0xff] %v12229_v17  ;;  %13861 = vst [vmem:[#allocation60_spill] sm:$0xff] %v12231_v38  ;;  %4730 = vmatprep.mubr.bf16.mxu1 %v10597_v54  ;;  %v10600_v17 = vld [vmem:[%s13851_s26 + $0x24] ss:$8 sps:$4 sm:$0xff]   ;;  %v10624_v38 = vld [vmem:[%s13854_s2 + $0x20] ss:$8 sps:$4 sm:$0xff]  }
 0x1f8   : > { %3854 = vperm.xlu1 %10469, %v3808_v57   ;;  %v3810_v54 = vld [vmem:[%s13842_s22 + $0x48] sm:$0xff]  ;;  %5128 = vmatpush1.bf16.msra.mxu0 %v10624_v38  ;;  %v10629_v57 = vld [vmem:[%s13854_s2 + $0x34] ss:$8 sps:$4 sm:$0xff]  }
 0x1f9   : > { %3849 = vperm.xlu0 %10468, %v3807_v61   ;;  %5129 = vmatprep.subr.bf16.mxu0 %v10629_v57  ;;  %v10602_v38 = vld [vmem:[%s13851_s26 + $0x20] ss:$8 sps:$4 sm:$0xff]   ;;  %v3940_v57 = vld [vmem:[%s13847_s23 + $0x58] sm:$0xff] }
 0x1fa   : > { %v12238_v59 = vpop.permute.xlu1 %4972  ;;  %v12240_v24 = vpop.permute.xlu0 %4967 }
 0x1fb   : > { %13862 = vst [vmem:[#allocation57_spill] sm:$0xff] %v12238_v59  ;;  %13863 = vst [vmem:[#allocation56_spill] sm:$0xff] %v12240_v24  ;;  %v10627_v59 = vld [vmem:[%s13854_s2 + $0x30] ss:$8 sps:$4 sm:$0xff]   ;;  %v10603_v24 = vld [vmem:[%s13851_s26 + $0x34] ss:$8 sps:$4 sm:$0xff]  }
 0x1fc   : > { %3982 = vperm.xlu1 %10469, %v3936_v29   ;;  %v3938_v29 = vld [vmem:[%s13847_s23 + $0x48] sm:$0xff]  ;;  %5130 = vmatpush1.bf16.msra.mxu0 %v10627_v59  ;;  %s13876_s2 = sld [smem:[#allocation22_spill]] }
 0x1fd   : > { %3977 = vperm.xlu0 %10468, %v3935_v7   ;;  %v3937_v7 = vld [vmem:[%s13847_s23 + $0x40] sm:$0xff] }
 0x1fe   : > { %4731 = vmatmul.mubr.bf16.gmra.mrb[112].mxu1 %v10599_v8  ;;  %v12247_v61 = vpop.permute.xlu1 %4413  ;;  %v12249_v35 = vpop.permute.xlu0 %4408 }
 0x1ff   : > { %13864 = vst [vmem:[#allocation61_spill] sm:$0xff] %v12247_v61  ;;  %13865 = vst [vmem:[#allocation62_spill] sm:$0xff] %v12249_v35  ;;  %4738 = vmatprep.mubr.bf16.mxu1 %v10600_v17  ;;  %v3812_v17 = vld [vmem:[%s13842_s22 + $0x58] sm:$0xff]  ;;  %v3942_v61 = vld [vmem:[%s13847_s23 + $0x68] sm:$0xff] }
 0x200   : > { %3864 = vperm.xlu1 %10469, %v3810_v54   ;;  %v3811_v54 = vld [vmem:[%s13842_s22 + $0x50] sm:$0xff] }
 0x201   : > { %3859 = vperm.xlu0 %10468, %v3809_v5  }
 0x202   : > { %v12255_v8 = vpop.permute.xlu1 %4870  ;;  %v12257_v60 = vpop.permute.xlu0 %4865 }
 0x203   : > { %13866 = vst [vmem:[#allocation63_spill] sm:$0xff] %v12255_v8  ;;  %13867 = vst [vmem:[#allocation64_spill] sm:$0xff] %v12257_v60  ;;  %v3939_v8 = vld [vmem:[%s13847_s23 + $0x50] sm:$0xff] }
 0x204   : > { %3992 = vperm.xlu1 %10469, %v3938_v29   ;;  %v10605_v60 = vld [vmem:[%s13851_s26 + $0x30] ss:$8 sps:$4 sm:$0xff]  }
 0x205   : > { %3987 = vperm.xlu0 %10468, %v3937_v7  }
 0x206   : > { %4739 = vmatmul.mubr.bf16.gmra.mrb[116].mxu1 %v10602_v38  ;;  %v12262_v5 = vpop.permute.xlu1 %4525  ;;  %v12264_v59 = vpop.permute.xlu0 %4520  ;;  %v10606_v38 = vld [vmem:[%s13851_s26 + $0x44] ss:$8 sps:$4 sm:$0xff]  }
 0x207   : > { %13868 = vst [vmem:[#allocation65_spill] sm:$0xff] %v12262_v5  ;;  %13869 = vst [vmem:[#allocation66_spill] sm:$0xff] %v12264_v59  ;;  %4746 = vmatprep.mubr.bf16.mxu1 %v10603_v24  ;;  %v3814_v5 = vld [vmem:[%s13842_s22 + $0x68] sm:$0xff]  ;;  %v3813_v24 = vld [vmem:[%s13842_s22 + $0x60] sm:$0xff] }
 0x208   : > { %3874 = vperm.xlu1 %10469, %v3812_v17   ;;  %v10611_v59 = vld [vmem:[%s13851_s26 + $0x50] ss:$8 sps:$4 sm:$0xff]  }
 0x209   : > { %3869 = vperm.xlu0 %10468, %v3811_v54  }
 0x20a   : > { %v12269_v29 = vpop.permute.xlu1 %4982  ;;  %v12271_v7 = vpop.permute.xlu0 %4977 }
 0x20b   : > { %13870 = vst [vmem:[#allocation67_spill] sm:$0xff] %v12269_v29  ;;  %13871 = vst [vmem:[#allocation68_spill] sm:$0xff] %v12271_v7  ;;  %v3941_v29 = vld [vmem:[%s13847_s23 + $0x60] sm:$0xff] }
 0x20c   : > { %4002 = vperm.xlu1 %10469, %v3940_v57   ;;  %v10608_v7 = vld [vmem:[%s13851_s26 + $0x40] ss:$8 sps:$4 sm:$0xff]  }
 0x20d   : > { %3997 = vperm.xlu0 %10468, %v3939_v8  }
 0x20e   : > { %4747 = vmatmul.mubr.bf16.gmra.mrb[120].mxu1 %v10605_v60  ;;  %v12276_v17 = vpop.permute.xlu1 %4423  ;;  %v12278_v54 = vpop.permute.xlu0 %4418  ;;  %v10609_v60 = vld [vmem:[%s13851_s26 + $0x54] ss:$8 sps:$4 sm:$0xff]  }
 0x20f   : > { %13872 = vst [vmem:[#allocation69_spill] sm:$0xff] %v12276_v17  ;;  %13873 = vst [vmem:[#allocation70_spill] sm:$0xff] %v12278_v54  ;;  %4754 = vmatprep.mubr.bf16.mxu1 %v10606_v38  ;;  %v3816_v17 = vld [vmem:[%s13842_s22 + $0x78] sm:$0xff]  ;;  %v3815_v38 = vld [vmem:[%s13842_s22 + $0x70] sm:$0xff] }
 0x210   : > { %3884 = vperm.xlu1 %10469, %v3814_v5   ;;  %v3944_v54 = vld [vmem:[%s13847_s23 + $0x78] sm:$0xff] }
 0x211   : > { %3879 = vperm.xlu0 %10468, %v3813_v24  }
 0x212   : > { %v12283_v57 = vpop.permute.xlu1 %4880  ;;  %v12285_v8 = vpop.permute.xlu0 %4875 }
 0x213   : > { %13874 = vst [vmem:[#allocation71_spill] sm:$0xff] %v12283_v57  ;;  %13875 = vst [vmem:[#allocation72_spill] sm:$0xff] %v12285_v8  ;;  %v3943_v57 = vld [vmem:[%s13847_s23 + $0x70] sm:$0xff] }
 0x214   : > { %4012 = vperm.xlu1 %10469, %v3942_v61  }
 0x215   : > { %4007 = vperm.xlu0 %10468, %v3941_v29   ;;  %v10612_v29 = vld [vmem:[%s13851_s26 + $0x64] ss:$8 sps:$4 sm:$0xff]  }
 0x216   : > { %4755 = vmatmul.mubr.bf16.gmra.mrb[124].mxu1 %v10608_v7  ;;  %v12290_v5 = vpop.permute.xlu1 %4535  ;;  %v12292_v24 = vpop.permute.xlu0 %4530  ;;  %v7714_v7 = vld [vmem:[%s13876_s2 + $0x8] sm:$0xff] }
 0x217   : > { %13877 = vst [vmem:[#allocation73_spill] sm:$0xff] %v12290_v5  ;;  %13878 = vst [vmem:[#allocation74_spill] sm:$0xff] %v12292_v24  ;;  %4762 = vmatprep.mubr.bf16.mxu1 %v10609_v60  ;;  %v7713_v5 = vld [vmem:[%s13876_s2] sm:$0xff] }
 0x218   : > { %3894 = vperm.xlu1 %10469, %v3816_v17  }
 0x219   : > { %3889 = vperm.xlu0 %10468, %v3815_v38  }
 0x21a   : > { %v12297_v8 = vpop.permute.xlu1 %4992  ;;  %v12299_v61 = vpop.permute.xlu0 %4987 }
 0x21b   : > { %13880 = vst [vmem:[#allocation75_spill] sm:$0xff] %v12297_v8  ;;  %13881 = vst [vmem:[#allocation76_spill] sm:$0xff] %v12299_v61  ;;  %v7842_v61 = vld [vmem:[%s13879_s3 + $0x8] sm:$0xff] }
 0x21c   : > { %4022 = vperm.xlu1 %10469, %v3944_v54   ;;  %v7841_v54 = vld [vmem:[%s13879_s3] sm:$0xff] }
 0x21d   : > { %4017 = vperm.xlu0 %10468, %v3943_v57   ;;  %v10614_v57 = vld [vmem:[%s13851_s26 + $0x60] ss:$8 sps:$4 sm:$0xff]  }
 0x21e   : > { %4763 = vmatmul.mubr.bf16.gmra.mrb[128].mxu1 %v10611_v59  ;;  %v3110_v60 = vpop.permute.xlu1 %3109 }
 0x21f   : > { %4770 = vmatprep.mubr.bf16.mxu1 %v10612_v29  ;;  %v3105_v17 = vpop.permute.xlu0 %3104  ;;  %v12305_v38 = vadd.f32 %v11942_v46, %v3110_v60  ;;  %v10615_v29 = vld [vmem:[%s13851_s26 + $0x74] ss:$8 sps:$4 sm:$0xff]  }
 0x220   : > { %7736 = vperm.xlu1 %10469, %v7714_v7   ;;  %v12308_v8 = vadd.f32 %v11924_v2, %v3105_v17  ;;  %v7715_v7 = vld [vmem:[%s13876_s2 + $0x10] sm:$0xff] }
 0x221   : > { %7731 = vperm.xlu0 %10468, %v7713_v5   ;;  %v7716_v5 = vld [vmem:[%s13876_s2 + $0x18] sm:$0xff] }
 0x222   : > { %v3120_v24 = vpop.permute.xlu1 %3119 }
 0x223   : > { %v12317_v35 = vadd.f32 %v11930_v62, %v3120_v24  ;;  %v3115_v46 = vpop.permute.xlu0 %3114  ;;  %v10630_v24 = vld [vmem:[%s13882_s5] ss:$8 sps:$4 sm:$0xff]  }
 0x224   : > { %7864 = vperm.xlu1 %10469, %v7842_v61   ;;  %v12320_v2 = vadd.f32 %v11920_v31, %v3115_v46  ;;  %v10632_v31 = vld [vmem:[%s13882_s5 + $0x4] ss:$8 sps:$4 sm:$0xff]   ;;  %v10617_v46 = vld [vmem:[%s13851_s26 + $0x70] ss:$8 sps:$4 sm:$0xff]   ;;  %s13893_s5 = sld [smem:[#allocation25_spill]] }
 0x225   : > { %7859 = vperm.xlu0 %10468, %v7841_v54   ;;  %v7844_v54 = vld [vmem:[%s13879_s3 + $0x18] sm:$0xff]  ;;  %5288 = vmatprep.subr.bf16.mxu1 %v10632_v31 }
 0x226   : > { %4771 = vmatmul.mubr.bf16.gmra.mrb[132].mxu1 %v10614_v57  ;;  %v3130_v17 = vpop.permute.xlu1 %3129  ;;  %v7843_v57 = vld [vmem:[%s13879_s3 + $0x10] sm:$0xff] }
 0x227   : > { %4778 = vmatprep.mubr.bf16.mxu1 %v10615_v29  ;;  %v3125_v59 = vpop.permute.xlu0 %3124  ;;  %v12327_v62 = vadd.f32 %v11992_v39, %v3130_v17  ;;  %5289 = vmatpush1.bf16.msra.mxu1 %v10630_v24  ;;  %v7846_v24 = vld [vmem:[%s13879_s3 + $0x28] sm:$0xff] }
 0x228   : > { %7746 = vperm.xlu1 %10469, %v7716_v5   ;;  %v12332_v61 = vadd.f32 %v11971_v33, %v3125_v59  ;;  %v7718_v59 = vld [vmem:[%s13876_s2 + $0x28] sm:$0xff] }
 0x229   : > { %7741 = vperm.xlu0 %10468, %v7715_v7   ;;  %v7717_v7 = vld [vmem:[%s13876_s2 + $0x20] sm:$0xff] }
 0x22a   : > { %v3140_v60 = vpop.permute.xlu1 %3139  ;;  %v8053_v29 = vld [vmem:[%s13893_s5 + $0x20] sm:$0xff] }
 0x22b   : > { %v12340_v39 = vadd.f32 %v11980_v47, %v3140_v60  ;;  %v3135_v5 = vpop.permute.xlu0 %3134 }
 0x22c   : > { %7874 = vperm.xlu1 %10469, %v7844_v54   ;;  %v12343_v33 = vadd.f32 %v11967_v4, %v3135_v5  ;;  %v7845_v54 = vld [vmem:[%s13879_s3 + $0x20] sm:$0xff] }
 0x22d   : > { %7869 = vperm.xlu0 %10468, %v7843_v57  }
 0x22e   : > { %4779 = vmatmul.mubr.bf16.gmra.mrb[136].mxu1 %v10617_v46  ;;  %v3150_v31 = vpop.permute.xlu1 %3149 }
 0x22f   : > { %5320 = vmatprep.mubr.bf16.mxu1 %v13843_v30  ;;  %v3145_v47 = vpop.permute.xlu0 %3144  ;;  %v12351_v60 = vadd.f32 %v12031_v53, %v3150_v31 }
 0x230   : > { %7756 = vperm.xlu1 %10469, %v7718_v59   ;;  %v12354_v4 = vadd.f32 %v12020_v43, %v3145_v47  ;;  %v7720_v43 = vld [vmem:[%s13876_s2 + $0x38] sm:$0xff]  ;;  %v7719_v59 = vld [vmem:[%s13876_s2 + $0x30] sm:$0xff] }
 0x231   : > { %7751 = vperm.xlu0 %10468, %v7717_v7  }
 0x232   : > { %v3160_v46 = vpop.permute.xlu1 %3159 }
 0x233   : > { %v12361_v5 = vadd.f32 %v12026_v6, %v3160_v46  ;;  %v3155_v17 = vpop.permute.xlu0 %3154 }
 0x234   : > { %7884 = vperm.xlu1 %10469, %v7846_v24   ;;  %v12364_v53 = vadd.f32 %v12017_v16, %v3155_v17  ;;  %v7848_v16 = vld [vmem:[%s13879_s3 + $0x38] sm:$0xff]  ;;  %v7847_v17 = vld [vmem:[%s13879_s3 + $0x30] sm:$0xff] }
 0x235   : > { %7879 = vperm.xlu0 %10468, %v7845_v54  }
 0x237   : > { %v3170_v31 = vpop.permute.xlu1 %3169  ;;  %v3165_v47 = vpop.permute.xlu0 %3164 }
 0x238   : > { %v12371_v57 = vadd.f32 %v12062_v9, %v3170_v31  ;;  %7766 = vperm.xlu1 %10469, %v7720_v43   ;;  %v12374_v6 = vadd.f32 %v12048_v56, %v3165_v47  ;;  %v7722_v56 = vld [vmem:[%s13876_s2 + $0x48] sm:$0xff]  ;;  %v7721_v43 = vld [vmem:[%s13876_s2 + $0x40] sm:$0xff] }
 0x239   : > { %7761 = vperm.xlu0 %10468, %v7719_v59  }
 0x23b   : > { %v3180_v54 = vpop.permute.xlu1 %3179  ;;  %v3175_v7 = vpop.permute.xlu0 %3174 }
 0x23c   : > { %v12381_v46 = vadd.f32 %v12057_v49, %v3180_v54  ;;  %7894 = vperm.xlu1 %10469, %v7848_v16   ;;  %v12384_v9 = vadd.f32 %v12044_v22, %v3175_v7  ;;  %v7850_v22 = vld [vmem:[%s13879_s3 + $0x48] sm:$0xff]  ;;  %v7849_v7 = vld [vmem:[%s13879_s3 + $0x40] sm:$0xff] }
 0x23d   : > { %7889 = vperm.xlu0 %10468, %v7847_v17  }
 0x23f   : > { %v3190_v31 = vpop.permute.xlu1 %3189 }
 0x240   : > { %v3185_v47 = vpop.permute.xlu0 %3184  ;;  %v12391_v24 = vadd.f32 %v12096_v28, %v3190_v31  ;;  %7776 = vperm.xlu1 %10469, %v7722_v56   ;;  %v7723_v56 = vld [vmem:[%s13876_s2 + $0x50] sm:$0xff] }
 0x241   : > { %v12394_v49 = vadd.f32 %v12082_v58, %v3185_v47  ;;  %7771 = vperm.xlu0 %10468, %v7721_v43   ;;  %v7724_v58 = vld [vmem:[%s13876_s2 + $0x58] sm:$0xff] }
 0x243   : > { %v3200_v17 = vpop.permute.xlu1 %3199 }
 0x244   : > { %v12401_v54 = vadd.f32 %v12091_v19, %v3200_v17  ;;  %v3195_v59 = vpop.permute.xlu0 %3194  ;;  %7904 = vperm.xlu1 %10469, %v7850_v22  }
 0x245   : > { %v12404_v28 = vadd.f32 %v12078_v63, %v3195_v59  ;;  %7899 = vperm.xlu0 %10468, %v7849_v7   ;;  %v7852_v63 = vld [vmem:[%s13879_s3 + $0x58] sm:$0xff]  ;;  %v7851_v59 = vld [vmem:[%s13879_s3 + $0x50] sm:$0xff] }
 0x246   : > { %13883 = vst [vmem:[#allocation77_spill] sm:$0xff] %v12401_v54  ;;  %v8187_v54 = vld [vmem:[%s13896_s6 + $0x50] sm:$0xff] }
 0x247   : > { %13884 = vst [vmem:[#allocation78_spill] sm:$0xff] %v12404_v28  ;;  %v3210_v31 = vpop.permute.xlu1 %3209 }
 0x248   : > { %v3205_v47 = vpop.permute.xlu0 %3204  ;;  %v12411_v16 = vadd.f32 %v12130_v41, %v3210_v31  ;;  %7786 = vperm.xlu1 %10469, %v7724_v58   ;;  %v7725_v58 = vld [vmem:[%s13876_s2 + $0x60] sm:$0xff] }
 0x249   : > { %v12414_v19 = vadd.f32 %v12116_v36, %v3205_v47  ;;  %7781 = vperm.xlu0 %10468, %v7723_v56   ;;  %v7726_v36 = vld [vmem:[%s13876_s2 + $0x68] sm:$0xff] }
 0x24a   : > { %13885 = vst [vmem:[#allocation79_spill] sm:$0xff] %v12411_v16 }
 0x24b   : > { %13886 = vst [vmem:[#allocation80_spill] sm:$0xff] %v12414_v19  ;;  %v3220_v7 = vpop.permute.xlu1 %3219 }
 0x24c   : > { %v12421_v17 = vadd.f32 %v12125_v48, %v3220_v7  ;;  %v3215_v43 = vpop.permute.xlu0 %3214  ;;  %7914 = vperm.xlu1 %10469, %v7852_v63  }
 0x24d   : > { %v12424_v41 = vadd.f32 %v12112_v20, %v3215_v43  ;;  %7909 = vperm.xlu0 %10468, %v7851_v59   ;;  %v7854_v20 = vld [vmem:[%s13879_s3 + $0x68] sm:$0xff]  ;;  %v7853_v43 = vld [vmem:[%s13879_s3 + $0x60] sm:$0xff] }
 0x24e   : > { %13887 = vst [vmem:[#allocation81_spill] sm:$0xff] %v12421_v17 }
 0x24f   : > { %13888 = vst [vmem:[#allocation82_spill] sm:$0xff] %v12424_v41  ;;  %v3230_v31 = vpop.permute.xlu1 %3229 }
 0x250   : > { %v3225_v47 = vpop.permute.xlu0 %3224  ;;  %v12431_v22 = vadd.f32 %v12161_v0, %v3230_v31  ;;  %7796 = vperm.xlu1 %10469, %v7726_v36   ;;  %v7727_v36 = vld [vmem:[%s13876_s2 + $0x70] sm:$0xff] }
 0x251   : > { %v12434_v48 = vadd.f32 %v12149_v3, %v3225_v47  ;;  %7791 = vperm.xlu0 %10468, %v7725_v58   ;;  %v7728_v3 = vld [vmem:[%s13876_s2 + $0x78] sm:$0xff]  ;;  %s13897_s2 = sld [smem:[#allocation28_spill]] }
 0x252   : > { %13889 = vst [vmem:[#allocation83_spill] sm:$0xff] %v12431_v22 }
 0x253   : > { %13890 = vst [vmem:[#allocation84_spill] sm:$0xff] %v12434_v48  ;;  %v3240_v59 = vpop.permute.xlu1 %3239 }
 0x254   : > { %v12441_v7 = vadd.f32 %v12158_v25, %v3240_v59  ;;  %v3235_v56 = vpop.permute.xlu0 %3234  ;;  %7924 = vperm.xlu1 %10469, %v7854_v20   ;;  %v8177_v20 = vld [vmem:[%s13896_s6] sm:$0xff] }
 0x255   : > { %v12444_v0 = vadd.f32 %v12146_v42, %v3235_v56  ;;  %7919 = vperm.xlu0 %10468, %v7853_v43   ;;  %v7856_v42 = vld [vmem:[%s13879_s3 + $0x78] sm:$0xff]  ;;  %v7855_v56 = vld [vmem:[%s13879_s3 + $0x70] sm:$0xff]  ;;  %s13903_s3 = sld [smem:[#allocation18_spill]] }
 0x256   : > { %13891 = vst [vmem:[#allocation85_spill] sm:$0xff] %v12441_v7 }
 0x257   : > { %13892 = vst [vmem:[#allocation86_spill] sm:$0xff] %v12444_v0  ;;  %v3250_v31 = vpop.permute.xlu1 %3249  ;;  %v8055_v0 = vld [vmem:[%s13893_s5 + $0x30] sm:$0xff] }
 0x258   : > { %v3245_v47 = vpop.permute.xlu0 %3244  ;;  %v12451_v63 = vadd.f32 %v12187_v1, %v3250_v31  ;;  %7806 = vperm.xlu1 %10469, %v7728_v3   ;;  %v8050_v3 = vld [vmem:[%s13893_s5 + $0x8] sm:$0xff] }
 0x259   : > { %v12454_v25 = vadd.f32 %v12178_v18, %v3245_v47  ;;  %7801 = vperm.xlu0 %10468, %v7727_v36   ;;  %v8049_v36 = vld [vmem:[%s13893_s5] sm:$0xff]  ;;  %v8178_v47 = vld [vmem:[%s13896_s6 + $0x8] sm:$0xff] }
 0x25a   : > { %13894 = vst [vmem:[#allocation87_spill] sm:$0xff] %v12451_v63  ;;  %v8054_v31 = vld [vmem:[%s13893_s5 + $0x28] sm:$0xff] }
 0x25b   : > { %13895 = vst [vmem:[#allocation88_spill] sm:$0xff] %v12454_v25  ;;  %v3260_v43 = vpop.permute.xlu1 %3259  ;;  %v8056_v25 = vld [vmem:[%s13893_s5 + $0x38] sm:$0xff] }
 0x25c   : > { %v12461_v59 = vadd.f32 %v12184_v14, %v3260_v43  ;;  %v3255_v1 = vpop.permute.xlu0 %3254  ;;  %7934 = vperm.xlu1 %10469, %v7856_v42   ;;  %v8052_v14 = vld [vmem:[%s13893_s5 + $0x18] sm:$0xff]  ;;  %v9800_v42 = vld.sshfl [vmem:[%s13897_s2] sm:$0x33 pattern:$0x76325410]  ;;  %s13901_s2 = sld [smem:[#allocation17_spill]] }
 0x25d   : > { %v12464_v18 = vadd.f32 %v12175_v11, %v3255_v1  ;;  %7929 = vperm.xlu0 %10468, %v7855_v56   ;;  %v8051_v56 = vld [vmem:[%s13893_s5 + $0x10] sm:$0xff]  ;;  %v6244_v43 = vcombine.high %v9800_v42, %v9800_v42 }
 0x25e   : > { %13898 = vst [vmem:[#allocation89_spill] sm:$0xff] %v12461_v59 }
 0x25f   : > { %13899 = vst [vmem:[#allocation90_spill] sm:$0xff] %v12464_v18  ;;  %v12477_v1 = vpop.permute.xlu1 %3824  ;;  %9801 = vmatprep.subr.msk.bf16.mxu1 %vm6294_vm4, %v6244_v43 }
 0x260   : > { %8072 = vperm.xlu1 %10469, %v8050_v3   ;;  %v12474_v11 = vpop.permute.xlu0 %3819  ;;  %v8180_v3 = vld [vmem:[%s13896_s6 + $0x18] sm:$0xff] }
 0x261   : > { %8067 = vperm.xlu0 %10468, %v8049_v36   ;;  %v8179_v36 = vld [vmem:[%s13896_s6 + $0x10] sm:$0xff] }
 0x263   : > { %v12486_v58 = vpop.permute.xlu1 %3952 }
 0x264   : > { %8200 = vperm.xlu1 %10469, %v8178_v47   ;;  %v12481_v47 = vsel %vm6294_vm4, %v9800_v42, 0 }
 0x265   : > { %8195 = vperm.xlu0 %10468, %v8177_v20   ;;  %v12483_v20 = vpop.permute.xlu0 %3947 }
 0x267   : > { %v12493_v59 = vpop.permute.xlu1 %3834 }
 0x268   : > { %8082 = vperm.xlu1 %10469, %v8052_v14   ;;  %v8182_v14 = vld [vmem:[%s13896_s6 + $0x28] sm:$0xff] }
 0x269   : > { %8077 = vperm.xlu0 %10468, %v8051_v56   ;;  %v12490_v18 = vpop.permute.xlu0 %3829  ;;  %v8181_v56 = vld [vmem:[%s13896_s6 + $0x20] sm:$0xff] }
 0x26c   : > { %8210 = vperm.xlu1 %10469, %v8180_v3  }
 0x26d   : > { %8205 = vperm.xlu0 %10468, %v8179_v36   ;;  %v12498_v7 = vpop.permute.xlu0 %3957 }
 0x270   : > { %8092 = vperm.xlu1 %10469, %v8054_v31  }
 0x271   : > { %8087 = vperm.xlu0 %10468, %v8053_v29  }
 0x272   : > { %v10055_v43 = vpop.f32.mrb[84].mxu0 }
 0x273   : > { %v10056_v42 = vpop.f32.mrb[85].mxu0 }
 0x274   : > { %8220 = vperm.xlu1 %10469, %v8182_v14   ;;  %v10057_v3 = vadd.f32 %v10056_v42, %v10055_v43  ;;  %v10058_v36 = vpop.f32.mrb[86].mxu0  ;;  %v8184_v14 = vld [vmem:[%s13896_s6 + $0x38] sm:$0xff]  ;;  %v12503_v43 = vpop.permute.xlu1 %3962 }
 0x275   : > { %8215 = vperm.xlu0 %10468, %v8181_v56   ;;  %v10059_v63 = vpop.f32.mrb[87].mxu0  ;;  %v8183_v56 = vld [vmem:[%s13896_s6 + $0x30] sm:$0xff] }
 0x276   : > { %v4426_v31 = vmul.f32 %v10057_v3, %v11890_v10  ;;  %v10060_v29 = vadd.f32 %v10059_v63, %v10058_v36  ;;  %v8057_v36 = vld [vmem:[%s13893_s5 + $0x40] sm:$0xff] }
 0x278   : > { %8102 = vperm.xlu1 %10469, %v8056_v25   ;;  %v4538_v48 = vadd.f32 %v11928_v27, %v4426_v31  ;;  %v4427_v22 = vmul.f32 %v10060_v29, %v11888_v50  ;;  %v8058_v27 = vld [vmem:[%s13893_s5 + $0x48] sm:$0xff]  ;;  %v12508_v50 = vpop.permute.xlu0 %3839 }
 0x279   : > { %8097 = vperm.xlu0 %10468, %v8055_v0  }
 0x27a   : > { %v4554_v42 = vmul.f32 0.2, %v4538_v48  ;;  %v4539_v41 = vadd.f32 %v11926_v32, %v4427_v22  ;;  %v10061_v17 = vpop.f32.mrb[88].mxu0  ;;  %v12512_v32 = vpop.permute.xlu1 %3844 }
 0x27b   : > { %v10062_v10 = vpop.f32.mrb[89].mxu0 }
 0x27c   : > { %8230 = vperm.xlu1 %10469, %v8184_v14   ;;  %v4555_v63 = vmul.f32 0.2, %v4539_v41  ;;  %v10063_v3 = vadd.f32 %v10062_v10, %v10061_v17  ;;  %v10064_v25 = vpop.f32.mrb[90].mxu0  ;;  %v4570_v31 = vmax.f32 %v4538_v48, %v4554_v42  ;;  %v8185_v10 = vld [vmem:[%s13896_s6 + $0x40] sm:$0xff] }
 0x27d   : > { %8225 = vperm.xlu0 %10468, %v8183_v56   ;;  %v10065_v0 = vpop.f32.mrb[91].mxu0  ;;  %v8186_v56 = vld [vmem:[%s13896_s6 + $0x48] sm:$0xff] }
 0x27e   : > { %v4571_v29 = vmax.f32 %v4539_v41, %v4555_v63  ;;  %v4428_v19 = vmul.f32 %v10063_v3, %v11975_v55  ;;  %v10066_v16 = vadd.f32 %v10065_v0, %v10064_v25  ;;  %v12520_v55 = vpop.permute.xlu0 %3967  ;;  %v12524_v63 = vpop.permute.xlu1 %3972 }
 0x280   : > { %8112 = vperm.xlu1 %10469, %v8058_v27   ;;  %v4586_v22 = vpack.c.bf16 %v4571_v29, %v4570_v31  ;;  %v4540_v17 = vadd.f32 %v12024_v51, %v4428_v19  ;;  %v4429_v14 = vmul.f32 %v10066_v16, %v11973_v21  ;;  %v8060_v16 = vld [vmem:[%s13893_s5 + $0x58] sm:$0xff] }
 0x281   : > { %8107 = vperm.xlu0 %10468, %v8057_v36  }
 0x282   : > { %v4556_v28 = vmul.f32 0.2, %v4540_v17  ;;  %v4541_v48 = vadd.f32 %v12022_v34, %v4429_v14  ;;  %v10067_v41 = vpop.f32.mrb[92].mxu0  ;;  %9758 = vmatmul.mubr.msk.bf16.vlgmr.msra.gmra.mrb[116].mxu0 %vm3366_vm3, %v4586_v22  ;;  %v8059_v34 = vld [vmem:[%s13893_s5 + $0x50] sm:$0xff] }
 0x283   : > { %v10068_v42 = vpop.f32.mrb[93].mxu0  ;;  %5165 = vmatprep.mubr.bf16.mxu0 %v13843_v30 }
 0x284   : > { %8240 = vperm.xlu1 %10469, %v8186_v56   ;;  %v4557_v51 = vmul.f32 0.2, %v4541_v48  ;;  %v10069_v19 = vadd.f32 %v10068_v42, %v10067_v41  ;;  %v10070_v21 = vpop.f32.mrb[94].mxu0  ;;  %v4572_v25 = vmax.f32 %v4540_v17, %v4556_v28  ;;  %v8188_v56 = vld [vmem:[%s13896_s6 + $0x58] sm:$0xff] }
 0x285   : > { %8235 = vperm.xlu0 %10468, %v8185_v10   ;;  %v10071_v3 = vpop.f32.mrb[95].mxu0  ;;  %v12531_v10 = vpop.permute.xlu0 %3849 }
 0x286   : > { %v4573_v27 = vmax.f32 %v4541_v48, %v4557_v51  ;;  %v4430_v0 = vmul.f32 %v10069_v19, %v12052_v52  ;;  %v10072_v36 = vadd.f32 %v10071_v3, %v10070_v21  ;;  %v8062_v3 = vld [vmem:[%s13893_s5 + $0x68] sm:$0xff] }
 0x288   : > { %8122 = vperm.xlu1 %10469, %v8060_v16   ;;  %v4542_v31 = vadd.f32 %v12086_v40, %v4430_v0  ;;  %v4431_v29 = vmul.f32 %v10072_v36, %v12050_v13  ;;  %v4587_v14 = vpack.c.bf16 %v4573_v27, %v4572_v25  ;;  %v12538_v13 = vpop.permute.xlu1 %3854  ;;  %v8061_v0 = vld [vmem:[%s13893_s5 + $0x60] sm:$0xff] }
 0x289   : > { %8117 = vperm.xlu0 %10468, %v8059_v34   ;;  %v3722_v22 = vpop.f32.mrb[76].mxu1 }
 0x28a   : > { %v3897_v41 = vmul.f32 %v12474_v11, %v3722_v22  ;;  %v3724_v42 = vpop.f32.mrb[77].mxu1  ;;  %v4558_v28 = vmul.f32 0.2, %v4542_v31  ;;  %v4543_v52 = vadd.f32 %v12084_v26, %v4431_v29  ;;  %v10073_v48 = vpop.f32.mrb[96].mxu0  ;;  %9759 = vmatmul.mubr.msk.bf16.gmra.mrb[120].mxu0 %vm3366_vm3, %v4587_v14 }
 0x28b   : > { %v3898_v17 = vmul.f32 %v12474_v11, %v3724_v42  ;;  %v3726_v51 = vpop.f32.mrb[78].mxu1  ;;  %5175 = vmatprep.mubr.bf16.mxu0 %v13843_v30  ;;  %v10074_v16 = vpop.f32.mrb[97].mxu0 }
 0x28c   : > { %v4025_v40 = vadd.f32 %v12483_v20, %v3897_v41  ;;  %8250 = vperm.xlu1 %10469, %v8188_v56   ;;  %v4559_v19 = vmul.f32 0.2, %v4543_v52  ;;  %v3899_v26 = vmul.f32 %v12477_v1, %v3726_v51  ;;  %v3728_v11 = vpop.f32.mrb[79].mxu1  ;;  %v10075_v34 = vadd.f32 %v10074_v16, %v10073_v48  ;;  %v10076_v27 = vpop.f32.mrb[98].mxu0 }
 0x28d   : > { %v12543_v21 = vadd.f32 %v12483_v20, %v3898_v17  ;;  %8245 = vperm.xlu0 %10468, %v8187_v54   ;;  %v3900_v25 = vmul.f32 %v12477_v1, %v3728_v11  ;;  %v4574_v36 = vmax.f32 %v4542_v31, %v4558_v28  ;;  %v10077_v56 = vpop.f32.mrb[99].mxu0  ;;  %v12550_v20 = vpop.permute.xlu0 %3977  ;;  %v8190_v28 = vld [vmem:[%s13896_s6 + $0x68] sm:$0xff] }
 0x28e   : > { %v4575_v29 = vmax.f32 %v4543_v52, %v4559_v19  ;;  %v4057_v22 = vmul.f32 0.2, %v4025_v40  ;;  %v4027_v14 = vadd.f32 %v12486_v58, %v3899_v26  ;;  %v4432_v41 = vmul.f32 %v10075_v34, %v12120_v44  ;;  %v12556_v52 = vpop.permute.xlu1 %3982 }
 0x28f   : > { %v4028_v54 = vadd.f32 %v12486_v58, %v3900_v25  ;;  %v10078_v42 = vadd.f32 %v10077_v56, %v10076_v27  ;;  %v4058_v1 = vmul.f32 0.2, %v12543_v21  ;;  %v8189_v58 = vld [vmem:[%s13896_s6 + $0x60] sm:$0xff] }
 0x290   : > { %8132 = vperm.xlu1 %10469, %v8062_v3   ;;  %v4059_v17 = vmul.f32 0.2, %v4027_v14  ;;  %v4588_v31 = vpack.c.bf16 %v4575_v29, %v4574_v36  ;;  %v4544_v51 = vadd.f32 %v12153_v37, %v4432_v41  ;;  %v4089_v11 = vmax.f32 %v4025_v40, %v4057_v22  ;;  %v8064_v41 = vld [vmem:[%s13893_s5 + $0x78] sm:$0xff] }
 0x291   : > { %8127 = vperm.xlu0 %10468, %v8061_v0   ;;  %v3732_v48 = vpop.f32.mrb[80].mxu1  ;;  %v4060_v19 = vmul.f32 0.2, %v4028_v54  ;;  %v4433_v26 = vmul.f32 %v10078_v42, %v12118_v45  ;;  %v4090_v45 = vmax.f32 %v12543_v21, %v4058_v1 }
 0x292   : > { %v3901_v44 = vmul.f32 %v12490_v18, %v3732_v48  ;;  %v3734_v16 = vpop.f32.mrb[81].mxu1  ;;  %v4091_v3 = vmax.f32 %v4027_v14, %v4059_v17  ;;  %9760 = vmatmul.mubr.msk.bf16.gmra.mrb[124].mxu0 %vm3366_vm3, %v4588_v31  ;;  %v4560_v27 = vmul.f32 0.2, %v4544_v51  ;;  %v8063_v31 = vld [vmem:[%s13893_s5 + $0x70] sm:$0xff]  ;;  %s13924_s5 = sld [smem:[#allocation30_spill]] }
 0x293   : > { %v3902_v34 = vmul.f32 %v12490_v18, %v3734_v16  ;;  %v10079_v25 = vpop.f32.mrb[100].mxu0  ;;  %v4092_v0 = vmax.f32 %v4028_v54, %v4060_v19  ;;  %v4545_v36 = vadd.f32 %v12151_v15, %v4433_v26  ;;  %v3736_v29 = vpop.f32.mrb[82].mxu1  ;;  %5185 = vmatprep.mubr.bf16.mxu0 %v13843_v30 }
 0x294   : > { %v4029_v37 = vadd.f32 %v12498_v7, %v3901_v44  ;;  %8260 = vperm.xlu1 %10469, %v8190_v28   ;;  %v4121_v40 = vpack.c.bf16 %v4091_v3, %v4089_v11  ;;  %v3903_v22 = vmul.f32 %v12493_v59, %v3736_v29  ;;  %v10080_v14 = vpop.f32.mrb[101].mxu0  ;;  %v3738_v56 = vpop.f32.mrb[83].mxu1  ;;  %v4576_v54 = vmax.f32 %v4544_v51, %v4560_v27  ;;  %v13900_v27 = vld [vmem:[#allocation50_spill] sm:$0xff] }
 0x295   : > { %v12569_v18 = vadd.f32 %v12498_v7, %v3902_v34  ;;  %8255 = vperm.xlu0 %10468, %v8189_v58   ;;  %v12573_v15 = vpop.permute.xlu0 %3859  ;;  %v4561_v42 = vmul.f32 0.2, %v4545_v36  ;;  %v10081_v17 = vadd.f32 %v10080_v14, %v10079_v25  ;;  %v10082_v48 = vpop.f32.mrb[102].mxu0  ;;  %v3904_v7 = vmul.f32 %v12493_v59, %v3738_v56  ;;  %v8192_v25 = vld [vmem:[%s13896_s6 + $0x78] sm:$0xff] }
 0x296   : > { %v4061_v28 = vmul.f32 0.2, %v4029_v37  ;;  %v4031_v21 = vadd.f32 %v12503_v43, %v3903_v22  ;;  %v10083_v1 = vpop.f32.mrb[103].mxu0  ;;  %v4122_v19 = vpack.c.bf16 %v4092_v0, %v4090_v45  ;;  %v12578_v26 = vpop.permute.xlu1 %3864  ;;  %v8191_v22 = vld [vmem:[%s13896_s6 + $0x70] sm:$0xff] }
 0x297   : > { %v4577_v44 = vmax.f32 %v4545_v36, %v4561_v42  ;;  %v4062_v16 = vmul.f32 0.2, %v12569_v18  ;;  %v4434_v51 = vmul.f32 %v10081_v17, %v12182_v23  ;;  %v10084_v58 = vadd.f32 %v10083_v1, %v10082_v48  ;;  %v13902_v48 = vld [vmem:[#allocation35_spill] sm:$0xff]  ;;  %v5900_v1 = vld [vmem:[%s13901_s2 + $0x8] sm:$0xff] }
 0x298   : > { %8142 = vperm.xlu1 %10469, %v8064_v41   ;;  %v4063_v11 = vmul.f32 0.2, %v4031_v21  ;;  %v4032_v3 = vadd.f32 %v12503_v43, %v3904_v7  ;;  %5673 = vmatprep.subr.bf16.mxu0 %v4122_v19  ;;  %v4093_v23 = vmax.f32 %v4029_v37, %v4061_v28 }
 0x299   : > { %8137 = vperm.xlu0 %10468, %v8063_v31   ;;  %v3742_v34 = vpop.f32.mrb[84].mxu1  ;;  %v4546_v59 = vadd.f32 %v12200_v12, %v4434_v51  ;;  %v4435_v0 = vmul.f32 %v10084_v58, %v13900_v27  ;;  %5674 = vmatpush1.bf16.msra.mxu0 %v4121_v40  ;;  %v4589_v45 = vpack.c.bf16 %v4577_v44, %v4576_v54  ;;  %v12589_v42 = vpop.permute.xlu0 %3987 }
 0x29a   : > { %v3905_v36 = vmul.f32 %v12508_v50, %v3742_v34  ;;  %v3744_v29 = vpop.f32.mrb[85].mxu1  ;;  %v4095_v14 = vmax.f32 %v4031_v21, %v4063_v11  ;;  %v4064_v56 = vmul.f32 0.2, %v4032_v3  ;;  %v4094_v17 = vmax.f32 %v12569_v18, %v4062_v16  ;;  %v12600_v19 = vpop.permute.xlu1 %3992  ;;  %v5899_v11 = vld [vmem:[%s13901_s2] sm:$0xff] }
 0x29b   : > { %v3906_v41 = vmul.f32 %v12508_v50, %v3744_v29  ;;  %v10085_v43 = vpop.f32.mrb[104].mxu0  ;;  %v4562_v12 = vmul.f32 0.2, %v4546_v59  ;;  %v4547_v31 = vadd.f32 %v13902_v48, %v4435_v0  ;;  %9761 = vmatmul.mubr.msk.bf16.gmra.mrb[128].mxu0 %vm3366_vm3, %v4589_v45  ;;  %v3746_v54 = vpop.f32.mrb[86].mxu1  ;;  %v13904_v29 = vld [vmem:[#allocation53_spill] sm:$0xff] }
 0x29c   : > { %v4033_v40 = vadd.f32 %v12520_v55, %v3905_v36  ;;  %8270 = vperm.xlu1 %10469, %v8192_v25   ;;  %v4123_v37 = vpack.c.bf16 %v4095_v14, %v4093_v23  ;;  %v4096_v28 = vmax.f32 %v4032_v3, %v4064_v56  ;;  %v3907_v21 = vmul.f32 %v12512_v32, %v3746_v54  ;;  %v10086_v7 = vpop.f32.mrb[105].mxu0  ;;  %v3748_v18 = vpop.f32.mrb[87].mxu1  ;;  %v6028_v56 = vld [vmem:[%s13903_s3 + $0x8] sm:$0xff]  ;;  %v6027_v54 = vld [vmem:[%s13903_s3] sm:$0xff] }
 0x29d   : > { %v12596_v50 = vadd.f32 %v12520_v55, %v3906_v41  ;;  %8265 = vperm.xlu0 %10468, %v8191_v22   ;;  %v4578_v44 = vmax.f32 %v4546_v59, %v4562_v12  ;;  %v4563_v16 = vmul.f32 0.2, %v4547_v31  ;;  %v10087_v51 = vadd.f32 %v10086_v7, %v10085_v43  ;;  %v10088_v58 = vpop.f32.mrb[106].mxu0  ;;  %5195 = vmatprep.mubr.bf16.mxu0 %v13843_v30  ;;  %v13905_v41 = vld [vmem:[#allocation60_spill] sm:$0xff] }
 0x29e   : > { %v4065_v3 = vmul.f32 0.2, %v4033_v40  ;;  %v4035_v55 = vadd.f32 %v12524_v63, %v3907_v21  ;;  %v3908_v34 = vmul.f32 %v12512_v32, %v3748_v18  ;;  %v10089_v25 = vpop.f32.mrb[107].mxu0  ;;  %v4124_v27 = vpack.c.bf16 %v4096_v28, %v4094_v17  ;;  %v13906_v32 = vld [vmem:[#allocation32_spill] sm:$0xff]  ;;  %v12614_v28 = vpop.permute.xlu0 %3869 }
 0x29f   : > { %v4579_v0 = vmax.f32 %v4547_v31, %v4563_v16  ;;  %v4066_v36 = vmul.f32 0.2, %v12596_v50  ;;  %v4436_v59 = vmul.f32 %v10087_v51, %v13904_v29  ;;  %v10090_v45 = vadd.f32 %v10089_v25, %v10088_v58  ;;  %v12617_v16 = vpop.permute.xlu1 %3874 }
 0x2a0   : > { %5922 = vperm.xlu1 %10469, %v5900_v1   ;;  %v4067_v22 = vmul.f32 0.2, %v4035_v55  ;;  %v4036_v23 = vadd.f32 %v12524_v63, %v3908_v34  ;;  %5675 = vmatprep.subr.bf16.mxu0 %v4124_v27  ;;  %v4097_v21 = vmax.f32 %v4033_v40, %v4065_v3  ;;  %v5902_v27 = vld [vmem:[%s13901_s2 + $0x18] sm:$0xff] }
 0x2a1   : > { %5917 = vperm.xlu0 %10468, %v5899_v11   ;;  %v3752_v14 = vpop.f32.mrb[88].mxu1  ;;  %v4548_v43 = vadd.f32 %v13905_v41, %v4436_v59  ;;  %v4437_v12 = vmul.f32 %v10090_v45, %v13906_v32  ;;  %5676 = vmatpush1.bf16.msra.mxu0 %v4123_v37  ;;  %v4590_v31 = vpack.c.bf16 %v4579_v0, %v4578_v44  ;;  %v13907_v37 = vld [vmem:[#allocation40_spill] sm:$0xff]  ;;  %v5901_v45 = vld [vmem:[%s13901_s2 + $0x10] sm:$0xff] }
 0x2a2   : > { %v3909_v17 = vmul.f32 %v12531_v10, %v3752_v14  ;;  %v3754_v48 = vpop.f32.mrb[89].mxu1  ;;  %v4099_v7 = vmax.f32 %v4035_v55, %v4067_v22  ;;  %v4068_v18 = vmul.f32 0.2, %v4036_v23  ;;  %v4098_v51 = vmax.f32 %v12596_v50, %v4066_v36 }
 0x2a3   : > { %v3910_v63 = vmul.f32 %v12531_v10, %v3754_v48  ;;  %v10091_v1 = vpop.f32.mrb[108].mxu0  ;;  %v4564_v58 = vmul.f32 0.2, %v4548_v43  ;;  %v4549_v11 = vadd.f32 %v13907_v37, %v4437_v12  ;;  %9762 = vmatmul.mubr.msk.bf16.gmra.mrb[132].mxu0 %vm3366_vm3, %v4590_v31  ;;  %v3756_v44 = vpop.f32.mrb[90].mxu1  ;;  %v13908_v12 = vld [vmem:[#allocation62_spill] sm:$0xff] }
 0x2a4   : > { %v4037_v34 = vadd.f32 %v12550_v20, %v3909_v17  ;;  %6050 = vperm.xlu1 %10469, %v6028_v56   ;;  %v4125_v40 = vpack.c.bf16 %v4099_v7, %v4097_v21  ;;  %v4100_v3 = vmax.f32 %v4036_v23, %v4068_v18  ;;  %v3911_v55 = vmul.f32 %v12538_v13, %v3756_v44  ;;  %v10092_v25 = vpop.f32.mrb[109].mxu0  ;;  %v3758_v50 = vpop.f32.mrb[91].mxu1  ;;  %v6030_v7 = vld [vmem:[%s13903_s3 + $0x18] sm:$0xff]  ;;  %v6029_v44 = vld [vmem:[%s13903_s3 + $0x10] sm:$0xff] }
 0x2a5   : > { %v12624_v10 = vadd.f32 %v12550_v20, %v3910_v63  ;;  %6045 = vperm.xlu0 %10468, %v6027_v54   ;;  %v4580_v0 = vmax.f32 %v4548_v43, %v4564_v58  ;;  %v4565_v36 = vmul.f32 0.2, %v4549_v11  ;;  %v10093_v29 = vadd.f32 %v10092_v25, %v10091_v1  ;;  %v10094_v59 = vpop.f32.mrb[110].mxu0  ;;  %5205 = vmatprep.mubr.bf16.mxu0 %v13843_v30  ;;  %v12634_v48 = vpop.permute.xlu0 %3997  ;;  %v13909_v18 = vld [vmem:[#allocation66_spill] sm:$0xff]  ;;  %v13910_v1 = vld [vmem:[#allocation61_spill] sm:$0xff] }
 0x2a6   : > { %v4069_v22 = vmul.f32 0.2, %v4037_v34  ;;  %v4039_v23 = vadd.f32 %v12556_v52, %v3911_v55  ;;  %v3912_v20 = vmul.f32 %v12538_v13, %v3758_v50  ;;  %v10095_v14 = vpop.f32.mrb[111].mxu0  ;;  %v4126_v56 = vpack.c.bf16 %v4100_v3, %v4098_v51  ;;  %v12638_v13 = vpop.permute.xlu1 %4002 }
 0x2a7   : > { %v4581_v41 = vmax.f32 %v4549_v11, %v4565_v36  ;;  %v4070_v32 = vmul.f32 0.2, %v12624_v10  ;;  %v4438_v17 = vmul.f32 %v10093_v29, %v13908_v12  ;;  %v10096_v43 = vadd.f32 %v10095_v14, %v10094_v59  ;;  %v13911_v29 = vld [vmem:[#allocation65_spill] sm:$0xff]  ;;  %v5903_v12 = vld [vmem:[%s13901_s2 + $0x20] sm:$0xff] }
 0x2a8   : > { %5932 = vperm.xlu1 %10469, %v5902_v27   ;;  %v4071_v31 = vmul.f32 0.2, %v4039_v23  ;;  %v4040_v54 = vadd.f32 %v12556_v52, %v3912_v20  ;;  %5677 = vmatprep.subr.bf16.mxu0 %v4126_v56  ;;  %v4101_v3 = vmax.f32 %v4037_v34, %v4069_v22  ;;  %v5904_v20 = vld [vmem:[%s13901_s2 + $0x28] sm:$0xff] }
 0x2a9   : > { %5927 = vperm.xlu0 %10468, %v5901_v45   ;;  %v3762_v21 = vpop.f32.mrb[92].mxu1  ;;  %v4550_v63 = vadd.f32 %v13909_v18, %v4438_v17  ;;  %v4439_v51 = vmul.f32 %v10096_v43, %v13910_v1  ;;  %5678 = vmatpush1.bf16.msra.mxu0 %v4125_v40  ;;  %v4591_v11 = vpack.c.bf16 %v4581_v41, %v4580_v0  ;;  %v12656_v17 = vpop.permute.xlu0 %3879 }
 0x2aa   : > { %v3913_v58 = vmul.f32 %v12573_v15, %v3762_v21  ;;  %v3764_v37 = vpop.f32.mrb[93].mxu1  ;;  %v4103_v55 = vmax.f32 %v4039_v23, %v4071_v31  ;;  %v4072_v25 = vmul.f32 0.2, %v4040_v54  ;;  %v4102_v27 = vmax.f32 %v12624_v10, %v4070_v32 }
 0x2ab   : > { %v3914_v52 = vmul.f32 %v12573_v15, %v3764_v37  ;;  %v10097_v50 = vpop.f32.mrb[112].mxu0  ;;  %v4566_v36 = vmul.f32 0.2, %v4550_v63  ;;  %v4551_v59 = vadd.f32 %v13911_v29, %v4439_v51  ;;  %9763 = vmatmul.mubr.msk.bf16.gmra.mrb[136].mxu0 %vm3366_vm3, %v4591_v11  ;;  %v3766_v40 = vpop.f32.mrb[94].mxu1  ;;  %v13912_v51 = vld [vmem:[#allocation70_spill] sm:$0xff] }
 0x2ac   : > { %v4041_v45 = vadd.f32 %v12589_v42, %v3913_v58  ;;  %6060 = vperm.xlu1 %10469, %v6030_v7   ;;  %v4127_v0 = vpack.c.bf16 %v4103_v55, %v4101_v3  ;;  %v4104_v34 = vmax.f32 %v4040_v54, %v4072_v25  ;;  %v3915_v15 = vmul.f32 %v12578_v26, %v3766_v40  ;;  %v10098_v23 = vpop.f32.mrb[113].mxu0  ;;  %v3768_v10 = vpop.f32.mrb[95].mxu1  ;;  %v6032_v25 = vld [vmem:[%s13903_s3 + $0x28] sm:$0xff] }
 0x2ad   : > { %v12650_v22 = vadd.f32 %v12589_v42, %v3914_v52  ;;  %6055 = vperm.xlu0 %10468, %v6029_v44   ;;  %v4567_v14 = vmul.f32 0.2, %v4551_v59  ;;  %v10099_v41 = vadd.f32 %v10098_v23, %v10097_v50  ;;  %v10100_v32 = vpop.f32.mrb[114].mxu0  ;;  %5215 = vmatprep.mubr.bf16.mxu0 %v13843_v30  ;;  %v3916_v31 = vmul.f32 %v12578_v26, %v3768_v10  ;;  %v12661_v7 = vpop.permute.xlu1 %3884  ;;  %v13913_v26 = vld [vmem:[#allocation74_spill] sm:$0xff]  ;;  %v13914_v50 = vld [vmem:[#allocation69_spill] sm:$0xff] }
 0x2ae   : > { %v4073_v56 = vmul.f32 0.2, %v4041_v45  ;;  %v4043_v42 = vadd.f32 %v12600_v19, %v3915_v15  ;;  %v10101_v54 = vpop.f32.mrb[115].mxu0  ;;  %v4128_v21 = vpack.c.bf16 %v4104_v34, %v4102_v27  ;;  %v4582_v18 = vmax.f32 %v4550_v63, %v4566_v36  ;;  %v13915_v10 = vld [vmem:[#allocation73_spill] sm:$0xff] }
 0x2af   : > { %v4074_v43 = vmul.f32 0.2, %v12650_v22  ;;  %v4583_v1 = vmax.f32 %v4551_v59, %v4567_v14  ;;  %v4440_v58 = vmul.f32 %v10099_v41, %v13912_v51  ;;  %v10102_v37 = vadd.f32 %v10101_v54, %v10100_v32  ;;  %v6031_v59 = vld [vmem:[%s13903_s3 + $0x20] sm:$0xff]  ;;  %v4008_v41 = vpop.permute.xlu0 %4007 }
 0x2b0   : > { %5942 = vperm.xlu1 %10469, %v5904_v20   ;;  %v4105_v11 = vmax.f32 %v4041_v45, %v4073_v56  ;;  %v4075_v44 = vmul.f32 0.2, %v4043_v42  ;;  %v4044_v3 = vadd.f32 %v12600_v19, %v3916_v31  ;;  %5679 = vmatprep.subr.bf16.mxu0 %v4128_v21 }
 0x2b1   : > { %5937 = vperm.xlu0 %10468, %v5903_v12   ;;  %v3772_v55 = vpop.f32.mrb[96].mxu1  ;;  %v4552_v52 = vadd.f32 %v13913_v26, %v4440_v58  ;;  %v4441_v27 = vmul.f32 %v10102_v37, %v13914_v50  ;;  %5680 = vmatpush1.bf16.msra.mxu0 %v4127_v0  ;;  %v4592_v29 = vpack.c.bf16 %v4583_v1, %v4582_v18  ;;  %v5905_v18 = vld [vmem:[%s13901_s2 + $0x30] sm:$0xff] }
 0x2b2   : > { %v3917_v63 = vmul.f32 %v12614_v28, %v3772_v55  ;;  %v3774_v36 = vpop.f32.mrb[97].mxu1  ;;  %v4106_v40 = vmax.f32 %v12650_v22, %v4074_v43  ;;  %v4107_v45 = vmax.f32 %v4043_v42, %v4075_v44  ;;  %v4076_v34 = vmul.f32 0.2, %v4044_v3  ;;  %v5906_v43 = vld [vmem:[%s13901_s2 + $0x38] sm:$0xff]  ;;  %v4013_v42 = vpop.permute.xlu1 %4012 }
 0x2b3   : > { %v3918_v19 = vmul.f32 %v12614_v28, %v3774_v36  ;;  %v3776_v15 = vpop.f32.mrb[98].mxu1  ;;  %v4568_v23 = vmul.f32 0.2, %v4552_v52  ;;  %v4553_v20 = vadd.f32 %v13915_v10, %v4441_v27  ;;  %9764 = vmatmul.mubr.msk.bf16.gmra.mrb[140].mxu0 %vm3366_vm3, %v4592_v29 }
 0x2b4   : > { %v4045_v14 = vadd.f32 %v12634_v48, %v3917_v63  ;;  %v3919_v0 = vmul.f32 %v12617_v16, %v3776_v15  ;;  %6070 = vperm.xlu1 %10469, %v6032_v25   ;;  %v3778_v56 = vpop.f32.mrb[99].mxu1  ;;  %v4129_v22 = vpack.c.bf16 %v4107_v45, %v4105_v11  ;;  %v4108_v32 = vmax.f32 %v4044_v3, %v4076_v34  ;;  %v6034_v3 = vld [vmem:[%s13903_s3 + $0x38] sm:$0xff]  ;;  %v6033_v63 = vld [vmem:[%s13903_s3 + $0x30] sm:$0xff] }
 0x2b5   : > { %v4046_v12 = vadd.f32 %v12634_v48, %v3918_v19  ;;  %6065 = vperm.xlu0 %10468, %v6031_v59   ;;  %v3920_v28 = vmul.f32 %v12617_v16, %v3778_v56  ;;  %v4569_v31 = vmul.f32 0.2, %v4553_v20  ;;  %5225 = vmatprep.mubr.bf16.mxu0 %v13843_v30  ;;  %v4584_v37 = vmax.f32 %v4552_v52, %v4568_v23  ;;  %v5907_v56 = vld [vmem:[%s13901_s2 + $0x40] sm:$0xff] }
 0x2b6   : > { %v4077_v54 = vmul.f32 0.2, %v4045_v14  ;;  %v4047_v21 = vadd.f32 %v12638_v13, %v3919_v0  ;;  %v4130_v58 = vpack.c.bf16 %v4108_v32, %v4106_v40  ;;  %v3895_v40 = vpop.permute.xlu1 %3894 }
 0x2b7   : > { %v4078_v1 = vmul.f32 0.2, %v4046_v12  ;;  %v4048_v51 = vadd.f32 %v12638_v13, %v3920_v28  ;;  %v4585_v48 = vmax.f32 %v4553_v20, %v4569_v31  ;;  %v3890_v13 = vpop.permute.xlu0 %3889  ;;  %v6036_v31 = vld [vmem:[%s13903_s3 + $0x48] sm:$0xff] }
 0x2b8   : > { %v4079_v11 = vmul.f32 0.2, %v4047_v21  ;;  %5952 = vperm.xlu1 %10469, %v5906_v43   ;;  %5681 = vmatprep.subr.bf16.mxu0 %v4130_v58  ;;  %v4109_v55 = vmax.f32 %v4045_v14, %v4077_v54  ;;  %v5908_v14 = vld [vmem:[%s13901_s2 + $0x48] sm:$0xff] }
 0x2b9   : > { %v4080_v16 = vmul.f32 0.2, %v4048_v51  ;;  %5947 = vperm.xlu0 %10468, %v5905_v18   ;;  %v3782_v44 = vpop.f32.mrb[100].mxu1  ;;  %5682 = vmatpush1.bf16.msra.mxu0 %v4129_v22  ;;  %v4593_v27 = vpack.c.bf16 %v4585_v48, %v4584_v37  ;;  %v4110_v36 = vmax.f32 %v4046_v12, %v4078_v1 }
 0x2ba   : > { %v4111_v25 = vmax.f32 %v4047_v21, %v4079_v11  ;;  %v3921_v26 = vmul.f32 %v12656_v17, %v3782_v44  ;;  %v3784_v50 = vpop.f32.mrb[101].mxu1  ;;  %v4023_v54 = vpop.permute.xlu1 %4022 }
 0x2bb   : > { %v4112_v52 = vmax.f32 %v4048_v51, %v4080_v16  ;;  %v3922_v29 = vmul.f32 %v12656_v17, %v3784_v50  ;;  %v3786_v59 = vpop.f32.mrb[102].mxu1  ;;  %9765 = vmatmul.mubr.msk.bf16.gmra.mrb[144].mxu0 %vm3366_vm3, %v4593_v27  ;;  %v4018_v28 = vpop.permute.xlu0 %4017  ;;  %v6035_v51 = vld [vmem:[%s13903_s3 + $0x40] sm:$0xff]  ;;  %v5910_v50 = vld [vmem:[%s13901_s2 + $0x58] sm:$0xff] }
 0x2bc   : > { %v4131_v45 = vpack.c.bf16 %v4111_v25, %v4109_v55  ;;  %v4049_v34 = vadd.f32 %v4008_v41, %v3921_v26  ;;  %v3923_v19 = vmul.f32 %v12661_v7, %v3786_v59  ;;  %6080 = vperm.xlu1 %10469, %v6034_v3   ;;  %v3788_v15 = vpop.f32.mrb[103].mxu1 }
 0x2bd   : > { %v4050_v23 = vadd.f32 %v4008_v41, %v3922_v29  ;;  %6075 = vperm.xlu0 %10468, %v6033_v63   ;;  %v3924_v10 = vmul.f32 %v12661_v7, %v3788_v15  ;;  %v4132_v20 = vpack.c.bf16 %v4112_v52, %v4110_v36  ;;  %v5909_v36 = vld [vmem:[%s13901_s2 + $0x50] sm:$0xff] }
 0x2be   : > { %v4081_v0 = vmul.f32 0.2, %v4049_v34  ;;  %v4051_v17 = vadd.f32 %v4013_v42, %v3923_v19  ;;  %v12698_v59 = vpop.permute.xlu1 %7736  ;;  %v6038_v19 = vld [vmem:[%s13903_s3 + $0x58] sm:$0xff] }
 0x2bf   : > { %v4082_v22 = vmul.f32 0.2, %v4050_v23  ;;  %v4052_v32 = vadd.f32 %v4013_v42, %v3924_v10  ;;  %5683 = vmatprep.subr.bf16.mxu0 %v4132_v20  ;;  %v12696_v52 = vpop.permute.xlu0 %7731  ;;  %v6037_v20 = vld [vmem:[%s13903_s3 + $0x50] sm:$0xff] }
 0x2c0   : > { %v4083_v12 = vmul.f32 0.2, %v4051_v17  ;;  %5962 = vperm.xlu1 %10469, %v5908_v14   ;;  %5684 = vmatpush1.bf16.msra.mxu0 %v4131_v45  ;;  %v4113_v7 = vmax.f32 %v4049_v34, %v4081_v0 }
 0x2c1   : > { %v4084_v43 = vmul.f32 0.2, %v4052_v32  ;;  %5957 = vperm.xlu0 %10468, %v5907_v56   ;;  %v3792_v41 = vpop.f32.mrb[104].mxu1  ;;  %v4114_v58 = vmax.f32 %v4050_v23, %v4082_v22 }
 0x2c2   : > { %v4115_v21 = vmax.f32 %v4051_v17, %v4083_v12  ;;  %v3925_v18 = vmul.f32 %v3890_v13, %v3792_v41  ;;  %v3794_v1 = vpop.f32.mrb[105].mxu1 }
 0x2c3   : > { %v4116_v37 = vmax.f32 %v4052_v32, %v4084_v43  ;;  %v3926_v42 = vmul.f32 %v3890_v13, %v3794_v1  ;;  %v3796_v48 = vpop.f32.mrb[106].mxu1  ;;  %v12702_v12 = vpop.permute.xlu0 %7859 }
 0x2c4   : > { %v4133_v11 = vpack.c.bf16 %v4115_v21, %v4113_v7  ;;  %v4053_v16 = vadd.f32 %v4018_v28, %v3925_v18  ;;  %v3927_v44 = vmul.f32 %v3895_v40, %v3796_v48  ;;  %6090 = vperm.xlu1 %10469, %v6036_v31   ;;  %v3798_v3 = vpop.f32.mrb[107].mxu1  ;;  %v12706_v7 = vpop.permute.xlu1 %7864  ;;  %v5911_v21 = vld [vmem:[%s13901_s2 + $0x60] sm:$0xff] }
 0x2c5   : > { %v4054_v55 = vadd.f32 %v4018_v28, %v3926_v42  ;;  %6085 = vperm.xlu0 %10468, %v6035_v51   ;;  %v3928_v25 = vmul.f32 %v3895_v40, %v3798_v3  ;;  %v4134_v26 = vpack.c.bf16 %v4116_v37, %v4114_v58  ;;  %v13916_v28 = vld [vmem:[#allocation31_spill] sm:$0xff]  ;;  %v13919_v42 = vld [vmem:[#allocation54_spill] sm:$0xff] }
 0x2c6   : > { %v4085_v27 = vmul.f32 0.2, %v4053_v16  ;;  %v4055_v63 = vadd.f32 %v4023_v54, %v3927_v44  ;;  %v13917_v18 = vld [vmem:[#allocation47_spill] sm:$0xff] }
 0x2c7   : > { %v4086_v29 = vmul.f32 0.2, %v4054_v55  ;;  %v4056_v13 = vadd.f32 %v4023_v54, %v3928_v25  ;;  %5685 = vmatprep.subr.bf16.mxu0 %v4134_v26  ;;  %v5912_v54 = vld [vmem:[%s13901_s2 + $0x68] sm:$0xff]  ;;  %v13918_v51 = vld [vmem:[#allocation55_spill] sm:$0xff] }
 0x2c8   : > { %v4087_v45 = vmul.f32 0.2, %v4055_v63  ;;  %5972 = vperm.xlu1 %10469, %v5910_v50   ;;  %5686 = vmatpush1.bf16.msra.mxu0 %v4133_v11  ;;  %v4117_v15 = vmax.f32 %v4053_v16, %v4085_v27  ;;  %v6040_v16 = vld [vmem:[%s13903_s3 + $0x68] sm:$0xff]  ;;  %v6039_v3 = vld [vmem:[%s13903_s3 + $0x60] sm:$0xff]  ;;  %v12716_v27 = vpop.permute.xlu1 %7746 }
 0x2c9   : > { %v4088_v34 = vmul.f32 0.2, %v4056_v13  ;;  %5967 = vperm.xlu0 %10468, %v5909_v36   ;;  %v10119_v40 = vpop.f32.mrb[108].mxu1  ;;  %v4118_v14 = vmax.f32 %v4054_v55, %v4086_v29  ;;  %v12714_v55 = vpop.permute.xlu0 %7741 }
 0x2ca   : > { %v4119_v23 = vmax.f32 %v4055_v63, %v4087_v45  ;;  %v10120_v10 = vpop.f32.mrb[109].mxu1 }
 0x2cb   : > { %v4120_v0 = vmax.f32 %v4056_v13, %v4088_v34  ;;  %v10121_v17 = vadd.f32 %v10120_v10, %v10119_v40  ;;  %v10122_v56 = vpop.f32.mrb[110].mxu1  ;;  %v13920_v13 = vld [vmem:[#allocation39_spill] sm:$0xff]  ;;  %v5914_v40 = vld [vmem:[%s13901_s2 + $0x78] sm:$0xff] }
 0x2cc   : > { %v4135_v22 = vpack.c.bf16 %v4119_v23, %v4117_v15  ;;  %6100 = vperm.xlu1 %10469, %v6038_v19   ;;  %v10123_v32 = vpop.f32.mrb[111].mxu1  ;;  %v5913_v19 = vld [vmem:[%s13901_s2 + $0x70] sm:$0xff]  ;;  %v13921_v23 = vld [vmem:[#allocation59_spill] sm:$0xff]  ;;  %s13950_s2 = sld [smem:[#allocation16_spill]] }
 0x2cd   : > { %v4883_v43 = vmul.f32 %v10121_v17, %v13916_v28  ;;  %6095 = vperm.xlu0 %10468, %v6037_v20   ;;  %v10124_v41 = vadd.f32 %v10123_v32, %v10122_v56  ;;  %v4136_v31 = vpack.c.bf16 %v4120_v0, %v4118_v14  ;;  %v13922_v20 = vld [vmem:[#allocation46_spill] sm:$0xff]  ;;  %v12723_v0 = vpop.permute.xlu0 %7869 }
 0x2ce   : > { %v13923_v56 = vld [vmem:[#allocation38_spill] sm:$0xff] }
 0x2cf   : > { %v4995_v1 = vadd.f32 %v13917_v18, %v4883_v43  ;;  %v4884_v58 = vmul.f32 %v10124_v41, %v13918_v51  ;;  %5687 = vmatprep.subr.bf16.mxu0 %v4136_v31  ;;  %v6042_v28 = vld [vmem:[%s13903_s3 + $0x78] sm:$0xff]  ;;  %v12728_v43 = vpop.permute.xlu1 %7874  ;;  %v6041_v31 = vld [vmem:[%s13903_s3 + $0x70] sm:$0xff]  ;;  %s13983_s3 = sld [smem:[#allocation27_spill]] }
 0x2d0   : > { %5982 = vperm.xlu1 %10469, %v5912_v54   ;;  %5688 = vmatpush1.bf16.msra.mxu0 %v4135_v22 }
 0x2d1   : > { %v5011_v37 = vmul.f32 0.2, %v4995_v1  ;;  %v4996_v48 = vadd.f32 %v13919_v42, %v4884_v58  ;;  %5977 = vperm.xlu0 %10468, %v5911_v21   ;;  %v10125_v11 = vpop.f32.mrb[112].mxu1 }
 0x2d2   : > { %v10126_v44 = vpop.f32.mrb[113].mxu1 }
 0x2d3   : > { %v5012_v25 = vmul.f32 0.2, %v4996_v48  ;;  %v10127_v26 = vadd.f32 %v10126_v44, %v10125_v11  ;;  %v10128_v50 = vpop.f32.mrb[114].mxu1  ;;  %v5027_v36 = vmax.f32 %v4995_v1, %v5011_v37  ;;  %v13925_v37 = vld [vmem:[#allocation37_spill] sm:$0xff]  ;;  %v8868_v11 = vld [vmem:[%s13924_s5 + $0x8] sm:$0xff]  ;;  %v12736_v44 = vpop.permute.xlu0 %7751 }
 0x2d4   : > { %6110 = vperm.xlu1 %10469, %v6040_v16   ;;  %v10129_v63 = vpop.f32.mrb[115].mxu1  ;;  %v8867_v16 = vld [vmem:[%s13924_s5] sm:$0xff] }
 0x2d5   : > { %v5028_v29 = vmax.f32 %v4996_v48, %v5012_v25  ;;  %v4885_v45 = vmul.f32 %v10127_v26, %v13920_v13  ;;  %6105 = vperm.xlu0 %10468, %v6039_v3   ;;  %v10130_v34 = vadd.f32 %v10129_v63, %v10128_v50  ;;  %v13926_v3 = vld [vmem:[#allocation45_spill] sm:$0xff]  ;;  %v12740_v63 = vpop.permute.xlu1 %7756 }
 0x2d7   : > { %v5043_v15 = vpack.c.bf16 %v5028_v29, %v5027_v36  ;;  %v4997_v10 = vadd.f32 %v13921_v23, %v4885_v45  ;;  %v4886_v14 = vmul.f32 %v10130_v34, %v13922_v20  ;;  %v13928_v29 = vld [vmem:[#allocation36_spill] sm:$0xff] }
 0x2d8   : > { %5992 = vperm.xlu1 %10469, %v5914_v40   ;;  %v8996_v34 = vld [vmem:[%s11141_s4 + $0x8] sm:$0xff] }
 0x2d9   : > { %v5013_v17 = vmul.f32 0.2, %v4997_v10  ;;  %v4998_v22 = vadd.f32 %v13923_v56, %v4886_v14  ;;  %5987 = vperm.xlu0 %10468, %v5913_v19   ;;  %v10131_v32 = vpop.f32.mrb[116].mxu1  ;;  %9768 = vmatmul.mubr.msk.bf16.vlgmr.msra.gmra.mrb[140].mxu1 %vm1656_vm0, %v5043_v15  ;;  %v8995_v19 = vld [vmem:[%s11141_s4] sm:$0xff]  ;;  %v12747_v14 = vpop.permute.xlu0 %7879 }
 0x2da   : > { %v10132_v41 = vpop.f32.mrb[117].mxu1  ;;  %5330 = vmatprep.mubr.bf16.mxu1 %v13843_v30  ;;  %6302 = vmatpush1.bf16.msra.mxu1 %v12481_v47  ;;  %v13927_v47 = vld [vmem:[#allocation58_spill] sm:$0xff] }
 0x2db   : > { %v5014_v54 = vmul.f32 0.2, %v4998_v22  ;;  %v10133_v21 = vadd.f32 %v10132_v41, %v10131_v32  ;;  %v10134_v18 = vpop.f32.mrb[118].mxu1  ;;  %v5029_v51 = vmax.f32 %v4997_v10, %v5013_v17  ;;  %v8870_v41 = vld [vmem:[%s13924_s5 + $0x18] sm:$0xff] }
 0x2dc   : > { %6120 = vperm.xlu1 %10469, %v6042_v28   ;;  %v10135_v1 = vpop.f32.mrb[119].mxu1 }
 0x2dd   : > { %v5030_v58 = vmax.f32 %v4998_v22, %v5014_v54  ;;  %v4887_v42 = vmul.f32 %v10133_v21, %v13925_v37  ;;  %6115 = vperm.xlu0 %10468, %v6041_v31   ;;  %v10136_v48 = vadd.f32 %v10135_v1, %v10134_v18  ;;  %v13929_v22 = vld [vmem:[#allocation43_spill] sm:$0xff]  ;;  %v12751_v31 = vpop.permute.xlu1 %7884  ;;  %v8869_v54 = vld [vmem:[%s13924_s5 + $0x10] sm:$0xff]  ;;  %v13931_v1 = vld [vmem:[#allocation44_spill] sm:$0xff] }
 0x2de   : > { %v13930_v21 = vld [vmem:[#allocation51_spill] sm:$0xff] }
 0x2df   : > { %v4999_v25 = vadd.f32 %v13926_v3, %v4887_v42  ;;  %v4888_v26 = vmul.f32 %v10136_v48, %v13927_v47  ;;  %v5044_v50 = vpack.c.bf16 %v5030_v58, %v5029_v51  ;;  %v13932_v42 = vld [vmem:[#allocation42_spill] sm:$0xff]  ;;  %v12761_v47 = vpop.permute.xlu0 %7761 }
 0x2e0   : > { %8890 = vperm.xlu1 %10469, %v8868_v11  }
 0x2e1   : > { %v5015_v36 = vmul.f32 0.2, %v4999_v25  ;;  %v5000_v13 = vadd.f32 %v13928_v29, %v4888_v26  ;;  %8885 = vperm.xlu0 %10468, %v8867_v16   ;;  %v10137_v45 = vpop.f32.mrb[120].mxu1  ;;  %9769 = vmatmul.mubr.msk.bf16.gmra.mrb[144].mxu1 %vm1656_vm0, %v5044_v50  ;;  %v8998_v16 = vld [vmem:[%s11141_s4 + $0x18] sm:$0xff]  ;;  %v12763_v29 = vpop.permute.xlu1 %7766 }
 0x2e2   : > { %v10138_v40 = vpop.f32.mrb[121].mxu1  ;;  %5340 = vmatprep.mubr.bf16.mxu1 %v13843_v30 }
 0x2e3   : > { %v5016_v15 = vmul.f32 0.2, %v5000_v13  ;;  %v10139_v23 = vadd.f32 %v10138_v40, %v10137_v45  ;;  %v10140_v10 = vpop.f32.mrb[122].mxu1  ;;  %v5031_v17 = vmax.f32 %v4999_v25, %v5015_v36  ;;  %v8997_v25 = vld [vmem:[%s11141_s4 + $0x10] sm:$0xff]  ;;  %v13933_v40 = vld [vmem:[#allocation48_spill] sm:$0xff] }
 0x2e4   : > { %9018 = vperm.xlu1 %10469, %v8996_v34   ;;  %v10141_v20 = vpop.f32.mrb[123].mxu1 }
 0x2e5   : > { %v5032_v56 = vmax.f32 %v5000_v13, %v5016_v15  ;;  %v4889_v32 = vmul.f32 %v10139_v23, %v13929_v22  ;;  %9013 = vperm.xlu0 %10468, %v8995_v19   ;;  %v10142_v28 = vadd.f32 %v10141_v20, %v10140_v10  ;;  %v8872_v23 = vld [vmem:[%s13924_s5 + $0x28] sm:$0xff]  ;;  %v8871_v10 = vld [vmem:[%s13924_s5 + $0x20] sm:$0xff]  ;;  %v13934_v20 = vld [vmem:[#allocation33_spill] sm:$0xff] }
 0x2e7   : > { %v5001_v18 = vadd.f32 %v13930_v21, %v4889_v32  ;;  %v4890_v51 = vmul.f32 %v10142_v28, %v13931_v1  ;;  %v5045_v58 = vpack.c.bf16 %v5032_v56, %v5031_v17  ;;  %v13935_v56 = vld [vmem:[#allocation49_spill] sm:$0xff]  ;;  %v12770_v28 = vpop.permute.xlu0 %7889  ;;  %v9000_v1 = vld [vmem:[%s11141_s4 + $0x28] sm:$0xff] }
 0x2e8   : > { %8900 = vperm.xlu1 %10469, %v8870_v41  }
 0x2e9   : > { %v5017_v37 = vmul.f32 0.2, %v5001_v18  ;;  %v5002_v48 = vadd.f32 %v13932_v42, %v4890_v51  ;;  %8895 = vperm.xlu0 %10468, %v8869_v54   ;;  %v10143_v11 = vpop.f32.mrb[124].mxu1  ;;  %9770 = vmatmul.mubr.msk.bf16.gmra.mrb[148].mxu1 %vm1656_vm0, %v5045_v58  ;;  %v13936_v54 = vld [vmem:[#allocation34_spill] sm:$0xff]  ;;  %v12775_v51 = vpop.permute.xlu1 %7894 }
 0x2ea   : > { %v10144_v3 = vpop.f32.mrb[125].mxu1  ;;  %5350 = vmatprep.mubr.bf16.mxu1 %v13843_v30 }
 0x2eb   : > { %v5018_v26 = vmul.f32 0.2, %v5002_v48  ;;  %v10145_v50 = vadd.f32 %v10144_v3, %v10143_v11  ;;  %v10146_v36 = vpop.f32.mrb[126].mxu1  ;;  %v5033_v45 = vmax.f32 %v5001_v18, %v5017_v37  ;;  %v8999_v37 = vld [vmem:[%s11141_s4 + $0x20] sm:$0xff] }
 0x2ec   : > { %9028 = vperm.xlu1 %10469, %v8998_v16   ;;  %v10147_v13 = vpop.f32.mrb[127].mxu1 }
 0x2ed   : > { %v5034_v34 = vmax.f32 %v5002_v48, %v5018_v26  ;;  %v4891_v19 = vmul.f32 %v10145_v50, %v13933_v40  ;;  %9023 = vperm.xlu0 %10468, %v8997_v25   ;;  %v10148_v15 = vadd.f32 %v10147_v13, %v10146_v36  ;;  %v13937_v26 = vld [vmem:[#allocation41_spill] sm:$0xff]  ;;  %v8874_v13 = vld [vmem:[%s13924_s5 + $0x38] sm:$0xff]  ;;  %v13938_v40 = vld [vmem:[#allocation56_spill] sm:$0xff] }
 0x2ef   : > { %v5003_v17 = vadd.f32 %v13934_v20, %v4891_v19  ;;  %v4892_v22 = vmul.f32 %v10148_v15, %v13935_v56  ;;  %v5046_v32 = vpack.c.bf16 %v5034_v34, %v5033_v45  ;;  %v8873_v45 = vld [vmem:[%s13924_s5 + $0x30] sm:$0xff]  ;;  %v12782_v34 = vpop.permute.xlu0 %7771  ;;  %v13939_v15 = vld [vmem:[#allocation52_spill] sm:$0xff]  ;;  %v12786_v20 = vpop.permute.xlu1 %7776 }
 0x2f0   : > { %8910 = vperm.xlu1 %10469, %v8872_v23   ;;  %v13940_v56 = vld [vmem:[#allocation57_spill] sm:$0xff] }
 0x2f1   : > { %v5019_v41 = vmul.f32 0.2, %v5003_v17  ;;  %v5004_v21 = vadd.f32 %v13936_v54, %v4892_v22  ;;  %8905 = vperm.xlu0 %10468, %v8871_v10   ;;  %v10149_v18 = vpop.f32.mrb[128].mxu1  ;;  %9771 = vmatmul.mubr.msk.bf16.gmra.mrb[152].mxu1 %vm1656_vm0, %v5046_v32 }
 0x2f2   : > { %v10150_v58 = vpop.f32.mrb[129].mxu1  ;;  %5360 = vmatprep.mubr.bf16.mxu1 %v13843_v30 }
 0x2f3   : > { %v5020_v42 = vmul.f32 0.2, %v5004_v21  ;;  %v10151_v48 = vadd.f32 %v10150_v58, %v10149_v18  ;;  %v10152_v11 = vpop.f32.mrb[130].mxu1  ;;  %v5035_v3 = vmax.f32 %v5003_v17, %v5019_v41  ;;  %v9002_v41 = vld [vmem:[%s11141_s4 + $0x38] sm:$0xff] }
 0x2f4   : > { %9038 = vperm.xlu1 %10469, %v9000_v1   ;;  %v10153_v16 = vpop.f32.mrb[131].mxu1 }
 0x2f5   : > { %v5036_v25 = vmax.f32 %v5004_v21, %v5020_v42  ;;  %v4893_v50 = vmul.f32 %v10151_v48, %v13937_v26  ;;  %9033 = vperm.xlu0 %10468, %v8999_v37   ;;  %v10154_v36 = vadd.f32 %v10153_v16, %v10152_v11  ;;  %v9001_v21 = vld [vmem:[%s11141_s4 + $0x30] sm:$0xff]  ;;  %v12793_v42 = vpop.permute.xlu0 %7899  ;;  %v13941_v16 = vld [vmem:[#allocation64_spill] sm:$0xff] }
 0x2f6   : > { %v8876_v26 = vld [vmem:[%s13924_s5 + $0x48] sm:$0xff] }
 0x2f7   : > { %v5005_v19 = vadd.f32 %v13938_v40, %v4893_v50  ;;  %v4894_v23 = vmul.f32 %v10154_v36, %v13939_v15  ;;  %v5047_v10 = vpack.c.bf16 %v5036_v25, %v5035_v3  ;;  %v12797_v50 = vpop.permute.xlu1 %7904  ;;  %v8875_v36 = vld [vmem:[%s13924_s5 + $0x40] sm:$0xff] }
 0x2f8   : > { %8920 = vperm.xlu1 %10469, %v8874_v13   ;;  %v13942_v13 = vld [vmem:[#allocation68_spill] sm:$0xff]  ;;  %v13943_v40 = vld [vmem:[#allocation63_spill] sm:$0xff] }
 0x2f9   : > { %v5021_v17 = vmul.f32 0.2, %v5005_v19  ;;  %v5006_v22 = vadd.f32 %v13940_v56, %v4894_v23  ;;  %8915 = vperm.xlu0 %10468, %v8873_v45   ;;  %v10155_v32 = vpop.f32.mrb[132].mxu1  ;;  %9772 = vmatmul.mubr.msk.bf16.gmra.mrb[156].mxu1 %vm1656_vm0, %v5047_v10  ;;  %v13944_v56 = vld [vmem:[#allocation67_spill] sm:$0xff] }
 0x2fa   : > { %v10156_v54 = vpop.f32.mrb[133].mxu1  ;;  %5370 = vmatprep.mubr.bf16.mxu1 %v13843_v30 }
 0x2fb   : > { %v5022_v18 = vmul.f32 0.2, %v5006_v22  ;;  %v10157_v1 = vadd.f32 %v10156_v54, %v10155_v32  ;;  %v10158_v58 = vpop.f32.mrb[134].mxu1  ;;  %v5037_v48 = vmax.f32 %v5005_v19, %v5021_v17  ;;  %v12807_v54 = vpop.permute.xlu0 %7781 }
 0x2fc   : > { %9048 = vperm.xlu1 %10469, %v9002_v41   ;;  %v10159_v37 = vpop.f32.mrb[135].mxu1  ;;  %v9003_v41 = vld [vmem:[%s11141_s4 + $0x40] sm:$0xff] }
 0x2fd   : > { %v5038_v11 = vmax.f32 %v5006_v22, %v5022_v18  ;;  %v4895_v3 = vmul.f32 %v10157_v1, %v13941_v16  ;;  %9043 = vperm.xlu0 %10468, %v9001_v21   ;;  %v10160_v25 = vadd.f32 %v10159_v37, %v10158_v58  ;;  %v9004_v22 = vld [vmem:[%s11141_s4 + $0x48] sm:$0xff]  ;;  %v12809_v58 = vpop.permute.xlu1 %7786 }
 0x2fe   : > { %v13945_v16 = vld [vmem:[#allocation72_spill] sm:$0xff] }
 0x2ff   : > { %v5007_v45 = vadd.f32 %v13942_v13, %v4895_v3  ;;  %v4896_v15 = vmul.f32 %v10160_v25, %v13943_v40  ;;  %v5048_v23 = vpack.c.bf16 %v5038_v11, %v5037_v48  ;;  %v13946_v13 = vld [vmem:[#allocation76_spill] sm:$0xff] }
 0x300   : > { %8930 = vperm.xlu1 %10469, %v8876_v26   ;;  %v8878_v26 = vld [vmem:[%s13924_s5 + $0x58] sm:$0xff] }
 0x301   : > { %v5023_v10 = vmul.f32 0.2, %v5007_v45  ;;  %v5008_v19 = vadd.f32 %v13944_v56, %v4896_v15  ;;  %8925 = vperm.xlu0 %10468, %v8875_v36   ;;  %v10161_v17 = vpop.f32.mrb[136].mxu1  ;;  %9773 = vmatmul.mubr.msk.bf16.gmra.mrb[160].mxu1 %vm1656_vm0, %v5048_v23  ;;  %v8877_v36 = vld [vmem:[%s13924_s5 + $0x50] sm:$0xff]  ;;  %v13947_v15 = vld [vmem:[#allocation71_spill] sm:$0xff] }
 0x302   : > { %v10162_v32 = vpop.f32.mrb[137].mxu1  ;;  %5380 = vmatprep.mubr.bf16.mxu1 %v13843_v30 }
 0x303   : > { %v5024_v21 = vmul.f32 0.2, %v5008_v19  ;;  %v10163_v18 = vadd.f32 %v10162_v32, %v10161_v17  ;;  %v10164_v1 = vpop.f32.mrb[138].mxu1  ;;  %v5039_v48 = vmax.f32 %v5007_v45, %v5023_v10  ;;  %v12816_v17 = vpop.permute.xlu0 %7909  ;;  %v13948_v10 = vld [vmem:[#allocation75_spill] sm:$0xff] }
 0x304   : > { %9058 = vperm.xlu1 %10469, %v9004_v22   ;;  %v10165_v37 = vpop.f32.mrb[139].mxu1  ;;  %v9006_v22 = vld [vmem:[%s11141_s4 + $0x58] sm:$0xff]  ;;  %v12821_v32 = vpop.permute.xlu1 %7914 }
 0x305   : > { %v5040_v11 = vmax.f32 %v5008_v19, %v5024_v21  ;;  %v4897_v3 = vmul.f32 %v10163_v18, %v13945_v16  ;;  %9053 = vperm.xlu0 %10468, %v9003_v41   ;;  %v10166_v25 = vadd.f32 %v10165_v37, %v10164_v1  ;;  %v9005_v41 = vld [vmem:[%s11141_s4 + $0x50] sm:$0xff]  ;;  %v8880_v37 = vld [vmem:[%s13924_s5 + $0x68] sm:$0xff] }
 0x307   : > { %v5009_v40 = vadd.f32 %v13946_v13, %v4897_v3  ;;  %v4898_v23 = vmul.f32 %v10166_v25, %v13947_v15  ;;  %v5049_v56 = vpack.c.bf16 %v5040_v11, %v5039_v48  ;;  %v8879_v48 = vld [vmem:[%s13924_s5 + $0x60] sm:$0xff]  ;;  %v12827_v11 = vpop.permute.xlu0 %7791  ;;  %v9008_v25 = vld [vmem:[%s11141_s4 + $0x68] sm:$0xff]  ;;  %v8882_v13 = vld [vmem:[%s13924_s5 + $0x78] sm:$0xff] }
 0x308   : > { %8940 = vperm.xlu1 %10469, %v8878_v26   ;;  %v12829_v3 = vpop.permute.xlu1 %7796  ;;  %v9007_v26 = vld [vmem:[%s11141_s4 + $0x60] sm:$0xff]  ;;  %v8881_v15 = vld [vmem:[%s13924_s5 + $0x70] sm:$0xff] }
 0x309   : > { %v5025_v45 = vmul.f32 0.2, %v5009_v40  ;;  %v5010_v19 = vadd.f32 %v13948_v10, %v4898_v23  ;;  %8935 = vperm.xlu0 %10468, %v8877_v36   ;;  %9774 = vmatmul.mubr.msk.bf16.gmra.mrb[164].mxu1 %vm1656_vm0, %v5049_v56  ;;  %v13949_v23 = vpack.c.bf16 %v12305_v38, %v12308_v8  ;;  %v9010_v56 = vld [vmem:[%s11141_s4 + $0x78] sm:$0xff]  ;;  %v13954_v8 = vpack.c.bf16 %v12317_v35, %v12320_v2 }
 0x30a   : > { %5390 = vmatprep.mubr.bf16.mxu1 %v13843_v30  ;;  %v13955_v38 = vpack.c.bf16 %v12327_v62, %v12332_v61  ;;  %v13957_v35 = vpack.c.bf16 %v12351_v60, %v12354_v4  ;;  %v13958_v2 = vpack.c.bf16 %v12361_v5, %v12364_v53  ;;  %v13959_v62 = vpack.c.bf16 %v12371_v57, %v12374_v6 }
 0x30b   : > { %v5026_v21 = vmul.f32 0.2, %v5010_v19  ;;  %v5041_v18 = vmax.f32 %v5009_v40, %v5025_v45  ;;  %v12835_v36 = vpop.permute.xlu0 %7919  ;;  %v9009_v45 = vld [vmem:[%s11141_s4 + $0x70] sm:$0xff]  ;;  %v13960_v61 = vpack.c.bf16 %v12381_v46, %v12384_v9  ;;  %v13961_v53 = vpack.c.bf16 %v12391_v24, %v12394_v49 }
 0x30c   : > { %9068 = vperm.xlu1 %10469, %v9006_v22   ;;  %v12838_v40 = vpop.permute.xlu1 %7924  ;;  %v9285_v22 = vld [vmem:[%s11151_s27] sm:$0xff] }
 0x30d   : > { %v5042_v1 = vmax.f32 %v5010_v19, %v5026_v21  ;;  %9063 = vperm.xlu0 %10468, %v9005_v41   ;;  %v10635_v21 = vld [vmem:[%s13950_s2 + $0x4] ss:$12 sps:$4 sm:$0xff]  }
 0x30e   : > { %5705 = vmatprep.mubr.bf16.mxu0 %v10635_v21 }
 0x30f   : > { %v5050_v16 = vpack.c.bf16 %v5042_v1, %v5041_v18  ;;  %v12848_v10 = vpop.permute.xlu0 %7801  ;;  %v13956_v18 = vpack.c.bf16 %v12340_v39, %v12343_v33 }
 0x310   : > { %8950 = vperm.xlu1 %10469, %v8880_v37   ;;  %13951 = vst [vmem:[#allocation50_spill] sm:$0xff] %v12848_v10  ;;  %v12850_v19 = vpop.permute.xlu1 %7806 }
 0x311   : > { %8945 = vperm.xlu0 %10468, %v8879_v48   ;;  %9775 = vmatmul.mubr.msk.bf16.gmra.mrb[168].mxu1 %vm1656_vm0, %v5050_v16  ;;  %13952 = vst [vmem:[#allocation35_spill] sm:$0xff] %v12850_v19  ;;  %v13962_v48 = vld [vmem:[#allocation77_spill] sm:$0xff]  ;;  %v13963_v16 = vld [vmem:[#allocation78_spill] sm:$0xff] }
 0x312   : > { %6333 = vmatprep.mubr.bf16.mxu1 %v13843_v30 }
 0x313   : > { %v12853_v41 = vpop.permute.xlu0 %7929 }
 0x314   : > { %9078 = vperm.xlu1 %10469, %v9008_v25   ;;  %13953 = vst [vmem:[#allocation53_spill] sm:$0xff] %v12853_v41  ;;  %v13964_v25 = vpack.c.bf16 %v13962_v48, %v13963_v16 }
 0x315   : > { %9073 = vperm.xlu0 %10468, %v9007_v26  }
 0x318   : > { %8960 = vperm.xlu1 %10469, %v8882_v13  }
 0x319   : > { %8955 = vperm.xlu0 %10468, %v8881_v15   ;;  %9802 = vmatmul.mubr.msk.bf16.vlgmr.msra.gmra.mrb[172].mxu1 %vm6245_vm5, %v13949_v23 }
 0x31a   : > { %6343 = vmatprep.mubr.bf16.mxu1 %v13843_v30 }
 0x31c   : > { %9088 = vperm.xlu1 %10469, %v9010_v56   ;;  %v13965_v56 = vld [vmem:[#allocation79_spill] sm:$0xff] }
 0x31d   : > { %9083 = vperm.xlu0 %10468, %v9009_v45   ;;  %v13966_v45 = vld [vmem:[#allocation80_spill] sm:$0xff] }
 0x321   : > { %9288 = vperm.xlu0 %10468, %v9285_v22   ;;  %9803 = vmatmul.mubr.msk.bf16.gmra.mrb[176].mxu1 %vm6245_vm5, %v13954_v8  ;;  %v13967_v22 = vpack.c.bf16 %v13965_v56, %v13966_v45 }
 0x322   : > { %6353 = vmatprep.mubr.bf16.mxu1 %v13843_v30 }
 0x329   : > { %9804 = vmatmul.mubr.msk.bf16.gmra.mrb[180].mxu1 %vm6245_vm5, %v13955_v38 }
 0x32a   : > { %6363 = vmatprep.mubr.bf16.mxu1 %v13843_v30 }
 0x331   : > { %9805 = vmatmul.mubr.msk.bf16.gmra.mrb[184].mxu1 %vm6245_vm5, %v13956_v18 }
 0x332   : > { %6373 = vmatprep.mubr.bf16.mxu1 %v13843_v30 }
 0x339   : > { %9806 = vmatmul.mubr.msk.bf16.gmra.mrb[188].mxu1 %vm6245_vm5, %v13957_v35  ;;  %v13968_v35 = vld [vmem:[#allocation81_spill] sm:$0xff] }
 0x33a   : > { %6383 = vmatprep.mubr.bf16.mxu1 %v13843_v30 }
 0x341   : > { %9807 = vmatmul.mubr.msk.bf16.gmra.mrb[192].mxu1 %vm6245_vm5, %v13958_v2  ;;  %v13969_v2 = vld [vmem:[#allocation82_spill] sm:$0xff] }
 0x342   : > { %6393 = vmatprep.mubr.bf16.mxu1 %v13843_v30 }
 0x349   : > { %9808 = vmatmul.mubr.msk.bf16.gmra.mrb[196].mxu1 %vm6245_vm5, %v13959_v62  ;;  %v13970_v62 = vpack.c.bf16 %v13968_v35, %v13969_v2 }
 0x34a   : > { %6403 = vmatprep.mubr.bf16.mxu1 %v13843_v30 }
 0x351   : > { %9809 = vmatmul.mubr.msk.bf16.gmra.mrb[200].mxu1 %vm6245_vm5, %v13960_v61 }
 0x352   : > { %6413 = vmatprep.mubr.bf16.mxu1 %v13843_v30 }
 0x355   : > { %v5157_v39 = vpop.f32.mrb[116].mxu0 }
 0x356   : > { %v5159_v33 = vpop.f32.mrb[117].mxu0 }
 0x357   : > { %v5161_v60 = vpop.f32.mrb[118].mxu0 }
 0x358   : > { %v5236_v4 = vpack.c.bf16 %v5161_v60, %v5157_v39  ;;  %v5163_v5 = vpop.f32.mrb[119].mxu0 }
 0x359   : > { %9810 = vmatmul.mubr.msk.bf16.gmra.mrb[204].mxu1 %vm6245_vm5, %v13961_v53  ;;  %v5237_v57 = vpack.c.bf16 %v5163_v5, %v5159_v33  ;;  %v13971_v53 = vld [vmem:[#allocation83_spill] sm:$0xff] }
 0x35a   : > { %6423 = vmatprep.mubr.bf16.mxu1 %v13843_v30 }
 0x35b   : > { %5689 = vmatprep.subr.bf16.mxu0 %v5237_v57  ;;  %v13972_v57 = vld [vmem:[#allocation84_spill] sm:$0xff] }
 0x35c   : > { %5690 = vmatpush1.bf16.msra.mxu0 %v5236_v4 }
 0x35d   : > { %v5167_v6 = vpop.f32.mrb[120].mxu0 }
 0x35e   : > { %v5169_v46 = vpop.f32.mrb[121].mxu0 }
 0x35f   : > { %v5171_v9 = vpop.f32.mrb[122].mxu0 }
 0x360   : > { %v5238_v1 = vpack.c.bf16 %v5171_v9, %v5167_v6  ;;  %v5173_v37 = vpop.f32.mrb[123].mxu0  ;;  %v13973_v6 = vpack.c.bf16 %v13971_v53, %v13972_v57  ;;  %v10633_v57 = vld [vmem:[%s13950_s2] ss:$12 sps:$4 sm:$0xff]  }
 0x361   : > { %9811 = vmatmul.mubr.msk.bf16.gmra.mrb[208].mxu1 %vm6245_vm5, %v13964_v25  ;;  %v5239_v26 = vpack.c.bf16 %v5173_v37, %v5169_v46  ;;  %v13974_v25 = vld [vmem:[#allocation85_spill] sm:$0xff] }
 0x362   : > { %6433 = vmatprep.mubr.bf16.mxu1 %v13843_v30 }
 0x363   : > { %5691 = vmatprep.subr.bf16.mxu0 %v5239_v26  ;;  %v13975_v26 = vld [vmem:[#allocation86_spill] sm:$0xff] }
 0x364   : > { %5692 = vmatpush1.bf16.msra.mxu0 %v5238_v1 }
 0x365   : > { %v5177_v24 = vpop.f32.mrb[124].mxu0 }
 0x366   : > { %v5179_v49 = vpop.f32.mrb[125].mxu0 }
 0x367   : > { %v5181_v13 = vpop.f32.mrb[126].mxu0 }
 0x368   : > { %v5240_v15 = vpack.c.bf16 %v5181_v13, %v5177_v24  ;;  %v5183_v23 = vpop.f32.mrb[127].mxu0  ;;  %v13976_v24 = vpack.c.bf16 %v13974_v25, %v13975_v26  ;;  %v10644_v25 = vld [vmem:[%s13950_s2 + $0x48] ss:$12 sps:$4 sm:$0xff]  }
 0x369   : > { %9812 = vmatmul.mubr.msk.bf16.gmra.mrb[212].mxu1 %vm6245_vm5, %v13967_v22  ;;  %v5241_v8 = vpack.c.bf16 %v5183_v23, %v5179_v49  ;;  %v13977_v22 = vld [vmem:[#allocation87_spill] sm:$0xff] }
 0x36a   : > { %6443 = vmatprep.mubr.bf16.mxu1 %v13843_v30 }
 0x36b   : > { %5693 = vmatprep.subr.bf16.mxu0 %v5241_v8  ;;  %v13978_v8 = vld [vmem:[#allocation88_spill] sm:$0xff] }
 0x36c   : > { %5694 = vmatpush1.bf16.msra.mxu0 %v5240_v15 }
 0x36e   : > { %v5187_v38 = vpop.f32.mrb[128].mxu0 }
 0x36f   : > { %v5189_v21 = vpop.f32.mrb[129].mxu0 }
 0x370   : > { %v5191_v18 = vpop.f32.mrb[130].mxu0 }
 0x371   : > { %9813 = vmatmul.mubr.msk.bf16.gmra.mrb[216].mxu1 %vm6245_vm5, %v13970_v62  ;;  %v5242_v61 = vpack.c.bf16 %v5191_v18, %v5187_v38  ;;  %v5193_v39 = vpop.f32.mrb[131].mxu0  ;;  %v13979_v38 = vpack.c.bf16 %v13977_v22, %v13978_v8  ;;  %v10648_v8 = vld [vmem:[%s13950_s2 + $0x7c] ss:$12 sps:$4 sm:$0xff]  }
 0x372   : > { %6453 = vmatprep.mubr.bf16.mxu1 %v13843_v30  ;;  %v5243_v33 = vpack.c.bf16 %v5193_v39, %v5189_v21  ;;  %v13980_v39 = vld [vmem:[#allocation89_spill] sm:$0xff] }
 0x374   : > { %5695 = vmatprep.subr.bf16.mxu0 %v5243_v33  ;;  %v13981_v33 = vld [vmem:[#allocation90_spill] sm:$0xff] }
 0x375   : > { %5696 = vmatpush1.bf16.msra.mxu0 %v5242_v61 }
 0x376   : > { %v5197_v60 = vpop.f32.mrb[132].mxu0 }
 0x377   : > { %v5199_v4 = vpop.f32.mrb[133].mxu0 }
 0x378   : > { %v5201_v5 = vpop.f32.mrb[134].mxu0 }
 0x379   : > { %9814 = vmatmul.mubr.msk.bf16.gmra.mrb[220].mxu1 %vm6245_vm5, %v13973_v6  ;;  %v5244_v46 = vpack.c.bf16 %v5201_v5, %v5197_v60  ;;  %v5203_v9 = vpop.f32.mrb[135].mxu0  ;;  %v13982_v60 = vpack.c.bf16 %v13980_v39, %v13981_v33  ;;  %v10636_v6 = vld [vmem:[%s13950_s2 + $0x1c] ss:$12 sps:$4 sm:$0xff]   ;;  %v10651_v39 = vld [vmem:[%s13950_s2 + $0x94] ss:$12 sps:$4 sm:$0xff]  }
 0x37a   : > { %6463 = vmatprep.mubr.bf16.mxu1 %v13843_v30  ;;  %v5245_v1 = vpack.c.bf16 %v5203_v9, %v5199_v4  ;;  %v10639_v9 = vld [vmem:[%s13950_s2 + $0x34] ss:$12 sps:$4 sm:$0xff]  }
 0x37c   : > { %5697 = vmatprep.subr.bf16.mxu0 %v5245_v1  ;;  %v10641_v1 = vld [vmem:[%s13950_s2 + $0x30] ss:$12 sps:$4 sm:$0xff]  }
 0x37d   : > { %5698 = vmatpush1.bf16.msra.mxu0 %v5244_v46  ;;  %v10638_v46 = vld [vmem:[%s13950_s2 + $0x18] ss:$12 sps:$4 sm:$0xff]  }
 0x37e   : > { %v5207_v37 = vpop.f32.mrb[136].mxu0 }
 0x37f   : > { %v5209_v48 = vpop.f32.mrb[137].mxu0 }
 0x380   : > { %v5211_v16 = vpop.f32.mrb[138].mxu0 }
 0x381   : > { %9815 = vmatmul.mubr.msk.bf16.gmra.mrb[224].mxu1 %vm6245_vm5, %v13976_v24  ;;  %v5246_v49 = vpack.c.bf16 %v5211_v16, %v5207_v37  ;;  %v5213_v13 = vpop.f32.mrb[139].mxu0  ;;  %v10642_v37 = vld [vmem:[%s13950_s2 + $0x4c] ss:$12 sps:$4 sm:$0xff]   ;;  %v10645_v24 = vld [vmem:[%s13950_s2 + $0x64] ss:$12 sps:$4 sm:$0xff]  }
 0x382   : > { %6473 = vmatprep.mubr.bf16.mxu1 %v13843_v30  ;;  %v5247_v15 = vpack.c.bf16 %v5213_v13, %v5209_v48 }
 0x384   : > { %5699 = vmatprep.subr.bf16.mxu0 %v5247_v15 }
 0x385   : > { %5700 = vmatpush1.bf16.msra.mxu0 %v5246_v49 }
 0x386   : > { %v5217_v23 = vpop.f32.mrb[140].mxu0 }
 0x387   : > { %v5219_v56 = vpop.f32.mrb[141].mxu0 }
 0x388   : > { %v5221_v45 = vpop.f32.mrb[142].mxu0 }
 0x389   : > { %9816 = vmatmul.mubr.msk.bf16.gmra.mrb[228].mxu1 %vm6245_vm5, %v13979_v38  ;;  %v5248_v21 = vpack.c.bf16 %v5221_v45, %v5217_v23  ;;  %v5223_v18 = vpop.f32.mrb[143].mxu0  ;;  %v10647_v45 = vld [vmem:[%s13950_s2 + $0x60] ss:$12 sps:$4 sm:$0xff]  }
 0x38a   : > { %6483 = vmatprep.mubr.bf16.mxu1 %v13843_v30  ;;  %v5249_v35 = vpack.c.bf16 %v5223_v18, %v5219_v56 }
 0x38c   : > { %5701 = vmatprep.subr.bf16.mxu0 %v5249_v35 }
 0x38d   : > { %5702 = vmatpush1.bf16.msra.mxu0 %v5248_v21 }
 0x38e   : > { %v5227_v2 = vpop.f32.mrb[144].mxu0 }
 0x38f   : > { %v5229_v62 = vpop.f32.mrb[145].mxu0 }
 0x390   : > { %v5231_v61 = vpop.f32.mrb[146].mxu0 }
 0x391   : > { %9817 = vmatmul.mubr.msk.bf16.gmra.mrb[232].mxu1 %vm6245_vm5, %v13982_v60  ;;  %v5250_v4 = vpack.c.bf16 %v5231_v61, %v5227_v2  ;;  %v5233_v5 = vpop.f32.mrb[147].mxu0 }
 0x392   : > { %v5251_v53 = vpack.c.bf16 %v5233_v5, %v5229_v62  ;;  %v10650_v62 = vld [vmem:[%s13950_s2 + $0x78] ss:$12 sps:$4 sm:$0xff]  }
 0x394   : > { %5703 = vmatprep.subr.bf16.mxu0 %v5251_v53 }
 0x395   : > { %5704 = vmatpush1.bf16.msra.mxu0 %v5250_v4 }
 0x398   : > { %5706 = vmatmul.mubr.bf16.vlgmr.msra.gmra.mrb[148].mxu0 %v10633_v57  ;;  %v10653_v57 = vld [vmem:[%s13950_s2 + $0x90] ss:$12 sps:$4 sm:$0xff]  }
 0x399   : > { %5715 = vmatprep.mubr.bf16.mxu0 %v10636_v6 }
 0x3a0   : > { %5716 = vmatmul.mubr.bf16.gmra.mrb[152].mxu0 %v10638_v46  ;;  %v10654_v46 = vld [vmem:[%s13950_s2 + $0xac] ss:$12 sps:$4 sm:$0xff]  }
 0x3a1   : > { %5725 = vmatprep.mubr.bf16.mxu0 %v10639_v9 }
 0x3a8   : > { %5726 = vmatmul.mubr.bf16.gmra.mrb[156].mxu0 %v10641_v1 }
 0x3a9   : > { %5735 = vmatprep.mubr.bf16.mxu0 %v10642_v37 }
 0x3ac   : > { %v5322_v48 = vpop.f32.mrb[140].mxu1 }
 0x3ad   : > { %v5324_v16 = vpop.f32.mrb[141].mxu1 }
 0x3ae   : > { %v5326_v26 = vpop.f32.mrb[142].mxu1 }
 0x3af   : > { %v5401_v49 = vpack.c.bf16 %v5326_v26, %v5322_v48  ;;  %v5328_v13 = vpop.f32.mrb[143].mxu1 }
 0x3b0   : > { %v5402_v15 = vpack.c.bf16 %v5328_v13, %v5324_v16  ;;  %5736 = vmatmul.mubr.bf16.gmra.mrb[160].mxu0 %v10644_v25  ;;  %v10656_v25 = vld [vmem:[%s13950_s2 + $0xa8] ss:$12 sps:$4 sm:$0xff]  }
 0x3b1   : > { %5745 = vmatprep.mubr.bf16.mxu0 %v10645_v24 }
 0x3b2   : > { %5786 = vmatprep.subr.bf16.mxu0 %v5402_v15 }
 0x3b3   : > { %5787 = vmatpush1.bf16.msra.mxu0 %v5401_v49 }
 0x3b4   : > { %v5332_v23 = vpop.f32.mrb[144].mxu1 }
 0x3b5   : > { %v5334_v56 = vpop.f32.mrb[145].mxu1 }
 0x3b6   : > { %v5336_v22 = vpop.f32.mrb[146].mxu1 }
 0x3b7   : > { %v5403_v38 = vpack.c.bf16 %v5336_v22, %v5332_v23  ;;  %v5338_v21 = vpop.f32.mrb[147].mxu1 }
 0x3b8   : > { %v5404_v18 = vpack.c.bf16 %v5338_v21, %v5334_v56  ;;  %5746 = vmatmul.mubr.bf16.gmra.mrb[164].mxu0 %v10647_v45 }
 0x3b9   : > { %5755 = vmatprep.mubr.bf16.mxu0 %v10648_v8 }
 0x3ba   : > { %5788 = vmatprep.subr.bf16.mxu0 %v5404_v18 }
 0x3bb   : > { %5789 = vmatpush1.bf16.msra.mxu0 %v5403_v38 }
 0x3bc   : > { %v5342_v35 = vpop.f32.mrb[148].mxu1 }
 0x3bd   : > { %v5344_v2 = vpop.f32.mrb[149].mxu1 }
 0x3be   : > { %v5346_v61 = vpop.f32.mrb[150].mxu1 }
 0x3bf   : > { %v5405_v33 = vpack.c.bf16 %v5346_v61, %v5342_v35  ;;  %v5348_v60 = vpop.f32.mrb[151].mxu1 }
 0x3c0   : > { %v5406_v4 = vpack.c.bf16 %v5348_v60, %v5344_v2  ;;  %5756 = vmatmul.mubr.bf16.gmra.mrb[168].mxu0 %v10650_v62 }
 0x3c1   : > { %5765 = vmatprep.mubr.bf16.mxu0 %v10651_v39 }
 0x3c2   : > { %5790 = vmatprep.subr.bf16.mxu0 %v5406_v4 }
 0x3c3   : > { %5791 = vmatpush1.bf16.msra.mxu0 %v5405_v33 }
 0x3c4   : > { %v5352_v5 = vpop.f32.mrb[152].mxu1 }
 0x3c5   : > { %v5354_v53 = vpop.f32.mrb[153].mxu1 }
 0x3c6   : > { %v5356_v6 = vpop.f32.mrb[154].mxu1 }
 0x3c7   : > { %v5407_v9 = vpack.c.bf16 %v5356_v6, %v5352_v5  ;;  %v5358_v1 = vpop.f32.mrb[155].mxu1 }
 0x3c8   : > { %v5408_v37 = vpack.c.bf16 %v5358_v1, %v5354_v53  ;;  %5766 = vmatmul.mubr.bf16.gmra.mrb[172].mxu0 %v10653_v57  ;;  %v10657_v53 = vld [vmem:[%s13950_s2 + $0x8] ss:$12 sps:$4 sm:$0xff]  }
 0x3c9   : > { %5775 = vmatprep.mubr.bf16.mxu0 %v10654_v46 }
 0x3ca   : > { %5792 = vmatprep.subr.bf16.mxu0 %v5408_v37 }
 0x3cb   : > { %5793 = vmatpush1.bf16.msra.mxu0 %v5407_v9 }
 0x3cc   : > { %v5362_v48 = vpop.f32.mrb[156].mxu1 }
 0x3cd   : > { %v5364_v16 = vpop.f32.mrb[157].mxu1 }
 0x3ce   : > { %v5366_v26 = vpop.f32.mrb[158].mxu1 }
 0x3cf   : > { %v5409_v24 = vpack.c.bf16 %v5366_v26, %v5362_v48  ;;  %v5368_v49 = vpop.f32.mrb[159].mxu1  ;;  %v10658_v48 = vld [vmem:[%s13950_s2 + $0x20] ss:$12 sps:$4 sm:$0xff]  }
 0x3d0   : > { %v5410_v13 = vpack.c.bf16 %v5368_v49, %v5364_v16  ;;  %5776 = vmatmul.mubr.bf16.gmra.mrb[176].mxu0 %v10656_v25 }
 0x3d1   : > { %5818 = vmatprep.mubr.bf16.mxu0 %v13843_v30 }
 0x3d2   : > { %5794 = vmatprep.subr.bf16.mxu0 %v5410_v13 }
 0x3d3   : > { %5795 = vmatpush1.bf16.msra.mxu0 %v5409_v24 }
 0x3d4   : > { %v5372_v15 = vpop.f32.mrb[160].mxu1 }
 0x3d5   : > { %v5374_v23 = vpop.f32.mrb[161].mxu1 }
 0x3d6   : > { %v5376_v56 = vpop.f32.mrb[162].mxu1 }
 0x3d7   : > { %v5411_v45 = vpack.c.bf16 %v5376_v56, %v5372_v15  ;;  %v5378_v22 = vpop.f32.mrb[163].mxu1  ;;  %v10659_v15 = vld [vmem:[%s13950_s2 + $0x38] ss:$12 sps:$4 sm:$0xff]  }
 0x3d8   : > { %v5412_v8 = vpack.c.bf16 %v5378_v22, %v5374_v23 }
 0x3da   : > { %5796 = vmatprep.subr.bf16.mxu0 %v5412_v8 }
 0x3db   : > { %5797 = vmatpush1.bf16.msra.mxu0 %v5411_v45 }
 0x3dc   : > { %v5382_v38 = vpop.f32.mrb[164].mxu1 }
 0x3dd   : > { %v5384_v21 = vpop.f32.mrb[165].mxu1 }
 0x3de   : > { %v5386_v18 = vpop.f32.mrb[166].mxu1 }
 0x3df   : > { %v5413_v35 = vpack.c.bf16 %v5386_v18, %v5382_v38  ;;  %v5388_v2 = vpop.f32.mrb[167].mxu1 }
 0x3e0   : > { %v5414_v62 = vpack.c.bf16 %v5388_v2, %v5384_v21  ;;  %v10660_v21 = vld [vmem:[%s13950_s2 + $0x50] ss:$12 sps:$4 sm:$0xff]  }
 0x3e2   : > { %5798 = vmatprep.subr.bf16.mxu0 %v5414_v62 }
 0x3e3   : > { %5799 = vmatpush1.bf16.msra.mxu0 %v5413_v35 }
 0x3e4   : > { %v5392_v61 = vpop.f32.mrb[168].mxu1 }
 0x3e5   : > { %v5394_v39 = vpop.f32.mrb[169].mxu1 }
 0x3e6   : > { %v5396_v33 = vpop.f32.mrb[170].mxu1 }
 0x3e7   : > { %v5415_v60 = vpack.c.bf16 %v5396_v33, %v5392_v61  ;;  %v5398_v4 = vpop.f32.mrb[171].mxu1  ;;  %v10661_v33 = vld [vmem:[%s13950_s2 + $0x68] ss:$12 sps:$4 sm:$0xff]  }
 0x3e8   : > { %v5416_v5 = vpack.c.bf16 %v5398_v4, %v5394_v39 }
 0x3ea   : > { %5800 = vmatprep.subr.bf16.mxu0 %v5416_v5 }
 0x3eb   : > { %5801 = vmatpush1.bf16.msra.mxu0 %v5415_v60 }
 0x3ec   : > { %v6335_v57 = vpop.f32.mrb[172].mxu1 }
 0x3ed   : > { %v6337_v6 = vpop.f32.mrb[173].mxu1 }
 0x3ee   : > { %5819 = vmatmul.mubr.bf16.vlgmr.msra.gmra.mrb[148].mxu0 %v10657_v53  ;;  %v6339_v46 = vpop.f32.mrb[174].mxu1 }
 0x3ef   : > { %v6494_v9 = vpack.c.bf16 %v6339_v46, %v6335_v57  ;;  %v6341_v1 = vpop.f32.mrb[175].mxu1  ;;  %5828 = vmatprep.mubr.bf16.mxu0 %v13843_v30  ;;  %v10662_v46 = vld [vmem:[%s13950_s2 + $0x80] ss:$12 sps:$4 sm:$0xff]  }
 0x3f0   : > { %v6495_v37 = vpack.c.bf16 %v6341_v1, %v6337_v6 }
 0x3f2   : > { %6718 = vmatprep.subr.bf16.mxu0 %v6495_v37 }
 0x3f3   : > { %6719 = vmatpush1.bf16.msra.mxu0 %v6494_v9 }
 0x3f4   : > { %v6345_v16 = vpop.f32.mrb[176].mxu1 }
 0x3f5   : > { %v6347_v25 = vpop.f32.mrb[177].mxu1 }
 0x3f6   : > { %5829 = vmatmul.mubr.bf16.gmra.mrb[152].mxu0 %v10658_v48  ;;  %v6349_v26 = vpop.f32.mrb[178].mxu1 }
 0x3f7   : > { %v6496_v24 = vpack.c.bf16 %v6349_v26, %v6345_v16  ;;  %v6351_v49 = vpop.f32.mrb[179].mxu1  ;;  %5838 = vmatprep.mubr.bf16.mxu0 %v13843_v30  ;;  %v10663_v26 = vld [vmem:[%s13950_s2 + $0x98] ss:$12 sps:$4 sm:$0xff]  }
 0x3f8   : > { %v6497_v13 = vpack.c.bf16 %v6351_v49, %v6347_v25 }
 0x3fa   : > { %6720 = vmatprep.subr.bf16.mxu0 %v6497_v13 }
 0x3fb   : > { %6721 = vmatpush1.bf16.msra.mxu0 %v6496_v24 }
 0x3fc   : > { %v6355_v23 = vpop.f32.mrb[180].mxu1 }
 0x3fd   : > { %v6357_v56 = vpop.f32.mrb[181].mxu1 }
 0x3fe   : > { %5839 = vmatmul.mubr.bf16.gmra.mrb[156].mxu0 %v10659_v15  ;;  %v6359_v45 = vpop.f32.mrb[182].mxu1 }
 0x3ff   : > { %v6498_v22 = vpack.c.bf16 %v6359_v45, %v6355_v23  ;;  %v6361_v8 = vpop.f32.mrb[183].mxu1  ;;  %5848 = vmatprep.mubr.bf16.mxu0 %v13843_v30  ;;  %v10664_v45 = vld [vmem:[%s13950_s2 + $0xb0] ss:$12 sps:$4 sm:$0xff]   ;;  %s14034_s2 = sld [smem:[#allocation24_spill]] }
 0x400   : > { %v6499_v38 = vpack.c.bf16 %v6361_v8, %v6357_v56 }
 0x402   : > { %6722 = vmatprep.subr.bf16.mxu0 %v6499_v38 }
 0x403   : > { %6723 = vmatpush1.bf16.msra.mxu0 %v6498_v22  ;;  %v10667_v22 = vld [vmem:[%s13983_s3 + $0x4] ss:$8 sps:$4 sm:$0xff]  }
 0x404   : > { %v6365_v18 = vpop.f32.mrb[184].mxu1 }
 0x405   : > { %v6367_v35 = vpop.f32.mrb[185].mxu1 }
 0x406   : > { %5849 = vmatmul.mubr.bf16.gmra.mrb[160].mxu0 %v10660_v21  ;;  %v6369_v2 = vpop.f32.mrb[186].mxu1 }
 0x407   : > { %v6500_v62 = vpack.c.bf16 %v6369_v2, %v6365_v18  ;;  %v6371_v61 = vpop.f32.mrb[187].mxu1  ;;  %5858 = vmatprep.mubr.bf16.mxu0 %v13843_v30 }
 0x408   : > { %v6501_v39 = vpack.c.bf16 %v6371_v61, %v6367_v35 }
 0x40a   : > { %6724 = vmatprep.subr.bf16.mxu0 %v6501_v39 }
 0x40b   : > { %6725 = vmatpush1.bf16.msra.mxu0 %v6500_v62 }
 0x40c   : > { %v6375_v60 = vpop.f32.mrb[188].mxu1 }
 0x40d   : > { %v6377_v4 = vpop.f32.mrb[189].mxu1 }
 0x40e   : > { %5859 = vmatmul.mubr.bf16.gmra.mrb[164].mxu0 %v10661_v33  ;;  %v6379_v5 = vpop.f32.mrb[190].mxu1 }
 0x40f   : > { %v6502_v53 = vpack.c.bf16 %v6379_v5, %v6375_v60  ;;  %v6381_v57 = vpop.f32.mrb[191].mxu1  ;;  %5868 = vmatprep.mubr.bf16.mxu0 %v13843_v30 }
 0x410   : > { %v6503_v6 = vpack.c.bf16 %v6381_v57, %v6377_v4 }
 0x412   : > { %6726 = vmatprep.subr.bf16.mxu0 %v6503_v6 }
 0x413   : > { %6727 = vmatpush1.bf16.msra.mxu0 %v6502_v53 }
 0x414   : > { %v6385_v9 = vpop.f32.mrb[192].mxu1 }
 0x415   : > { %v6387_v1 = vpop.f32.mrb[193].mxu1 }
 0x416   : > { %5869 = vmatmul.mubr.bf16.gmra.mrb[168].mxu0 %v10662_v46  ;;  %v6389_v37 = vpop.f32.mrb[194].mxu1 }
 0x417   : > { %v6504_v48 = vpack.c.bf16 %v6389_v37, %v6385_v9  ;;  %v6391_v16 = vpop.f32.mrb[195].mxu1  ;;  %5878 = vmatprep.mubr.bf16.mxu0 %v13843_v30  ;;  %v12962_v37 = vpop.permute.xlu1 %7934 }
 0x418   : > { %v6505_v25 = vpack.c.bf16 %v6391_v16, %v6387_v1  ;;  %13984 = vst [vmem:[#allocation60_spill] sm:$0xff] %v12962_v37  ;;  %v10736_v37 = vld [vmem:[%s13983_s3 + $0xc0] ss:$8 sps:$4 sm:$0xff]  }
 0x41a   : > { %6728 = vmatprep.subr.bf16.mxu0 %v6505_v25 }
 0x41b   : > { %6729 = vmatpush1.bf16.msra.mxu0 %v6504_v48 }
 0x41c   : > { %v6395_v24 = vpop.f32.mrb[196].mxu1 }
 0x41d   : > { %v6397_v49 = vpop.f32.mrb[197].mxu1 }
 0x41e   : > { %5879 = vmatmul.mubr.bf16.gmra.mrb[172].mxu0 %v10663_v26  ;;  %v6399_v13 = vpop.f32.mrb[198].mxu1 }
 0x41f   : > { %v6506_v15 = vpack.c.bf16 %v6399_v13, %v6395_v24  ;;  %v6401_v23 = vpop.f32.mrb[199].mxu1  ;;  %5888 = vmatprep.mubr.bf16.mxu0 %v13843_v30  ;;  %v12966_v13 = vpop.permute.xlu1 %8072  ;;  %v10707_v30 = vld [vmem:[%s11430_s28 + $0x60] ss:$8 sps:$4 sm:$0xff]  }
 0x420   : > { %v6507_v56 = vpack.c.bf16 %v6401_v23, %v6397_v49  ;;  %v12964_v49 = vpop.permute.xlu0 %8067  ;;  %13986 = vst [vmem:[#allocation40_spill] sm:$0xff] %v12966_v13 }
 0x421   : > { %13985 = vst [vmem:[#allocation32_spill] sm:$0xff] %v12964_v49 }
 0x422   : > { %6730 = vmatprep.subr.bf16.mxu0 %v6507_v56 }
 0x423   : > { %6731 = vmatpush1.bf16.msra.mxu0 %v6506_v15 }
 0x424   : > { %v6405_v8 = vpop.f32.mrb[200].mxu1 }
 0x425   : > { %v6407_v38 = vpop.f32.mrb[201].mxu1 }
 0x426   : > { %5889 = vmatmul.mubr.bf16.gmra.mrb[176].mxu0 %v10664_v45  ;;  %v6409_v21 = vpop.f32.mrb[202].mxu1  ;;  %v12968_v45 = vpop.permute.xlu0 %8195 }
 0x427   : > { %v6508_v18 = vpack.c.bf16 %v6409_v21, %v6405_v8  ;;  %v6411_v35 = vpop.f32.mrb[203].mxu1  ;;  %6750 = vmatprep.mubr.bf16.mxu0 %v10667_v22  ;;  %13987 = vst [vmem:[#allocation62_spill] sm:$0xff] %v12968_v45  ;;  %v12970_v21 = vpop.permute.xlu1 %8200 }
 0x428   : > { %v6509_v2 = vpack.c.bf16 %v6411_v35, %v6407_v38  ;;  %13988 = vst [vmem:[#allocation66_spill] sm:$0xff] %v12970_v21 }
 0x42a   : > { %6732 = vmatprep.subr.bf16.mxu0 %v6509_v2  ;;  %v12972_v35 = vpop.permute.xlu0 %8077 }
 0x42b   : > { %6733 = vmatpush1.bf16.msra.mxu0 %v6508_v18  ;;  %13989 = vst [vmem:[#allocation61_spill] sm:$0xff] %v12972_v35 }
 0x42c   : > { %v6415_v62 = vpop.f32.mrb[204].mxu1 }
 0x42d   : > { %v6417_v61 = vpop.f32.mrb[205].mxu1 }
 0x42e   : > { %v6419_v39 = vpop.f32.mrb[206].mxu1 }
 0x42f   : > { %v6510_v33 = vpack.c.bf16 %v6419_v39, %v6415_v62  ;;  %v6421_v60 = vpop.f32.mrb[207].mxu1 }
 0x430   : > { %v6511_v4 = vpack.c.bf16 %v6421_v60, %v6417_v61  ;;  %v12974_v61 = vpop.permute.xlu1 %8082 }
 0x431   : > { %13990 = vst [vmem:[#allocation65_spill] sm:$0xff] %v12974_v61 }
 0x432   : > { %6734 = vmatprep.subr.bf16.mxu0 %v6511_v4  ;;  %v12976_v4 = vpop.permute.xlu0 %8205 }
 0x433   : > { %6735 = vmatpush1.bf16.msra.mxu0 %v6510_v33  ;;  %13991 = vst [vmem:[#allocation70_spill] sm:$0xff] %v12976_v4 }
 0x434   : > { %v6425_v5 = vpop.f32.mrb[208].mxu1 }
 0x435   : > { %v6427_v53 = vpop.f32.mrb[209].mxu1 }
 0x436   : > { %v6429_v57 = vpop.f32.mrb[210].mxu1 }
 0x437   : > { %v6512_v6 = vpack.c.bf16 %v6429_v57, %v6425_v5  ;;  %v6431_v46 = vpop.f32.mrb[211].mxu1 }
 0x438   : > { %v6513_v9 = vpack.c.bf16 %v6431_v46, %v6427_v53  ;;  %v12978_v53 = vpop.permute.xlu1 %8210 }
 0x439   : > { %13992 = vst [vmem:[#allocation74_spill] sm:$0xff] %v12978_v53 }
 0x43a   : > { %6736 = vmatprep.subr.bf16.mxu0 %v6513_v9 }
 0x43b   : > { %6737 = vmatpush1.bf16.msra.mxu0 %v6512_v6 }
 0x43c   : > { %v6435_v1 = vpop.f32.mrb[212].mxu1 }
 0x43d   : > { %v6437_v48 = vpop.f32.mrb[213].mxu1 }
 0x43e   : > { %v6439_v16 = vpop.f32.mrb[214].mxu1 }
 0x43f   : > { %v6514_v25 = vpack.c.bf16 %v6439_v16, %v6435_v1  ;;  %v6441_v26 = vpop.f32.mrb[215].mxu1  ;;  %v12982_v16 = vpop.permute.xlu1 %8092 }
 0x440   : > { %v6515_v24 = vpack.c.bf16 %v6441_v26, %v6437_v48  ;;  %v12980_v48 = vpop.permute.xlu0 %8087  ;;  %13994 = vst [vmem:[#allocation73_spill] sm:$0xff] %v12982_v16  ;;  %v10734_v16 = vld [vmem:[%s13983_s3 + $0xc4] ss:$8 sps:$4 sm:$0xff]  }
 0x441   : > { %13993 = vst [vmem:[#allocation69_spill] sm:$0xff] %v12980_v48 }
 0x442   : > { %6738 = vmatprep.subr.bf16.mxu0 %v6515_v24 }
 0x443   : > { %6739 = vmatpush1.bf16.msra.mxu0 %v6514_v25 }
 0x444   : > { %v6445_v15 = vpop.f32.mrb[216].mxu1 }
 0x445   : > { %v6447_v23 = vpop.f32.mrb[217].mxu1 }
 0x446   : > { %v6449_v56 = vpop.f32.mrb[218].mxu1 }
 0x447   : > { %v6516_v22 = vpack.c.bf16 %v6449_v56, %v6445_v15  ;;  %v6451_v8 = vpop.f32.mrb[219].mxu1  ;;  %v12984_v15 = vpop.permute.xlu0 %8215 }
 0x448   : > { %v6517_v38 = vpack.c.bf16 %v6451_v8, %v6447_v23  ;;  %13995 = vst [vmem:[#allocation31_spill] sm:$0xff] %v12984_v15  ;;  %v12986_v8 = vpop.permute.xlu1 %8220 }
 0x449   : > { %13996 = vst [vmem:[#allocation47_spill] sm:$0xff] %v12986_v8 }
 0x44a   : > { %6740 = vmatprep.subr.bf16.mxu0 %v6517_v38 }
 0x44b   : > { %6741 = vmatpush1.bf16.msra.mxu0 %v6516_v22 }
 0x44c   : > { %v6455_v18 = vpop.f32.mrb[220].mxu1 }
 0x44d   : > { %v6457_v2 = vpop.f32.mrb[221].mxu1 }
 0x44e   : > { %v6459_v62 = vpop.f32.mrb[222].mxu1 }
 0x44f   : > { %v6518_v39 = vpack.c.bf16 %v6459_v62, %v6455_v18  ;;  %v6461_v33 = vpop.f32.mrb[223].mxu1  ;;  %v12988_v18 = vpop.permute.xlu0 %8097 }
 0x450   : > { %v6519_v60 = vpack.c.bf16 %v6461_v33, %v6457_v2  ;;  %13997 = vst [vmem:[#allocation55_spill] sm:$0xff] %v12988_v18  ;;  %v10730_v18 = vld [vmem:[%s13983_s3 + $0xb0] ss:$8 sps:$4 sm:$0xff]  }
 0x452   : > { %6742 = vmatprep.subr.bf16.mxu0 %v6519_v60 }
 0x453   : > { %6743 = vmatpush1.bf16.msra.mxu0 %v6518_v39  ;;  %v12990_v39 = vpop.permute.xlu1 %8102 }
 0x454   : > { %v6465_v5 = vpop.f32.mrb[224].mxu1  ;;  %13998 = vst [vmem:[#allocation54_spill] sm:$0xff] %v12990_v39  ;;  %v10728_v39 = vld [vmem:[%s13983_s3 + $0xb4] ss:$8 sps:$4 sm:$0xff]  }
 0x455   : > { %v6467_v57 = vpop.f32.mrb[225].mxu1 }
 0x456   : > { %v6469_v6 = vpop.f32.mrb[226].mxu1 }
 0x457   : > { %v6520_v46 = vpack.c.bf16 %v6469_v6, %v6465_v5  ;;  %v6471_v9 = vpop.f32.mrb[227].mxu1  ;;  %v10665_v6 = vld [vmem:[%s13983_s3] ss:$8 sps:$4 sm:$0xff]  }
 0x458   : > { %v6521_v1 = vpack.c.bf16 %v6471_v9, %v6467_v57  ;;  %v10673_v57 = vld [vmem:[%s11430_s28 + $0x4] ss:$8 sps:$4 sm:$0xff]   ;;  %v10668_v9 = vld [vmem:[%s13983_s3 + $0x14] ss:$8 sps:$4 sm:$0xff]  }
 0x45a   : > { %6744 = vmatprep.subr.bf16.mxu0 %v6521_v1  ;;  %v10671_v1 = vld [vmem:[%s11430_s28] ss:$8 sps:$4 sm:$0xff]  }
 0x45b   : > { %6745 = vmatpush1.bf16.msra.mxu0 %v6520_v46  ;;  %v12994_v46 = vpop.permute.xlu0 %8225 }
 0x45c   : > { %v6475_v25 = vpop.f32.mrb[228].mxu1  ;;  %13999 = vst [vmem:[#allocation39_spill] sm:$0xff] %v12994_v46 }
 0x45d   : > { %v6477_v26 = vpop.f32.mrb[229].mxu1 }
 0x45e   : > { %v6479_v24 = vpop.f32.mrb[230].mxu1 }
 0x45f   : > { %v6522_v23 = vpack.c.bf16 %v6479_v24, %v6475_v25  ;;  %v6481_v56 = vpop.f32.mrb[231].mxu1  ;;  %v10679_v25 = vld [vmem:[%s11430_s28 + $0x14] ss:$8 sps:$4 sm:$0xff]   ;;  %v10677_v24 = vld [vmem:[%s11430_s28 + $0x10] ss:$8 sps:$4 sm:$0xff]  }
 0x460   : > { %v6523_v22 = vpack.c.bf16 %v6481_v56, %v6477_v26  ;;  %v12999_v26 = vpop.permute.xlu1 %8230  ;;  %v13003_v56 = vpop.permute.xlu0 %8107 }
 0x461   : > { %14000 = vst [vmem:[#allocation59_spill] sm:$0xff] %v12999_v26  ;;  %14001 = vst [vmem:[#allocation46_spill] sm:$0xff] %v13003_v56 }
 0x462   : > { %6746 = vmatprep.subr.bf16.mxu0 %v6523_v22  ;;  %v10670_v22 = vld [vmem:[%s13983_s3 + $0x10] ss:$8 sps:$4 sm:$0xff]  }
 0x463   : > { %6747 = vmatpush1.bf16.msra.mxu0 %v6522_v23  ;;  %v10685_v23 = vld [vmem:[%s11430_s28 + $0x24] ss:$8 sps:$4 sm:$0xff]  }
 0x464   : > { %v6485_v38 = vpop.f32.mrb[232].mxu1 }
 0x465   : > { %v6487_v2 = vpop.f32.mrb[233].mxu1 }
 0x466   : > { %v6489_v62 = vpop.f32.mrb[234].mxu1 }
 0x467   : > { %v6524_v33 = vpack.c.bf16 %v6489_v62, %v6485_v38  ;;  %v6491_v60 = vpop.f32.mrb[235].mxu1  ;;  %v13006_v38 = vpop.permute.xlu1 %8112  ;;  %v10683_v62 = vld [vmem:[%s11430_s28 + $0x20] ss:$8 sps:$4 sm:$0xff]  }
 0x468   : > { %v6525_v5 = vpack.c.bf16 %v6491_v60, %v6487_v2  ;;  %14002 = vst [vmem:[#allocation38_spill] sm:$0xff] %v13006_v38  ;;  %v10674_v2 = vld [vmem:[%s13983_s3 + $0x24] ss:$8 sps:$4 sm:$0xff]   ;;  %v13011_v60 = vpop.permute.xlu0 %8235  ;;  %v10716_v38 = vld [vmem:[%s13983_s3 + $0x94] ss:$8 sps:$4 sm:$0xff]  }
 0x469   : > { %14003 = vst [vmem:[#allocation37_spill] sm:$0xff] %v13011_v60 }
 0x46a   : > { %6748 = vmatprep.subr.bf16.mxu0 %v6525_v5  ;;  %v10689_v5 = vld [vmem:[%s11430_s28 + $0x30] ss:$8 sps:$4 sm:$0xff]  }
 0x46b   : > { %6749 = vmatpush1.bf16.msra.mxu0 %v6524_v33  ;;  %v10691_v33 = vld [vmem:[%s11430_s28 + $0x34] ss:$8 sps:$4 sm:$0xff]  }
 0x46c   : > { %7199 = vmatprep.subr.bf16.mxu0 %v10673_v57  ;;  %v10697_v57 = vld [vmem:[%s11430_s28 + $0x44] ss:$8 sps:$4 sm:$0xff]  }
 0x46e   : > { %6751 = vmatmul.mubr.bf16.vlgmr.msra.gmra.mrb[180].mxu0 %v10665_v6  ;;  %v13015_v6 = vpop.permute.xlu1 %8240 }
 0x46f   : > { %6760 = vmatprep.mubr.bf16.mxu0 %v10668_v9  ;;  %7200 = vmatpush1.bf16.msra.mxu0 %v10671_v1  ;;  %14004 = vst [vmem:[#allocation45_spill] sm:$0xff] %v13015_v6  ;;  %v10676_v9 = vld [vmem:[%s13983_s3 + $0x20] ss:$8 sps:$4 sm:$0xff]   ;;  %v10680_v1 = vld [vmem:[%s13983_s3 + $0x34] ss:$8 sps:$4 sm:$0xff]  }
 0x470   : > { %7201 = vmatprep.subr.bf16.mxu0 %v10679_v25  ;;  %v10695_v25 = vld [vmem:[%s11430_s28 + $0x40] ss:$8 sps:$4 sm:$0xff]   ;;  %v10760_v6 = vld [vmem:[%s11430_s28 + $0xf4] ss:$8 sps:$4 sm:$0xff]  }
 0x473   : > { %7202 = vmatpush1.bf16.msra.mxu0 %v10677_v24  ;;  %v10703_v24 = vld [vmem:[%s11430_s28 + $0x54] ss:$8 sps:$4 sm:$0xff]  }
 0x474   : > { %7203 = vmatprep.subr.bf16.mxu0 %v10685_v23  ;;  %v13021_v23 = vpop.permute.xlu0 %8117 }
 0x475   : > { %14005 = vst [vmem:[#allocation58_spill] sm:$0xff] %v13021_v23  ;;  %v10719_v23 = vld [vmem:[%s11430_s28 + $0x80] ss:$8 sps:$4 sm:$0xff]  }
 0x476   : > { %6761 = vmatmul.mubr.bf16.gmra.mrb[184].mxu0 %v10670_v22  ;;  %v13023_v22 = vpop.permute.xlu1 %8122 }
 0x477   : > { %6770 = vmatprep.mubr.bf16.mxu0 %v10674_v2  ;;  %7204 = vmatpush1.bf16.msra.mxu0 %v10683_v62  ;;  %14006 = vst [vmem:[#allocation36_spill] sm:$0xff] %v13023_v22  ;;  %v10701_v2 = vld [vmem:[%s11430_s28 + $0x50] ss:$8 sps:$4 sm:$0xff]   ;;  %v10709_v62 = vld [vmem:[%s11430_s28 + $0x64] ss:$8 sps:$4 sm:$0xff]  }
 0x478   : > { %7205 = vmatprep.subr.bf16.mxu0 %v10691_v33  ;;  %v10682_v33 = vld [vmem:[%s13983_s3 + $0x30] ss:$8 sps:$4 sm:$0xff]  }
 0x47a   : > { %v13033_v22 = vpop.permute.xlu1 %8250 }
 0x47b   : > { %7206 = vmatpush1.bf16.msra.mxu0 %v10689_v5  ;;  %v13028_v5 = vpop.permute.xlu0 %8245  ;;  %14008 = vst [vmem:[#allocation51_spill] sm:$0xff] %v13033_v22  ;;  %v10743_v22 = vld [vmem:[%s11430_s28 + $0xc0] ss:$8 sps:$4 sm:$0xff]  }
 0x47c   : > { %7207 = vmatprep.subr.bf16.mxu0 %v10697_v57  ;;  %14007 = vst [vmem:[#allocation43_spill] sm:$0xff] %v13028_v5  ;;  %v10686_v57 = vld [vmem:[%s13983_s3 + $0x44] ss:$8 sps:$4 sm:$0xff]   ;;  %v10688_v5 = vld [vmem:[%s13983_s3 + $0x40] ss:$8 sps:$4 sm:$0xff]  }
 0x47e   : > { %6771 = vmatmul.mubr.bf16.gmra.mrb[188].mxu0 %v10676_v9  ;;  %v10715_v9 = vld [vmem:[%s11430_s28 + $0x74] ss:$8 sps:$4 sm:$0xff]  }
 0x47f   : > { %6780 = vmatprep.mubr.bf16.mxu0 %v10680_v1  ;;  %7208 = vmatpush1.bf16.msra.mxu0 %v10695_v25  ;;  %v10713_v1 = vld [vmem:[%s11430_s28 + $0x70] ss:$8 sps:$4 sm:$0xff]   ;;  %v10721_v25 = vld [vmem:[%s11430_s28 + $0x84] ss:$8 sps:$4 sm:$0xff]  }
 0x480   : > { %7209 = vmatprep.subr.bf16.mxu0 %v10703_v24  ;;  %v13037_v24 = vpop.permute.xlu0 %8127 }
 0x481   : > { %14009 = vst [vmem:[#allocation44_spill] sm:$0xff] %v13037_v24 }
 0x483   : > { %7210 = vmatpush1.bf16.msra.mxu0 %v10701_v2  ;;  %v13040_v2 = vpop.permute.xlu1 %8132 }
 0x484   : > { %7211 = vmatprep.subr.bf16.mxu0 %v10709_v62  ;;  %14010 = vst [vmem:[#allocation42_spill] sm:$0xff] %v13040_v2  ;;  %v10692_v62 = vld [vmem:[%s13983_s3 + $0x54] ss:$8 sps:$4 sm:$0xff]   ;;  %v10694_v2 = vld [vmem:[%s13983_s3 + $0x50] ss:$8 sps:$4 sm:$0xff]  }
 0x486   : > { %6781 = vmatmul.mubr.bf16.gmra.mrb[192].mxu0 %v10682_v33  ;;  %v10727_v33 = vld [vmem:[%s11430_s28 + $0x94] ss:$8 sps:$4 sm:$0xff]  }
 0x487   : > { %6790 = vmatprep.mubr.bf16.mxu0 %v10686_v57  ;;  %7212 = vmatpush1.bf16.msra.mxu0 %v10707_v30  ;;  %v13045_v30 = vpop.permute.xlu0 %8255  ;;  %v10725_v57 = vld [vmem:[%s11430_s28 + $0x90] ss:$8 sps:$4 sm:$0xff]   ;;  %v13049_v24 = vpop.permute.xlu1 %8260 }
 0x488   : > { %7213 = vmatprep.subr.bf16.mxu0 %v10715_v9  ;;  %14011 = vst [vmem:[#allocation48_spill] sm:$0xff] %v13045_v30  ;;  %v10733_v9 = vld [vmem:[%s11430_s28 + $0xa4] ss:$8 sps:$4 sm:$0xff]   ;;  %14012 = vst [vmem:[#allocation33_spill] sm:$0xff] %v13049_v24  ;;  %v10700_v24 = vld [vmem:[%s13983_s3 + $0x60] ss:$8 sps:$4 sm:$0xff]  }
 0x48b   : > { %7214 = vmatpush1.bf16.msra.mxu0 %v10713_v1  ;;  %v10698_v1 = vld [vmem:[%s13983_s3 + $0x64] ss:$8 sps:$4 sm:$0xff]   ;;  %v13055_v30 = vpop.permute.xlu0 %8137 }
 0x48c   : > { %7215 = vmatprep.subr.bf16.mxu0 %v10721_v25  ;;  %v10731_v25 = vld [vmem:[%s11430_s28 + $0xa0] ss:$8 sps:$4 sm:$0xff]   ;;  %14013 = vst [vmem:[#allocation49_spill] sm:$0xff] %v13055_v30  ;;  %v10710_v30 = vld [vmem:[%s13983_s3 + $0x84] ss:$8 sps:$4 sm:$0xff]  }
 0x48e   : > { %6791 = vmatmul.mubr.bf16.gmra.mrb[196].mxu0 %v10688_v5  ;;  %v10739_v5 = vld [vmem:[%s11430_s28 + $0xb4] ss:$8 sps:$4 sm:$0xff]  }
 0x48f   : > { %6800 = vmatprep.mubr.bf16.mxu0 %v10692_v62  ;;  %7216 = vmatpush1.bf16.msra.mxu0 %v10719_v23  ;;  %v13057_v23 = vpop.permute.xlu1 %8142  ;;  %v10737_v62 = vld [vmem:[%s11430_s28 + $0xb0] ss:$8 sps:$4 sm:$0xff]  }
 0x490   : > { %7217 = vmatprep.subr.bf16.mxu0 %v10727_v33  ;;  %14014 = vst [vmem:[#allocation34_spill] sm:$0xff] %v13057_v23  ;;  %v10745_v33 = vld [vmem:[%s11430_s28 + $0xc4] ss:$8 sps:$4 sm:$0xff]  }
 0x493   : > { %7218 = vmatpush1.bf16.msra.mxu0 %v10725_v57  ;;  %v13062_v57 = vpop.permute.xlu0 %8265  ;;  %v13067_v23 = vpop.permute.xlu1 %8270 }
 0x494   : > { %7219 = vmatprep.subr.bf16.mxu0 %v10733_v9  ;;  %14015 = vst [vmem:[#allocation41_spill] sm:$0xff] %v13062_v57  ;;  %v10704_v9 = vld [vmem:[%s13983_s3 + $0x74] ss:$8 sps:$4 sm:$0xff]   ;;  %14016 = vst [vmem:[#allocation56_spill] sm:$0xff] %v13067_v23  ;;  %v10706_v57 = vld [vmem:[%s13983_s3 + $0x70] ss:$8 sps:$4 sm:$0xff]  }
 0x495   : > { %v10712_v23 = vld [vmem:[%s13983_s3 + $0x80] ss:$8 sps:$4 sm:$0xff]  }
 0x496   : > { %6801 = vmatmul.mubr.bf16.gmra.mrb[200].mxu0 %v10694_v2  ;;  %v10751_v2 = vld [vmem:[%s11430_s28 + $0xd4] ss:$8 sps:$4 sm:$0xff]  }
 0x497   : > { %6810 = vmatprep.mubr.bf16.mxu0 %v10698_v1  ;;  %7220 = vmatpush1.bf16.msra.mxu0 %v10731_v25  ;;  %v10749_v1 = vld [vmem:[%s11430_s28 + $0xd0] ss:$8 sps:$4 sm:$0xff]   ;;  %v10757_v25 = vld [vmem:[%s11430_s28 + $0xe4] ss:$8 sps:$4 sm:$0xff]  }
 0x498   : > { %7221 = vmatprep.subr.bf16.mxu0 %v10739_v5  ;;  %v5918_v5 = vpop.permute.xlu0 %5917 }
 0x49b   : > { %7222 = vmatpush1.bf16.msra.mxu0 %v10737_v62  ;;  %v5923_v62 = vpop.permute.xlu1 %5922 }
 0x49c   : > { %7223 = vmatprep.subr.bf16.mxu0 %v10745_v33  ;;  %v10755_v33 = vld [vmem:[%s11430_s28 + $0xe0] ss:$8 sps:$4 sm:$0xff]  }
 0x49e   : > { %6811 = vmatmul.mubr.bf16.gmra.mrb[204].mxu0 %v10700_v24  ;;  %v6046_v24 = vpop.permute.xlu0 %6045 }
 0x49f   : > { %6820 = vmatprep.mubr.bf16.mxu0 %v10704_v9  ;;  %7224 = vmatpush1.bf16.msra.mxu0 %v10743_v22  ;;  %v10758_v22 = vld [vmem:[%s11430_s28 + $0xf0] ss:$8 sps:$4 sm:$0xff]   ;;  %v10766_v9 = vld [vmem:[%s11483_s1 + $0x4] ss:$8 sps:$4 sm:$0xff]   ;;  %s14023_s28 = sld [smem:[#allocation21_spill]] }
 0x4a0   : > { %7225 = vmatprep.subr.bf16.mxu0 %v10751_v2  ;;  %v6051_v2 = vpop.permute.xlu1 %6050 }
 0x4a3   : > { %7226 = vmatpush1.bf16.msra.mxu0 %v10749_v1  ;;  %v5928_v1 = vpop.permute.xlu0 %5927 }
 0x4a4   : > { %7227 = vmatprep.subr.bf16.mxu0 %v10757_v25  ;;  %v5933_v25 = vpop.permute.xlu1 %5932 }
 0x4a6   : > { %6821 = vmatmul.mubr.bf16.gmra.mrb[208].mxu0 %v10706_v57  ;;  %v10718_v57 = vld [vmem:[%s13983_s3 + $0x90] ss:$8 sps:$4 sm:$0xff]  }
 0x4a7   : > { %6830 = vmatprep.mubr.bf16.mxu0 %v10710_v30  ;;  %7228 = vmatpush1.bf16.msra.mxu0 %v10755_v33  ;;  %v6056_v60 = vpop.permute.xlu0 %6055  ;;  %v10722_v30 = vld [vmem:[%s13983_s3 + $0xa4] ss:$8 sps:$4 sm:$0xff]   ;;  %v10724_v33 = vld [vmem:[%s13983_s3 + $0xa0] ss:$8 sps:$4 sm:$0xff]  }
 0x4a8   : > { %7229 = vmatprep.subr.bf16.mxu0 %v10760_v6  ;;  %v6061_v56 = vpop.permute.xlu1 %6060 }
 0x4ab   : > { %7230 = vmatpush1.bf16.msra.mxu0 %v10758_v22  ;;  %v13081_v6 = vpop.permute.xlu0 %5937 }
 0x4ac   : > { %7600 = vmatprep.subr.bf16.mxu0 %v10766_v9  ;;  %v13084_v26 = vpop.permute.xlu1 %5942 }
 0x4ae   : > { %6831 = vmatmul.mubr.bf16.gmra.mrb[212].mxu0 %v10712_v23 }
 0x4af   : > { %6840 = vmatprep.mubr.bf16.mxu0 %v10716_v38  ;;  %v13087_v22 = vpop.permute.xlu0 %6065 }
 0x4b0   : > { %v13089_v23 = vpop.permute.xlu1 %6070 }
 0x4b3   : > { %v13093_v53 = vpop.permute.xlu0 %5947 }
 0x4b6   : > { %6841 = vmatmul.mubr.bf16.gmra.mrb[216].mxu0 %v10718_v57 }
 0x4b7   : > { %6850 = vmatprep.mubr.bf16.mxu0 %v10722_v30 }
 0x4be   : > { %6851 = vmatmul.mubr.bf16.gmra.mrb[220].mxu0 %v10724_v33 }
 0x4bf   : > { %6860 = vmatprep.mubr.bf16.mxu0 %v10728_v39  ;;  %v13095_v39 = vpop.permute.xlu1 %5952 }
 0x4c1   : > { %v5820_v38 = vpop.f32.mrb[148].mxu0 }
 0x4c2   : > { %v5995_v9 = vmul.f32 %v5918_v5, %v5820_v38  ;;  %v5822_v46 = vpop.f32.mrb[149].mxu0 }
 0x4c3   : > { %v5996_v8 = vmul.f32 %v5918_v5, %v5822_v46  ;;  %v5824_v57 = vpop.f32.mrb[150].mxu0 }
 0x4c4   : > { %v6123_v30 = vadd.f32 %v6046_v24, %v5995_v9  ;;  %v5997_v15 = vmul.f32 %v5923_v62, %v5824_v57  ;;  %v5826_v48 = vpop.f32.mrb[151].mxu0 }
 0x4c5   : > { %v6124_v61 = vadd.f32 %v6046_v24, %v5996_v8  ;;  %v5998_v33 = vmul.f32 %v5923_v62, %v5826_v48  ;;  %v13098_v8 = vpop.permute.xlu0 %6075  ;;  %v10740_v24 = vld [vmem:[%s13983_s3 + $0xd4] ss:$8 sps:$4 sm:$0xff]  }
 0x4c6   : > { %v6155_v4 = vmul.f32 0.2, %v6123_v30  ;;  %v6125_v35 = vadd.f32 %v6051_v2, %v5997_v15  ;;  %6861 = vmatmul.mubr.bf16.gmra.mrb[224].mxu0 %v10730_v18 }
 0x4c7   : > { %v6156_v21 = vmul.f32 0.2, %v6124_v61  ;;  %v6126_v38 = vadd.f32 %v6051_v2, %v5998_v33  ;;  %6870 = vmatprep.mubr.bf16.mxu0 %v10734_v16  ;;  %v13103_v33 = vpop.permute.xlu1 %6080 }
 0x4c8   : > { %v6157_v46 = vmul.f32 0.2, %v6125_v35  ;;  %v6187_v9 = vmax.f32 %v6123_v30, %v6155_v4 }
 0x4c9   : > { %v6158_v5 = vmul.f32 0.2, %v6126_v38  ;;  %v5830_v13 = vpop.f32.mrb[152].mxu0  ;;  %v6188_v48 = vmax.f32 %v6124_v61, %v6156_v21 }
 0x4ca   : > { %v6189_v57 = vmax.f32 %v6125_v35, %v6157_v46  ;;  %v5999_v45 = vmul.f32 %v5928_v1, %v5830_v13  ;;  %v5832_v49 = vpop.f32.mrb[153].mxu0 }
 0x4cb   : > { %v6190_v62 = vmax.f32 %v6126_v38, %v6158_v5  ;;  %v6000_v15 = vmul.f32 %v5928_v1, %v5832_v49  ;;  %v5834_v18 = vpop.f32.mrb[154].mxu0  ;;  %v13107_v1 = vpop.permute.xlu0 %5957 }
 0x4cc   : > { %v13101_v19 = vpack.c.bf16 %v6189_v57, %v6187_v9  ;;  %v6127_v41 = vadd.f32 %v6056_v60, %v5999_v45  ;;  %v6001_v2 = vmul.f32 %v5933_v25, %v5834_v18  ;;  %v5836_v16 = vpop.f32.mrb[155].mxu0  ;;  %v10742_v9 = vld [vmem:[%s13983_s3 + $0xd0] ss:$8 sps:$4 sm:$0xff]   ;;  %v13111_v57 = vpop.permute.xlu1 %5962 }
 0x4cd   : > { %v6128_v10 = vadd.f32 %v6056_v60, %v6000_v15  ;;  %v6002_v4 = vmul.f32 %v5933_v25, %v5836_v16  ;;  %v13105_v13 = vpack.c.bf16 %v6190_v62, %v6188_v48  ;;  %v10746_v15 = vld [vmem:[%s13983_s3 + $0xe4] ss:$8 sps:$4 sm:$0xff]  }
 0x4ce   : > { %14017 = vst [vmem:[#allocation52_spill] sm:$0xff] %v13101_v19  ;;  %v6159_v35 = vmul.f32 0.2, %v6127_v41  ;;  %v6129_v30 = vadd.f32 %v6061_v56, %v6001_v2  ;;  %6871 = vmatmul.mubr.bf16.gmra.mrb[228].mxu0 %v10736_v37 }
 0x4cf   : > { %14018 = vst [vmem:[#allocation57_spill] sm:$0xff] %v13105_v13  ;;  %v6160_v21 = vmul.f32 0.2, %v6128_v10  ;;  %v6130_v61 = vadd.f32 %v6061_v56, %v6002_v4  ;;  %6880 = vmatprep.mubr.bf16.mxu0 %v10740_v24 }
 0x4d0   : > { %v6161_v49 = vmul.f32 0.2, %v6129_v30  ;;  %v6191_v46 = vmax.f32 %v6127_v41, %v6159_v35 }
 0x4d1   : > { %v6162_v45 = vmul.f32 0.2, %v6130_v61  ;;  %v5840_v38 = vpop.f32.mrb[156].mxu0  ;;  %v6192_v48 = vmax.f32 %v6128_v10, %v6160_v21 }
 0x4d2   : > { %v6193_v5 = vmax.f32 %v6129_v30, %v6161_v49  ;;  %v6003_v60 = vmul.f32 %v13081_v6, %v5840_v38  ;;  %v5842_v25 = vpop.f32.mrb[157].mxu0 }
 0x4d3   : > { %v6194_v62 = vmax.f32 %v6130_v61, %v6162_v45  ;;  %v6004_v37 = vmul.f32 %v13081_v6, %v5842_v25  ;;  %v5844_v56 = vpop.f32.mrb[158].mxu0  ;;  %v6086_v6 = vpop.permute.xlu0 %6085  ;;  %v10748_v25 = vld [vmem:[%s13983_s3 + $0xe0] ss:$8 sps:$4 sm:$0xff]  }
 0x4d4   : > { %v13115_v18 = vpack.c.bf16 %v6193_v5, %v6191_v46  ;;  %v6131_v24 = vadd.f32 %v13087_v22, %v6003_v60  ;;  %v6005_v2 = vmul.f32 %v13084_v26, %v5844_v56  ;;  %v5846_v41 = vpop.f32.mrb[159].mxu0  ;;  %v6091_v45 = vpop.permute.xlu1 %6090  ;;  %v10752_v56 = vld [vmem:[%s13983_s3 + $0xf4] ss:$8 sps:$4 sm:$0xff]  }
 0x4d5   : > { %v6132_v16 = vadd.f32 %v13087_v22, %v6004_v37  ;;  %v6006_v4 = vmul.f32 %v13084_v26, %v5846_v41  ;;  %v13121_v35 = vpack.c.bf16 %v6194_v62, %v6192_v48 }
 0x4d6   : > { %14019 = vst [vmem:[#allocation64_spill] sm:$0xff] %v13115_v18  ;;  %v6163_v10 = vmul.f32 0.2, %v6131_v24  ;;  %v6133_v30 = vadd.f32 %v13089_v23, %v6005_v2  ;;  %6881 = vmatmul.mubr.bf16.gmra.mrb[232].mxu0 %v10742_v9 }
 0x4d7   : > { %14020 = vst [vmem:[#allocation68_spill] sm:$0xff] %v13121_v35  ;;  %v6164_v21 = vmul.f32 0.2, %v6132_v16  ;;  %v6134_v61 = vadd.f32 %v13089_v23, %v6006_v4  ;;  %6890 = vmatprep.mubr.bf16.mxu0 %v10746_v15  ;;  %v5968_v4 = vpop.permute.xlu0 %5967 }
 0x4d8   : > { %v6165_v49 = vmul.f32 0.2, %v6133_v30  ;;  %v6195_v22 = vmax.f32 %v6131_v24, %v6163_v10 }
 0x4d9   : > { %v6166_v38 = vmul.f32 0.2, %v6134_v61  ;;  %v5850_v46 = vpop.f32.mrb[160].mxu0  ;;  %v6196_v48 = vmax.f32 %v6132_v16, %v6164_v21  ;;  %v5973_v21 = vpop.permute.xlu1 %5972 }
 0x4da   : > { %v6197_v5 = vmax.f32 %v6133_v30, %v6165_v49  ;;  %v6007_v26 = vmul.f32 %v13093_v53, %v5850_v46  ;;  %v5852_v60 = vpop.f32.mrb[161].mxu0 }
 0x4db   : > { %v6198_v62 = vmax.f32 %v6134_v61, %v6166_v38  ;;  %v6008_v9 = vmul.f32 %v13093_v53, %v5852_v60  ;;  %v5854_v37 = vpop.f32.mrb[162].mxu0  ;;  %v10754_v60 = vld [vmem:[%s13983_s3 + $0xf0] ss:$8 sps:$4 sm:$0xff]  }
 0x4dc   : > { %v13129_v2 = vpack.c.bf16 %v6197_v5, %v6195_v22  ;;  %v6135_v23 = vadd.f32 %v13098_v8, %v6007_v26  ;;  %v6009_v15 = vmul.f32 %v13095_v39, %v5854_v37  ;;  %v5856_v41 = vpop.f32.mrb[163].mxu0 }
 0x4dd   : > { %v6136_v24 = vadd.f32 %v13098_v8, %v6008_v9  ;;  %v6010_v10 = vmul.f32 %v13095_v39, %v5856_v41  ;;  %v13135_v30 = vpack.c.bf16 %v6198_v62, %v6196_v48  ;;  %v6096_v48 = vpop.permute.xlu0 %6095 }
 0x4de   : > { %14021 = vst [vmem:[#allocation63_spill] sm:$0xff] %v13129_v2  ;;  %v6167_v16 = vmul.f32 0.2, %v6135_v23  ;;  %v6137_v53 = vadd.f32 %v13103_v33, %v6009_v15  ;;  %6891 = vmatmul.mubr.bf16.gmra.mrb[236].mxu0 %v10748_v25  ;;  %v10763_v15 = vld [vmem:[%s14023_s28 + $0x4] ss:$8 sps:$4 sm:$0xff]   ;;  %v6101_v2 = vpop.permute.xlu1 %6100 }
 0x4df   : > { %14022 = vst [vmem:[#allocation67_spill] sm:$0xff] %v13135_v30  ;;  %v6168_v61 = vmul.f32 0.2, %v6136_v24  ;;  %v6138_v49 = vadd.f32 %v13103_v33, %v6010_v10  ;;  %6900 = vmatprep.mubr.bf16.mxu0 %v10752_v56 }
 0x4e0   : > { %v6169_v38 = vmul.f32 0.2, %v6137_v53  ;;  %v6199_v5 = vmax.f32 %v6135_v23, %v6167_v16 }
 0x4e1   : > { %v6170_v46 = vmul.f32 0.2, %v6138_v49  ;;  %v5860_v22 = vpop.f32.mrb[164].mxu0  ;;  %v6200_v62 = vmax.f32 %v6136_v24, %v6168_v61 }
 0x4e2   : > { %v6201_v8 = vmax.f32 %v6137_v53, %v6169_v38  ;;  %v6011_v39 = vmul.f32 %v13107_v1, %v5860_v22  ;;  %v5862_v26 = vpop.f32.mrb[165].mxu0 }
 0x4e3   : > { %v6202_v9 = vmax.f32 %v6138_v49, %v6170_v46  ;;  %v6012_v25 = vmul.f32 %v13107_v1, %v5862_v26  ;;  %v5864_v37 = vpop.f32.mrb[166].mxu0  ;;  %v5978_v46 = vpop.permute.xlu0 %5977  ;;  %v10761_v26 = vld [vmem:[%s14023_s28] ss:$8 sps:$4 sm:$0xff]  }
 0x4e4   : > { %v13143_v41 = vpack.c.bf16 %v6201_v8, %v6199_v5  ;;  %v6139_v33 = vadd.f32 %v6086_v6, %v6011_v39  ;;  %v6013_v56 = vmul.f32 %v13111_v57, %v5864_v37  ;;  %v5866_v10 = vpop.f32.mrb[167].mxu0 }
 0x4e5   : > { %v6140_v23 = vadd.f32 %v6086_v6, %v6012_v25  ;;  %v6014_v16 = vmul.f32 %v13111_v57, %v5866_v10  ;;  %v13147_v53 = vpack.c.bf16 %v6202_v9, %v6200_v62  ;;  %v5983_v62 = vpop.permute.xlu1 %5982 }
 0x4e6   : > { %14024 = vst [vmem:[#allocation72_spill] sm:$0xff] %v13143_v41  ;;  %v6171_v38 = vmul.f32 0.2, %v6139_v33  ;;  %v6141_v24 = vadd.f32 %v6091_v45, %v6013_v56  ;;  %6901 = vmatmul.mubr.bf16.gmra.mrb[240].mxu0 %v10754_v60  ;;  %v10764_v56 = vld [vmem:[%s11483_s1] ss:$8 sps:$4 sm:$0xff]  }
 0x4e7   : > { %14025 = vst [vmem:[#allocation76_spill] sm:$0xff] %v13147_v53  ;;  %v6172_v61 = vmul.f32 0.2, %v6140_v23  ;;  %v6142_v1 = vadd.f32 %v6091_v45, %v6014_v16  ;;  %7231 = vmatprep.mubr.bf16.mxu0 %v10763_v15  ;;  %v10770_v45 = vld [vmem:[%s14023_s28 + $0x14] ss:$8 sps:$4 sm:$0xff]  }
 0x4e8   : > { %v6173_v49 = vmul.f32 0.2, %v6141_v24  ;;  %v6203_v8 = vmax.f32 %v6139_v33, %v6171_v38  ;;  %v10769_v33 = vld [vmem:[%s11483_s1 + $0x14] ss:$8 sps:$4 sm:$0xff]  }
 0x4e9   : > { %v6174_v22 = vmul.f32 0.2, %v6142_v1  ;;  %v5870_v5 = vpop.f32.mrb[168].mxu0  ;;  %v6204_v9 = vmax.f32 %v6140_v23, %v6172_v61  ;;  %v6106_v23 = vpop.permute.xlu0 %6105 }
 0x4ea   : > { %v6205_v6 = vmax.f32 %v6141_v24, %v6173_v49  ;;  %v6015_v39 = vmul.f32 %v5968_v4, %v5870_v5  ;;  %v5872_v57 = vpop.f32.mrb[169].mxu0 }
 0x4eb   : > { %v6206_v25 = vmax.f32 %v6142_v1, %v6174_v22  ;;  %v6016_v37 = vmul.f32 %v5968_v4, %v5872_v57  ;;  %v5874_v60 = vpop.f32.mrb[170].mxu0  ;;  %v10767_v1 = vld [vmem:[%s11483_s1 + $0x10] ss:$8 sps:$4 sm:$0xff]  }
 0x4ec   : > { %v13152_v15 = vpack.c.bf16 %v6205_v6, %v6203_v8  ;;  %v6143_v10 = vadd.f32 %v6096_v48, %v6015_v39  ;;  %v6017_v16 = vmul.f32 %v5973_v21, %v5874_v60  ;;  %v5876_v41 = vpop.f32.mrb[171].mxu0  ;;  %v10775_v8 = vld [vmem:[%s11483_s1 + $0x24] ss:$8 sps:$4 sm:$0xff]   ;;  %v6111_v6 = vpop.permute.xlu1 %6110 }
 0x4ed   : > { %v6144_v38 = vadd.f32 %v6096_v48, %v6016_v37  ;;  %v6018_v24 = vmul.f32 %v5973_v21, %v5876_v41  ;;  %v13155_v49 = vpack.c.bf16 %v6206_v25, %v6204_v9  ;;  %v10772_v9 = vld [vmem:[%s14023_s28 + $0x10] ss:$8 sps:$4 sm:$0xff]  }
 0x4ee   : > { %14026 = vst [vmem:[#allocation71_spill] sm:$0xff] %v13152_v15  ;;  %v6175_v5 = vmul.f32 0.2, %v6143_v10  ;;  %v6145_v53 = vadd.f32 %v6101_v2, %v6017_v16  ;;  %7232 = vmatmul.mubr.bf16.vlgmr.msra.gmra.mrb[180].mxu0 %v10761_v26 }
 0x4ef   : > { %14027 = vst [vmem:[#allocation75_spill] sm:$0xff] %v13155_v49  ;;  %v6176_v4 = vmul.f32 0.2, %v6144_v38  ;;  %v6146_v61 = vadd.f32 %v6101_v2, %v6018_v24  ;;  %7601 = vmatpush1.bf16.msra.mxu0 %v10764_v56  ;;  %7241 = vmatprep.mubr.bf16.mxu0 %v10770_v45  ;;  %v10773_v56 = vld [vmem:[%s11483_s1 + $0x20] ss:$8 sps:$4 sm:$0xff]  }
 0x4f0   : > { %v6177_v22 = vmul.f32 0.2, %v6145_v53  ;;  %7602 = vmatprep.subr.bf16.mxu0 %v10769_v33  ;;  %v6207_v41 = vmax.f32 %v6143_v10, %v6175_v5  ;;  %v10779_v45 = vld [vmem:[%s14023_s28 + $0x24] ss:$8 sps:$4 sm:$0xff]   ;;  %v10778_v10 = vld [vmem:[%s11483_s1 + $0x34] ss:$8 sps:$4 sm:$0xff]  }
 0x4f1   : > { %v6178_v48 = vmul.f32 0.2, %v6146_v61  ;;  %v5880_v21 = vpop.f32.mrb[172].mxu0  ;;  %v6208_v25 = vmax.f32 %v6144_v38, %v6176_v4  ;;  %v5993_v4 = vpop.permute.xlu1 %5992 }
 0x4f2   : > { %v6209_v39 = vmax.f32 %v6145_v53, %v6177_v22  ;;  %v6019_v57 = vmul.f32 %v5978_v46, %v5880_v21  ;;  %v5882_v26 = vpop.f32.mrb[173].mxu0  ;;  %v5988_v53 = vpop.permute.xlu0 %5987 }
 0x4f3   : > { %v6210_v37 = vmax.f32 %v6146_v61, %v6178_v48  ;;  %v6020_v2 = vmul.f32 %v5978_v46, %v5882_v26  ;;  %v5884_v60 = vpop.f32.mrb[174].mxu0  ;;  %7603 = vmatpush1.bf16.msra.mxu0 %v10767_v1  ;;  %v10776_v48 = vld [vmem:[%s11483_s1 + $0x30] ss:$8 sps:$4 sm:$0xff]  }
 0x4f4   : > { %v13162_v16 = vpack.c.bf16 %v6209_v39, %v6207_v41  ;;  %v6147_v33 = vadd.f32 %v6106_v23, %v6019_v57  ;;  %v6021_v24 = vmul.f32 %v5983_v62, %v5884_v60  ;;  %v5886_v15 = vpop.f32.mrb[175].mxu0  ;;  %7604 = vmatprep.subr.bf16.mxu0 %v10775_v8  ;;  %v10784_v8 = vld [vmem:[%s11483_s1 + $0x44] ss:$8 sps:$4 sm:$0xff]  }
 0x4f5   : > { %v6148_v5 = vadd.f32 %v6106_v23, %v6020_v2  ;;  %v6022_v22 = vmul.f32 %v5983_v62, %v5886_v15  ;;  %v13165_v21 = vpack.c.bf16 %v6210_v37, %v6208_v25 }
 0x4f6   : > { %14028 = vst [vmem:[#allocation77_spill] sm:$0xff] %v13162_v16  ;;  %v6179_v38 = vmul.f32 0.2, %v6147_v33  ;;  %v6149_v46 = vadd.f32 %v6111_v6, %v6021_v24  ;;  %7242 = vmatmul.mubr.bf16.gmra.mrb[184].mxu0 %v10772_v9  ;;  %v10781_v9 = vld [vmem:[%s14023_s28 + $0x20] ss:$8 sps:$4 sm:$0xff]   ;;  %v6116_v25 = vpop.permute.xlu0 %6115 }
 0x4f7   : > { %14029 = vst [vmem:[#allocation78_spill] sm:$0xff] %v13165_v21  ;;  %v6180_v61 = vmul.f32 0.2, %v6148_v5  ;;  %v6150_v1 = vadd.f32 %v6111_v6, %v6022_v22  ;;  %7605 = vmatpush1.bf16.msra.mxu0 %v10773_v56  ;;  %7251 = vmatprep.mubr.bf16.mxu0 %v10779_v45  ;;  %v10782_v56 = vld [vmem:[%s11483_s1 + $0x40] ss:$8 sps:$4 sm:$0xff]  }
 0x4f8   : > { %v6181_v41 = vmul.f32 0.2, %v6149_v46  ;;  %7606 = vmatprep.subr.bf16.mxu0 %v10778_v10  ;;  %v6211_v62 = vmax.f32 %v6147_v33, %v6179_v38  ;;  %v10788_v45 = vld [vmem:[%s14023_s28 + $0x34] ss:$8 sps:$4 sm:$0xff]   ;;  %v6121_v38 = vpop.permute.xlu1 %6120 }
 0x4f9   : > { %v6182_v39 = vmul.f32 0.2, %v6150_v1  ;;  %v5890_v23 = vpop.f32.mrb[176].mxu0  ;;  %v6212_v37 = vmax.f32 %v6148_v5, %v6180_v61  ;;  %v10787_v33 = vld [vmem:[%s11483_s1 + $0x54] ss:$8 sps:$4 sm:$0xff]  }
 0x4fa   : > { %v6213_v15 = vmax.f32 %v6149_v46, %v6181_v41  ;;  %v6023_v57 = vmul.f32 %v5988_v53, %v5890_v23  ;;  %v5892_v26 = vpop.f32.mrb[177].mxu0  ;;  %v10793_v23 = vld [vmem:[%s11483_s1 + $0x64] ss:$8 sps:$4 sm:$0xff]  }
 0x4fb   : > { %v6214_v2 = vmax.f32 %v6150_v1, %v6182_v39  ;;  %v6024_v6 = vmul.f32 %v5988_v53, %v5892_v26  ;;  %v5894_v60 = vpop.f32.mrb[178].mxu0  ;;  %7607 = vmatpush1.bf16.msra.mxu0 %v10776_v48  ;;  %v10785_v39 = vld [vmem:[%s11483_s1 + $0x50] ss:$8 sps:$4 sm:$0xff]  }
 0x4fc   : > { %v13172_v24 = vpack.c.bf16 %v6213_v15, %v6211_v62  ;;  %v6151_v10 = vadd.f32 %v6116_v25, %v6023_v57  ;;  %v6025_v22 = vmul.f32 %v5993_v4, %v5894_v60  ;;  %v5896_v16 = vpop.f32.mrb[179].mxu0  ;;  %7608 = vmatprep.subr.bf16.mxu0 %v10784_v8  ;;  %v10790_v15 = vld [vmem:[%s14023_s28 + $0x30] ss:$8 sps:$4 sm:$0xff]  }
 0x4fd   : > { %v6152_v46 = vadd.f32 %v6116_v25, %v6024_v6  ;;  %v6026_v41 = vmul.f32 %v5993_v4, %v5896_v16  ;;  %v13175_v5 = vpack.c.bf16 %v6214_v2, %v6212_v37  ;;  %v10797_v25 = vld [vmem:[%s14023_s28 + $0x44] ss:$8 sps:$4 sm:$0xff]   ;;  %v10796_v2 = vld [vmem:[%s11483_s1 + $0x74] ss:$8 sps:$4 sm:$0xff]   ;;  %v10794_v60 = vld [vmem:[%s11483_s1 + $0x70] ss:$8 sps:$4 sm:$0xff]  }
 0x4fe   : > { %14030 = vst [vmem:[#allocation79_spill] sm:$0xff] %v13172_v24  ;;  %v6183_v53 = vmul.f32 0.2, %v6151_v10  ;;  %v6153_v61 = vadd.f32 %v6121_v38, %v6025_v22  ;;  %7252 = vmatmul.mubr.bf16.gmra.mrb[188].mxu0 %v10781_v9  ;;  %v10791_v9 = vld [vmem:[%s11483_s1 + $0x60] ss:$8 sps:$4 sm:$0xff]  }
 0x4ff   : > { %14031 = vst [vmem:[#allocation80_spill] sm:$0xff] %v13175_v5  ;;  %v6184_v1 = vmul.f32 0.2, %v6152_v46  ;;  %v6154_v48 = vadd.f32 %v6121_v38, %v6026_v41  ;;  %7609 = vmatpush1.bf16.msra.mxu0 %v10782_v56  ;;  %7261 = vmatprep.mubr.bf16.mxu0 %v10788_v45  ;;  %v10802_v56 = vld [vmem:[%s11483_s1 + $0x84] ss:$8 sps:$4 sm:$0xff]  }
 0x500   : > { %v6185_v8 = vmul.f32 0.2, %v6153_v61  ;;  %7610 = vmatprep.subr.bf16.mxu0 %v10787_v33  ;;  %v6215_v16 = vmax.f32 %v6151_v10, %v6183_v53  ;;  %v10799_v45 = vld [vmem:[%s14023_s28 + $0x40] ss:$8 sps:$4 sm:$0xff]   ;;  %v10806_v22 = vld [vmem:[%s14023_s28 + $0x54] ss:$8 sps:$4 sm:$0xff]  }
 0x501   : > { %v6186_v62 = vmul.f32 0.2, %v6154_v48  ;;  %v6216_v57 = vmax.f32 %v6152_v46, %v6184_v1  ;;  %v10800_v10 = vld [vmem:[%s11483_s1 + $0x80] ss:$8 sps:$4 sm:$0xff]   ;;  %v10805_v33 = vld [vmem:[%s11483_s1 + $0x94] ss:$8 sps:$4 sm:$0xff]  }
 0x502   : > { %v6217_v4 = vmax.f32 %v6153_v61, %v6185_v8  ;;  %v10803_v38 = vld [vmem:[%s11483_s1 + $0x90] ss:$8 sps:$4 sm:$0xff]   ;;  %v10811_v46 = vld [vmem:[%s11483_s1 + $0xa4] ss:$8 sps:$4 sm:$0xff]   ;;  %v10809_v53 = vld [vmem:[%s11483_s1 + $0xa0] ss:$8 sps:$4 sm:$0xff]  }
 0x503   : > { %v6218_v26 = vmax.f32 %v6154_v48, %v6186_v62  ;;  %7611 = vmatpush1.bf16.msra.mxu0 %v10785_v39  ;;  %v10808_v41 = vld [vmem:[%s14023_s28 + $0x50] ss:$8 sps:$4 sm:$0xff]   ;;  %v10815_v61 = vld [vmem:[%s14023_s28 + $0x64] ss:$8 sps:$4 sm:$0xff]   ;;  %v10814_v1 = vld [vmem:[%s11483_s1 + $0xb4] ss:$8 sps:$4 sm:$0xff]  }
 0x504   : > { %v13182_v37 = vpack.c.bf16 %v6217_v4, %v6215_v16  ;;  %7612 = vmatprep.subr.bf16.mxu0 %v10793_v23  ;;  %v10812_v48 = vld [vmem:[%s11483_s1 + $0xb0] ss:$8 sps:$4 sm:$0xff]   ;;  %v10820_v39 = vld [vmem:[%s11483_s1 + $0xc4] ss:$8 sps:$4 sm:$0xff]   ;;  %v10817_v8 = vld [vmem:[%s14023_s28 + $0x60] ss:$8 sps:$4 sm:$0xff]  }
 0x505   : > { %v13185_v6 = vpack.c.bf16 %v6218_v26, %v6216_v57  ;;  %v10818_v23 = vld [vmem:[%s11483_s1 + $0xc0] ss:$8 sps:$4 sm:$0xff]   ;;  %v10824_v62 = vld [vmem:[%s14023_s28 + $0x74] ss:$8 sps:$4 sm:$0xff]   ;;  %v10821_v4 = vld [vmem:[%s11483_s1 + $0xd0] ss:$8 sps:$4 sm:$0xff]  }
 0x506   : > { %14032 = vst [vmem:[#allocation81_spill] sm:$0xff] %v13182_v37  ;;  %7262 = vmatmul.mubr.bf16.gmra.mrb[192].mxu0 %v10790_v15  ;;  %v10823_v16 = vld [vmem:[%s11483_s1 + $0xd4] ss:$8 sps:$4 sm:$0xff]   ;;  %v10829_v15 = vld [vmem:[%s11483_s1 + $0xe4] ss:$8 sps:$4 sm:$0xff]  }
 0x507   : > { %14033 = vst [vmem:[#allocation82_spill] sm:$0xff] %v13185_v6  ;;  %7613 = vmatpush1.bf16.msra.mxu0 %v10791_v9  ;;  %7271 = vmatprep.mubr.bf16.mxu0 %v10797_v25  ;;  %v10826_v57 = vld [vmem:[%s14023_s28 + $0x70] ss:$8 sps:$4 sm:$0xff]   ;;  %v10827_v26 = vld [vmem:[%s11483_s1 + $0xe0] ss:$8 sps:$4 sm:$0xff]  }
 0x508   : > { %7614 = vmatprep.subr.bf16.mxu0 %v10796_v2  ;;  %v10835_v9 = vld [vmem:[%s14034_s2 + $0x4] ss:$8 sps:$4 sm:$0xff]   ;;  %v10832_v25 = vld [vmem:[%s11483_s1 + $0xf4] ss:$8 sps:$4 sm:$0xff]   ;;  %v10830_v2 = vld [vmem:[%s11483_s1 + $0xf0] ss:$8 sps:$4 sm:$0xff]  }
 0x509   : > { %s14035_s1 = sld [smem:[#allocation29_spill]] }
 0x50b   : > { %7615 = vmatpush1.bf16.msra.mxu0 %v10794_v60  ;;  %v10833_v60 = vld [vmem:[%s14034_s2] ss:$8 sps:$4 sm:$0xff]  }
 0x50c   : > { %7616 = vmatprep.subr.bf16.mxu0 %v10802_v56  ;;  %v10836_v56 = vld [vmem:[%s14034_s2 + $0x14] ss:$8 sps:$4 sm:$0xff]  }
 0x50e   : > { %7272 = vmatmul.mubr.bf16.gmra.mrb[196].mxu0 %v10799_v45  ;;  %v10838_v45 = vld [vmem:[%s14034_s2 + $0x10] ss:$8 sps:$4 sm:$0xff]  }
 0x50f   : > { %7617 = vmatpush1.bf16.msra.mxu0 %v10800_v10  ;;  %7281 = vmatprep.mubr.bf16.mxu0 %v10806_v22  ;;  %v10839_v10 = vld [vmem:[%s14034_s2 + $0x24] ss:$8 sps:$4 sm:$0xff]   ;;  %v10841_v22 = vld [vmem:[%s14034_s2 + $0x20] ss:$8 sps:$4 sm:$0xff]  }
 0x510   : > { %7618 = vmatprep.subr.bf16.mxu0 %v10805_v33  ;;  %v10842_v33 = vld [vmem:[%s14034_s2 + $0x34] ss:$8 sps:$4 sm:$0xff]  }
 0x513   : > { %7619 = vmatpush1.bf16.msra.mxu0 %v10803_v38  ;;  %v10844_v38 = vld [vmem:[%s14034_s2 + $0x30] ss:$8 sps:$4 sm:$0xff]  }
 0x514   : > { %7620 = vmatprep.subr.bf16.mxu0 %v10811_v46  ;;  %v10845_v46 = vld [vmem:[%s14034_s2 + $0x44] ss:$8 sps:$4 sm:$0xff]  }
 0x516   : > { %7282 = vmatmul.mubr.bf16.gmra.mrb[200].mxu0 %v10808_v41  ;;  %v10847_v41 = vld [vmem:[%s14034_s2 + $0x40] ss:$8 sps:$4 sm:$0xff]  }
 0x517   : > { %7621 = vmatpush1.bf16.msra.mxu0 %v10809_v53  ;;  %7291 = vmatprep.mubr.bf16.mxu0 %v10815_v61  ;;  %v10848_v53 = vld [vmem:[%s14034_s2 + $0x54] ss:$8 sps:$4 sm:$0xff]   ;;  %v10850_v61 = vld [vmem:[%s14034_s2 + $0x50] ss:$8 sps:$4 sm:$0xff]  }
 0x518   : > { %7622 = vmatprep.subr.bf16.mxu0 %v10814_v1  ;;  %v10851_v1 = vld [vmem:[%s14034_s2 + $0x64] ss:$8 sps:$4 sm:$0xff]  }
 0x51b   : > { %7623 = vmatpush1.bf16.msra.mxu0 %v10812_v48  ;;  %v10853_v48 = vld [vmem:[%s14034_s2 + $0x60] ss:$8 sps:$4 sm:$0xff]  }
 0x51c   : > { %7624 = vmatprep.subr.bf16.mxu0 %v10820_v39  ;;  %v10854_v39 = vld [vmem:[%s14034_s2 + $0x74] ss:$8 sps:$4 sm:$0xff]  }
 0x51e   : > { %7292 = vmatmul.mubr.bf16.gmra.mrb[204].mxu0 %v10817_v8  ;;  %v10856_v8 = vld [vmem:[%s14034_s2 + $0x70] ss:$8 sps:$4 sm:$0xff]  }
 0x51f   : > { %7625 = vmatpush1.bf16.msra.mxu0 %v10818_v23  ;;  %7301 = vmatprep.mubr.bf16.mxu0 %v10824_v62 }
 0x520   : > { %7626 = vmatprep.subr.bf16.mxu0 %v10823_v16 }
 0x523   : > { %7627 = vmatpush1.bf16.msra.mxu0 %v10821_v4 }
 0x524   : > { %7628 = vmatprep.subr.bf16.mxu0 %v10829_v15 }
 0x526   : > { %7302 = vmatmul.mubr.bf16.gmra.mrb[208].mxu0 %v10826_v57 }
 0x527   : > { %7629 = vmatpush1.bf16.msra.mxu0 %v10827_v26  ;;  %7632 = vmatprep.mubr.bf16.mxu0 %v10835_v9 }
 0x528   : > { %7630 = vmatprep.subr.bf16.mxu0 %v10832_v25 }
 0x52b   : > { %7631 = vmatpush1.bf16.msra.mxu0 %v10830_v2 }
 0x52e   : > { %7633 = vmatmul.mubr.bf16.vlgmr.msra.gmra.mrb[212].mxu0 %v10833_v60 }
 0x52f   : > { %7642 = vmatprep.mubr.bf16.mxu0 %v10836_v56 }
 0x536   : > { %7643 = vmatmul.mubr.bf16.gmra.mrb[216].mxu0 %v10838_v45 }
 0x537   : > { %7652 = vmatprep.mubr.bf16.mxu0 %v10839_v10 }
 0x53e   : > { %7653 = vmatmul.mubr.bf16.gmra.mrb[220].mxu0 %v10841_v22 }
 0x53f   : > { %7662 = vmatprep.mubr.bf16.mxu0 %v10842_v33 }
 0x546   : > { %7663 = vmatmul.mubr.bf16.gmra.mrb[224].mxu0 %v10844_v38 }
 0x547   : > { %7672 = vmatprep.mubr.bf16.mxu0 %v10845_v46 }
 0x54e   : > { %7673 = vmatmul.mubr.bf16.gmra.mrb[228].mxu0 %v10847_v41 }
 0x54f   : > { %7682 = vmatprep.mubr.bf16.mxu0 %v10848_v53 }
 0x556   : > { %7683 = vmatmul.mubr.bf16.gmra.mrb[232].mxu0 %v10850_v61  ;;  %v10859_v61 = vld [vmem:[%s14035_s1 + $0x4] ss:$12 sps:$4 sm:$0xff]  }
 0x557   : > { %7692 = vmatprep.mubr.bf16.mxu0 %v10851_v1  ;;  %8673 = vmatprep.mubr.bf16.mxu1 %v10859_v61 }
 0x55e   : > { %7693 = vmatmul.mubr.bf16.gmra.mrb[236].mxu0 %v10853_v48 }
 0x55f   : > { %7702 = vmatprep.mubr.bf16.mxu0 %v10854_v39 }
 0x566   : > { %7703 = vmatmul.mubr.bf16.gmra.mrb[240].mxu0 %v10856_v8 }
 0x5c1   : > { %v7233_v23 = vpop.f32.mrb[180].mxu0 }
 0x5c2   : > { %v7809_v62 = vmul.f32 %v12696_v52, %v7233_v23  ;;  %v7235_v16 = vpop.f32.mrb[181].mxu0 }
 0x5c3   : > { %v7810_v4 = vmul.f32 %v12696_v52, %v7235_v16  ;;  %v7237_v15 = vpop.f32.mrb[182].mxu0 }
 0x5c4   : > { %v7937_v57 = vadd.f32 %v12702_v12, %v7809_v62  ;;  %v7811_v26 = vmul.f32 %v12698_v59, %v7237_v15  ;;  %v7239_v9 = vpop.f32.mrb[183].mxu0 }
 0x5c5   : > { %v7938_v25 = vadd.f32 %v12702_v12, %v7810_v4  ;;  %v7812_v2 = vmul.f32 %v12698_v59, %v7239_v9 }
 0x5c6   : > { %v7969_v60 = vmul.f32 0.2, %v7937_v57  ;;  %v7939_v56 = vadd.f32 %v12706_v7, %v7811_v26 }
 0x5c7   : > { %v7970_v45 = vmul.f32 0.2, %v7938_v25  ;;  %v7940_v10 = vadd.f32 %v12706_v7, %v7812_v2 }
 0x5c8   : > { %v7971_v22 = vmul.f32 0.2, %v7939_v56  ;;  %v8001_v38 = vmax.f32 %v7937_v57, %v7969_v60 }
 0x5c9   : > { %v7972_v33 = vmul.f32 0.2, %v7940_v10  ;;  %v7243_v52 = vpop.f32.mrb[184].mxu0  ;;  %v8002_v1 = vmax.f32 %v7938_v25, %v7970_v45 }
 0x5ca   : > { %v8003_v46 = vmax.f32 %v7939_v56, %v7971_v22  ;;  %v7813_v41 = vmul.f32 %v12714_v55, %v7243_v52  ;;  %v7245_v53 = vpop.f32.mrb[185].mxu0 }
 0x5cb   : > { %v8004_v48 = vmax.f32 %v7940_v10, %v7972_v33  ;;  %v7814_v12 = vmul.f32 %v12714_v55, %v7245_v53  ;;  %v7247_v59 = vpop.f32.mrb[186].mxu0 }
 0x5cc   : > { %v13238_v39 = vpack.c.bf16 %v8003_v46, %v8001_v38  ;;  %v7941_v8 = vadd.f32 %v12723_v0, %v7813_v41  ;;  %v7815_v7 = vmul.f32 %v12716_v27, %v7247_v59  ;;  %v7249_v23 = vpop.f32.mrb[187].mxu0 }
 0x5cd   : > { %v7942_v62 = vadd.f32 %v12723_v0, %v7814_v12  ;;  %v7816_v16 = vmul.f32 %v12716_v27, %v7249_v23  ;;  %v13244_v4 = vpack.c.bf16 %v8004_v48, %v8002_v1 }
 0x5ce   : > { %v7973_v15 = vmul.f32 0.2, %v7941_v8  ;;  %v7943_v57 = vadd.f32 %v12728_v43, %v7815_v7 }
 0x5cf   : > { %v7974_v26 = vmul.f32 0.2, %v7942_v62  ;;  %v7944_v55 = vadd.f32 %v12728_v43, %v7816_v16  ;;  %8641 = vmatprep.subr.bf16.mxu1 %v13244_v4 }
 0x5d0   : > { %v7975_v9 = vmul.f32 0.2, %v7943_v57  ;;  %8642 = vmatpush1.bf16.msra.mxu1 %v13238_v39  ;;  %v8005_v60 = vmax.f32 %v7941_v8, %v7973_v15 }
 0x5d1   : > { %v7976_v25 = vmul.f32 0.2, %v7944_v55  ;;  %v7253_v2 = vpop.f32.mrb[188].mxu0  ;;  %v8006_v45 = vmax.f32 %v7942_v62, %v7974_v26 }
 0x5d2   : > { %v8007_v56 = vmax.f32 %v7943_v57, %v7975_v9  ;;  %v7817_v0 = vmul.f32 %v12736_v44, %v7253_v2  ;;  %v7255_v27 = vpop.f32.mrb[189].mxu0 }
 0x5d3   : > { %v8008_v10 = vmax.f32 %v7944_v55, %v7976_v25  ;;  %v7818_v22 = vmul.f32 %v12736_v44, %v7255_v27  ;;  %v7257_v33 = vpop.f32.mrb[190].mxu0 }
 0x5d4   : > { %v13252_v52 = vpack.c.bf16 %v8007_v56, %v8005_v60  ;;  %v7945_v43 = vadd.f32 %v12747_v14, %v7817_v0  ;;  %v7819_v38 = vmul.f32 %v12740_v63, %v7257_v33  ;;  %v7259_v46 = vpop.f32.mrb[191].mxu0 }
 0x5d5   : > { %v7946_v41 = vadd.f32 %v12747_v14, %v7818_v22  ;;  %v7820_v53 = vmul.f32 %v12740_v63, %v7259_v46  ;;  %v13258_v61 = vpack.c.bf16 %v8008_v10, %v8006_v45 }
 0x5d6   : > { %v7977_v1 = vmul.f32 0.2, %v7945_v43  ;;  %v7947_v48 = vadd.f32 %v12751_v31, %v7819_v38 }
 0x5d7   : > { %v7978_v12 = vmul.f32 0.2, %v7946_v41  ;;  %v7948_v44 = vadd.f32 %v12751_v31, %v7820_v53  ;;  %8643 = vmatprep.subr.bf16.mxu1 %v13258_v61 }
 0x5d8   : > { %v7979_v59 = vmul.f32 0.2, %v7947_v48  ;;  %8644 = vmatpush1.bf16.msra.mxu1 %v13252_v52  ;;  %v8009_v23 = vmax.f32 %v7945_v43, %v7977_v1 }
 0x5d9   : > { %v7980_v8 = vmul.f32 0.2, %v7948_v44  ;;  %v7263_v7 = vpop.f32.mrb[192].mxu0  ;;  %v8010_v16 = vmax.f32 %v7946_v41, %v7978_v12 }
 0x5da   : > { %v8011_v62 = vmax.f32 %v7947_v48, %v7979_v59  ;;  %v7821_v14 = vmul.f32 %v12761_v47, %v7263_v7  ;;  %v7265_v63 = vpop.f32.mrb[193].mxu0 }
 0x5db   : > { %v8012_v15 = vmax.f32 %v7948_v44, %v7980_v8  ;;  %v7822_v57 = vmul.f32 %v12761_v47, %v7265_v63  ;;  %v7267_v26 = vpop.f32.mrb[194].mxu0 }
 0x5dc   : > { %v13266_v55 = vpack.c.bf16 %v8011_v62, %v8009_v23  ;;  %v7949_v31 = vadd.f32 %v12770_v28, %v7821_v14  ;;  %v7823_v9 = vmul.f32 %v12763_v29, %v7267_v26  ;;  %v7269_v25 = vpop.f32.mrb[195].mxu0 }
 0x5dd   : > { %v7950_v2 = vadd.f32 %v12770_v28, %v7822_v57  ;;  %v7824_v60 = vmul.f32 %v12763_v29, %v7269_v25  ;;  %v13272_v56 = vpack.c.bf16 %v8012_v15, %v8010_v16 }
 0x5de   : > { %v7981_v0 = vmul.f32 0.2, %v7949_v31  ;;  %v7951_v27 = vadd.f32 %v12775_v51, %v7823_v9 }
 0x5df   : > { %v7982_v45 = vmul.f32 0.2, %v7950_v2  ;;  %v7952_v47 = vadd.f32 %v12775_v51, %v7824_v60  ;;  %8645 = vmatprep.subr.bf16.mxu1 %v13272_v56 }
 0x5e0   : > { %v7983_v10 = vmul.f32 0.2, %v7951_v27  ;;  %8646 = vmatpush1.bf16.msra.mxu1 %v13266_v55  ;;  %v8013_v43 = vmax.f32 %v7949_v31, %v7981_v0 }
 0x5e1   : > { %v7984_v22 = vmul.f32 0.2, %v7952_v47  ;;  %v7273_v33 = vpop.f32.mrb[196].mxu0  ;;  %v8014_v46 = vmax.f32 %v7950_v2, %v7982_v45 }
 0x5e2   : > { %v8015_v38 = vmax.f32 %v7951_v27, %v7983_v10  ;;  %v7825_v28 = vmul.f32 %v12782_v34, %v7273_v33  ;;  %v7275_v29 = vpop.f32.mrb[197].mxu0 }
 0x5e3   : > { %v8016_v41 = vmax.f32 %v7952_v47, %v7984_v22  ;;  %v7826_v53 = vmul.f32 %v12782_v34, %v7275_v29  ;;  %v7277_v1 = vpop.f32.mrb[198].mxu0 }
 0x5e4   : > { %v13280_v48 = vpack.c.bf16 %v8015_v38, %v8013_v43  ;;  %v7953_v51 = vadd.f32 %v12793_v42, %v7825_v28  ;;  %v7827_v12 = vmul.f32 %v12786_v20, %v7277_v1  ;;  %v7279_v44 = vpop.f32.mrb[199].mxu0 }
 0x5e5   : > { %v7954_v59 = vadd.f32 %v12793_v42, %v7826_v53  ;;  %v7828_v8 = vmul.f32 %v12786_v20, %v7279_v44  ;;  %v13286_v7 = vpack.c.bf16 %v8016_v41, %v8014_v46 }
 0x5e6   : > { %v7985_v23 = vmul.f32 0.2, %v7953_v51  ;;  %v7955_v62 = vadd.f32 %v12797_v50, %v7827_v12 }
 0x5e7   : > { %v7986_v14 = vmul.f32 0.2, %v7954_v59  ;;  %v7956_v34 = vadd.f32 %v12797_v50, %v7828_v8  ;;  %8647 = vmatprep.subr.bf16.mxu1 %v13286_v7 }
 0x5e8   : > { %v7987_v63 = vmul.f32 0.2, %v7955_v62  ;;  %8648 = vmatpush1.bf16.msra.mxu1 %v13280_v48  ;;  %v8017_v57 = vmax.f32 %v7953_v51, %v7985_v23 }
 0x5e9   : > { %v7988_v16 = vmul.f32 0.2, %v7956_v34  ;;  %v7283_v15 = vpop.f32.mrb[200].mxu0  ;;  %v8018_v31 = vmax.f32 %v7954_v59, %v7986_v14 }
 0x5ea   : > { %v8019_v26 = vmax.f32 %v7955_v62, %v7987_v63  ;;  %v7829_v42 = vmul.f32 %v12807_v54, %v7283_v15  ;;  %v7285_v20 = vpop.f32.mrb[201].mxu0 }
 0x5eb   : > { %v8020_v9 = vmax.f32 %v7956_v34, %v7988_v16  ;;  %v7830_v25 = vmul.f32 %v12807_v54, %v7285_v20  ;;  %v7287_v2 = vpop.f32.mrb[202].mxu0 }
 0x5ec   : > { %v13294_v60 = vpack.c.bf16 %v8019_v26, %v8017_v57  ;;  %v7957_v50 = vadd.f32 %v12816_v17, %v7829_v42  ;;  %v7831_v0 = vmul.f32 %v12809_v58, %v7287_v2  ;;  %v7289_v27 = vpop.f32.mrb[203].mxu0 }
 0x5ed   : > { %v7958_v45 = vadd.f32 %v12816_v17, %v7830_v25  ;;  %v7832_v47 = vmul.f32 %v12809_v58, %v7289_v27  ;;  %v13300_v10 = vpack.c.bf16 %v8020_v9, %v8018_v31 }
 0x5ee   : > { %v7989_v22 = vmul.f32 0.2, %v7957_v50  ;;  %v7959_v33 = vadd.f32 %v12821_v32, %v7831_v0 }
 0x5ef   : > { %v7990_v43 = vmul.f32 0.2, %v7958_v45  ;;  %v7960_v54 = vadd.f32 %v12821_v32, %v7832_v47  ;;  %8649 = vmatprep.subr.bf16.mxu1 %v13300_v10 }
 0x5f0   : > { %v7991_v38 = vmul.f32 0.2, %v7959_v33  ;;  %8650 = vmatpush1.bf16.msra.mxu1 %v13294_v60  ;;  %v8021_v46 = vmax.f32 %v7957_v50, %v7989_v22 }
 0x5f1   : > { %v7992_v28 = vmul.f32 0.2, %v7960_v54  ;;  %v7293_v29 = vpop.f32.mrb[204].mxu0  ;;  %v8022_v53 = vmax.f32 %v7958_v45, %v7990_v43  ;;  %v14038_v45 = vld [vmem:[#allocation35_spill] sm:$0xff] }
 0x5f2   : > { %v8023_v41 = vmax.f32 %v7959_v33, %v7991_v38  ;;  %v7833_v17 = vmul.f32 %v12827_v11, %v7293_v29  ;;  %v7295_v58 = vpop.f32.mrb[205].mxu0 }
 0x5f3   : > { %v8024_v1 = vmax.f32 %v7960_v54, %v7992_v28  ;;  %v7834_v51 = vmul.f32 %v12827_v11, %v7295_v58  ;;  %v7297_v12 = vpop.f32.mrb[206].mxu0  ;;  %v14039_v28 = vld [vmem:[#allocation60_spill] sm:$0xff] }
 0x5f4   : > { %v13308_v44 = vpack.c.bf16 %v8023_v41, %v8021_v46  ;;  %v7961_v32 = vadd.f32 %v12835_v36, %v7833_v17  ;;  %v7835_v59 = vmul.f32 %v12829_v3, %v7297_v12  ;;  %v7299_v8 = vpop.f32.mrb[207].mxu0  ;;  %v14040_v12 = vld [vmem:[#allocation32_spill] sm:$0xff] }
 0x5f5   : > { %v7962_v23 = vadd.f32 %v12835_v36, %v7834_v51  ;;  %v7836_v62 = vmul.f32 %v12829_v3, %v7299_v8  ;;  %v13314_v14 = vpack.c.bf16 %v8024_v1, %v8022_v53  ;;  %v14036_v36 = vld [vmem:[#allocation50_spill] sm:$0xff] }
 0x5f6   : > { %v7993_v34 = vmul.f32 0.2, %v7961_v32  ;;  %v7963_v63 = vadd.f32 %v12838_v40, %v7835_v59 }
 0x5f7   : > { %v7994_v16 = vmul.f32 0.2, %v7962_v23  ;;  %v7964_v11 = vadd.f32 %v12838_v40, %v7836_v62  ;;  %8651 = vmatprep.subr.bf16.mxu1 %v13314_v14  ;;  %v14037_v40 = vld [vmem:[#allocation53_spill] sm:$0xff] }
 0x5f8   : > { %v7995_v15 = vmul.f32 0.2, %v7963_v63  ;;  %8652 = vmatpush1.bf16.msra.mxu1 %v13308_v44  ;;  %v8025_v42 = vmax.f32 %v7961_v32, %v7993_v34 }
 0x5f9   : > { %v7996_v57 = vmul.f32 0.2, %v7964_v11  ;;  %v7303_v26 = vpop.f32.mrb[208].mxu0  ;;  %v8026_v9 = vmax.f32 %v7962_v23, %v7994_v16  ;;  %v14041_v16 = vld [vmem:[#allocation62_spill] sm:$0xff] }
 0x5fa   : > { %v8027_v20 = vmax.f32 %v7963_v63, %v7995_v15  ;;  %v7837_v31 = vmul.f32 %v14036_v36, %v7303_v26  ;;  %v7305_v3 = vpop.f32.mrb[209].mxu0  ;;  %v14042_v15 = vld [vmem:[#allocation40_spill] sm:$0xff] }
 0x5fb   : > { %v8028_v25 = vmax.f32 %v7964_v11, %v7996_v57  ;;  %v7838_v2 = vmul.f32 %v14036_v36, %v7305_v3  ;;  %v7307_v50 = vpop.f32.mrb[210].mxu0  ;;  %v14043_v3 = vld [vmem:[#allocation66_spill] sm:$0xff] }
 0x5fc   : > { %v13322_v0 = vpack.c.bf16 %v8027_v20, %v8025_v42  ;;  %v7965_v27 = vadd.f32 %v14037_v40, %v7837_v31  ;;  %v7839_v47 = vmul.f32 %v14038_v45, %v7307_v50  ;;  %v7309_v22 = vpop.f32.mrb[211].mxu0 }
 0x5fd   : > { %v7966_v33 = vadd.f32 %v14037_v40, %v7838_v2  ;;  %v7840_v43 = vmul.f32 %v14038_v45, %v7309_v22  ;;  %v13328_v54 = vpack.c.bf16 %v8028_v25, %v8026_v9  ;;  %v14044_v22 = vld [vmem:[#allocation61_spill] sm:$0xff] }
 0x5fe   : > { %v7997_v38 = vmul.f32 0.2, %v7965_v27  ;;  %v7967_v29 = vadd.f32 %v14039_v28, %v7839_v47 }
 0x5ff   : > { %v7998_v46 = vmul.f32 0.2, %v7966_v33  ;;  %v7968_v41 = vadd.f32 %v14039_v28, %v7840_v43  ;;  %8653 = vmatprep.subr.bf16.mxu1 %v13328_v54 }
 0x600   : > { %v7999_v17 = vmul.f32 0.2, %v7967_v29  ;;  %8654 = vmatpush1.bf16.msra.mxu1 %v13322_v0  ;;  %v8029_v1 = vmax.f32 %v7965_v27, %v7997_v38 }
 0x601   : > { %v8000_v58 = vmul.f32 0.2, %v7968_v41  ;;  %v7634_v53 = vpop.f32.mrb[212].mxu0  ;;  %v8030_v8 = vmax.f32 %v7966_v33, %v7998_v46 }
 0x602   : > { %v8031_v51 = vmax.f32 %v7967_v29, %v7999_v17  ;;  %v8145_v32 = vmul.f32 %v14040_v12, %v7634_v53  ;;  %v7636_v59 = vpop.f32.mrb[213].mxu0  ;;  %v14045_v17 = vld [vmem:[#allocation70_spill] sm:$0xff]  ;;  %v14046_v53 = vld [vmem:[#allocation65_spill] sm:$0xff] }
 0x603   : > { %v8032_v23 = vmax.f32 %v7968_v41, %v8000_v58  ;;  %v8146_v62 = vmul.f32 %v14040_v12, %v7636_v59  ;;  %v7638_v34 = vpop.f32.mrb[214].mxu0 }
 0x604   : > { %v13336_v63 = vpack.c.bf16 %v8031_v51, %v8029_v1  ;;  %v8273_v11 = vadd.f32 %v14041_v16, %v8145_v32  ;;  %v8147_v57 = vmul.f32 %v14042_v15, %v7638_v34  ;;  %v7640_v26 = vpop.f32.mrb[215].mxu0 }
 0x605   : > { %v8274_v42 = vadd.f32 %v14041_v16, %v8146_v62  ;;  %v8148_v20 = vmul.f32 %v14042_v15, %v7640_v26  ;;  %v13342_v36 = vpack.c.bf16 %v8032_v23, %v8030_v8  ;;  %v14047_v23 = vld [vmem:[#allocation74_spill] sm:$0xff] }
 0x606   : > { %v8305_v31 = vmul.f32 0.2, %v8273_v11  ;;  %v8275_v9 = vadd.f32 %v14043_v3, %v8147_v57 }
 0x607   : > { %v8306_v25 = vmul.f32 0.2, %v8274_v42  ;;  %v8276_v2 = vadd.f32 %v14043_v3, %v8148_v20  ;;  %8655 = vmatprep.subr.bf16.mxu1 %v13342_v36  ;;  %v14048_v20 = vld [vmem:[#allocation69_spill] sm:$0xff] }
 0x608   : > { %v8307_v50 = vmul.f32 0.2, %v8275_v9  ;;  %8656 = vmatpush1.bf16.msra.mxu1 %v13336_v63  ;;  %v8337_v45 = vmax.f32 %v8273_v11, %v8305_v31 }
 0x609   : > { %v8308_v40 = vmul.f32 0.2, %v8276_v2  ;;  %v7644_v27 = vpop.f32.mrb[216].mxu0  ;;  %v8338_v38 = vmax.f32 %v8274_v42, %v8306_v25 }
 0x60a   : > { %v8339_v47 = vmax.f32 %v8275_v9, %v8307_v50  ;;  %v8149_v33 = vmul.f32 %v14044_v22, %v7644_v27  ;;  %v7646_v43 = vpop.f32.mrb[217].mxu0  ;;  %v14049_v27 = vld [vmem:[#allocation31_spill] sm:$0xff] }
 0x60b   : > { %v8340_v28 = vmax.f32 %v8276_v2, %v8308_v40  ;;  %v8150_v29 = vmul.f32 %v14044_v22, %v7646_v43  ;;  %v7648_v46 = vpop.f32.mrb[218].mxu0 }
 0x60c   : > { %v13350_v41 = vpack.c.bf16 %v8339_v47, %v8337_v45  ;;  %v8277_v58 = vadd.f32 %v14045_v17, %v8149_v33  ;;  %v8151_v1 = vmul.f32 %v14046_v53, %v7648_v46  ;;  %v7650_v51 = vpop.f32.mrb[219].mxu0  ;;  %v14050_v47 = vld [vmem:[#allocation73_spill] sm:$0xff]  ;;  %v14051_v46 = vld [vmem:[#allocation47_spill] sm:$0xff] }
 0x60d   : > { %v8278_v12 = vadd.f32 %v14045_v17, %v8150_v29  ;;  %v8152_v32 = vmul.f32 %v14046_v53, %v7650_v51  ;;  %v13356_v59 = vpack.c.bf16 %v8340_v28, %v8338_v38 }
 0x60e   : > { %v8309_v8 = vmul.f32 0.2, %v8277_v58  ;;  %v8279_v62 = vadd.f32 %v14047_v23, %v8151_v1 }
 0x60f   : > { %v8310_v34 = vmul.f32 0.2, %v8278_v12  ;;  %v8280_v16 = vadd.f32 %v14047_v23, %v8152_v32  ;;  %8657 = vmatprep.subr.bf16.mxu1 %v13356_v59  ;;  %v14052_v23 = vld [vmem:[#allocation55_spill] sm:$0xff] }
 0x610   : > { %v8311_v11 = vmul.f32 0.2, %v8279_v62  ;;  %8658 = vmatpush1.bf16.msra.mxu1 %v13350_v41  ;;  %v8341_v26 = vmax.f32 %v8277_v58, %v8309_v8 }
 0x611   : > { %v8312_v15 = vmul.f32 0.2, %v8280_v16  ;;  %v7654_v57 = vpop.f32.mrb[220].mxu0  ;;  %v8342_v9 = vmax.f32 %v8278_v12, %v8310_v34 }
 0x612   : > { %v8343_v42 = vmax.f32 %v8279_v62, %v8311_v11  ;;  %v8153_v31 = vmul.f32 %v14048_v20, %v7654_v57  ;;  %v7656_v3 = vpop.f32.mrb[221].mxu0 }
 0x613   : > { %v8344_v25 = vmax.f32 %v8280_v16, %v8312_v15  ;;  %v8154_v2 = vmul.f32 %v14048_v20, %v7656_v3  ;;  %v7658_v50 = vpop.f32.mrb[222].mxu0 }
 0x614   : > { %v13364_v40 = vpack.c.bf16 %v8343_v42, %v8341_v26  ;;  %v8281_v45 = vadd.f32 %v14049_v27, %v8153_v31  ;;  %v8155_v22 = vmul.f32 %v14050_v47, %v7658_v50  ;;  %v7660_v33 = vpop.f32.mrb[223].mxu0  ;;  %v14053_v42 = vld [vmem:[#allocation39_spill] sm:$0xff]  ;;  %v14054_v31 = vld [vmem:[#allocation54_spill] sm:$0xff] }
 0x615   : > { %v8282_v43 = vadd.f32 %v14049_v27, %v8154_v2  ;;  %v8156_v38 = vmul.f32 %v14050_v47, %v7660_v33  ;;  %v13370_v28 = vpack.c.bf16 %v8344_v25, %v8342_v9 }
 0x616   : > { %v8313_v29 = vmul.f32 0.2, %v8281_v45  ;;  %v8283_v17 = vadd.f32 %v14051_v46, %v8155_v22 }
 0x617   : > { %v8314_v58 = vmul.f32 0.2, %v8282_v43  ;;  %v8284_v53 = vadd.f32 %v14051_v46, %v8156_v38  ;;  %8659 = vmatprep.subr.bf16.mxu1 %v13370_v28 }
 0x618   : > { %v8315_v1 = vmul.f32 0.2, %v8283_v17  ;;  %8660 = vmatpush1.bf16.msra.mxu1 %v13364_v40  ;;  %v8345_v32 = vmax.f32 %v8281_v45, %v8313_v29  ;;  %v14055_v45 = vld [vmem:[#allocation59_spill] sm:$0xff] }
 0x619   : > { %v8316_v51 = vmul.f32 0.2, %v8284_v53  ;;  %v7664_v12 = vpop.f32.mrb[224].mxu0  ;;  %v8346_v16 = vmax.f32 %v8282_v43, %v8314_v58  ;;  %v14056_v58 = vld [vmem:[#allocation46_spill] sm:$0xff] }
 0x61a   : > { %v8347_v8 = vmax.f32 %v8283_v17, %v8315_v1  ;;  %v8157_v62 = vmul.f32 %v14052_v23, %v7664_v12  ;;  %v7666_v34 = vpop.f32.mrb[225].mxu0 }
 0x61b   : > { %v8348_v11 = vmax.f32 %v8284_v53, %v8316_v51  ;;  %v8158_v15 = vmul.f32 %v14052_v23, %v7666_v34  ;;  %v7668_v57 = vpop.f32.mrb[226].mxu0 }
 0x61c   : > { %v13378_v26 = vpack.c.bf16 %v8347_v8, %v8345_v32  ;;  %v8285_v20 = vadd.f32 %v14053_v42, %v8157_v62  ;;  %v8159_v3 = vmul.f32 %v14054_v31, %v7668_v57  ;;  %v7670_v9 = vpop.f32.mrb[227].mxu0  ;;  %v14057_v62 = vld [vmem:[#allocation37_spill] sm:$0xff] }
 0x61d   : > { %v8286_v25 = vadd.f32 %v14053_v42, %v8158_v15  ;;  %v8160_v2 = vmul.f32 %v14054_v31, %v7670_v9  ;;  %v13384_v50 = vpack.c.bf16 %v8348_v11, %v8346_v16  ;;  %v14058_v16 = vld [vmem:[#allocation38_spill] sm:$0xff] }
 0x61e   : > { %v8317_v27 = vmul.f32 0.2, %v8285_v20  ;;  %v8287_v47 = vadd.f32 %v14055_v45, %v8159_v3  ;;  %v14059_v3 = vld [vmem:[#allocation45_spill] sm:$0xff] }
 0x61f   : > { %v8318_v22 = vmul.f32 0.2, %v8286_v25  ;;  %v8288_v33 = vadd.f32 %v14055_v45, %v8160_v2  ;;  %8661 = vmatprep.subr.bf16.mxu1 %v13384_v50 }
 0x620   : > { %v8319_v43 = vmul.f32 0.2, %v8287_v47  ;;  %8662 = vmatpush1.bf16.msra.mxu1 %v13378_v26  ;;  %v8349_v46 = vmax.f32 %v8285_v20, %v8317_v27 }
 0x621   : > { %v8320_v38 = vmul.f32 0.2, %v8288_v33  ;;  %v7674_v29 = vpop.f32.mrb[228].mxu0  ;;  %v8350_v51 = vmax.f32 %v8286_v25, %v8318_v22 }
 0x622   : > { %v8351_v17 = vmax.f32 %v8287_v47, %v8319_v43  ;;  %v8161_v53 = vmul.f32 %v14056_v58, %v7674_v29  ;;  %v7676_v1 = vpop.f32.mrb[229].mxu0  ;;  %v14060_v43 = vld [vmem:[#allocation58_spill] sm:$0xff] }
 0x623   : > { %v8352_v12 = vmax.f32 %v8288_v33, %v8320_v38  ;;  %v8162_v32 = vmul.f32 %v14056_v58, %v7676_v1  ;;  %v7678_v8 = vpop.f32.mrb[230].mxu0 }
 0x624   : > { %v13392_v23 = vpack.c.bf16 %v8351_v17, %v8349_v46  ;;  %v8289_v34 = vadd.f32 %v14057_v62, %v8161_v53  ;;  %v8163_v11 = vmul.f32 %v14058_v16, %v7678_v8  ;;  %v7680_v15 = vpop.f32.mrb[231].mxu0 }
 0x625   : > { %v8290_v57 = vadd.f32 %v14057_v62, %v8162_v32  ;;  %v8164_v42 = vmul.f32 %v14058_v16, %v7680_v15  ;;  %v13398_v20 = vpack.c.bf16 %v8352_v12, %v8350_v51  ;;  %v14062_v51 = vld [vmem:[#allocation43_spill] sm:$0xff]  ;;  %v14063_v32 = vld [vmem:[#allocation36_spill] sm:$0xff] }
 0x626   : > { %v8321_v31 = vmul.f32 0.2, %v8289_v34  ;;  %v8291_v9 = vadd.f32 %v14059_v3, %v8163_v11 }
 0x627   : > { %v8322_v25 = vmul.f32 0.2, %v8290_v57  ;;  %v8292_v2 = vadd.f32 %v14059_v3, %v8164_v42  ;;  %8663 = vmatprep.subr.bf16.mxu1 %v13398_v20  ;;  %v14064_v42 = vld [vmem:[#allocation51_spill] sm:$0xff] }
 0x628   : > { %v8323_v27 = vmul.f32 0.2, %v8291_v9  ;;  %8664 = vmatpush1.bf16.msra.mxu1 %v13392_v23  ;;  %v8353_v22 = vmax.f32 %v8289_v34, %v8321_v31 }
 0x629   : > { %v8324_v45 = vmul.f32 0.2, %v8292_v2  ;;  %v7684_v47 = vpop.f32.mrb[232].mxu0  ;;  %v8354_v46 = vmax.f32 %v8290_v57, %v8322_v25 }
 0x62a   : > { %v8355_v33 = vmax.f32 %v8291_v9, %v8323_v27  ;;  %v8165_v38 = vmul.f32 %v14060_v43, %v7684_v47  ;;  %v7686_v29 = vpop.f32.mrb[233].mxu0  ;;  %v14065_v47 = vld [vmem:[#allocation44_spill] sm:$0xff] }
 0x62b   : > { %v8356_v17 = vmax.f32 %v8292_v2, %v8324_v45  ;;  %v8166_v58 = vmul.f32 %v14060_v43, %v7686_v29  ;;  %v7688_v53 = vpop.f32.mrb[234].mxu0 }
 0x62c   : > { %v13406_v1 = vpack.c.bf16 %v8355_v33, %v8353_v22  ;;  %v8293_v12 = vadd.f32 %v14062_v51, %v8165_v38  ;;  %v8167_v8 = vmul.f32 %v14063_v32, %v7688_v53  ;;  %v7690_v62 = vpop.f32.mrb[235].mxu0 }
 0x62d   : > { %v8294_v16 = vadd.f32 %v14062_v51, %v8166_v58  ;;  %v8168_v34 = vmul.f32 %v14063_v32, %v7690_v62  ;;  %v13412_v11 = vpack.c.bf16 %v8356_v17, %v8354_v46  ;;  %v14067_v58 = vld [vmem:[#allocation48_spill] sm:$0xff]  ;;  %v14068_v51 = vld [vmem:[#allocation42_spill] sm:$0xff] }
 0x62e   : > { %14061 = vst [vmem:[#allocation83_spill] sm:$0xff] %v13406_v1  ;;  %v8325_v15 = vmul.f32 0.2, %v8293_v12  ;;  %v8295_v57 = vadd.f32 %v14064_v42, %v8167_v8 }
 0x62f   : > { %v8326_v31 = vmul.f32 0.2, %v8294_v16  ;;  %v8296_v3 = vadd.f32 %v14064_v42, %v8168_v34  ;;  %8665 = vmatprep.subr.bf16.mxu1 %v13412_v11  ;;  %v14070_v42 = vld [vmem:[#allocation33_spill] sm:$0xff] }
 0x630   : > { %v8327_v9 = vmul.f32 0.2, %v8295_v57  ;;  %8666 = vmatpush1.bf16.msra.mxu1 %v13406_v1  ;;  %v8357_v27 = vmax.f32 %v8293_v12, %v8325_v15 }
 0x631   : > { %v8328_v25 = vmul.f32 0.2, %v8296_v3  ;;  %v7694_v2 = vpop.f32.mrb[236].mxu0  ;;  %v8358_v43 = vmax.f32 %v8294_v16, %v8326_v31 }
 0x632   : > { %v8359_v45 = vmax.f32 %v8295_v57, %v8327_v9  ;;  %v8169_v22 = vmul.f32 %v14065_v47, %v7694_v2  ;;  %v7696_v33 = vpop.f32.mrb[237].mxu0 }
 0x633   : > { %v8360_v38 = vmax.f32 %v8296_v3, %v8328_v25  ;;  %v8170_v29 = vmul.f32 %v14065_v47, %v7696_v33  ;;  %v7698_v46 = vpop.f32.mrb[238].mxu0 }
 0x634   : > { %v13420_v17 = vpack.c.bf16 %v8359_v45, %v8357_v27  ;;  %v8297_v53 = vadd.f32 %v14067_v58, %v8169_v22  ;;  %v8171_v32 = vmul.f32 %v14068_v51, %v7698_v46  ;;  %v7700_v8 = vpop.f32.mrb[239].mxu0  ;;  %v14071_v45 = vld [vmem:[#allocation49_spill] sm:$0xff] }
 0x635   : > { %v8298_v62 = vadd.f32 %v14067_v58, %v8170_v29  ;;  %v8172_v12 = vmul.f32 %v14068_v51, %v7700_v8  ;;  %v13426_v34 = vpack.c.bf16 %v8360_v38, %v8358_v43  ;;  %v14073_v58 = vld [vmem:[#allocation41_spill] sm:$0xff] }
 0x636   : > { %14066 = vst [vmem:[#allocation84_spill] sm:$0xff] %v13420_v17  ;;  %v8329_v15 = vmul.f32 0.2, %v8297_v53  ;;  %v8299_v16 = vadd.f32 %v14070_v42, %v8171_v32  ;;  %v14074_v32 = vld [vmem:[#allocation34_spill] sm:$0xff] }
 0x637   : > { %14069 = vst [vmem:[#allocation85_spill] sm:$0xff] %v13426_v34  ;;  %v8330_v57 = vmul.f32 0.2, %v8298_v62  ;;  %v8300_v31 = vadd.f32 %v14070_v42, %v8172_v12  ;;  %8667 = vmatprep.subr.bf16.mxu1 %v13426_v34 }
 0x638   : > { %v8331_v3 = vmul.f32 0.2, %v8299_v16  ;;  %8668 = vmatpush1.bf16.msra.mxu1 %v13420_v17  ;;  %v8361_v2 = vmax.f32 %v8297_v53, %v8329_v15 }
 0x639   : > { %v8332_v9 = vmul.f32 0.2, %v8300_v31  ;;  %v7704_v25 = vpop.f32.mrb[240].mxu0  ;;  %v8362_v33 = vmax.f32 %v8298_v62, %v8330_v57  ;;  %v14076_v62 = vld [vmem:[#allocation56_spill] sm:$0xff] }
 0x63a   : > { %v8363_v27 = vmax.f32 %v8299_v16, %v8331_v3  ;;  %v8173_v47 = vmul.f32 %v14071_v45, %v7704_v25  ;;  %v7706_v22 = vpop.f32.mrb[241].mxu0 }
 0x63b   : > { %v8364_v43 = vmax.f32 %v8300_v31, %v8332_v9  ;;  %v8174_v38 = vmul.f32 %v14071_v45, %v7706_v22  ;;  %v7708_v29 = vpop.f32.mrb[242].mxu0 }
 0x63c   : > { %v13434_v46 = vpack.c.bf16 %v8363_v27, %v8361_v2  ;;  %v8301_v51 = vadd.f32 %v14073_v58, %v8173_v47  ;;  %v8175_v8 = vmul.f32 %v14074_v32, %v7708_v29  ;;  %v7710_v12 = vpop.f32.mrb[243].mxu0  ;;  %v10862_v29 = vld [vmem:[%s14035_s1 + $0x18] ss:$12 sps:$4 sm:$0xff]  }
 0x63d   : > { %v8302_v42 = vadd.f32 %v14073_v58, %v8174_v38  ;;  %v8176_v53 = vmul.f32 %v14074_v32, %v7710_v12  ;;  %v13440_v15 = vpack.c.bf16 %v8364_v43, %v8362_v33  ;;  %v10857_v43 = vld [vmem:[%s14035_s1] ss:$12 sps:$4 sm:$0xff]   ;;  %v10860_v38 = vld [vmem:[%s14035_s1 + $0x1c] ss:$12 sps:$4 sm:$0xff]  }
 0x63e   : > { %14072 = vst [vmem:[#allocation86_spill] sm:$0xff] %v13434_v46  ;;  %v8333_v16 = vmul.f32 0.2, %v8301_v51  ;;  %v8303_v57 = vadd.f32 %v14076_v62, %v8175_v8  ;;  %v10863_v58 = vld [vmem:[%s14035_s1 + $0x34] ss:$12 sps:$4 sm:$0xff]   ;;  %v14080_v32 = vld [vmem:[#allocation76_spill] sm:$0xff] }
 0x63f   : > { %14075 = vst [vmem:[#allocation87_spill] sm:$0xff] %v13440_v15  ;;  %v8334_v31 = vmul.f32 0.2, %v8302_v42  ;;  %v8304_v3 = vadd.f32 %v14076_v62, %v8176_v53  ;;  %8669 = vmatprep.subr.bf16.mxu1 %v13440_v15  ;;  %v10865_v8 = vld [vmem:[%s14035_s1 + $0x30] ss:$12 sps:$4 sm:$0xff]   ;;  %v14081_v12 = vld [vmem:[#allocation72_spill] sm:$0xff] }
 0x640   : > { %v8335_v9 = vmul.f32 0.2, %v8303_v57  ;;  %8670 = vmatpush1.bf16.msra.mxu1 %v13434_v46  ;;  %v8365_v2 = vmax.f32 %v8301_v51, %v8333_v16  ;;  %v14079_v51 = vld [vmem:[#allocation63_spill] sm:$0xff]  ;;  %v10868_v16 = vld [vmem:[%s14035_s1 + $0x48] ss:$12 sps:$4 sm:$0xff]  }
 0x641   : > { %v8336_v25 = vmul.f32 0.2, %v8304_v3  ;;  %v8366_v45 = vmax.f32 %v8302_v42, %v8334_v31  ;;  %v10866_v42 = vld [vmem:[%s14035_s1 + $0x4c] ss:$12 sps:$4 sm:$0xff]   ;;  %v14082_v53 = vld [vmem:[#allocation71_spill] sm:$0xff]  ;;  %v14083_v62 = vld [vmem:[#allocation77_spill] sm:$0xff] }
 0x642   : > { %v8367_v27 = vmax.f32 %v8303_v57, %v8335_v9  ;;  %v10869_v57 = vld [vmem:[%s14035_s1 + $0x64] ss:$12 sps:$4 sm:$0xff]   ;;  %v10871_v31 = vld [vmem:[%s14035_s1 + $0x60] ss:$12 sps:$4 sm:$0xff]  }
 0x643   : > { %v8368_v47 = vmax.f32 %v8304_v3, %v8336_v25  ;;  %v10874_v3 = vld [vmem:[%s14035_s1 + $0x7c] ss:$12 sps:$4 sm:$0xff]   ;;  %v10872_v9 = vld [vmem:[%s14035_s1 + $0x78] ss:$12 sps:$4 sm:$0xff]   ;;  %v10877_v25 = vld [vmem:[%s14035_s1 + $0x94] ss:$12 sps:$4 sm:$0xff]  }
 0x644   : > { %v13446_v22 = vpack.c.bf16 %v8367_v27, %v8365_v2  ;;  %v10875_v2 = vld [vmem:[%s14035_s1 + $0x90] ss:$12 sps:$4 sm:$0xff]   ;;  %v10880_v27 = vld [vmem:[%s14035_s1 + $0xac] ss:$12 sps:$4 sm:$0xff]  }
 0x645   : > { %v13448_v33 = vpack.c.bf16 %v8368_v47, %v8366_v45  ;;  %v10878_v45 = vld [vmem:[%s14035_s1 + $0xa8] ss:$12 sps:$4 sm:$0xff]   ;;  %v14084_v47 = vmov 0  }
 0x646   : > { %14077 = vst [vmem:[#allocation88_spill] sm:$0xff] %v13446_v22 }
 0x647   : > { %14078 = vst [vmem:[#allocation89_spill] sm:$0xff] %v13448_v33  ;;  %8671 = vmatprep.subr.bf16.mxu1 %v13448_v33 }
 0x648   : > { %8672 = vmatpush1.bf16.msra.mxu1 %v13446_v22 }
 0x649   : > { %8754 = vmatprep.subr.bf16.mxu1 %v13105_v13 }
 0x64b   : > { %8674 = vmatmul.mubr.bf16.vlgmr.msra.gmra.mrb[236].mxu1 %v10857_v43  ;;  %v10881_v43 = vld [vmem:[%s14035_s1 + $0x8] ss:$12 sps:$4 sm:$0xff]  }
 0x64c   : > { %8755 = vmatpush1.bf16.msra.mxu1 %v13101_v19  ;;  %8683 = vmatprep.mubr.bf16.mxu1 %v10860_v38  ;;  %v10882_v38 = vld [vmem:[%s14035_s1 + $0x20] ss:$12 sps:$4 sm:$0xff]  }
 0x64d   : > { %8756 = vmatprep.subr.bf16.mxu1 %v13121_v35 }
 0x650   : > { %8757 = vmatpush1.bf16.msra.mxu1 %v13115_v18 }
 0x651   : > { %8758 = vmatprep.subr.bf16.mxu1 %v13135_v30 }
 0x653   : > { %8684 = vmatmul.mubr.bf16.gmra.mrb[240].mxu1 %v10862_v29  ;;  %v10883_v29 = vld [vmem:[%s14035_s1 + $0x38] ss:$12 sps:$4 sm:$0xff]  }
 0x654   : > { %8759 = vmatpush1.bf16.msra.mxu1 %v14079_v51  ;;  %8693 = vmatprep.mubr.bf16.mxu1 %v10863_v58  ;;  %v10884_v58 = vld [vmem:[%s14035_s1 + $0x50] ss:$12 sps:$4 sm:$0xff]  }
 0x655   : > { %8760 = vmatprep.subr.bf16.mxu1 %v14080_v32 }
 0x658   : > { %8761 = vmatpush1.bf16.msra.mxu1 %v14081_v12 }
 0x659   : > { %8762 = vmatprep.subr.bf16.mxu1 %v13155_v49 }
 0x65b   : > { %8694 = vmatmul.mubr.bf16.gmra.mrb[244].mxu1 %v10865_v8  ;;  %v10885_v8 = vld [vmem:[%s14035_s1 + $0x68] ss:$12 sps:$4 sm:$0xff]  }
 0x65c   : > { %8763 = vmatpush1.bf16.msra.mxu1 %v14082_v53  ;;  %8703 = vmatprep.mubr.bf16.mxu1 %v10866_v42  ;;  %v10886_v42 = vld [vmem:[%s14035_s1 + $0x80] ss:$12 sps:$4 sm:$0xff]  }
 0x65d   : > { %8764 = vmatprep.subr.bf16.mxu1 %v13165_v21 }
 0x660   : > { %8765 = vmatpush1.bf16.msra.mxu1 %v14083_v62 }
 0x661   : > { %8766 = vmatprep.subr.bf16.mxu1 %v13175_v5 }
 0x663   : > { %8704 = vmatmul.mubr.bf16.gmra.mrb[248].mxu1 %v10868_v16  ;;  %v10887_v16 = vld [vmem:[%s14035_s1 + $0x98] ss:$12 sps:$4 sm:$0xff]  }
 0x664   : > { %8767 = vmatpush1.bf16.msra.mxu1 %v13172_v24  ;;  %8713 = vmatprep.mubr.bf16.mxu1 %v10869_v57  ;;  %v10888_v57 = vld [vmem:[%s14035_s1 + $0xb0] ss:$12 sps:$4 sm:$0xff]   ;;  %s1338_s1 = scalar_lea.vmem %s11156_s12, %s11177_s0 }
 0x665   : > { %8768 = vmatprep.subr.bf16.mxu1 %v13185_v6 }
 0x668   : > { %8769 = vmatpush1.bf16.msra.mxu1 %v13182_v37 }
 0x66b   : > { %8714 = vmatmul.mubr.bf16.gmra.mrb[252].mxu1 %v10871_v31  ;;  %v8886_v31 = vpop.permute.xlu0 %8885 }
 0x66c   : > { %8723 = vmatprep.mubr.bf16.mxu1 %v10874_v3  ;;  %v8891_v3 = vpop.permute.xlu1 %8890 }
 0x673   : > { %8724 = vmatmul.mubr.bf16.gmra.mrb[0].mxu1 %v10872_v9  ;;  %v9014_v9 = vpop.permute.xlu0 %9013 }
 0x674   : > { %8733 = vmatprep.mubr.bf16.mxu1 %v10877_v25  ;;  %v9019_v25 = vpop.permute.xlu1 %9018 }
 0x67b   : > { %8734 = vmatmul.mubr.bf16.gmra.mrb[4].mxu1 %v10875_v2  ;;  %v13500_v2 = vld [vmem:[%s11146_s20] sm:$0xff] }
 0x67c   : > { %8743 = vmatprep.mubr.bf16.mxu1 %v10880_v27  ;;  %v9971_v27 = vcombine.high %v13500_v2, %v13500_v2 }
 0x683   : > { %8744 = vmatmul.mubr.bf16.gmra.mrb[8].mxu1 %v10878_v45  ;;  %v8896_v45 = vpop.permute.xlu0 %8895 }
 0x684   : > { %8786 = vmatprep.mubr.bf16.mxu1 %v14084_v47 }
 0x68b   : > { %8787 = vmatmul.mubr.bf16.vlgmr.msra.gmra.mrb[236].mxu1 %v10881_v43  ;;  %v8901_v43 = vpop.permute.xlu1 %8900 }
 0x68c   : > { %8796 = vmatprep.mubr.bf16.mxu1 %v14084_v47 }
 0x693   : > { %8797 = vmatmul.mubr.bf16.gmra.mrb[240].mxu1 %v10882_v38  ;;  %v9024_v38 = vpop.permute.xlu0 %9023 }
 0x694   : > { %8806 = vmatprep.mubr.bf16.mxu1 %v14084_v47 }
 0x69b   : > { %8807 = vmatmul.mubr.bf16.gmra.mrb[244].mxu1 %v10883_v29  ;;  %v9029_v29 = vpop.permute.xlu1 %9028 }
 0x69c   : > { %8816 = vmatprep.mubr.bf16.mxu1 %v14084_v47 }
 0x6a3   : > { %8817 = vmatmul.mubr.bf16.gmra.mrb[248].mxu1 %v10884_v58  ;;  %v8906_v58 = vpop.permute.xlu0 %8905 }
 0x6a4   : > { %8826 = vmatprep.mubr.bf16.mxu1 %v14084_v47 }
 0x6ab   : > { %8827 = vmatmul.mubr.bf16.gmra.mrb[252].mxu1 %v10885_v8  ;;  %v13504_v8 = vpop.permute.xlu1 %8910 }
 0x6ac   : > { %8836 = vmatprep.mubr.bf16.mxu1 %v14084_v47 }
 0x6b3   : > { %8837 = vmatmul.mubr.bf16.gmra.mrb[0].mxu1 %v10886_v42  ;;  %v13506_v42 = vpop.permute.xlu1 %9038 }
 0x6b4   : > { %8846 = vmatprep.mubr.bf16.mxu1 %v14084_v47 }
 0x6b7   : > { %v13510_v51 = vpop.permute.xlu1 %8920 }
 0x6bb   : > { %8847 = vmatmul.mubr.bf16.gmra.mrb[4].mxu1 %v10887_v16  ;;  %v9049_v15 = vpop.permute.xlu1 %9048 }
 0x6bc   : > { %8856 = vmatprep.mubr.bf16.mxu1 %v14084_v47  ;;  %v9034_v47 = vpop.permute.xlu0 %9033 }
 0x6c0   : > { %v13508_v53 = vpop.permute.xlu0 %8915 }
 0x6c3   : > { %8857 = vmatmul.mubr.bf16.gmra.mrb[8].mxu1 %v10888_v57 }
 0x6c4   : > { %9337 = vmatprep.mubr.bf16.mxu1 %v9971_v27 }
 0x75e   : > { %v8788_v16 = vpop.f32.mrb[236].mxu1 }
 0x75f   : > { %v8963_v57 = vmul.f32 %v8886_v31, %v8788_v16  ;;  %v8790_v37 = vpop.f32.mrb[237].mxu1 }
 0x760   : > { %v8964_v6 = vmul.f32 %v8886_v31, %v8790_v37  ;;  %v8792_v24 = vpop.f32.mrb[238].mxu1 }
 0x761   : > { %v9091_v5 = vadd.f32 %v9014_v9, %v8963_v57  ;;  %v8965_v62 = vmul.f32 %v8891_v3, %v8792_v24  ;;  %v8794_v21 = vpop.f32.mrb[239].mxu1  ;;  %v13512_v57 = vpop.permute.xlu0 %9043 }
 0x762   : > { %v9092_v27 = vadd.f32 %v9014_v9, %v8964_v6  ;;  %v8966_v49 = vmul.f32 %v8891_v3, %v8794_v21 }
 0x763   : > { %v9123_v12 = vmul.f32 0.2, %v9091_v5  ;;  %v9093_v32 = vadd.f32 %v9019_v25, %v8965_v62 }
 0x764   : > { %v9124_v30 = vmul.f32 0.2, %v9092_v27  ;;  %v9094_v18 = vadd.f32 %v9019_v25, %v8966_v49 }
 0x765   : > { %v9125_v35 = vmul.f32 0.2, %v9093_v32  ;;  %v9155_v16 = vmax.f32 %v9091_v5, %v9123_v12 }
 0x766   : > { %v9126_v19 = vmul.f32 0.2, %v9094_v18  ;;  %v8798_v13 = vpop.f32.mrb[240].mxu1  ;;  %v9156_v24 = vmax.f32 %v9092_v27, %v9124_v30  ;;  %v13516_v27 = vpop.permute.xlu1 %8930 }
 0x767   : > { %v9157_v22 = vmax.f32 %v9093_v32, %v9125_v35  ;;  %v8967_v37 = vmul.f32 %v8896_v45, %v8798_v13  ;;  %v8800_v31 = vpop.f32.mrb[241].mxu1  ;;  %v13514_v32 = vpop.permute.xlu0 %8925 }
 0x768   : > { %v9158_v33 = vmax.f32 %v9094_v18, %v9126_v19  ;;  %v8968_v46 = vmul.f32 %v8896_v45, %v8800_v31  ;;  %v8802_v6 = vpop.f32.mrb[242].mxu1 }
 0x769   : > { %v9187_v21 = vpack.c.bf16 %v9157_v22, %v9155_v16  ;;  %v9095_v3 = vadd.f32 %v9024_v38, %v8967_v37  ;;  %v8969_v62 = vmul.f32 %v8901_v43, %v8802_v6  ;;  %v8804_v9 = vpop.f32.mrb[243].mxu1 }
 0x76a   : > { %v9096_v17 = vadd.f32 %v9024_v38, %v8968_v46  ;;  %v8970_v49 = vmul.f32 %v8901_v43, %v8804_v9  ;;  %v9188_v25 = vpack.c.bf16 %v9158_v33, %v9156_v24 }
 0x76b   : > { %v9127_v34 = vmul.f32 0.2, %v9095_v3  ;;  %v9097_v1 = vadd.f32 %v9029_v29, %v8969_v62 }
 0x76c   : > { %v9128_v5 = vmul.f32 0.2, %v9096_v17  ;;  %v9098_v35 = vadd.f32 %v9029_v29, %v8970_v49  ;;  %9305 = vmatprep.subr.bf16.mxu1 %v9188_v25 }
 0x76d   : > { %v9129_v13 = vmul.f32 0.2, %v9097_v1  ;;  %9306 = vmatpush1.bf16.msra.mxu1 %v9187_v21  ;;  %v9159_v30 = vmax.f32 %v9095_v3, %v9127_v34  ;;  %v9054_v34 = vpop.permute.xlu0 %9053 }
 0x76e   : > { %v9130_v19 = vmul.f32 0.2, %v9098_v35  ;;  %v8808_v18 = vpop.f32.mrb[244].mxu1  ;;  %v9160_v46 = vmax.f32 %v9096_v17, %v9128_v5 }
 0x76f   : > { %v9161_v22 = vmax.f32 %v9097_v1, %v9129_v13  ;;  %v8971_v12 = vmul.f32 %v8906_v58, %v8808_v18  ;;  %v8810_v45 = vpop.f32.mrb[245].mxu1 }
 0x770   : > { %v9162_v43 = vmax.f32 %v9098_v35, %v9130_v19  ;;  %v8972_v33 = vmul.f32 %v8906_v58, %v8810_v45  ;;  %v8812_v38 = vpop.f32.mrb[246].mxu1  ;;  %v9059_v58 = vpop.permute.xlu1 %9058 }
 0x771   : > { %v9189_v16 = vpack.c.bf16 %v9161_v22, %v9159_v30  ;;  %v9099_v37 = vadd.f32 %v9034_v47, %v8971_v12  ;;  %v8973_v29 = vmul.f32 %v13504_v8, %v8812_v38  ;;  %v8814_v31 = vpop.f32.mrb[247].mxu1 }
 0x772   : > { %v9100_v24 = vadd.f32 %v9034_v47, %v8972_v33  ;;  %v8974_v6 = vmul.f32 %v13504_v8, %v8814_v31  ;;  %v9190_v21 = vpack.c.bf16 %v9162_v43, %v9160_v46  ;;  %v8936_v46 = vpop.permute.xlu0 %8935 }
 0x773   : > { %v9131_v62 = vmul.f32 0.2, %v9099_v37  ;;  %v9101_v1 = vadd.f32 %v13506_v42, %v8973_v29 }
 0x774   : > { %v9132_v3 = vmul.f32 0.2, %v9100_v24  ;;  %v9102_v9 = vadd.f32 %v13506_v42, %v8974_v6  ;;  %9307 = vmatprep.subr.bf16.mxu1 %v9190_v21  ;;  %v8941_v29 = vpop.permute.xlu1 %8940 }
 0x775   : > { %v9133_v17 = vmul.f32 0.2, %v9101_v1  ;;  %9308 = vmatpush1.bf16.msra.mxu1 %v9189_v16  ;;  %v9163_v5 = vmax.f32 %v9099_v37, %v9131_v62 }
 0x776   : > { %v9134_v49 = vmul.f32 0.2, %v9102_v9  ;;  %v8818_v25 = vpop.f32.mrb[248].mxu1  ;;  %v9164_v8 = vmax.f32 %v9100_v24, %v9132_v3 }
 0x777   : > { %v9165_v35 = vmax.f32 %v9101_v1, %v9133_v17  ;;  %v8975_v47 = vmul.f32 %v13508_v53, %v8818_v25  ;;  %v8820_v13 = vpop.f32.mrb[249].mxu1  ;;  %v9064_v17 = vpop.permute.xlu0 %9063 }
 0x778   : > { %v9166_v19 = vmax.f32 %v9102_v9, %v9134_v49  ;;  %v8976_v18 = vmul.f32 %v13508_v53, %v8820_v13  ;;  %v8822_v30 = vpop.f32.mrb[250].mxu1  ;;  %v9069_v13 = vpop.permute.xlu1 %9068 }
 0x779   : > { %v9191_v22 = vpack.c.bf16 %v9165_v35, %v9163_v5  ;;  %v9103_v12 = vadd.f32 %v13512_v57, %v8975_v47  ;;  %v8977_v42 = vmul.f32 %v13510_v51, %v8822_v30  ;;  %v8824_v45 = vpop.f32.mrb[251].mxu1 }
 0x77a   : > { %v9104_v43 = vadd.f32 %v13512_v57, %v8976_v18  ;;  %v8978_v33 = vmul.f32 %v13510_v51, %v8824_v45  ;;  %v9192_v38 = vpack.c.bf16 %v9166_v19, %v9164_v8 }
 0x77b   : > { %v9135_v16 = vmul.f32 0.2, %v9103_v12  ;;  %v9105_v37 = vadd.f32 %v9049_v15, %v8977_v42 }
 0x77c   : > { %v9136_v31 = vmul.f32 0.2, %v9104_v43  ;;  %v9106_v24 = vadd.f32 %v9049_v15, %v8978_v33  ;;  %9309 = vmatprep.subr.bf16.mxu1 %v9192_v38 }
 0x77d   : > { %v9137_v53 = vmul.f32 0.2, %v9105_v37  ;;  %9310 = vmatpush1.bf16.msra.mxu1 %v9191_v22  ;;  %v9167_v62 = vmax.f32 %v9103_v12, %v9135_v16 }
 0x77e   : > { %v9138_v6 = vmul.f32 0.2, %v9106_v24  ;;  %v8828_v21 = vpop.f32.mrb[252].mxu1  ;;  %v9168_v57 = vmax.f32 %v9104_v43, %v9136_v31  ;;  %v8946_v43 = vpop.permute.xlu0 %8945 }
 0x77f   : > { %v9169_v1 = vmax.f32 %v9105_v37, %v9137_v53  ;;  %v8979_v3 = vmul.f32 %v13514_v32, %v8828_v21  ;;  %v8830_v9 = vpop.f32.mrb[253].mxu1 }
 0x780   : > { %v9170_v49 = vmax.f32 %v9106_v24, %v9138_v6  ;;  %v8980_v51 = vmul.f32 %v13514_v32, %v8830_v9  ;;  %v8832_v25 = vpop.f32.mrb[254].mxu1  ;;  %v8951_v24 = vpop.permute.xlu1 %8950 }
 0x781   : > { %v9193_v5 = vpack.c.bf16 %v9169_v1, %v9167_v62  ;;  %v9107_v35 = vadd.f32 %v9054_v34, %v8979_v3  ;;  %v8981_v15 = vmul.f32 %v13516_v27, %v8832_v25  ;;  %v8834_v47 = vpop.f32.mrb[255].mxu1 }
 0x782   : > { %v9108_v8 = vadd.f32 %v9054_v34, %v8980_v51  ;;  %v8982_v19 = vmul.f32 %v13516_v27, %v8834_v47  ;;  %v9194_v18 = vpack.c.bf16 %v9170_v49, %v9168_v57  ;;  %v9074_v25 = vpop.permute.xlu0 %9073 }
 0x783   : > { %v9139_v30 = vmul.f32 0.2, %v9107_v35  ;;  %v9109_v22 = vadd.f32 %v9059_v58, %v8981_v15 }
 0x784   : > { %v9140_v12 = vmul.f32 0.2, %v9108_v8  ;;  %v9110_v42 = vadd.f32 %v9059_v58, %v8982_v19  ;;  %9311 = vmatprep.subr.bf16.mxu1 %v9194_v18  ;;  %v9079_v47 = vpop.permute.xlu1 %9078 }
 0x785   : > { %v9141_v45 = vmul.f32 0.2, %v9109_v22  ;;  %9312 = vmatpush1.bf16.msra.mxu1 %v9193_v5  ;;  %v9171_v38 = vmax.f32 %v9107_v35, %v9139_v30 }
 0x786   : > { %v9142_v32 = vmul.f32 0.2, %v9110_v42  ;;  %v8838_v33 = vpop.f32.mrb[0].mxu1  ;;  %v9172_v53 = vmax.f32 %v9108_v8, %v9140_v12 }
 0x787   : > { %v9173_v16 = vmax.f32 %v9109_v22, %v9141_v45  ;;  %v8983_v37 = vmul.f32 %v8936_v46, %v8838_v33  ;;  %v8840_v31 = vpop.f32.mrb[1].mxu1 }
 0x788   : > { %v9174_v34 = vmax.f32 %v9110_v42, %v9142_v32  ;;  %v8984_v6 = vmul.f32 %v8936_v46, %v8840_v31  ;;  %v8842_v27 = vpop.f32.mrb[2].mxu1 }
 0x789   : > { %v9195_v21 = vpack.c.bf16 %v9173_v16, %v9171_v38  ;;  %v9111_v62 = vadd.f32 %v9064_v17, %v8983_v37  ;;  %v8985_v1 = vmul.f32 %v8941_v29, %v8842_v27  ;;  %v8844_v3 = vpop.f32.mrb[3].mxu1  ;;  %v8956_v16 = vpop.permute.xlu0 %8955 }
 0x78a   : > { %v9112_v58 = vadd.f32 %v9064_v17, %v8984_v6  ;;  %v8986_v9 = vmul.f32 %v8941_v29, %v8844_v3  ;;  %v9196_v57 = vpack.c.bf16 %v9174_v34, %v9172_v53  ;;  %v8961_v6 = vpop.permute.xlu1 %8960 }
 0x78b   : > { %v9143_v49 = vmul.f32 0.2, %v9111_v62  ;;  %v9113_v51 = vadd.f32 %v9069_v13, %v8985_v1 }
 0x78c   : > { %v9144_v5 = vmul.f32 0.2, %v9112_v58  ;;  %v9114_v35 = vadd.f32 %v9069_v13, %v8986_v9  ;;  %9313 = vmatprep.subr.bf16.mxu1 %v9196_v57 }
 0x78d   : > { %v9145_v15 = vmul.f32 0.2, %v9113_v51  ;;  %9314 = vmatpush1.bf16.msra.mxu1 %v9195_v21  ;;  %v9175_v46 = vmax.f32 %v9111_v62, %v9143_v49  ;;  %v9084_v49 = vpop.permute.xlu0 %9083 }
 0x78e   : > { %v9146_v8 = vmul.f32 0.2, %v9114_v35  ;;  %v8848_v19 = vpop.f32.mrb[4].mxu1  ;;  %v9176_v12 = vmax.f32 %v9112_v58, %v9144_v5 }
 0x78f   : > { %v9177_v18 = vmax.f32 %v9113_v51, %v9145_v15  ;;  %v8987_v30 = vmul.f32 %v8946_v43, %v8848_v19  ;;  %v8850_v22 = vpop.f32.mrb[5].mxu1 }
 0x790   : > { %v9178_v42 = vmax.f32 %v9114_v35, %v9146_v8  ;;  %v8988_v17 = vmul.f32 %v8946_v43, %v8850_v22  ;;  %v8852_v29 = vpop.f32.mrb[6].mxu1 }
 0x791   : > { %v9197_v45 = vpack.c.bf16 %v9177_v18, %v9175_v46  ;;  %v9115_v32 = vadd.f32 %v9074_v25, %v8987_v30  ;;  %v8989_v33 = vmul.f32 %v8951_v24, %v8852_v29  ;;  %v8854_v38 = vpop.f32.mrb[7].mxu1  ;;  %v9089_v46 = vpop.permute.xlu1 %9088 }
 0x792   : > { %v9116_v13 = vadd.f32 %v9074_v25, %v8988_v17  ;;  %v8990_v37 = vmul.f32 %v8951_v24, %v8854_v38  ;;  %v9198_v31 = vpack.c.bf16 %v9178_v42, %v9176_v12 }
 0x793   : > { %v9147_v53 = vmul.f32 0.2, %v9115_v32  ;;  %v9117_v34 = vadd.f32 %v9079_v47, %v8989_v33 }
 0x794   : > { %v9148_v27 = vmul.f32 0.2, %v9116_v13  ;;  %v9118_v21 = vadd.f32 %v9079_v47, %v8990_v37  ;;  %9315 = vmatprep.subr.bf16.mxu1 %v9198_v31  ;;  %v14107_v31 = vld [vmem:[#allocation81_spill] sm:$0xff] }
 0x795   : > { %v9149_v62 = vmul.f32 0.2, %v9117_v34  ;;  %9316 = vmatpush1.bf16.msra.mxu1 %v9197_v45  ;;  %v9179_v43 = vmax.f32 %v9115_v32, %v9147_v53  ;;  %v9289_v53 = vpop.permute.xlu0 %9288 }
 0x796   : > { %v9150_v1 = vmul.f32 0.2, %v9118_v21  ;;  %v8858_v3 = vpop.f32.mrb[8].mxu1  ;;  %v9180_v51 = vmax.f32 %v9116_v13, %v9148_v27 }
 0x797   : > { %v9181_v58 = vmax.f32 %v9117_v34, %v9149_v62  ;;  %v8991_v9 = vmul.f32 %v8956_v16, %v8858_v3  ;;  %v8860_v57 = vpop.f32.mrb[9].mxu1 }
 0x798   : > { %v9182_v5 = vmax.f32 %v9118_v21, %v9150_v1  ;;  %v8992_v25 = vmul.f32 %v8956_v16, %v8860_v57  ;;  %v8862_v24 = vpop.f32.mrb[10].mxu1 }
 0x799   : > { %v9199_v35 = vpack.c.bf16 %v9181_v58, %v9179_v43  ;;  %v9119_v15 = vadd.f32 %v9084_v49, %v8991_v9  ;;  %v8993_v8 = vmul.f32 %v8961_v6, %v8862_v24  ;;  %v8864_v19 = vpop.f32.mrb[11].mxu1 }
 0x79a   : > { %v9120_v47 = vadd.f32 %v9084_v49, %v8992_v25  ;;  %v8994_v18 = vmul.f32 %v8961_v6, %v8864_v19  ;;  %v9200_v30 = vpack.c.bf16 %v9182_v5, %v9180_v51 }
 0x79b   : > { %v9151_v22 = vmul.f32 0.2, %v9119_v15  ;;  %v9121_v12 = vadd.f32 %v9089_v46, %v8993_v8 }
 0x79c   : > { %v9152_v42 = vmul.f32 0.2, %v9120_v47  ;;  %v9122_v17 = vadd.f32 %v9089_v46, %v8994_v18  ;;  %9317 = vmatprep.subr.bf16.mxu1 %v9200_v30 }
 0x79d   : > { %v9153_v29 = vmul.f32 0.2, %v9121_v12  ;;  %9318 = vmatpush1.bf16.msra.mxu1 %v9199_v35  ;;  %v9183_v32 = vmax.f32 %v9119_v15, %v9151_v22 }
 0x79e   : > { %v9154_v45 = vmul.f32 0.2, %v9122_v17  ;;  %v9184_v38 = vmax.f32 %v9120_v47, %v9152_v42 }
 0x79f   : > { %v9185_v33 = vmax.f32 %v9121_v12, %v9153_v29 }
 0x7a0   : > { %v9186_v16 = vmax.f32 %v9122_v17, %v9154_v45 }
 0x7a1   : > { %v9201_v13 = vpack.c.bf16 %v9185_v33, %v9183_v32 }
 0x7a2   : > { %v9202_v37 = vpack.c.bf16 %v9186_v16, %v9184_v38 }
 0x7a4   : > { %9319 = vmatprep.subr.bf16.mxu1 %v9202_v37 }
 0x7a5   : > { %9320 = vmatpush1.bf16.msra.mxu1 %v9201_v13 }
 0x7a6   : > { %9321 = vmatprep.subr.bf16.mxu1 %v13244_v4  ;;  %v9970_v4 = vcombine.low %v13500_v2, %v13500_v2 }
 0x7a9   : > { %9322 = vmatpush1.bf16.msra.mxu1 %v13238_v39  ;;  %v9220_v39 = vld [vmem:[%s11146_s20 + $0x8] sm:$0xff] }
 0x7aa   : > { %9323 = vmatprep.subr.bf16.mxu1 %v13258_v61  ;;  %v14085_v61 = vld [vmem:[#allocation83_spill] sm:$0xff]  ;;  %v9972_v2 = vcombine.low %v9220_v39, %v9220_v39 }
 0x7ad   : > { %9324 = vmatpush1.bf16.msra.mxu1 %v13252_v52  ;;  %v9973_v52 = vcombine.high %v9220_v39, %v9220_v39 }
 0x7ae   : > { %9325 = vmatprep.subr.bf16.mxu1 %v13272_v56  ;;  %v14087_v56 = vld [vmem:[#allocation84_spill] sm:$0xff] }
 0x7b1   : > { %9326 = vmatpush1.bf16.msra.mxu1 %v13266_v55  ;;  %v14086_v55 = vld [vmem:[#allocation85_spill] sm:$0xff] }
 0x7b2   : > { %9327 = vmatprep.subr.bf16.mxu1 %v13286_v7  ;;  %v14089_v7 = vld [vmem:[#allocation86_spill] sm:$0xff] }
 0x7b5   : > { %9328 = vmatpush1.bf16.msra.mxu1 %v13280_v48  ;;  %v14088_v48 = vld [vmem:[#allocation87_spill] sm:$0xff] }
 0x7b6   : > { %9329 = vmatprep.subr.bf16.mxu1 %v13300_v10  ;;  %v14091_v10 = vld [vmem:[#allocation88_spill] sm:$0xff] }
 0x7b9   : > { %9330 = vmatpush1.bf16.msra.mxu1 %v13294_v60  ;;  %v14090_v60 = vld [vmem:[#allocation89_spill] sm:$0xff] }
 0x7ba   : > { %9331 = vmatprep.subr.bf16.mxu1 %v13314_v14  ;;  %v14093_v14 = vld [vmem:[#allocation52_spill] sm:$0xff] }
 0x7bd   : > { %9332 = vmatpush1.bf16.msra.mxu1 %v13308_v44  ;;  %v14092_v44 = vld [vmem:[#allocation57_spill] sm:$0xff] }
 0x7be   : > { %9333 = vmatprep.subr.bf16.mxu1 %v13328_v54  ;;  %v14095_v54 = vld [vmem:[#allocation64_spill] sm:$0xff] }
 0x7c1   : > { %9334 = vmatpush1.bf16.msra.mxu1 %v13322_v0  ;;  %v14094_v0 = vld [vmem:[#allocation68_spill] sm:$0xff] }
 0x7c2   : > { %9335 = vmatprep.subr.bf16.mxu1 %v13342_v36  ;;  %v14097_v36 = vld [vmem:[#allocation63_spill] sm:$0xff] }
 0x7c5   : > { %9336 = vmatpush1.bf16.msra.mxu1 %v13336_v63  ;;  %v14096_v63 = vld [vmem:[#allocation67_spill] sm:$0xff] }
 0x7c6   : > { %9346 = vmatprep.subr.bf16.mxu1 %v13356_v59  ;;  %v14099_v59 = vld [vmem:[#allocation72_spill] sm:$0xff] }
 0x7c8   : > { %9338 = vmatmul.mubr.bf16.vlgmr.msra.gmra.mrb[12].mxu1 %v9970_v4 }
 0x7c9   : > { %9347 = vmatpush1.bf16.msra.mxu1 %v13350_v41  ;;  %9378 = vmatprep.mubr.bf16.mxu1 %v9973_v52  ;;  %v14098_v41 = vld [vmem:[#allocation76_spill] sm:$0xff] }
 0x7ca   : > { %9348 = vmatprep.subr.bf16.mxu1 %v13370_v28  ;;  %v14101_v28 = vld [vmem:[#allocation71_spill] sm:$0xff] }
 0x7cd   : > { %9349 = vmatpush1.bf16.msra.mxu1 %v13364_v40  ;;  %v14100_v40 = vld [vmem:[#allocation75_spill] sm:$0xff] }
 0x7ce   : > { %9350 = vmatprep.subr.bf16.mxu1 %v13384_v50  ;;  %v14103_v50 = vld [vmem:[#allocation77_spill] sm:$0xff] }
 0x7d1   : > { %9351 = vmatpush1.bf16.msra.mxu1 %v13378_v26  ;;  %v14102_v26 = vld [vmem:[#allocation78_spill] sm:$0xff] }
 0x7d2   : > { %9352 = vmatprep.subr.bf16.mxu1 %v13398_v20  ;;  %v14105_v20 = vld [vmem:[#allocation79_spill] sm:$0xff] }
 0x7d5   : > { %9353 = vmatpush1.bf16.msra.mxu1 %v13392_v23  ;;  %v14104_v23 = vld [vmem:[#allocation80_spill] sm:$0xff] }
 0x7d6   : > { %9354 = vmatprep.subr.bf16.mxu1 %v13412_v11  ;;  %v14106_v11 = vld [vmem:[#allocation82_spill] sm:$0xff] }
 0x7d9   : > { %9355 = vmatpush1.bf16.msra.mxu1 %v14085_v61 }
 0x7da   : > { %9356 = vmatprep.subr.bf16.mxu1 %v14086_v55 }
 0x7dd   : > { %9357 = vmatpush1.bf16.msra.mxu1 %v14087_v56 }
 0x7de   : > { %9358 = vmatprep.subr.bf16.mxu1 %v14088_v48 }
 0x7e1   : > { %9359 = vmatpush1.bf16.msra.mxu1 %v14089_v7 }
 0x7e2   : > { %9360 = vmatprep.subr.bf16.mxu1 %v14090_v60 }
 0x7e5   : > { %9361 = vmatpush1.bf16.msra.mxu1 %v14091_v10 }
 0x7e6   : > { %9362 = vmatprep.subr.bf16.mxu1 %v14092_v44 }
 0x7e9   : > { %9363 = vmatpush1.bf16.msra.mxu1 %v14093_v14 }
 0x7ea   : > { %9364 = vmatprep.subr.bf16.mxu1 %v14094_v0 }
 0x7ed   : > { %9365 = vmatpush1.bf16.msra.mxu1 %v14095_v54 }
 0x7ee   : > { %9366 = vmatprep.subr.bf16.mxu1 %v14096_v63 }
 0x7f1   : > { %9367 = vmatpush1.bf16.msra.mxu1 %v14097_v36 }
 0x7f2   : > { %9368 = vmatprep.subr.bf16.mxu1 %v14098_v41 }
 0x7f5   : > { %9369 = vmatpush1.bf16.msra.mxu1 %v14099_v59 }
 0x7f6   : > { %9370 = vmatprep.subr.bf16.mxu1 %v14100_v40 }
 0x7f9   : > { %9371 = vmatpush1.bf16.msra.mxu1 %v14101_v28 }
 0x7fa   : > { %9372 = vmatprep.subr.bf16.mxu1 %v14102_v26 }
 0x7fd   : > { %9373 = vmatpush1.bf16.msra.mxu1 %v14103_v50 }
 0x7fe   : > { %9374 = vmatprep.subr.bf16.mxu1 %v14104_v23 }
 0x801   : > { %9375 = vmatpush1.bf16.msra.mxu1 %v14105_v20 }
 0x802   : > { %9376 = vmatprep.subr.bf16.mxu1 %v14106_v11 }
 0x805   : > { %9377 = vmatpush1.bf16.msra.mxu1 %v14107_v31 }
 0x808   : > { %9379 = vmatmul.mubr.bf16.vlgmr.msra.gmra.mrb[12].mxu1 %v9972_v2 }
 0x8db   : > { %v9380_v34 = vpop.f32.mrb[12].mxu1 }
 0x8dc   : > { %v10283_v6 = vadd.f32 %v9380_v34, %v9289_v53  ;;  %v9382_v27 = vpop.f32.mrb[13].mxu1 }
 0x8dd   : > { %v10284_v21 = vadd.f32 %v9382_v27, %v9289_v53  ;;  %v9384_v62 = vpop.f32.mrb[14].mxu1 }
 0x8de   : > { %9387 = vst [vmem:[%s1338_s1] sm:$0xff] %v10283_v6  ;;  %v9385_v1 = vpop.f32.mrb[15].mxu1 }
 0x8df   : > { %9388 = vst [vmem:[%s1338_s1 + $0x8] sm:$0xff] %v10284_v21 }
 0x8e0 PF: > { %s93_s7 = sadd.s32 1, %s10899_s7  }
 0x8e1   : > { %p90_p4 = scmp.ge.s32.totalorder %s93_s7, 4  }
 0x8e3   :  { %92 = sbr.rel (!%p90_p4) target bundleno = 80 (0x50), region = 270 }

</bundles_post_ra>
